<compile_context>
chip_gen: v7x
topology: tpu7x:2x2x1
jax: 0.10.0
libtpu: 0.0.40
codegen_flags: <defaults>
</compile_context>

<pallas_src>
import functools

import numpy as np

import jax
import jax.numpy as jnp
from jax.experimental import pallas as pl
from jax.experimental.pallas import tpu as pltpu


_NPAD = 128  # lane-dense width: Cout zero-padded to 128 lanes (sliced by caller)


# ---------------------------------------------------------------------------
# Fused per-layer kernel
# ---------------------------------------------------------------------------
def _dcn_fused_kernel(x_ref, idx_ref, pos_ref, w_off_ref, b_off_ref,
                      w_conv_ref, b_conv_ref, o_ref, regcols_ref, defcols_ref,
                      *, C, K, H, W):
    """One grid step = `tm` output rows of one deformable-conv layer.

    x_ref:      (P, 128) f32   whole NHWC-flat activation map (P = N*H*W rows)
    idx_ref:    (tm, K+1) i32  static im2col flat indices (-1 = zero pad) | n*H*W
    pos_ref:    (tm, 2K) f32   static base sampling positions [base_y | base_x]
    w_off_ref:  (K*C, 2K) bf16 offset-conv weights (columns: dy_0..dy_K, dx_0..dx_K)
    b_off_ref:  (1, 2K)  f32
    w_conv_ref: (K*C, 128) bf16 main conv weights, lanes zero-padded
    b_conv_ref: (1, 128) f32
    o_ref:      (tm, 128) f32  lane-dense output block
    regcols/defcols: (tm, K*C) f32 VMEM scratch for the gathered tap columns
    """
    tm = o_ref.shape[0]
    P = x_ref.shape[0]

    x = x_ref[:, :C].astype(jnp.bfloat16)                    # (P, C) resident
    p_iota = jax.lax.broadcasted_iota(jnp.int32, (tm, P), 1)

    reg_idx = idx_ref[:, :K]                                  # (tm, K) i32
    nbase = idx_ref[:, K:K + 1]                               # (tm, 1)  i32

    # ---- offset-predicting 3x3 conv: static one-hot gather (depth P matmuls)
    #      assembled into a (tm, K*C) tap matrix, then ONE depth-144 matmul.
    for k in range(K):
        sel = jnp.where(p_iota == reg_idx[:, k:k + 1], 1.0, 0.0)
        regcols_ref[:, k * C:(k + 1) * C] = jnp.dot(
            sel.astype(jnp.bfloat16), x, preferred_element_type=jnp.float32)
    offsets = (jnp.dot(regcols_ref[...].astype(jnp.bfloat16), w_off_ref[...],
                       preferred_element_type=jnp.float32)
               + b_off_ref[...])                              # (tm, 2K) f32
    dy = offsets[:, :K]
    dx = offsets[:, K:2 * K]

    # ---- sampling positions: p = p0 + pn + delta_p -------------------------
    py = pos_ref[:, :K] + dy
    px = pos_ref[:, K:2 * K] + dx
    y0f = jnp.floor(py)
    x0f = jnp.floor(px)
    lh = py - y0f
    lw = px - x0f
    y0 = y0f.astype(jnp.int32)
    x0 = x0f.astype(jnp.int32)
    y1 = y0 + 1
    x1 = x0 + 1

    def corner(yi, xi, wgt):
        # OOB mask folded into the small (tm, K) bilinear weight; index clipped.
        valid = (yi >= 0) & (yi < H) & (xi >= 0) & (xi < W)
        flat = nbase + jnp.clip(yi, 0, H - 1) * W + jnp.clip(xi, 0, W - 1)
        return flat, jnp.where(valid, wgt, 0.0)

    f00, w00 = corner(y0, x0, (1.0 - lh) * (1.0 - lw))
    f01, w01 = corner(y0, x1, (1.0 - lh) * lw)
    f10, w10 = corner(y1, x0, lh * (1.0 - lw))
    f11, w11 = corner(y1, x1, lh * lw)

    # ---- deformable sampling: weighted one-hot gather per tap (depth P) ----
    for k in range(K):
        s = (jnp.where(p_iota == f00[:, k:k + 1], w00[:, k:k + 1], 0.0)
             + jnp.where(p_iota == f01[:, k:k + 1], w01[:, k:k + 1], 0.0)
             + jnp.where(p_iota == f10[:, k:k + 1], w10[:, k:k + 1], 0.0)
             + jnp.where(p_iota == f11[:, k:k + 1], w11[:, k:k + 1], 0.0))
        defcols_ref[:, k * C:(k + 1) * C] = jnp.dot(
            s.astype(jnp.bfloat16), x, preferred_element_type=jnp.float32)

    # ---- single depth K*C=144 contraction + bias, lane-dense f32 store -----
    o_ref[...] = (jnp.dot(defcols_ref[...].astype(jnp.bfloat16), w_conv_ref[...],
                          preferred_element_type=jnp.float32)
                  + b_conv_ref[...])


# ---------------------------------------------------------------------------
# Static tables / weight prep / tiling
# ---------------------------------------------------------------------------
def _pick_tm(M, target_steps=8, cap=512):
    """Row tile: multiple of 8 dividing M, targeting >=8 grid steps (>=4 per
    v7x TensorCore).  `cap` is a pipelining knob, not a VMEM one."""
    assert M % 8 == 0, "N*H*W must be a multiple of 8"
    eff_target = min(target_steps, M // 8)
    best = 8
    for t in range(8, min(cap, M) + 1, 8):
        if M % t == 0 and M // t >= eff_target:
            best = t
    return best


def _static_tables(N, H, W, kh, kw, pad):
    """Per-output-row static data (trace-time numpy constants)."""
    K = kh * kw
    M = N * H * W
    ki = np.repeat(np.arange(kh), kw)                   # (K,)
    kj = np.tile(np.arange(kw), kh)                     # (K,)
    by = (np.arange(H)[:, None] - pad + ki[None, :]).astype(np.float32)  # (H, K)
    bx = (np.arange(W)[:, None] - pad + kj[None, :]).astype(np.float32)  # (W, K)
    base_y = np.broadcast_to(by[None, :, None, :], (N, H, W, K)).reshape(M, K)
    base_x = np.broadcast_to(bx[None, None, :, :], (N, H, W, K)).reshape(M, K)
    nbase = (np.broadcast_to(np.arange(N)[:, None, None], (N, H, W))
             .reshape(M, 1) * (H * W)).astype(np.int64)
    yi = base_y.astype(np.int32)
    xi = base_x.astype(np.int32)
    valid = (yi >= 0) & (yi < H) & (xi >= 0) & (xi < W)
    flat = nbase + yi * W + xi
    reg_idx = np.where(valid, flat, -1).astype(np.int32)
    idx_tab = np.concatenate([reg_idx, nbase.astype(np.int32)], axis=1)  # (M, K+1)
    pos_tab = np.concatenate([base_y, base_x], axis=1).astype(np.float32)  # (M, 2K)
    return jnp.asarray(idx_tab), jnp.asarray(pos_tab)


def _prep_weights(w_off, b_off, w_conv, b_conv, cin):
    two_k, _, kh, kw = w_off.shape
    K = kh * kw
    cout = w_conv.shape[0]
    assert cout <= _NPAD and 2 * K <= _NPAD
    # offset conv: (2K, Cin, kh, kw) -> (K*Cin, 2K); permute columns so the
    # first K outputs are dy_0..dy_{K-1} and the next K are dx_0..dx_{K-1}.
    # TODO(synk): mmcv's offset-channel interleaving may differ; equivalent here
    #             since the offset conv uses random weights.
    w_off_mat = jnp.transpose(w_off, (2, 3, 1, 0)).reshape(K * cin, two_k)
    perm = np.concatenate([np.arange(0, two_k, 2), np.arange(1, two_k, 2)])
    w_off_mat = w_off_mat[:, perm].astype(jnp.bfloat16)
    b_off_row = b_off[perm].reshape(1, two_k).astype(jnp.float32)
    # main conv: (Cout, Cin, kh, kw) -> (K*Cin, Cout) -> lane-pad to 128
    w_conv_mat = jnp.transpose(w_conv, (2, 3, 1, 0)).reshape(K * cin, cout)
    w_conv_pad = jnp.pad(w_conv_mat, ((0, 0), (0, _NPAD - cout))).astype(jnp.bfloat16)
    b_conv_pad = jnp.pad(b_conv.reshape(1, cout),
                         ((0, 0), (0, _NPAD - cout))).astype(jnp.float32)
    return w_off_mat, b_off_row, w_conv_pad, b_conv_pad, cout, K, kh, kw


# ---------------------------------------------------------------------------
# One fused deformable-conv layer (DeformConvPack semantics, stride=1, pad=1)
# ---------------------------------------------------------------------------
def deform_conv2d(x_flat_pad, params, *, N, cin, H, W, pad=1):
    """x_flat_pad: (N*H*W, 128) f32 NHWC-flat activations (lanes >= cin).
    Returns ((N*H*W, 128) f32 lane-padded output, cout)."""
    w_off, b_off, w_conv, b_conv = params
    (w_off_p, b_off_p, w_conv_p, b_conv_p,
     cout, K, kh, kw) = _prep_weights(w_off, b_off, w_conv, b_conv, cin)

    M = N * H * W
    assert x_flat_pad.shape == (M, _NPAD)
    idx_tab, pos_tab = _static_tables(N, H, W, kh, kw, pad)
    tm = _pick_tm(M)

    kernel = functools.partial(_dcn_fused_kernel, C=cin, K=K, H=H, W=W)
    out = pl.pallas_call(
        kernel,
        out_shape=jax.ShapeDtypeStruct((M, _NPAD), jnp.float32),
        grid=(M // tm,),
        in_specs=[
            pl.BlockSpec((M, _NPAD), lambda i: (0, 0)),        # x: whole map, VMEM-resident
            pl.BlockSpec((tm, K + 1), lambda i: (i, 0)),       # static gather idx + batch base
            pl.BlockSpec((tm, 2 * K), lambda i: (i, 0)),       # static base positions
            pl.BlockSpec((K * cin, 2 * K), lambda i: (0, 0)),  # offset-conv weights
            pl.BlockSpec((1, 2 * K), lambda i: (0, 0)),        # offset-conv bias
            pl.BlockSpec((K * cin, _NPAD), lambda i: (0, 0)),  # conv weights (lane-padded)
            pl.BlockSpec((1, _NPAD), lambda i: (0, 0)),        # conv bias
        ],
        out_specs=pl.BlockSpec((tm, _NPAD), lambda i: (i, 0)),
        scratch_shapes=[pltpu.VMEM((tm, K * cin), jnp.float32),
                        pltpu.VMEM((tm, K * cin), jnp.float32)],
        compiler_params=pltpu.CompilerParams(dimension_semantics=("parallel",)),
    )(x_flat_pad, idx_tab, pos_tab, w_off_p, b_off_p, w_conv_p, b_conv_p)
    return out, cout


# ---------------------------------------------------------------------------
# Net.forward
# ---------------------------------------------------------------------------
@jax.jit
def net_forward(x, params1, params2):
    """Returns (module_output, aux_deconv2_output).

    The PyTorch module executes deconv2 and discards its result; we return it as
    an aux output so it is actually executed (not DCE'd), while the module's
    return value is the deconv1 output.  Activations stay NHWC-flat (lane-padded)
    between the two layers -> no inter-layer relayout.
    """
    N, C, H, W = x.shape
    xf = jnp.transpose(x, (0, 2, 3, 1)).reshape(N * H * W, C)
    xf = jnp.pad(xf, ((0, 0), (0, _NPAD - C))).astype(jnp.float32)

    y1_pad, c1 = deform_conv2d(xf, params1, N=N, cin=C, H=H, W=W)     # deconv1
    y2_pad, c2 = deform_conv2d(y1_pad, params2, N=N, cin=c1, H=H, W=W)  # deconv2 ('HW')

    y1 = y1_pad[:, :c1].reshape(N, H, W, c1).transpose(0, 3, 1, 2)    # NCHW module output
    y2 = y2_pad[:, :c2].reshape(N, H, W, c2).transpose(0, 3, 1, 2)
    return y1, y2


# ---------------------------------------------------------------------------
# Parameter init + driver
# ---------------------------------------------------------------------------
def init_deform_layer(key, cin, cout, k=3):
    K = k * k
    k1, k2, k3, k4 = jax.random.split(key, 4)
    # offset-predicting conv: small random values so the bilinear-sampling path
    # is actually exercised (mmcv zero-init would reduce it to a plain conv).
    w_off = jax.random.normal(k1, (2 * K, cin, k, k), jnp.float32) * 0.05
    b_off = jax.random.normal(k2, (2 * K,), jnp.float32) * 0.05
    # main deformable conv weights: (Cout, Cin, k, k)
    w_conv = jax.random.normal(k3, (cout, cin, k, k), jnp.float32) / jnp.sqrt(cin * K)
    b_conv = jax.random.normal(k4, (cout,), jnp.float32) * 0.05
    return w_off, b_off, w_conv, b_conv


if __name__ == "__main__":
    key = jax.random.PRNGKey(0)
    kx, kl1, kl2 = jax.random.split(key, 3)

    # small shapes consistent with the module (in_channels must be 16)
    N, Cin, H, W = 2, 16, 8, 8
    x = jax.random.normal(kx, (N, Cin, H, W), jnp.float32)

    params1 = init_deform_layer(kl1, Cin, 16)
    params2 = init_deform_layer(kl2, 16, 16)

    y, y2 = net_forward(x, params1, params2)
    jax.block_until_ready((y, y2))
    assert y.shape == (N, 16, H, W) and y.dtype == jnp.float32
    assert y2.shape == (N, 16, H, W)
    print("KERNEL_OK")
</pallas_src>

<mosaic_0001>
module attributes {stable_mosaic.version = 11 : i64} {
  func.func @_dcn_fused_kernel(%arg0: i32, %arg1: memref<128x128xf32, #tpu.memory_space<vmem>>, %arg2: memref<16x10xi32, #tpu.memory_space<vmem>>, %arg3: memref<16x18xf32, #tpu.memory_space<vmem>>, %arg4: memref<144x18xbf16, #tpu.memory_space<vmem>>, %arg5: memref<1x18xf32, #tpu.memory_space<vmem>>, %arg6: memref<144x128xbf16, #tpu.memory_space<vmem>>, %arg7: memref<1x128xf32, #tpu.memory_space<vmem>>, %arg8: memref<16x128xf32, #tpu.memory_space<vmem>>, %arg9: memref<16x144xf32, #tpu.memory_space<vmem>>, %arg10: memref<16x144xf32, #tpu.memory_space<vmem>>) attributes {dimension_semantics = [#tpu.dimension_semantics<parallel>], iteration_bounds = array<i64: 8>, scalar_prefetch = 0 : i64, scratch_operands = 2 : i64, tpu.core_type = #tpu.core_type<tc>, window_params = [{pipeline_mode = #tpu.pipeline_mode<synchronous>, transform_indices = @transform_0, window_bounds = array<i64: 128, 128>}, {transform_indices = @transform_1, window_bounds = array<i64: 16, 10>}, {transform_indices = @transform_2, window_bounds = array<i64: 16, 18>}, {pipeline_mode = #tpu.pipeline_mode<synchronous>, transform_indices = @transform_3, window_bounds = array<i64: 144, 18>}, {pipeline_mode = #tpu.pipeline_mode<synchronous>, transform_indices = @transform_4, window_bounds = array<i64: 1, 18>}, {pipeline_mode = #tpu.pipeline_mode<synchronous>, transform_indices = @transform_5, window_bounds = array<i64: 144, 128>}, {pipeline_mode = #tpu.pipeline_mode<synchronous>, transform_indices = @transform_6, window_bounds = array<i64: 1, 128>}, {transform_indices = @transform_7, window_bounds = array<i64: 16, 128>}]} {
    %c0 = arith.constant 0 : index
    %c0_0 = arith.constant 0 : index
    %0 = vector.load %arg1[%c0, %c0_0] : memref<128x128xf32, #tpu.memory_space<vmem>>, vector<128x16xf32>
    %1 = arith.truncf %0 : vector<128x16xf32> to vector<128x16xbf16>
    %2 = tpu.iota {dimensions = array<i32: 1>} : vector<16x128xi32>
    %c0_1 = arith.constant 0 : index
    %c0_2 = arith.constant 0 : index
    %3 = vector.load %arg2[%c0_1, %c0_2] : memref<16x10xi32, #tpu.memory_space<vmem>>, vector<16x9xi32>
    %c0_3 = arith.constant 0 : index
    %c9 = arith.constant 9 : index
    %4 = vector.load %arg2[%c0_3, %c9] : memref<16x10xi32, #tpu.memory_space<vmem>>, vector<16x1xi32>
    %5 = vector.extract_strided_slice %3 {offsets = [0, 0], sizes = [16, 1], strides = [1, 1]} : vector<16x9xi32> to vector<16x1xi32>
    %6 = vector.broadcast %5 : vector<16x1xi32> to vector<16x128xi32>
    %7 = arith.cmpi eq, %2, %6 : vector<16x128xi32>
    %cst = arith.constant 1.000000e+00 : f32
    %cst_4 = arith.constant 0.000000e+00 : f32
    %8 = vector.broadcast %cst : f32 to vector<16x128xf32>
    %9 = vector.broadcast %cst_4 : f32 to vector<16x128xf32>
    %10 = arith.select %7, %8, %9 : vector<16x128xi1>, vector<16x128xf32>
    %11 = arith.truncf %10 : vector<16x128xf32> to vector<16x128xbf16>
    %cst_5 = arith.constant dense<0.000000e+00> : vector<16x16xf32>
    %12 = tpu.matmul %11, %1, %cst_5 {dimension_numbers = #tpu.dot_dimension_numbers<[1], [0], [0], [1], [0, 0, 1, 1], [], []>} : vector<16x128xbf16>, vector<128x16xbf16>, vector<16x16xf32> -> vector<16x16xf32>
    %c0_6 = arith.constant 0 : index
    %c0_7 = arith.constant 0 : index
    %13 = vector.load %arg9[%c0_6, %c0_7] : memref<16x144xf32, #tpu.memory_space<vmem>>, vector<16x16xf32>
    tpu.vector_store %arg9[%c0_6, %c0_7], %12 {strides = array<i32>} : memref<16x144xf32, #tpu.memory_space<vmem>>, vector<16x16xf32>,
    %14 = vector.extract_strided_slice %3 {offsets = [0, 1], sizes = [16, 1], strides = [1, 1]} : vector<16x9xi32> to vector<16x1xi32>
    %15 = vector.broadcast %14 : vector<16x1xi32> to vector<16x128xi32>
    %16 = arith.cmpi eq, %2, %15 : vector<16x128xi32>
    %cst_8 = arith.constant 1.000000e+00 : f32
    %cst_9 = arith.constant 0.000000e+00 : f32
    %17 = vector.broadcast %cst_8 : f32 to vector<16x128xf32>
    %18 = vector.broadcast %cst_9 : f32 to vector<16x128xf32>
    %19 = arith.select %16, %17, %18 : vector<16x128xi1>, vector<16x128xf32>
    %20 = arith.truncf %19 : vector<16x128xf32> to vector<16x128xbf16>
    %cst_10 = arith.constant dense<0.000000e+00> : vector<16x16xf32>
    %21 = tpu.matmul %20, %1, %cst_10 {dimension_numbers = #tpu.dot_dimension_numbers<[1], [0], [0], [1], [0, 0, 1, 1], [], []>} : vector<16x128xbf16>, vector<128x16xbf16>, vector<16x16xf32> -> vector<16x16xf32>
    %c0_11 = arith.constant 0 : index
    %c16 = arith.constant 16 : index
    %22 = vector.load %arg9[%c0_11, %c16] : memref<16x144xf32, #tpu.memory_space<vmem>>, vector<16x16xf32>
    tpu.vector_store %arg9[%c0_11, %c16], %21 {strides = array<i32>} : memref<16x144xf32, #tpu.memory_space<vmem>>, vector<16x16xf32>,
    %23 = vector.extract_strided_slice %3 {offsets = [0, 2], sizes = [16, 1], strides = [1, 1]} : vector<16x9xi32> to vector<16x1xi32>
    %24 = vector.broadcast %23 : vector<16x1xi32> to vector<16x128xi32>
    %25 = arith.cmpi eq, %2, %24 : vector<16x128xi32>
    %cst_12 = arith.constant 1.000000e+00 : f32
    %cst_13 = arith.constant 0.000000e+00 : f32
    %26 = vector.broadcast %cst_12 : f32 to vector<16x128xf32>
    %27 = vector.broadcast %cst_13 : f32 to vector<16x128xf32>
    %28 = arith.select %25, %26, %27 : vector<16x128xi1>, vector<16x128xf32>
    %29 = arith.truncf %28 : vector<16x128xf32> to vector<16x128xbf16>
    %cst_14 = arith.constant dense<0.000000e+00> : vector<16x16xf32>
    %30 = tpu.matmul %29, %1, %cst_14 {dimension_numbers = #tpu.dot_dimension_numbers<[1], [0], [0], [1], [0, 0, 1, 1], [], []>} : vector<16x128xbf16>, vector<128x16xbf16>, vector<16x16xf32> -> vector<16x16xf32>
    %c0_15 = arith.constant 0 : index
    %c32 = arith.constant 32 : index
    %31 = vector.load %arg9[%c0_15, %c32] : memref<16x144xf32, #tpu.memory_space<vmem>>, vector<16x16xf32>
    tpu.vector_store %arg9[%c0_15, %c32], %30 {strides = array<i32>} : memref<16x144xf32, #tpu.memory_space<vmem>>, vector<16x16xf32>,
    %32 = vector.extract_strided_slice %3 {offsets = [0, 3], sizes = [16, 1], strides = [1, 1]} : vector<16x9xi32> to vector<16x1xi32>
    %33 = vector.broadcast %32 : vector<16x1xi32> to vector<16x128xi32>
    %34 = arith.cmpi eq, %2, %33 : vector<16x128xi32>
    %cst_16 = arith.constant 1.000000e+00 : f32
    %cst_17 = arith.constant 0.000000e+00 : f32
    %35 = vector.broadcast %cst_16 : f32 to vector<16x128xf32>
    %36 = vector.broadcast %cst_17 : f32 to vector<16x128xf32>
    %37 = arith.select %34, %35, %36 : vector<16x128xi1>, vector<16x128xf32>
    %38 = arith.truncf %37 : vector<16x128xf32> to vector<16x128xbf16>
    %cst_18 = arith.constant dense<0.000000e+00> : vector<16x16xf32>
    %39 = tpu.matmul %38, %1, %cst_18 {dimension_numbers = #tpu.dot_dimension_numbers<[1], [0], [0], [1], [0, 0, 1, 1], [], []>} : vector<16x128xbf16>, vector<128x16xbf16>, vector<16x16xf32> -> vector<16x16xf32>
    %c0_19 = arith.constant 0 : index
    %c48 = arith.constant 48 : index
    %40 = vector.load %arg9[%c0_19, %c48] : memref<16x144xf32, #tpu.memory_space<vmem>>, vector<16x16xf32>
    tpu.vector_store %arg9[%c0_19, %c48], %39 {strides = array<i32>} : memref<16x144xf32, #tpu.memory_space<vmem>>, vector<16x16xf32>,
    %41 = vector.extract_strided_slice %3 {offsets = [0, 4], sizes = [16, 1], strides = [1, 1]} : vector<16x9xi32> to vector<16x1xi32>
    %42 = vector.broadcast %41 : vector<16x1xi32> to vector<16x128xi32>
    %43 = arith.cmpi eq, %2, %42 : vector<16x128xi32>
    %cst_20 = arith.constant 1.000000e+00 : f32
    %cst_21 = arith.constant 0.000000e+00 : f32
    %44 = vector.broadcast %cst_20 : f32 to vector<16x128xf32>
    %45 = vector.broadcast %cst_21 : f32 to vector<16x128xf32>
    %46 = arith.select %43, %44, %45 : vector<16x128xi1>, vector<16x128xf32>
    %47 = arith.truncf %46 : vector<16x128xf32> to vector<16x128xbf16>
    %cst_22 = arith.constant dense<0.000000e+00> : vector<16x16xf32>
    %48 = tpu.matmul %47, %1, %cst_22 {dimension_numbers = #tpu.dot_dimension_numbers<[1], [0], [0], [1], [0, 0, 1, 1], [], []>} : vector<16x128xbf16>, vector<128x16xbf16>, vector<16x16xf32> -> vector<16x16xf32>
    %c0_23 = arith.constant 0 : index
    %c64 = arith.constant 64 : index
    %49 = vector.load %arg9[%c0_23, %c64] : memref<16x144xf32, #tpu.memory_space<vmem>>, vector<16x16xf32>
    tpu.vector_store %arg9[%c0_23, %c64], %48 {strides = array<i32>} : memref<16x144xf32, #tpu.memory_space<vmem>>, vector<16x16xf32>,
    %50 = vector.extract_strided_slice %3 {offsets = [0, 5], sizes = [16, 1], strides = [1, 1]} : vector<16x9xi32> to vector<16x1xi32>
    %51 = vector.broadcast %50 : vector<16x1xi32> to vector<16x128xi32>
    %52 = arith.cmpi eq, %2, %51 : vector<16x128xi32>
    %cst_24 = arith.constant 1.000000e+00 : f32
    %cst_25 = arith.constant 0.000000e+00 : f32
    %53 = vector.broadcast %cst_24 : f32 to vector<16x128xf32>
    %54 = vector.broadcast %cst_25 : f32 to vector<16x128xf32>
    %55 = arith.select %52, %53, %54 : vector<16x128xi1>, vector<16x128xf32>
    %56 = arith.truncf %55 : vector<16x128xf32> to vector<16x128xbf16>
    %cst_26 = arith.constant dense<0.000000e+00> : vector<16x16xf32>
    %57 = tpu.matmul %56, %1, %cst_26 {dimension_numbers = #tpu.dot_dimension_numbers<[1], [0], [0], [1], [0, 0, 1, 1], [], []>} : vector<16x128xbf16>, vector<128x16xbf16>, vector<16x16xf32> -> vector<16x16xf32>
    %c0_27 = arith.constant 0 : index
    %c80 = arith.constant 80 : index
    %58 = vector.load %arg9[%c0_27, %c80] : memref<16x144xf32, #tpu.memory_space<vmem>>, vector<16x16xf32>
    tpu.vector_store %arg9[%c0_27, %c80], %57 {strides = array<i32>} : memref<16x144xf32, #tpu.memory_space<vmem>>, vector<16x16xf32>,
    %59 = vector.extract_strided_slice %3 {offsets = [0, 6], sizes = [16, 1], strides = [1, 1]} : vector<16x9xi32> to vector<16x1xi32>
    %60 = vector.broadcast %59 : vector<16x1xi32> to vector<16x128xi32>
    %61 = arith.cmpi eq, %2, %60 : vector<16x128xi32>
    %cst_28 = arith.constant 1.000000e+00 : f32
    %cst_29 = arith.constant 0.000000e+00 : f32
    %62 = vector.broadcast %cst_28 : f32 to vector<16x128xf32>
    %63 = vector.broadcast %cst_29 : f32 to vector<16x128xf32>
    %64 = arith.select %61, %62, %63 : vector<16x128xi1>, vector<16x128xf32>
    %65 = arith.truncf %64 : vector<16x128xf32> to vector<16x128xbf16>
    %cst_30 = arith.constant dense<0.000000e+00> : vector<16x16xf32>
    %66 = tpu.matmul %65, %1, %cst_30 {dimension_numbers = #tpu.dot_dimension_numbers<[1], [0], [0], [1], [0, 0, 1, 1], [], []>} : vector<16x128xbf16>, vector<128x16xbf16>, vector<16x16xf32> -> vector<16x16xf32>
    %c0_31 = arith.constant 0 : index
    %c96 = arith.constant 96 : index
    %67 = vector.load %arg9[%c0_31, %c96] : memref<16x144xf32, #tpu.memory_space<vmem>>, vector<16x16xf32>
    tpu.vector_store %arg9[%c0_31, %c96], %66 {strides = array<i32>} : memref<16x144xf32, #tpu.memory_space<vmem>>, vector<16x16xf32>,
    %68 = vector.extract_strided_slice %3 {offsets = [0, 7], sizes = [16, 1], strides = [1, 1]} : vector<16x9xi32> to vector<16x1xi32>
    %69 = vector.broadcast %68 : vector<16x1xi32> to vector<16x128xi32>
    %70 = arith.cmpi eq, %2, %69 : vector<16x128xi32>
    %cst_32 = arith.constant 1.000000e+00 : f32
    %cst_33 = arith.constant 0.000000e+00 : f32
    %71 = vector.broadcast %cst_32 : f32 to vector<16x128xf32>
    %72 = vector.broadcast %cst_33 : f32 to vector<16x128xf32>
    %73 = arith.select %70, %71, %72 : vector<16x128xi1>, vector<16x128xf32>
    %74 = arith.truncf %73 : vector<16x128xf32> to vector<16x128xbf16>
    %cst_34 = arith.constant dense<0.000000e+00> : vector<16x16xf32>
    %75 = tpu.matmul %74, %1, %cst_34 {dimension_numbers = #tpu.dot_dimension_numbers<[1], [0], [0], [1], [0, 0, 1, 1], [], []>} : vector<16x128xbf16>, vector<128x16xbf16>, vector<16x16xf32> -> vector<16x16xf32>
    %c0_35 = arith.constant 0 : index
    %c112 = arith.constant 112 : index
    %76 = vector.load %arg9[%c0_35, %c112] : memref<16x144xf32, #tpu.memory_space<vmem>>, vector<16x16xf32>
    tpu.vector_store %arg9[%c0_35, %c112], %75 {strides = array<i32>} : memref<16x144xf32, #tpu.memory_space<vmem>>, vector<16x16xf32>,
    %77 = vector.extract_strided_slice %3 {offsets = [0, 8], sizes = [16, 1], strides = [1, 1]} : vector<16x9xi32> to vector<16x1xi32>
    %78 = vector.broadcast %77 : vector<16x1xi32> to vector<16x128xi32>
    %79 = arith.cmpi eq, %2, %78 : vector<16x128xi32>
    %cst_36 = arith.constant 1.000000e+00 : f32
    %cst_37 = arith.constant 0.000000e+00 : f32
    %80 = vector.broadcast %cst_36 : f32 to vector<16x128xf32>
    %81 = vector.broadcast %cst_37 : f32 to vector<16x128xf32>
    %82 = arith.select %79, %80, %81 : vector<16x128xi1>, vector<16x128xf32>
    %83 = arith.truncf %82 : vector<16x128xf32> to vector<16x128xbf16>
    %cst_38 = arith.constant dense<0.000000e+00> : vector<16x16xf32>
    %84 = tpu.matmul %83, %1, %cst_38 {dimension_numbers = #tpu.dot_dimension_numbers<[1], [0], [0], [1], [0, 0, 1, 1], [], []>} : vector<16x128xbf16>, vector<128x16xbf16>, vector<16x16xf32> -> vector<16x16xf32>
    %c0_39 = arith.constant 0 : index
    %c128 = arith.constant 128 : index
    %85 = vector.load %arg9[%c0_39, %c128] : memref<16x144xf32, #tpu.memory_space<vmem>>, vector<16x16xf32>
    tpu.vector_store %arg9[%c0_39, %c128], %84 {strides = array<i32>} : memref<16x144xf32, #tpu.memory_space<vmem>>, vector<16x16xf32>,
    %c0_40 = arith.constant 0 : index
    %c0_41 = arith.constant 0 : index
    %86 = vector.load %arg9[%c0_40, %c0_41] : memref<16x144xf32, #tpu.memory_space<vmem>>, vector<16x144xf32>
    %87 = arith.truncf %86 : vector<16x144xf32> to vector<16x144xbf16>
    %c0_42 = arith.constant 0 : index
    %c0_43 = arith.constant 0 : index
    %88 = vector.load %arg4[%c0_42, %c0_43] : memref<144x18xbf16, #tpu.memory_space<vmem>>, vector<144x18xbf16>
    %cst_44 = arith.constant dense<0.000000e+00> : vector<16x18xf32>
    %89 = tpu.matmul %87, %88, %cst_44 {dimension_numbers = #tpu.dot_dimension_numbers<[1], [0], [0], [1], [0, 0, 1, 1], [], []>} : vector<16x144xbf16>, vector<144x18xbf16>, vector<16x18xf32> -> vector<16x18xf32>
    %c0_45 = arith.constant 0 : index
    %c0_46 = arith.constant 0 : index
    %90 = vector.load %arg5[%c0_45, %c0_46] : memref<1x18xf32, #tpu.memory_space<vmem>>, vector<1x18xf32>
    %91 = vector.broadcast %90 : vector<1x18xf32> to vector<16x18xf32>
    %92 = arith.addf %89, %91 : vector<16x18xf32>
    %93 = vector.extract_strided_slice %92 {offsets = [0, 0], sizes = [16, 9], strides = [1, 1]} : vector<16x18xf32> to vector<16x9xf32>
    %94 = vector.extract_strided_slice %92 {offsets = [0, 9], sizes = [16, 9], strides = [1, 1]} : vector<16x18xf32> to vector<16x9xf32>
    %c0_47 = arith.constant 0 : index
    %c0_48 = arith.constant 0 : index
    %95 = vector.load %arg3[%c0_47, %c0_48] : memref<16x18xf32, #tpu.memory_space<vmem>>, vector<16x9xf32>
    %96 = arith.addf %95, %93 : vector<16x9xf32>
    %c0_49 = arith.constant 0 : index
    %c9_50 = arith.constant 9 : index
    %97 = vector.load %arg3[%c0_49, %c9_50] : memref<16x18xf32, #tpu.memory_space<vmem>>, vector<16x9xf32>
    %98 = arith.addf %97, %94 : vector<16x9xf32>
    %99 = math.floor %96 : vector<16x9xf32>
    %100 = math.floor %98 : vector<16x9xf32>
    %101 = arith.subf %96, %99 : vector<16x9xf32>
    %102 = arith.subf %98, %100 : vector<16x9xf32>
    %103 = arith.fptosi %99 : vector<16x9xf32> to vector<16x9xi32>
    %104 = arith.fptosi %100 : vector<16x9xf32> to vector<16x9xi32>
    %c1_i32 = arith.constant 1 : i32
    %105 = vector.broadcast %c1_i32 : i32 to vector<16x9xi32>
    %106 = arith.addi %103, %105 : vector<16x9xi32>
    %c1_i32_51 = arith.constant 1 : i32
    %107 = vector.broadcast %c1_i32_51 : i32 to vector<16x9xi32>
    %108 = arith.addi %104, %107 : vector<16x9xi32>
    %cst_52 = arith.constant 1.000000e+00 : f32
    %109 = vector.broadcast %cst_52 : f32 to vector<16x9xf32>
    %110 = arith.subf %109, %101 : vector<16x9xf32>
    %cst_53 = arith.constant 1.000000e+00 : f32
    %111 = vector.broadcast %cst_53 : f32 to vector<16x9xf32>
    %112 = arith.subf %111, %102 : vector<16x9xf32>
    %113 = arith.mulf %110, %112 : vector<16x9xf32>
    %c0_i32 = arith.constant 0 : i32
    %114 = vector.broadcast %c0_i32 : i32 to vector<16x9xi32>
    %115 = arith.cmpi sge, %103, %114 : vector<16x9xi32>
    %c8_i32 = arith.constant 8 : i32
    %116 = vector.broadcast %c8_i32 : i32 to vector<16x9xi32>
    %117 = arith.cmpi slt, %103, %116 : vector<16x9xi32>
    %118 = arith.andi %115, %117 : vector<16x9xi1>
    %c0_i32_54 = arith.constant 0 : i32
    %119 = vector.broadcast %c0_i32_54 : i32 to vector<16x9xi32>
    %120 = arith.cmpi sge, %104, %119 : vector<16x9xi32>
    %121 = arith.andi %118, %120 : vector<16x9xi1>
    %c8_i32_55 = arith.constant 8 : i32
    %122 = vector.broadcast %c8_i32_55 : i32 to vector<16x9xi32>
    %123 = arith.cmpi slt, %104, %122 : vector<16x9xi32>
    %124 = arith.andi %121, %123 : vector<16x9xi1>
    %c0_i32_56 = arith.constant 0 : i32
    %c7_i32 = arith.constant 7 : i32
    %125 = vector.broadcast %c0_i32_56 : i32 to vector<16x9xi32>
    %126 = arith.maxsi %125, %103 : vector<16x9xi32>
    %127 = vector.broadcast %c7_i32 : i32 to vector<16x9xi32>
    %128 = arith.minsi %127, %126 : vector<16x9xi32>
    %c8_i32_57 = arith.constant 8 : i32
    %129 = vector.broadcast %c8_i32_57 : i32 to vector<16x9xi32>
    %130 = arith.muli %128, %129 : vector<16x9xi32>
    %131 = vector.broadcast %4 : vector<16x1xi32> to vector<16x9xi32>
    %132 = arith.addi %131, %130 : vector<16x9xi32>
    %c0_i32_58 = arith.constant 0 : i32
    %c7_i32_59 = arith.constant 7 : i32
    %133 = vector.broadcast %c0_i32_58 : i32 to vector<16x9xi32>
    %134 = arith.maxsi %133, %104 : vector<16x9xi32>
    %135 = vector.broadcast %c7_i32_59 : i32 to vector<16x9xi32>
    %136 = arith.minsi %135, %134 : vector<16x9xi32>
    %137 = arith.addi %132, %136 : vector<16x9xi32>
    %cst_60 = arith.constant 0.000000e+00 : f32
    %138 = vector.broadcast %cst_60 : f32 to vector<16x9xf32>
    %139 = arith.select %124, %113, %138 : vector<16x9xi1>, vector<16x9xf32>
    %cst_61 = arith.constant 1.000000e+00 : f32
    %140 = vector.broadcast %cst_61 : f32 to vector<16x9xf32>
    %141 = arith.subf %140, %101 : vector<16x9xf32>
    %142 = arith.mulf %141, %102 : vector<16x9xf32>
    %c0_i32_62 = arith.constant 0 : i32
    %143 = vector.broadcast %c0_i32_62 : i32 to vector<16x9xi32>
    %144 = arith.cmpi sge, %103, %143 : vector<16x9xi32>
    %c8_i32_63 = arith.constant 8 : i32
    %145 = vector.broadcast %c8_i32_63 : i32 to vector<16x9xi32>
    %146 = arith.cmpi slt, %103, %145 : vector<16x9xi32>
    %147 = arith.andi %144, %146 : vector<16x9xi1>
    %c0_i32_64 = arith.constant 0 : i32
    %148 = vector.broadcast %c0_i32_64 : i32 to vector<16x9xi32>
    %149 = arith.cmpi sge, %108, %148 : vector<16x9xi32>
    %150 = arith.andi %147, %149 : vector<16x9xi1>
    %c8_i32_65 = arith.constant 8 : i32
    %151 = vector.broadcast %c8_i32_65 : i32 to vector<16x9xi32>
    %152 = arith.cmpi slt, %108, %151 : vector<16x9xi32>
    %153 = arith.andi %150, %152 : vector<16x9xi1>
    %c0_i32_66 = arith.constant 0 : i32
    %c7_i32_67 = arith.constant 7 : i32
    %154 = vector.broadcast %c0_i32_66 : i32 to vector<16x9xi32>
    %155 = arith.maxsi %154, %103 : vector<16x9xi32>
    %156 = vector.broadcast %c7_i32_67 : i32 to vector<16x9xi32>
    %157 = arith.minsi %156, %155 : vector<16x9xi32>
    %c8_i32_68 = arith.constant 8 : i32
    %158 = vector.broadcast %c8_i32_68 : i32 to vector<16x9xi32>
    %159 = arith.muli %157, %158 : vector<16x9xi32>
    %160 = vector.broadcast %4 : vector<16x1xi32> to vector<16x9xi32>
    %161 = arith.addi %160, %159 : vector<16x9xi32>
    %c0_i32_69 = arith.constant 0 : i32
    %c7_i32_70 = arith.constant 7 : i32
    %162 = vector.broadcast %c0_i32_69 : i32 to vector<16x9xi32>
    %163 = arith.maxsi %162, %108 : vector<16x9xi32>
    %164 = vector.broadcast %c7_i32_70 : i32 to vector<16x9xi32>
    %165 = arith.minsi %164, %163 : vector<16x9xi32>
    %166 = arith.addi %161, %165 : vector<16x9xi32>
    %cst_71 = arith.constant 0.000000e+00 : f32
    %167 = vector.broadcast %cst_71 : f32 to vector<16x9xf32>
    %168 = arith.select %153, %142, %167 : vector<16x9xi1>, vector<16x9xf32>
    %cst_72 = arith.constant 1.000000e+00 : f32
    %169 = vector.broadcast %cst_72 : f32 to vector<16x9xf32>
    %170 = arith.subf %169, %102 : vector<16x9xf32>
    %171 = arith.mulf %101, %170 : vector<16x9xf32>
    %c0_i32_73 = arith.constant 0 : i32
    %172 = vector.broadcast %c0_i32_73 : i32 to vector<16x9xi32>
    %173 = arith.cmpi sge, %106, %172 : vector<16x9xi32>
    %c8_i32_74 = arith.constant 8 : i32
    %174 = vector.broadcast %c8_i32_74 : i32 to vector<16x9xi32>
    %175 = arith.cmpi slt, %106, %174 : vector<16x9xi32>
    %176 = arith.andi %173, %175 : vector<16x9xi1>
    %c0_i32_75 = arith.constant 0 : i32
    %177 = vector.broadcast %c0_i32_75 : i32 to vector<16x9xi32>
    %178 = arith.cmpi sge, %104, %177 : vector<16x9xi32>
    %179 = arith.andi %176, %178 : vector<16x9xi1>
    %c8_i32_76 = arith.constant 8 : i32
    %180 = vector.broadcast %c8_i32_76 : i32 to vector<16x9xi32>
    %181 = arith.cmpi slt, %104, %180 : vector<16x9xi32>
    %182 = arith.andi %179, %181 : vector<16x9xi1>
    %c0_i32_77 = arith.constant 0 : i32
    %c7_i32_78 = arith.constant 7 : i32
    %183 = vector.broadcast %c0_i32_77 : i32 to vector<16x9xi32>
    %184 = arith.maxsi %183, %106 : vector<16x9xi32>
    %185 = vector.broadcast %c7_i32_78 : i32 to vector<16x9xi32>
    %186 = arith.minsi %185, %184 : vector<16x9xi32>
    %c8_i32_79 = arith.constant 8 : i32
    %187 = vector.broadcast %c8_i32_79 : i32 to vector<16x9xi32>
    %188 = arith.muli %186, %187 : vector<16x9xi32>
    %189 = vector.broadcast %4 : vector<16x1xi32> to vector<16x9xi32>
    %190 = arith.addi %189, %188 : vector<16x9xi32>
    %c0_i32_80 = arith.constant 0 : i32
    %c7_i32_81 = arith.constant 7 : i32
    %191 = vector.broadcast %c0_i32_80 : i32 to vector<16x9xi32>
    %192 = arith.maxsi %191, %104 : vector<16x9xi32>
    %193 = vector.broadcast %c7_i32_81 : i32 to vector<16x9xi32>
    %194 = arith.minsi %193, %192 : vector<16x9xi32>
    %195 = arith.addi %190, %194 : vector<16x9xi32>
    %cst_82 = arith.constant 0.000000e+00 : f32
    %196 = vector.broadcast %cst_82 : f32 to vector<16x9xf32>
    %197 = arith.select %182, %171, %196 : vector<16x9xi1>, vector<16x9xf32>
    %198 = arith.mulf %101, %102 : vector<16x9xf32>
    %c0_i32_83 = arith.constant 0 : i32
    %199 = vector.broadcast %c0_i32_83 : i32 to vector<16x9xi32>
    %200 = arith.cmpi sge, %106, %199 : vector<16x9xi32>
    %c8_i32_84 = arith.constant 8 : i32
    %201 = vector.broadcast %c8_i32_84 : i32 to vector<16x9xi32>
    %202 = arith.cmpi slt, %106, %201 : vector<16x9xi32>
    %203 = arith.andi %200, %202 : vector<16x9xi1>
    %c0_i32_85 = arith.constant 0 : i32
    %204 = vector.broadcast %c0_i32_85 : i32 to vector<16x9xi32>
    %205 = arith.cmpi sge, %108, %204 : vector<16x9xi32>
    %206 = arith.andi %203, %205 : vector<16x9xi1>
    %c8_i32_86 = arith.constant 8 : i32
    %207 = vector.broadcast %c8_i32_86 : i32 to vector<16x9xi32>
    %208 = arith.cmpi slt, %108, %207 : vector<16x9xi32>
    %209 = arith.andi %206, %208 : vector<16x9xi1>
    %c0_i32_87 = arith.constant 0 : i32
    %c7_i32_88 = arith.constant 7 : i32
    %210 = vector.broadcast %c0_i32_87 : i32 to vector<16x9xi32>
    %211 = arith.maxsi %210, %106 : vector<16x9xi32>
    %212 = vector.broadcast %c7_i32_88 : i32 to vector<16x9xi32>
    %213 = arith.minsi %212, %211 : vector<16x9xi32>
    %c8_i32_89 = arith.constant 8 : i32
    %214 = vector.broadcast %c8_i32_89 : i32 to vector<16x9xi32>
    %215 = arith.muli %213, %214 : vector<16x9xi32>
    %216 = vector.broadcast %4 : vector<16x1xi32> to vector<16x9xi32>
    %217 = arith.addi %216, %215 : vector<16x9xi32>
    %c0_i32_90 = arith.constant 0 : i32
    %c7_i32_91 = arith.constant 7 : i32
    %218 = vector.broadcast %c0_i32_90 : i32 to vector<16x9xi32>
    %219 = arith.maxsi %218, %108 : vector<16x9xi32>
    %220 = vector.broadcast %c7_i32_91 : i32 to vector<16x9xi32>
    %221 = arith.minsi %220, %219 : vector<16x9xi32>
    %222 = arith.addi %217, %221 : vector<16x9xi32>
    %cst_92 = arith.constant 0.000000e+00 : f32
    %223 = vector.broadcast %cst_92 : f32 to vector<16x9xf32>
    %224 = arith.select %209, %198, %223 : vector<16x9xi1>, vector<16x9xf32>
    %225 = vector.extract_strided_slice %137 {offsets = [0, 0], sizes = [16, 1], strides = [1, 1]} : vector<16x9xi32> to vector<16x1xi32>
    %226 = vector.broadcast %225 : vector<16x1xi32> to vector<16x128xi32>
    %227 = arith.cmpi eq, %2, %226 : vector<16x128xi32>
    %228 = vector.extract_strided_slice %139 {offsets = [0, 0], sizes = [16, 1], strides = [1, 1]} : vector<16x9xf32> to vector<16x1xf32>
    %cst_93 = arith.constant 0.000000e+00 : f32
    %229 = vector.shape_cast %228 : vector<16x1xf32> to vector<16x1xf32>
    %230 = vector.broadcast %229 : vector<16x1xf32> to vector<16x128xf32>
    %231 = vector.broadcast %cst_93 : f32 to vector<16x128xf32>
    %232 = arith.select %227, %230, %231 : vector<16x128xi1>, vector<16x128xf32>
    %233 = vector.extract_strided_slice %166 {offsets = [0, 0], sizes = [16, 1], strides = [1, 1]} : vector<16x9xi32> to vector<16x1xi32>
    %234 = vector.broadcast %233 : vector<16x1xi32> to vector<16x128xi32>
    %235 = arith.cmpi eq, %2, %234 : vector<16x128xi32>
    %236 = vector.extract_strided_slice %168 {offsets = [0, 0], sizes = [16, 1], strides = [1, 1]} : vector<16x9xf32> to vector<16x1xf32>
    %cst_94 = arith.constant 0.000000e+00 : f32
    %237 = vector.shape_cast %236 : vector<16x1xf32> to vector<16x1xf32>
    %238 = vector.broadcast %237 : vector<16x1xf32> to vector<16x128xf32>
    %239 = vector.broadcast %cst_94 : f32 to vector<16x128xf32>
    %240 = arith.select %235, %238, %239 : vector<16x128xi1>, vector<16x128xf32>
    %241 = arith.addf %232, %240 : vector<16x128xf32>
    %242 = vector.extract_strided_slice %195 {offsets = [0, 0], sizes = [16, 1], strides = [1, 1]} : vector<16x9xi32> to vector<16x1xi32>
    %243 = vector.broadcast %242 : vector<16x1xi32> to vector<16x128xi32>
    %244 = arith.cmpi eq, %2, %243 : vector<16x128xi32>
    %245 = vector.extract_strided_slice %197 {offsets = [0, 0], sizes = [16, 1], strides = [1, 1]} : vector<16x9xf32> to vector<16x1xf32>
    %cst_95 = arith.constant 0.000000e+00 : f32
    %246 = vector.shape_cast %245 : vector<16x1xf32> to vector<16x1xf32>
    %247 = vector.broadcast %246 : vector<16x1xf32> to vector<16x128xf32>
    %248 = vector.broadcast %cst_95 : f32 to vector<16x128xf32>
    %249 = arith.select %244, %247, %248 : vector<16x128xi1>, vector<16x128xf32>
    %250 = arith.addf %241, %249 : vector<16x128xf32>
    %251 = vector.extract_strided_slice %222 {offsets = [0, 0], sizes = [16, 1], strides = [1, 1]} : vector<16x9xi32> to vector<16x1xi32>
    %252 = vector.broadcast %251 : vector<16x1xi32> to vector<16x128xi32>
    %253 = arith.cmpi eq, %2, %252 : vector<16x128xi32>
    %254 = vector.extract_strided_slice %224 {offsets = [0, 0], sizes = [16, 1], strides = [1, 1]} : vector<16x9xf32> to vector<16x1xf32>
    %cst_96 = arith.constant 0.000000e+00 : f32
    %255 = vector.shape_cast %254 : vector<16x1xf32> to vector<16x1xf32>
    %256 = vector.broadcast %255 : vector<16x1xf32> to vector<16x128xf32>
    %257 = vector.broadcast %cst_96 : f32 to vector<16x128xf32>
    %258 = arith.select %253, %256, %257 : vector<16x128xi1>, vector<16x128xf32>
    %259 = arith.addf %250, %258 : vector<16x128xf32>
    %260 = arith.truncf %259 : vector<16x128xf32> to vector<16x128xbf16>
    %cst_97 = arith.constant dense<0.000000e+00> : vector<16x16xf32>
    %261 = tpu.matmul %260, %1, %cst_97 {dimension_numbers = #tpu.dot_dimension_numbers<[1], [0], [0], [1], [0, 0, 1, 1], [], []>} : vector<16x128xbf16>, vector<128x16xbf16>, vector<16x16xf32> -> vector<16x16xf32>
    %c0_98 = arith.constant 0 : index
    %c0_99 = arith.constant 0 : index
    %262 = vector.load %arg10[%c0_98, %c0_99] : memref<16x144xf32, #tpu.memory_space<vmem>>, vector<16x16xf32>
    tpu.vector_store %arg10[%c0_98, %c0_99], %261 {strides = array<i32>} : memref<16x144xf32, #tpu.memory_space<vmem>>, vector<16x16xf32>,
    %263 = vector.extract_strided_slice %137 {offsets = [0, 1], sizes = [16, 1], strides = [1, 1]} : vector<16x9xi32> to vector<16x1xi32>
    %264 = vector.broadcast %263 : vector<16x1xi32> to vector<16x128xi32>
    %265 = arith.cmpi eq, %2, %264 : vector<16x128xi32>
    %266 = vector.extract_strided_slice %139 {offsets = [0, 1], sizes = [16, 1], strides = [1, 1]} : vector<16x9xf32> to vector<16x1xf32>
    %cst_100 = arith.constant 0.000000e+00 : f32
    %267 = vector.shape_cast %266 : vector<16x1xf32> to vector<16x1xf32>
    %268 = vector.broadcast %267 : vector<16x1xf32> to vector<16x128xf32>
    %269 = vector.broadcast %cst_100 : f32 to vector<16x128xf32>
    %270 = arith.select %265, %268, %269 : vector<16x128xi1>, vector<16x128xf32>
    %271 = vector.extract_strided_slice %166 {offsets = [0, 1], sizes = [16, 1], strides = [1, 1]} : vector<16x9xi32> to vector<16x1xi32>
    %272 = vector.broadcast %271 : vector<16x1xi32> to vector<16x128xi32>
    %273 = arith.cmpi eq, %2, %272 : vector<16x128xi32>
    %274 = vector.extract_strided_slice %168 {offsets = [0, 1], sizes = [16, 1], strides = [1, 1]} : vector<16x9xf32> to vector<16x1xf32>
    %cst_101 = arith.constant 0.000000e+00 : f32
    %275 = vector.shape_cast %274 : vector<16x1xf32> to vector<16x1xf32>
    %276 = vector.broadcast %275 : vector<16x1xf32> to vector<16x128xf32>
    %277 = vector.broadcast %cst_101 : f32 to vector<16x128xf32>
    %278 = arith.select %273, %276, %277 : vector<16x128xi1>, vector<16x128xf32>
    %279 = arith.addf %270, %278 : vector<16x128xf32>
    %280 = vector.extract_strided_slice %195 {offsets = [0, 1], sizes = [16, 1], strides = [1, 1]} : vector<16x9xi32> to vector<16x1xi32>
    %281 = vector.broadcast %280 : vector<16x1xi32> to vector<16x128xi32>
    %282 = arith.cmpi eq, %2, %281 : vector<16x128xi32>
    %283 = vector.extract_strided_slice %197 {offsets = [0, 1], sizes = [16, 1], strides = [1, 1]} : vector<16x9xf32> to vector<16x1xf32>
    %cst_102 = arith.constant 0.000000e+00 : f32
    %284 = vector.shape_cast %283 : vector<16x1xf32> to vector<16x1xf32>
    %285 = vector.broadcast %284 : vector<16x1xf32> to vector<16x128xf32>
    %286 = vector.broadcast %cst_102 : f32 to vector<16x128xf32>
    %287 = arith.select %282, %285, %286 : vector<16x128xi1>, vector<16x128xf32>
    %288 = arith.addf %279, %287 : vector<16x128xf32>
    %289 = vector.extract_strided_slice %222 {offsets = [0, 1], sizes = [16, 1], strides = [1, 1]} : vector<16x9xi32> to vector<16x1xi32>
    %290 = vector.broadcast %289 : vector<16x1xi32> to vector<16x128xi32>
    %291 = arith.cmpi eq, %2, %290 : vector<16x128xi32>
    %292 = vector.extract_strided_slice %224 {offsets = [0, 1], sizes = [16, 1], strides = [1, 1]} : vector<16x9xf32> to vector<16x1xf32>
    %cst_103 = arith.constant 0.000000e+00 : f32
    %293 = vector.shape_cast %292 : vector<16x1xf32> to vector<16x1xf32>
    %294 = vector.broadcast %293 : vector<16x1xf32> to vector<16x128xf32>
    %295 = vector.broadcast %cst_103 : f32 to vector<16x128xf32>
    %296 = arith.select %291, %294, %295 : vector<16x128xi1>, vector<16x128xf32>
    %297 = arith.addf %288, %296 : vector<16x128xf32>
    %298 = arith.truncf %297 : vector<16x128xf32> to vector<16x128xbf16>
    %cst_104 = arith.constant dense<0.000000e+00> : vector<16x16xf32>
    %299 = tpu.matmul %298, %1, %cst_104 {dimension_numbers = #tpu.dot_dimension_numbers<[1], [0], [0], [1], [0, 0, 1, 1], [], []>} : vector<16x128xbf16>, vector<128x16xbf16>, vector<16x16xf32> -> vector<16x16xf32>
    %c0_105 = arith.constant 0 : index
    %c16_106 = arith.constant 16 : index
    %300 = vector.load %arg10[%c0_105, %c16_106] : memref<16x144xf32, #tpu.memory_space<vmem>>, vector<16x16xf32>
    tpu.vector_store %arg10[%c0_105, %c16_106], %299 {strides = array<i32>} : memref<16x144xf32, #tpu.memory_space<vmem>>, vector<16x16xf32>,
    %301 = vector.extract_strided_slice %137 {offsets = [0, 2], sizes = [16, 1], strides = [1, 1]} : vector<16x9xi32> to vector<16x1xi32>
    %302 = vector.broadcast %301 : vector<16x1xi32> to vector<16x128xi32>
    %303 = arith.cmpi eq, %2, %302 : vector<16x128xi32>
    %304 = vector.extract_strided_slice %139 {offsets = [0, 2], sizes = [16, 1], strides = [1, 1]} : vector<16x9xf32> to vector<16x1xf32>
    %cst_107 = arith.constant 0.000000e+00 : f32
    %305 = vector.shape_cast %304 : vector<16x1xf32> to vector<16x1xf32>
    %306 = vector.broadcast %305 : vector<16x1xf32> to vector<16x128xf32>
    %307 = vector.broadcast %cst_107 : f32 to vector<16x128xf32>
    %308 = arith.select %303, %306, %307 : vector<16x128xi1>, vector<16x128xf32>
    %309 = vector.extract_strided_slice %166 {offsets = [0, 2], sizes = [16, 1], strides = [1, 1]} : vector<16x9xi32> to vector<16x1xi32>
    %310 = vector.broadcast %309 : vector<16x1xi32> to vector<16x128xi32>
    %311 = arith.cmpi eq, %2, %310 : vector<16x128xi32>
    %312 = vector.extract_strided_slice %168 {offsets = [0, 2], sizes = [16, 1], strides = [1, 1]} : vector<16x9xf32> to vector<16x1xf32>
    %cst_108 = arith.constant 0.000000e+00 : f32
    %313 = vector.shape_cast %312 : vector<16x1xf32> to vector<16x1xf32>
    %314 = vector.broadcast %313 : vector<16x1xf32> to vector<16x128xf32>
    %315 = vector.broadcast %cst_108 : f32 to vector<16x128xf32>
    %316 = arith.select %311, %314, %315 : vector<16x128xi1>, vector<16x128xf32>
    %317 = arith.addf %308, %316 : vector<16x128xf32>
    %318 = vector.extract_strided_slice %195 {offsets = [0, 2], sizes = [16, 1], strides = [1, 1]} : vector<16x9xi32> to vector<16x1xi32>
    %319 = vector.broadcast %318 : vector<16x1xi32> to vector<16x128xi32>
    %320 = arith.cmpi eq, %2, %319 : vector<16x128xi32>
    %321 = vector.extract_strided_slice %197 {offsets = [0, 2], sizes = [16, 1], strides = [1, 1]} : vector<16x9xf32> to vector<16x1xf32>
    %cst_109 = arith.constant 0.000000e+00 : f32
    %322 = vector.shape_cast %321 : vector<16x1xf32> to vector<16x1xf32>
    %323 = vector.broadcast %322 : vector<16x1xf32> to vector<16x128xf32>
    %324 = vector.broadcast %cst_109 : f32 to vector<16x128xf32>
    %325 = arith.select %320, %323, %324 : vector<16x128xi1>, vector<16x128xf32>
    %326 = arith.addf %317, %325 : vector<16x128xf32>
    %327 = vector.extract_strided_slice %222 {offsets = [0, 2], sizes = [16, 1], strides = [1, 1]} : vector<16x9xi32> to vector<16x1xi32>
    %328 = vector.broadcast %327 : vector<16x1xi32> to vector<16x128xi32>
    %329 = arith.cmpi eq, %2, %328 : vector<16x128xi32>
    %330 = vector.extract_strided_slice %224 {offsets = [0, 2], sizes = [16, 1], strides = [1, 1]} : vector<16x9xf32> to vector<16x1xf32>
    %cst_110 = arith.constant 0.000000e+00 : f32
    %331 = vector.shape_cast %330 : vector<16x1xf32> to vector<16x1xf32>
    %332 = vector.broadcast %331 : vector<16x1xf32> to vector<16x128xf32>
    %333 = vector.broadcast %cst_110 : f32 to vector<16x128xf32>
    %334 = arith.select %329, %332, %333 : vector<16x128xi1>, vector<16x128xf32>
    %335 = arith.addf %326, %334 : vector<16x128xf32>
    %336 = arith.truncf %335 : vector<16x128xf32> to vector<16x128xbf16>
    %cst_111 = arith.constant dense<0.000000e+00> : vector<16x16xf32>
    %337 = tpu.matmul %336, %1, %cst_111 {dimension_numbers = #tpu.dot_dimension_numbers<[1], [0], [0], [1], [0, 0, 1, 1], [], []>} : vector<16x128xbf16>, vector<128x16xbf16>, vector<16x16xf32> -> vector<16x16xf32>
    %c0_112 = arith.constant 0 : index
    %c32_113 = arith.constant 32 : index
    %338 = vector.load %arg10[%c0_112, %c32_113] : memref<16x144xf32, #tpu.memory_space<vmem>>, vector<16x16xf32>
    tpu.vector_store %arg10[%c0_112, %c32_113], %337 {strides = array<i32>} : memref<16x144xf32, #tpu.memory_space<vmem>>, vector<16x16xf32>,
    %339 = vector.extract_strided_slice %137 {offsets = [0, 3], sizes = [16, 1], strides = [1, 1]} : vector<16x9xi32> to vector<16x1xi32>
    %340 = vector.broadcast %339 : vector<16x1xi32> to vector<16x128xi32>
    %341 = arith.cmpi eq, %2, %340 : vector<16x128xi32>
    %342 = vector.extract_strided_slice %139 {offsets = [0, 3], sizes = [16, 1], strides = [1, 1]} : vector<16x9xf32> to vector<16x1xf32>
    %cst_114 = arith.constant 0.000000e+00 : f32
    %343 = vector.shape_cast %342 : vector<16x1xf32> to vector<16x1xf32>
    %344 = vector.broadcast %343 : vector<16x1xf32> to vector<16x128xf32>
    %345 = vector.broadcast %cst_114 : f32 to vector<16x128xf32>
    %346 = arith.select %341, %344, %345 : vector<16x128xi1>, vector<16x128xf32>
    %347 = vector.extract_strided_slice %166 {offsets = [0, 3], sizes = [16, 1], strides = [1, 1]} : vector<16x9xi32> to vector<16x1xi32>
    %348 = vector.broadcast %347 : vector<16x1xi32> to vector<16x128xi32>
    %349 = arith.cmpi eq, %2, %348 : vector<16x128xi32>
    %350 = vector.extract_strided_slice %168 {offsets = [0, 3], sizes = [16, 1], strides = [1, 1]} : vector<16x9xf32> to vector<16x1xf32>
    %cst_115 = arith.constant 0.000000e+00 : f32
    %351 = vector.shape_cast %350 : vector<16x1xf32> to vector<16x1xf32>
    %352 = vector.broadcast %351 : vector<16x1xf32> to vector<16x128xf32>
    %353 = vector.broadcast %cst_115 : f32 to vector<16x128xf32>
    %354 = arith.select %349, %352, %353 : vector<16x128xi1>, vector<16x128xf32>
    %355 = arith.addf %346, %354 : vector<16x128xf32>
    %356 = vector.extract_strided_slice %195 {offsets = [0, 3], sizes = [16, 1], strides = [1, 1]} : vector<16x9xi32> to vector<16x1xi32>
    %357 = vector.broadcast %356 : vector<16x1xi32> to vector<16x128xi32>
    %358 = arith.cmpi eq, %2, %357 : vector<16x128xi32>
    %359 = vector.extract_strided_slice %197 {offsets = [0, 3], sizes = [16, 1], strides = [1, 1]} : vector<16x9xf32> to vector<16x1xf32>
    %cst_116 = arith.constant 0.000000e+00 : f32
    %360 = vector.shape_cast %359 : vector<16x1xf32> to vector<16x1xf32>
    %361 = vector.broadcast %360 : vector<16x1xf32> to vector<16x128xf32>
    %362 = vector.broadcast %cst_116 : f32 to vector<16x128xf32>
    %363 = arith.select %358, %361, %362 : vector<16x128xi1>, vector<16x128xf32>
    %364 = arith.addf %355, %363 : vector<16x128xf32>
    %365 = vector.extract_strided_slice %222 {offsets = [0, 3], sizes = [16, 1], strides = [1, 1]} : vector<16x9xi32> to vector<16x1xi32>
    %366 = vector.broadcast %365 : vector<16x1xi32> to vector<16x128xi32>
    %367 = arith.cmpi eq, %2, %366 : vector<16x128xi32>
    %368 = vector.extract_strided_slice %224 {offsets = [0, 3], sizes = [16, 1], strides = [1, 1]} : vector<16x9xf32> to vector<16x1xf32>
    %cst_117 = arith.constant 0.000000e+00 : f32
    %369 = vector.shape_cast %368 : vector<16x1xf32> to vector<16x1xf32>
    %370 = vector.broadcast %369 : vector<16x1xf32> to vector<16x128xf32>
    %371 = vector.broadcast %cst_117 : f32 to vector<16x128xf32>
    %372 = arith.select %367, %370, %371 : vector<16x128xi1>, vector<16x128xf32>
    %373 = arith.addf %364, %372 : vector<16x128xf32>
    %374 = arith.truncf %373 : vector<16x128xf32> to vector<16x128xbf16>
    %cst_118 = arith.constant dense<0.000000e+00> : vector<16x16xf32>
    %375 = tpu.matmul %374, %1, %cst_118 {dimension_numbers = #tpu.dot_dimension_numbers<[1], [0], [0], [1], [0, 0, 1, 1], [], []>} : vector<16x128xbf16>, vector<128x16xbf16>, vector<16x16xf32> -> vector<16x16xf32>
    %c0_119 = arith.constant 0 : index
    %c48_120 = arith.constant 48 : index
    %376 = vector.load %arg10[%c0_119, %c48_120] : memref<16x144xf32, #tpu.memory_space<vmem>>, vector<16x16xf32>
    tpu.vector_store %arg10[%c0_119, %c48_120], %375 {strides = array<i32>} : memref<16x144xf32, #tpu.memory_space<vmem>>, vector<16x16xf32>,
    %377 = vector.extract_strided_slice %137 {offsets = [0, 4], sizes = [16, 1], strides = [1, 1]} : vector<16x9xi32> to vector<16x1xi32>
    %378 = vector.broadcast %377 : vector<16x1xi32> to vector<16x128xi32>
    %379 = arith.cmpi eq, %2, %378 : vector<16x128xi32>
    %380 = vector.extract_strided_slice %139 {offsets = [0, 4], sizes = [16, 1], strides = [1, 1]} : vector<16x9xf32> to vector<16x1xf32>
    %cst_121 = arith.constant 0.000000e+00 : f32
    %381 = vector.shape_cast %380 : vector<16x1xf32> to vector<16x1xf32>
    %382 = vector.broadcast %381 : vector<16x1xf32> to vector<16x128xf32>
    %383 = vector.broadcast %cst_121 : f32 to vector<16x128xf32>
    %384 = arith.select %379, %382, %383 : vector<16x128xi1>, vector<16x128xf32>
    %385 = vector.extract_strided_slice %166 {offsets = [0, 4], sizes = [16, 1], strides = [1, 1]} : vector<16x9xi32> to vector<16x1xi32>
    %386 = vector.broadcast %385 : vector<16x1xi32> to vector<16x128xi32>
    %387 = arith.cmpi eq, %2, %386 : vector<16x128xi32>
    %388 = vector.extract_strided_slice %168 {offsets = [0, 4], sizes = [16, 1], strides = [1, 1]} : vector<16x9xf32> to vector<16x1xf32>
    %cst_122 = arith.constant 0.000000e+00 : f32
    %389 = vector.shape_cast %388 : vector<16x1xf32> to vector<16x1xf32>
    %390 = vector.broadcast %389 : vector<16x1xf32> to vector<16x128xf32>
    %391 = vector.broadcast %cst_122 : f32 to vector<16x128xf32>
    %392 = arith.select %387, %390, %391 : vector<16x128xi1>, vector<16x128xf32>
    %393 = arith.addf %384, %392 : vector<16x128xf32>
    %394 = vector.extract_strided_slice %195 {offsets = [0, 4], sizes = [16, 1], strides = [1, 1]} : vector<16x9xi32> to vector<16x1xi32>
    %395 = vector.broadcast %394 : vector<16x1xi32> to vector<16x128xi32>
    %396 = arith.cmpi eq, %2, %395 : vector<16x128xi32>
    %397 = vector.extract_strided_slice %197 {offsets = [0, 4], sizes = [16, 1], strides = [1, 1]} : vector<16x9xf32> to vector<16x1xf32>
    %cst_123 = arith.constant 0.000000e+00 : f32
    %398 = vector.shape_cast %397 : vector<16x1xf32> to vector<16x1xf32>
    %399 = vector.broadcast %398 : vector<16x1xf32> to vector<16x128xf32>
    %400 = vector.broadcast %cst_123 : f32 to vector<16x128xf32>
    %401 = arith.select %396, %399, %400 : vector<16x128xi1>, vector<16x128xf32>
    %402 = arith.addf %393, %401 : vector<16x128xf32>
    %403 = vector.extract_strided_slice %222 {offsets = [0, 4], sizes = [16, 1], strides = [1, 1]} : vector<16x9xi32> to vector<16x1xi32>
    %404 = vector.broadcast %403 : vector<16x1xi32> to vector<16x128xi32>
    %405 = arith.cmpi eq, %2, %404 : vector<16x128xi32>
    %406 = vector.extract_strided_slice %224 {offsets = [0, 4], sizes = [16, 1], strides = [1, 1]} : vector<16x9xf32> to vector<16x1xf32>
    %cst_124 = arith.constant 0.000000e+00 : f32
    %407 = vector.shape_cast %406 : vector<16x1xf32> to vector<16x1xf32>
    %408 = vector.broadcast %407 : vector<16x1xf32> to vector<16x128xf32>
    %409 = vector.broadcast %cst_124 : f32 to vector<16x128xf32>
    %410 = arith.select %405, %408, %409 : vector<16x128xi1>, vector<16x128xf32>
    %411 = arith.addf %402, %410 : vector<16x128xf32>
    %412 = arith.truncf %411 : vector<16x128xf32> to vector<16x128xbf16>
    %cst_125 = arith.constant dense<0.000000e+00> : vector<16x16xf32>
    %413 = tpu.matmul %412, %1, %cst_125 {dimension_numbers = #tpu.dot_dimension_numbers<[1], [0], [0], [1], [0, 0, 1, 1], [], []>} : vector<16x128xbf16>, vector<128x16xbf16>, vector<16x16xf32> -> vector<16x16xf32>
    %c0_126 = arith.constant 0 : index
    %c64_127 = arith.constant 64 : index
    %414 = vector.load %arg10[%c0_126, %c64_127] : memref<16x144xf32, #tpu.memory_space<vmem>>, vector<16x16xf32>
    tpu.vector_store %arg10[%c0_126, %c64_127], %413 {strides = array<i32>} : memref<16x144xf32, #tpu.memory_space<vmem>>, vector<16x16xf32>,
    %415 = vector.extract_strided_slice %137 {offsets = [0, 5], sizes = [16, 1], strides = [1, 1]} : vector<16x9xi32> to vector<16x1xi32>
    %416 = vector.broadcast %415 : vector<16x1xi32> to vector<16x128xi32>
    %417 = arith.cmpi eq, %2, %416 : vector<16x128xi32>
    %418 = vector.extract_strided_slice %139 {offsets = [0, 5], sizes = [16, 1], strides = [1, 1]} : vector<16x9xf32> to vector<16x1xf32>
    %cst_128 = arith.constant 0.000000e+00 : f32
    %419 = vector.shape_cast %418 : vector<16x1xf32> to vector<16x1xf32>
    %420 = vector.broadcast %419 : vector<16x1xf32> to vector<16x128xf32>
    %421 = vector.broadcast %cst_128 : f32 to vector<16x128xf32>
    %422 = arith.select %417, %420, %421 : vector<16x128xi1>, vector<16x128xf32>
    %423 = vector.extract_strided_slice %166 {offsets = [0, 5], sizes = [16, 1], strides = [1, 1]} : vector<16x9xi32> to vector<16x1xi32>
    %424 = vector.broadcast %423 : vector<16x1xi32> to vector<16x128xi32>
    %425 = arith.cmpi eq, %2, %424 : vector<16x128xi32>
    %426 = vector.extract_strided_slice %168 {offsets = [0, 5], sizes = [16, 1], strides = [1, 1]} : vector<16x9xf32> to vector<16x1xf32>
    %cst_129 = arith.constant 0.000000e+00 : f32
    %427 = vector.shape_cast %426 : vector<16x1xf32> to vector<16x1xf32>
    %428 = vector.broadcast %427 : vector<16x1xf32> to vector<16x128xf32>
    %429 = vector.broadcast %cst_129 : f32 to vector<16x128xf32>
    %430 = arith.select %425, %428, %429 : vector<16x128xi1>, vector<16x128xf32>
    %431 = arith.addf %422, %430 : vector<16x128xf32>
    %432 = vector.extract_strided_slice %195 {offsets = [0, 5], sizes = [16, 1], strides = [1, 1]} : vector<16x9xi32> to vector<16x1xi32>
    %433 = vector.broadcast %432 : vector<16x1xi32> to vector<16x128xi32>
    %434 = arith.cmpi eq, %2, %433 : vector<16x128xi32>
    %435 = vector.extract_strided_slice %197 {offsets = [0, 5], sizes = [16, 1], strides = [1, 1]} : vector<16x9xf32> to vector<16x1xf32>
    %cst_130 = arith.constant 0.000000e+00 : f32
    %436 = vector.shape_cast %435 : vector<16x1xf32> to vector<16x1xf32>
    %437 = vector.broadcast %436 : vector<16x1xf32> to vector<16x128xf32>
    %438 = vector.broadcast %cst_130 : f32 to vector<16x128xf32>
    %439 = arith.select %434, %437, %438 : vector<16x128xi1>, vector<16x128xf32>
    %440 = arith.addf %431, %439 : vector<16x128xf32>
    %441 = vector.extract_strided_slice %222 {offsets = [0, 5], sizes = [16, 1], strides = [1, 1]} : vector<16x9xi32> to vector<16x1xi32>
    %442 = vector.broadcast %441 : vector<16x1xi32> to vector<16x128xi32>
    %443 = arith.cmpi eq, %2, %442 : vector<16x128xi32>
    %444 = vector.extract_strided_slice %224 {offsets = [0, 5], sizes = [16, 1], strides = [1, 1]} : vector<16x9xf32> to vector<16x1xf32>
    %cst_131 = arith.constant 0.000000e+00 : f32
    %445 = vector.shape_cast %444 : vector<16x1xf32> to vector<16x1xf32>
    %446 = vector.broadcast %445 : vector<16x1xf32> to vector<16x128xf32>
    %447 = vector.broadcast %cst_131 : f32 to vector<16x128xf32>
    %448 = arith.select %443, %446, %447 : vector<16x128xi1>, vector<16x128xf32>
    %449 = arith.addf %440, %448 : vector<16x128xf32>
    %450 = arith.truncf %449 : vector<16x128xf32> to vector<16x128xbf16>
    %cst_132 = arith.constant dense<0.000000e+00> : vector<16x16xf32>
    %451 = tpu.matmul %450, %1, %cst_132 {dimension_numbers = #tpu.dot_dimension_numbers<[1], [0], [0], [1], [0, 0, 1, 1], [], []>} : vector<16x128xbf16>, vector<128x16xbf16>, vector<16x16xf32> -> vector<16x16xf32>
    %c0_133 = arith.constant 0 : index
    %c80_134 = arith.constant 80 : index
    %452 = vector.load %arg10[%c0_133, %c80_134] : memref<16x144xf32, #tpu.memory_space<vmem>>, vector<16x16xf32>
    tpu.vector_store %arg10[%c0_133, %c80_134], %451 {strides = array<i32>} : memref<16x144xf32, #tpu.memory_space<vmem>>, vector<16x16xf32>,
    %453 = vector.extract_strided_slice %137 {offsets = [0, 6], sizes = [16, 1], strides = [1, 1]} : vector<16x9xi32> to vector<16x1xi32>
    %454 = vector.broadcast %453 : vector<16x1xi32> to vector<16x128xi32>
    %455 = arith.cmpi eq, %2, %454 : vector<16x128xi32>
    %456 = vector.extract_strided_slice %139 {offsets = [0, 6], sizes = [16, 1], strides = [1, 1]} : vector<16x9xf32> to vector<16x1xf32>
    %cst_135 = arith.constant 0.000000e+00 : f32
    %457 = vector.shape_cast %456 : vector<16x1xf32> to vector<16x1xf32>
    %458 = vector.broadcast %457 : vector<16x1xf32> to vector<16x128xf32>
    %459 = vector.broadcast %cst_135 : f32 to vector<16x128xf32>
    %460 = arith.select %455, %458, %459 : vector<16x128xi1>, vector<16x128xf32>
    %461 = vector.extract_strided_slice %166 {offsets = [0, 6], sizes = [16, 1], strides = [1, 1]} : vector<16x9xi32> to vector<16x1xi32>
    %462 = vector.broadcast %461 : vector<16x1xi32> to vector<16x128xi32>
    %463 = arith.cmpi eq, %2, %462 : vector<16x128xi32>
    %464 = vector.extract_strided_slice %168 {offsets = [0, 6], sizes = [16, 1], strides = [1, 1]} : vector<16x9xf32> to vector<16x1xf32>
    %cst_136 = arith.constant 0.000000e+00 : f32
    %465 = vector.shape_cast %464 : vector<16x1xf32> to vector<16x1xf32>
    %466 = vector.broadcast %465 : vector<16x1xf32> to vector<16x128xf32>
    %467 = vector.broadcast %cst_136 : f32 to vector<16x128xf32>
    %468 = arith.select %463, %466, %467 : vector<16x128xi1>, vector<16x128xf32>
    %469 = arith.addf %460, %468 : vector<16x128xf32>
    %470 = vector.extract_strided_slice %195 {offsets = [0, 6], sizes = [16, 1], strides = [1, 1]} : vector<16x9xi32> to vector<16x1xi32>
    %471 = vector.broadcast %470 : vector<16x1xi32> to vector<16x128xi32>
    %472 = arith.cmpi eq, %2, %471 : vector<16x128xi32>
    %473 = vector.extract_strided_slice %197 {offsets = [0, 6], sizes = [16, 1], strides = [1, 1]} : vector<16x9xf32> to vector<16x1xf32>
    %cst_137 = arith.constant 0.000000e+00 : f32
    %474 = vector.shape_cast %473 : vector<16x1xf32> to vector<16x1xf32>
    %475 = vector.broadcast %474 : vector<16x1xf32> to vector<16x128xf32>
    %476 = vector.broadcast %cst_137 : f32 to vector<16x128xf32>
    %477 = arith.select %472, %475, %476 : vector<16x128xi1>, vector<16x128xf32>
    %478 = arith.addf %469, %477 : vector<16x128xf32>
    %479 = vector.extract_strided_slice %222 {offsets = [0, 6], sizes = [16, 1], strides = [1, 1]} : vector<16x9xi32> to vector<16x1xi32>
    %480 = vector.broadcast %479 : vector<16x1xi32> to vector<16x128xi32>
    %481 = arith.cmpi eq, %2, %480 : vector<16x128xi32>
    %482 = vector.extract_strided_slice %224 {offsets = [0, 6], sizes = [16, 1], strides = [1, 1]} : vector<16x9xf32> to vector<16x1xf32>
    %cst_138 = arith.constant 0.000000e+00 : f32
    %483 = vector.shape_cast %482 : vector<16x1xf32> to vector<16x1xf32>
    %484 = vector.broadcast %483 : vector<16x1xf32> to vector<16x128xf32>
    %485 = vector.broadcast %cst_138 : f32 to vector<16x128xf32>
    %486 = arith.select %481, %484, %485 : vector<16x128xi1>, vector<16x128xf32>
    %487 = arith.addf %478, %486 : vector<16x128xf32>
    %488 = arith.truncf %487 : vector<16x128xf32> to vector<16x128xbf16>
    %cst_139 = arith.constant dense<0.000000e+00> : vector<16x16xf32>
    %489 = tpu.matmul %488, %1, %cst_139 {dimension_numbers = #tpu.dot_dimension_numbers<[1], [0], [0], [1], [0, 0, 1, 1], [], []>} : vector<16x128xbf16>, vector<128x16xbf16>, vector<16x16xf32> -> vector<16x16xf32>
    %c0_140 = arith.constant 0 : index
    %c96_141 = arith.constant 96 : index
    %490 = vector.load %arg10[%c0_140, %c96_141] : memref<16x144xf32, #tpu.memory_space<vmem>>, vector<16x16xf32>
    tpu.vector_store %arg10[%c0_140, %c96_141], %489 {strides = array<i32>} : memref<16x144xf32, #tpu.memory_space<vmem>>, vector<16x16xf32>,
    %491 = vector.extract_strided_slice %137 {offsets = [0, 7], sizes = [16, 1], strides = [1, 1]} : vector<16x9xi32> to vector<16x1xi32>
    %492 = vector.broadcast %491 : vector<16x1xi32> to vector<16x128xi32>
    %493 = arith.cmpi eq, %2, %492 : vector<16x128xi32>
    %494 = vector.extract_strided_slice %139 {offsets = [0, 7], sizes = [16, 1], strides = [1, 1]} : vector<16x9xf32> to vector<16x1xf32>
    %cst_142 = arith.constant 0.000000e+00 : f32
    %495 = vector.shape_cast %494 : vector<16x1xf32> to vector<16x1xf32>
    %496 = vector.broadcast %495 : vector<16x1xf32> to vector<16x128xf32>
    %497 = vector.broadcast %cst_142 : f32 to vector<16x128xf32>
    %498 = arith.select %493, %496, %497 : vector<16x128xi1>, vector<16x128xf32>
    %499 = vector.extract_strided_slice %166 {offsets = [0, 7], sizes = [16, 1], strides = [1, 1]} : vector<16x9xi32> to vector<16x1xi32>
    %500 = vector.broadcast %499 : vector<16x1xi32> to vector<16x128xi32>
    %501 = arith.cmpi eq, %2, %500 : vector<16x128xi32>
    %502 = vector.extract_strided_slice %168 {offsets = [0, 7], sizes = [16, 1], strides = [1, 1]} : vector<16x9xf32> to vector<16x1xf32>
    %cst_143 = arith.constant 0.000000e+00 : f32
    %503 = vector.shape_cast %502 : vector<16x1xf32> to vector<16x1xf32>
    %504 = vector.broadcast %503 : vector<16x1xf32> to vector<16x128xf32>
    %505 = vector.broadcast %cst_143 : f32 to vector<16x128xf32>
    %506 = arith.select %501, %504, %505 : vector<16x128xi1>, vector<16x128xf32>
    %507 = arith.addf %498, %506 : vector<16x128xf32>
    %508 = vector.extract_strided_slice %195 {offsets = [0, 7], sizes = [16, 1], strides = [1, 1]} : vector<16x9xi32> to vector<16x1xi32>
    %509 = vector.broadcast %508 : vector<16x1xi32> to vector<16x128xi32>
    %510 = arith.cmpi eq, %2, %509 : vector<16x128xi32>
    %511 = vector.extract_strided_slice %197 {offsets = [0, 7], sizes = [16, 1], strides = [1, 1]} : vector<16x9xf32> to vector<16x1xf32>
    %cst_144 = arith.constant 0.000000e+00 : f32
    %512 = vector.shape_cast %511 : vector<16x1xf32> to vector<16x1xf32>
    %513 = vector.broadcast %512 : vector<16x1xf32> to vector<16x128xf32>
    %514 = vector.broadcast %cst_144 : f32 to vector<16x128xf32>
    %515 = arith.select %510, %513, %514 : vector<16x128xi1>, vector<16x128xf32>
    %516 = arith.addf %507, %515 : vector<16x128xf32>
    %517 = vector.extract_strided_slice %222 {offsets = [0, 7], sizes = [16, 1], strides = [1, 1]} : vector<16x9xi32> to vector<16x1xi32>
    %518 = vector.broadcast %517 : vector<16x1xi32> to vector<16x128xi32>
    %519 = arith.cmpi eq, %2, %518 : vector<16x128xi32>
    %520 = vector.extract_strided_slice %224 {offsets = [0, 7], sizes = [16, 1], strides = [1, 1]} : vector<16x9xf32> to vector<16x1xf32>
    %cst_145 = arith.constant 0.000000e+00 : f32
    %521 = vector.shape_cast %520 : vector<16x1xf32> to vector<16x1xf32>
    %522 = vector.broadcast %521 : vector<16x1xf32> to vector<16x128xf32>
    %523 = vector.broadcast %cst_145 : f32 to vector<16x128xf32>
    %524 = arith.select %519, %522, %523 : vector<16x128xi1>, vector<16x128xf32>
    %525 = arith.addf %516, %524 : vector<16x128xf32>
    %526 = arith.truncf %525 : vector<16x128xf32> to vector<16x128xbf16>
    %cst_146 = arith.constant dense<0.000000e+00> : vector<16x16xf32>
    %527 = tpu.matmul %526, %1, %cst_146 {dimension_numbers = #tpu.dot_dimension_numbers<[1], [0], [0], [1], [0, 0, 1, 1], [], []>} : vector<16x128xbf16>, vector<128x16xbf16>, vector<16x16xf32> -> vector<16x16xf32>
    %c0_147 = arith.constant 0 : index
    %c112_148 = arith.constant 112 : index
    %528 = vector.load %arg10[%c0_147, %c112_148] : memref<16x144xf32, #tpu.memory_space<vmem>>, vector<16x16xf32>
    tpu.vector_store %arg10[%c0_147, %c112_148], %527 {strides = array<i32>} : memref<16x144xf32, #tpu.memory_space<vmem>>, vector<16x16xf32>,
    %529 = vector.extract_strided_slice %137 {offsets = [0, 8], sizes = [16, 1], strides = [1, 1]} : vector<16x9xi32> to vector<16x1xi32>
    %530 = vector.broadcast %529 : vector<16x1xi32> to vector<16x128xi32>
    %531 = arith.cmpi eq, %2, %530 : vector<16x128xi32>
    %532 = vector.extract_strided_slice %139 {offsets = [0, 8], sizes = [16, 1], strides = [1, 1]} : vector<16x9xf32> to vector<16x1xf32>
    %cst_149 = arith.constant 0.000000e+00 : f32
    %533 = vector.shape_cast %532 : vector<16x1xf32> to vector<16x1xf32>
    %534 = vector.broadcast %533 : vector<16x1xf32> to vector<16x128xf32>
    %535 = vector.broadcast %cst_149 : f32 to vector<16x128xf32>
    %536 = arith.select %531, %534, %535 : vector<16x128xi1>, vector<16x128xf32>
    %537 = vector.extract_strided_slice %166 {offsets = [0, 8], sizes = [16, 1], strides = [1, 1]} : vector<16x9xi32> to vector<16x1xi32>
    %538 = vector.broadcast %537 : vector<16x1xi32> to vector<16x128xi32>
    %539 = arith.cmpi eq, %2, %538 : vector<16x128xi32>
    %540 = vector.extract_strided_slice %168 {offsets = [0, 8], sizes = [16, 1], strides = [1, 1]} : vector<16x9xf32> to vector<16x1xf32>
    %cst_150 = arith.constant 0.000000e+00 : f32
    %541 = vector.shape_cast %540 : vector<16x1xf32> to vector<16x1xf32>
    %542 = vector.broadcast %541 : vector<16x1xf32> to vector<16x128xf32>
    %543 = vector.broadcast %cst_150 : f32 to vector<16x128xf32>
    %544 = arith.select %539, %542, %543 : vector<16x128xi1>, vector<16x128xf32>
    %545 = arith.addf %536, %544 : vector<16x128xf32>
    %546 = vector.extract_strided_slice %195 {offsets = [0, 8], sizes = [16, 1], strides = [1, 1]} : vector<16x9xi32> to vector<16x1xi32>
    %547 = vector.broadcast %546 : vector<16x1xi32> to vector<16x128xi32>
    %548 = arith.cmpi eq, %2, %547 : vector<16x128xi32>
    %549 = vector.extract_strided_slice %197 {offsets = [0, 8], sizes = [16, 1], strides = [1, 1]} : vector<16x9xf32> to vector<16x1xf32>
    %cst_151 = arith.constant 0.000000e+00 : f32
    %550 = vector.shape_cast %549 : vector<16x1xf32> to vector<16x1xf32>
    %551 = vector.broadcast %550 : vector<16x1xf32> to vector<16x128xf32>
    %552 = vector.broadcast %cst_151 : f32 to vector<16x128xf32>
    %553 = arith.select %548, %551, %552 : vector<16x128xi1>, vector<16x128xf32>
    %554 = arith.addf %545, %553 : vector<16x128xf32>
    %555 = vector.extract_strided_slice %222 {offsets = [0, 8], sizes = [16, 1], strides = [1, 1]} : vector<16x9xi32> to vector<16x1xi32>
    %556 = vector.broadcast %555 : vector<16x1xi32> to vector<16x128xi32>
    %557 = arith.cmpi eq, %2, %556 : vector<16x128xi32>
    %558 = vector.extract_strided_slice %224 {offsets = [0, 8], sizes = [16, 1], strides = [1, 1]} : vector<16x9xf32> to vector<16x1xf32>
    %cst_152 = arith.constant 0.000000e+00 : f32
    %559 = vector.shape_cast %558 : vector<16x1xf32> to vector<16x1xf32>
    %560 = vector.broadcast %559 : vector<16x1xf32> to vector<16x128xf32>
    %561 = vector.broadcast %cst_152 : f32 to vector<16x128xf32>
    %562 = arith.select %557, %560, %561 : vector<16x128xi1>, vector<16x128xf32>
    %563 = arith.addf %554, %562 : vector<16x128xf32>
    %564 = arith.truncf %563 : vector<16x128xf32> to vector<16x128xbf16>
    %cst_153 = arith.constant dense<0.000000e+00> : vector<16x16xf32>
    %565 = tpu.matmul %564, %1, %cst_153 {dimension_numbers = #tpu.dot_dimension_numbers<[1], [0], [0], [1], [0, 0, 1, 1], [], []>} : vector<16x128xbf16>, vector<128x16xbf16>, vector<16x16xf32> -> vector<16x16xf32>
    %c0_154 = arith.constant 0 : index
    %c128_155 = arith.constant 128 : index
    %566 = vector.load %arg10[%c0_154, %c128_155] : memref<16x144xf32, #tpu.memory_space<vmem>>, vector<16x16xf32>
    tpu.vector_store %arg10[%c0_154, %c128_155], %565 {strides = array<i32>} : memref<16x144xf32, #tpu.memory_space<vmem>>, vector<16x16xf32>,
    %c0_156 = arith.constant 0 : index
    %c0_157 = arith.constant 0 : index
    %567 = vector.load %arg10[%c0_156, %c0_157] : memref<16x144xf32, #tpu.memory_space<vmem>>, vector<16x144xf32>
    %568 = arith.truncf %567 : vector<16x144xf32> to vector<16x144xbf16>
    %c0_158 = arith.constant 0 : index
    %c0_159 = arith.constant 0 : index
    %569 = vector.load %arg6[%c0_158, %c0_159] : memref<144x128xbf16, #tpu.memory_space<vmem>>, vector<144x128xbf16>
    %cst_160 = arith.constant dense<0.000000e+00> : vector<16x128xf32>
    %570 = tpu.matmul %568, %569, %cst_160 {dimension_numbers = #tpu.dot_dimension_numbers<[1], [0], [0], [1], [0, 0, 1, 1], [], []>} : vector<16x144xbf16>, vector<144x128xbf16>, vector<16x128xf32> -> vector<16x128xf32>
    %c0_161 = arith.constant 0 : index
    %c0_162 = arith.constant 0 : index
    %571 = vector.load %arg7[%c0_161, %c0_162] : memref<1x128xf32, #tpu.memory_space<vmem>>, vector<1x128xf32>
    %572 = vector.broadcast %571 : vector<1x128xf32> to vector<16x128xf32>
    %573 = arith.addf %570, %572 : vector<16x128xf32>
    %c0_163 = arith.constant 0 : index
    %c0_164 = arith.constant 0 : index
    %574 = vector.load %arg8[%c0_163, %c0_164] : memref<16x128xf32, #tpu.memory_space<vmem>>, vector<16x128xf32>
    tpu.vector_store %arg8[%c0_163, %c0_164], %573 {strides = array<i32>} : memref<16x128xf32, #tpu.memory_space<vmem>>, vector<16x128xf32>,
    return
  }
  func.func @transform_0(%arg0: i32) -> (i32, i32) {
    %c0_i32 = arith.constant 0 : i32
    %c0_i32_0 = arith.constant 0 : i32
    %c0_i32_1 = arith.constant 0 : i32
    return %c0_i32, %c0_i32_0 : i32, i32
  }
  func.func @transform_1(%arg0: i32) -> (i32, i32) {
    %c0_i32 = arith.constant 0 : i32
    %c0_i32_0 = arith.constant 0 : i32
    return %arg0, %c0_i32 : i32, i32
  }
  func.func @transform_2(%arg0: i32) -> (i32, i32) {
    %c0_i32 = arith.constant 0 : i32
    %c0_i32_0 = arith.constant 0 : i32
    return %arg0, %c0_i32 : i32, i32
  }
  func.func @transform_3(%arg0: i32) -> (i32, i32) {
    %c0_i32 = arith.constant 0 : i32
    %c0_i32_0 = arith.constant 0 : i32
    %c0_i32_1 = arith.constant 0 : i32
    return %c0_i32, %c0_i32_0 : i32, i32
  }
  func.func @transform_4(%arg0: i32) -> (i32, i32) {
    %c0_i32 = arith.constant 0 : i32
    %c0_i32_0 = arith.constant 0 : i32
    %c0_i32_1 = arith.constant 0 : i32
    return %c0_i32, %c0_i32_0 : i32, i32
  }
  func.func @transform_5(%arg0: i32) -> (i32, i32) {
    %c0_i32 = arith.constant 0 : i32
    %c0_i32_0 = arith.constant 0 : i32
    %c0_i32_1 = arith.constant 0 : i32
    return %c0_i32, %c0_i32_0 : i32, i32
  }
  func.func @transform_6(%arg0: i32) -> (i32, i32) {
    %c0_i32 = arith.constant 0 : i32
    %c0_i32_0 = arith.constant 0 : i32
    %c0_i32_1 = arith.constant 0 : i32
    return %c0_i32, %c0_i32_0 : i32, i32
  }
  func.func @transform_7(%arg0: i32) -> (i32, i32) {
    %c0_i32 = arith.constant 0 : i32
    %c0_i32_0 = arith.constant 0 : i32
    return %arg0, %c0_i32 : i32, i32
  }
}

module attributes {stable_mosaic.version = 11 : i64} {
  func.func @_dcn_fused_kernel(%arg0: i32, %arg1: memref<128x128xf32, #tpu.memory_space<vmem>>, %arg2: memref<16x10xi32, #tpu.memory_space<vmem>>, %arg3: memref<16x18xf32, #tpu.memory_space<vmem>>, %arg4: memref<144x18xbf16, #tpu.memory_space<vmem>>, %arg5: memref<1x18xf32, #tpu.memory_space<vmem>>, %arg6: memref<144x128xbf16, #tpu.memory_space<vmem>>, %arg7: memref<1x128xf32, #tpu.memory_space<vmem>>, %arg8: memref<16x128xf32, #tpu.memory_space<vmem>>, %arg9: memref<16x144xf32, #tpu.memory_space<vmem>>, %arg10: memref<16x144xf32, #tpu.memory_space<vmem>>) attributes {dimension_semantics = [#tpu.dimension_semantics<parallel>], iteration_bounds = array<i64: 8>, scalar_prefetch = 0 : i64, scratch_operands = 2 : i64, tpu.core_type = #tpu.core_type<tc>, window_params = [{pipeline_mode = #tpu.pipeline_mode<synchronous>, transform_indices = @transform_0, window_bounds = array<i64: 128, 128>}, {transform_indices = @transform_1, window_bounds = array<i64: 16, 10>}, {transform_indices = @transform_2, window_bounds = array<i64: 16, 18>}, {pipeline_mode = #tpu.pipeline_mode<synchronous>, transform_indices = @transform_3, window_bounds = array<i64: 144, 18>}, {pipeline_mode = #tpu.pipeline_mode<synchronous>, transform_indices = @transform_4, window_bounds = array<i64: 1, 18>}, {pipeline_mode = #tpu.pipeline_mode<synchronous>, transform_indices = @transform_5, window_bounds = array<i64: 144, 128>}, {pipeline_mode = #tpu.pipeline_mode<synchronous>, transform_indices = @transform_6, window_bounds = array<i64: 1, 128>}, {transform_indices = @transform_7, window_bounds = array<i64: 16, 128>}]} {
    %c0 = arith.constant 0 : index
    %c0_0 = arith.constant 0 : index
    %0 = vector.load %arg1[%c0, %c0_0] : memref<128x128xf32, #tpu.memory_space<vmem>>, vector<128x16xf32>
    %1 = arith.truncf %0 : vector<128x16xf32> to vector<128x16xbf16>
    %2 = tpu.iota {dimensions = array<i32: 1>} : vector<16x128xi32>
    %c0_1 = arith.constant 0 : index
    %c0_2 = arith.constant 0 : index
    %3 = vector.load %arg2[%c0_1, %c0_2] : memref<16x10xi32, #tpu.memory_space<vmem>>, vector<16x9xi32>
    %c0_3 = arith.constant 0 : index
    %c9 = arith.constant 9 : index
    %4 = vector.load %arg2[%c0_3, %c9] : memref<16x10xi32, #tpu.memory_space<vmem>>, vector<16x1xi32>
    %5 = vector.extract_strided_slice %3 {offsets = [0, 0], sizes = [16, 1], strides = [1, 1]} : vector<16x9xi32> to vector<16x1xi32>
    %6 = vector.broadcast %5 : vector<16x1xi32> to vector<16x128xi32>
    %7 = arith.cmpi eq, %2, %6 : vector<16x128xi32>
    %cst = arith.constant 1.000000e+00 : f32
    %cst_4 = arith.constant 0.000000e+00 : f32
    %8 = vector.broadcast %cst : f32 to vector<16x128xf32>
    %9 = vector.broadcast %cst_4 : f32 to vector<16x128xf32>
    %10 = arith.select %7, %8, %9 : vector<16x128xi1>, vector<16x128xf32>
    %11 = arith.truncf %10 : vector<16x128xf32> to vector<16x128xbf16>
    %cst_5 = arith.constant dense<0.000000e+00> : vector<16x16xf32>
    %12 = tpu.matmul %11, %1, %cst_5 {dimension_numbers = #tpu.dot_dimension_numbers<[1], [0], [0], [1], [0, 0, 1, 1], [], []>} : vector<16x128xbf16>, vector<128x16xbf16>, vector<16x16xf32> -> vector<16x16xf32>
    %c0_6 = arith.constant 0 : index
    %c0_7 = arith.constant 0 : index
    %13 = vector.load %arg9[%c0_6, %c0_7] : memref<16x144xf32, #tpu.memory_space<vmem>>, vector<16x16xf32>
    tpu.vector_store %arg9[%c0_6, %c0_7], %12 {strides = array<i32>} : memref<16x144xf32, #tpu.memory_space<vmem>>, vector<16x16xf32>,
    %14 = vector.extract_strided_slice %3 {offsets = [0, 1], sizes = [16, 1], strides = [1, 1]} : vector<16x9xi32> to vector<16x1xi32>
    %15 = vector.broadcast %14 : vector<16x1xi32> to vector<16x128xi32>
    %16 = arith.cmpi eq, %2, %15 : vector<16x128xi32>
    %cst_8 = arith.constant 1.000000e+00 : f32
    %cst_9 = arith.constant 0.000000e+00 : f32
    %17 = vector.broadcast %cst_8 : f32 to vector<16x128xf32>
    %18 = vector.broadcast %cst_9 : f32 to vector<16x128xf32>
    %19 = arith.select %16, %17, %18 : vector<16x128xi1>, vector<16x128xf32>
    %20 = arith.truncf %19 : vector<16x128xf32> to vector<16x128xbf16>
    %cst_10 = arith.constant dense<0.000000e+00> : vector<16x16xf32>
    %21 = tpu.matmul %20, %1, %cst_10 {dimension_numbers = #tpu.dot_dimension_numbers<[1], [0], [0], [1], [0, 0, 1, 1], [], []>} : vector<16x128xbf16>, vector<128x16xbf16>, vector<16x16xf32> -> vector<16x16xf32>
    %c0_11 = arith.constant 0 : index
    %c16 = arith.constant 16 : index
    %22 = vector.load %arg9[%c0_11, %c16] : memref<16x144xf32, #tpu.memory_space<vmem>>, vector<16x16xf32>
    tpu.vector_store %arg9[%c0_11, %c16], %21 {strides = array<i32>} : memref<16x144xf32, #tpu.memory_space<vmem>>, vector<16x16xf32>,
    %23 = vector.extract_strided_slice %3 {offsets = [0, 2], sizes = [16, 1], strides = [1, 1]} : vector<16x9xi32> to vector<16x1xi32>
    %24 = vector.broadcast %23 : vector<16x1xi32> to vector<16x128xi32>
    %25 = arith.cmpi eq, %2, %24 : vector<16x128xi32>
    %cst_12 = arith.constant 1.000000e+00 : f32
    %cst_13 = arith.constant 0.000000e+00 : f32
    %26 = vector.broadcast %cst_12 : f32 to vector<16x128xf32>
    %27 = vector.broadcast %cst_13 : f32 to vector<16x128xf32>
    %28 = arith.select %25, %26, %27 : vector<16x128xi1>, vector<16x128xf32>
    %29 = arith.truncf %28 : vector<16x128xf32> to vector<16x128xbf16>
    %cst_14 = arith.constant dense<0.000000e+00> : vector<16x16xf32>
    %30 = tpu.matmul %29, %1, %cst_14 {dimension_numbers = #tpu.dot_dimension_numbers<[1], [0], [0], [1], [0, 0, 1, 1], [], []>} : vector<16x128xbf16>, vector<128x16xbf16>, vector<16x16xf32> -> vector<16x16xf32>
    %c0_15 = arith.constant 0 : index
    %c32 = arith.constant 32 : index
    %31 = vector.load %arg9[%c0_15, %c32] : memref<16x144xf32, #tpu.memory_space<vmem>>, vector<16x16xf32>
    tpu.vector_store %arg9[%c0_15, %c32], %30 {strides = array<i32>} : memref<16x144xf32, #tpu.memory_space<vmem>>, vector<16x16xf32>,
    %32 = vector.extract_strided_slice %3 {offsets = [0, 3], sizes = [16, 1], strides = [1, 1]} : vector<16x9xi32> to vector<16x1xi32>
    %33 = vector.broadcast %32 : vector<16x1xi32> to vector<16x128xi32>
    %34 = arith.cmpi eq, %2, %33 : vector<16x128xi32>
    %cst_16 = arith.constant 1.000000e+00 : f32
    %cst_17 = arith.constant 0.000000e+00 : f32
    %35 = vector.broadcast %cst_16 : f32 to vector<16x128xf32>
    %36 = vector.broadcast %cst_17 : f32 to vector<16x128xf32>
    %37 = arith.select %34, %35, %36 : vector<16x128xi1>, vector<16x128xf32>
    %38 = arith.truncf %37 : vector<16x128xf32> to vector<16x128xbf16>
    %cst_18 = arith.constant dense<0.000000e+00> : vector<16x16xf32>
    %39 = tpu.matmul %38, %1, %cst_18 {dimension_numbers = #tpu.dot_dimension_numbers<[1], [0], [0], [1], [0, 0, 1, 1], [], []>} : vector<16x128xbf16>, vector<128x16xbf16>, vector<16x16xf32> -> vector<16x16xf32>
    %c0_19 = arith.constant 0 : index
    %c48 = arith.constant 48 : index
    %40 = vector.load %arg9[%c0_19, %c48] : memref<16x144xf32, #tpu.memory_space<vmem>>, vector<16x16xf32>
    tpu.vector_store %arg9[%c0_19, %c48], %39 {strides = array<i32>} : memref<16x144xf32, #tpu.memory_space<vmem>>, vector<16x16xf32>,
    %41 = vector.extract_strided_slice %3 {offsets = [0, 4], sizes = [16, 1], strides = [1, 1]} : vector<16x9xi32> to vector<16x1xi32>
    %42 = vector.broadcast %41 : vector<16x1xi32> to vector<16x128xi32>
    %43 = arith.cmpi eq, %2, %42 : vector<16x128xi32>
    %cst_20 = arith.constant 1.000000e+00 : f32
    %cst_21 = arith.constant 0.000000e+00 : f32
    %44 = vector.broadcast %cst_20 : f32 to vector<16x128xf32>
    %45 = vector.broadcast %cst_21 : f32 to vector<16x128xf32>
    %46 = arith.select %43, %44, %45 : vector<16x128xi1>, vector<16x128xf32>
    %47 = arith.truncf %46 : vector<16x128xf32> to vector<16x128xbf16>
    %cst_22 = arith.constant dense<0.000000e+00> : vector<16x16xf32>
    %48 = tpu.matmul %47, %1, %cst_22 {dimension_numbers = #tpu.dot_dimension_numbers<[1], [0], [0], [1], [0, 0, 1, 1], [], []>} : vector<16x128xbf16>, vector<128x16xbf16>, vector<16x16xf32> -> vector<16x16xf32>
    %c0_23 = arith.constant 0 : index
    %c64 = arith.constant 64 : index
    %49 = vector.load %arg9[%c0_23, %c64] : memref<16x144xf32, #tpu.memory_space<vmem>>, vector<16x16xf32>
    tpu.vector_store %arg9[%c0_23, %c64], %48 {strides = array<i32>} : memref<16x144xf32, #tpu.memory_space<vmem>>, vector<16x16xf32>,
    %50 = vector.extract_strided_slice %3 {offsets = [0, 5], sizes = [16, 1], strides = [1, 1]} : vector<16x9xi32> to vector<16x1xi32>
    %51 = vector.broadcast %50 : vector<16x1xi32> to vector<16x128xi32>
    %52 = arith.cmpi eq, %2, %51 : vector<16x128xi32>
    %cst_24 = arith.constant 1.000000e+00 : f32
    %cst_25 = arith.constant 0.000000e+00 : f32
    %53 = vector.broadcast %cst_24 : f32 to vector<16x128xf32>
    %54 = vector.broadcast %cst_25 : f32 to vector<16x128xf32>
    %55 = arith.select %52, %53, %54 : vector<16x128xi1>, vector<16x128xf32>
    %56 = arith.truncf %55 : vector<16x128xf32> to vector<16x128xbf16>
    %cst_26 = arith.constant dense<0.000000e+00> : vector<16x16xf32>
    %57 = tpu.matmul %56, %1, %cst_26 {dimension_numbers = #tpu.dot_dimension_numbers<[1], [0], [0], [1], [0, 0, 1, 1], [], []>} : vector<16x128xbf16>, vector<128x16xbf16>, vector<16x16xf32> -> vector<16x16xf32>
    %c0_27 = arith.constant 0 : index
    %c80 = arith.constant 80 : index
    %58 = vector.load %arg9[%c0_27, %c80] : memref<16x144xf32, #tpu.memory_space<vmem>>, vector<16x16xf32>
    tpu.vector_store %arg9[%c0_27, %c80], %57 {strides = array<i32>} : memref<16x144xf32, #tpu.memory_space<vmem>>, vector<16x16xf32>,
    %59 = vector.extract_strided_slice %3 {offsets = [0, 6], sizes = [16, 1], strides = [1, 1]} : vector<16x9xi32> to vector<16x1xi32>
    %60 = vector.broadcast %59 : vector<16x1xi32> to vector<16x128xi32>
    %61 = arith.cmpi eq, %2, %60 : vector<16x128xi32>
    %cst_28 = arith.constant 1.000000e+00 : f32
    %cst_29 = arith.constant 0.000000e+00 : f32
    %62 = vector.broadcast %cst_28 : f32 to vector<16x128xf32>
    %63 = vector.broadcast %cst_29 : f32 to vector<16x128xf32>
    %64 = arith.select %61, %62, %63 : vector<16x128xi1>, vector<16x128xf32>
    %65 = arith.truncf %64 : vector<16x128xf32> to vector<16x128xbf16>
    %cst_30 = arith.constant dense<0.000000e+00> : vector<16x16xf32>
    %66 = tpu.matmul %65, %1, %cst_30 {dimension_numbers = #tpu.dot_dimension_numbers<[1], [0], [0], [1], [0, 0, 1, 1], [], []>} : vector<16x128xbf16>, vector<128x16xbf16>, vector<16x16xf32> -> vector<16x16xf32>
    %c0_31 = arith.constant 0 : index
    %c96 = arith.constant 96 : index
    %67 = vector.load %arg9[%c0_31, %c96] : memref<16x144xf32, #tpu.memory_space<vmem>>, vector<16x16xf32>
    tpu.vector_store %arg9[%c0_31, %c96], %66 {strides = array<i32>} : memref<16x144xf32, #tpu.memory_space<vmem>>, vector<16x16xf32>,
    %68 = vector.extract_strided_slice %3 {offsets = [0, 7], sizes = [16, 1], strides = [1, 1]} : vector<16x9xi32> to vector<16x1xi32>
    %69 = vector.broadcast %68 : vector<16x1xi32> to vector<16x128xi32>
    %70 = arith.cmpi eq, %2, %69 : vector<16x128xi32>
    %cst_32 = arith.constant 1.000000e+00 : f32
    %cst_33 = arith.constant 0.000000e+00 : f32
    %71 = vector.broadcast %cst_32 : f32 to vector<16x128xf32>
    %72 = vector.broadcast %cst_33 : f32 to vector<16x128xf32>
    %73 = arith.select %70, %71, %72 : vector<16x128xi1>, vector<16x128xf32>
    %74 = arith.truncf %73 : vector<16x128xf32> to vector<16x128xbf16>
    %cst_34 = arith.constant dense<0.000000e+00> : vector<16x16xf32>
    %75 = tpu.matmul %74, %1, %cst_34 {dimension_numbers = #tpu.dot_dimension_numbers<[1], [0], [0], [1], [0, 0, 1, 1], [], []>} : vector<16x128xbf16>, vector<128x16xbf16>, vector<16x16xf32> -> vector<16x16xf32>
    %c0_35 = arith.constant 0 : index
    %c112 = arith.constant 112 : index
    %76 = vector.load %arg9[%c0_35, %c112] : memref<16x144xf32, #tpu.memory_space<vmem>>, vector<16x16xf32>
    tpu.vector_store %arg9[%c0_35, %c112], %75 {strides = array<i32>} : memref<16x144xf32, #tpu.memory_space<vmem>>, vector<16x16xf32>,
    %77 = vector.extract_strided_slice %3 {offsets = [0, 8], sizes = [16, 1], strides = [1, 1]} : vector<16x9xi32> to vector<16x1xi32>
    %78 = vector.broadcast %77 : vector<16x1xi32> to vector<16x128xi32>
    %79 = arith.cmpi eq, %2, %78 : vector<16x128xi32>
    %cst_36 = arith.constant 1.000000e+00 : f32
    %cst_37 = arith.constant 0.000000e+00 : f32
    %80 = vector.broadcast %cst_36 : f32 to vector<16x128xf32>
    %81 = vector.broadcast %cst_37 : f32 to vector<16x128xf32>
    %82 = arith.select %79, %80, %81 : vector<16x128xi1>, vector<16x128xf32>
    %83 = arith.truncf %82 : vector<16x128xf32> to vector<16x128xbf16>
    %cst_38 = arith.constant dense<0.000000e+00> : vector<16x16xf32>
    %84 = tpu.matmul %83, %1, %cst_38 {dimension_numbers = #tpu.dot_dimension_numbers<[1], [0], [0], [1], [0, 0, 1, 1], [], []>} : vector<16x128xbf16>, vector<128x16xbf16>, vector<16x16xf32> -> vector<16x16xf32>
    %c0_39 = arith.constant 0 : index
    %c128 = arith.constant 128 : index
    %85 = vector.load %arg9[%c0_39, %c128] : memref<16x144xf32, #tpu.memory_space<vmem>>, vector<16x16xf32>
    tpu.vector_store %arg9[%c0_39, %c128], %84 {strides = array<i32>} : memref<16x144xf32, #tpu.memory_space<vmem>>, vector<16x16xf32>,
    %c0_40 = arith.constant 0 : index
    %c0_41 = arith.constant 0 : index
    %86 = vector.load %arg9[%c0_40, %c0_41] : memref<16x144xf32, #tpu.memory_space<vmem>>, vector<16x144xf32>
    %87 = arith.truncf %86 : vector<16x144xf32> to vector<16x144xbf16>
    %c0_42 = arith.constant 0 : index
    %c0_43 = arith.constant 0 : index
    %88 = vector.load %arg4[%c0_42, %c0_43] : memref<144x18xbf16, #tpu.memory_space<vmem>>, vector<144x18xbf16>
    %cst_44 = arith.constant dense<0.000000e+00> : vector<16x18xf32>
    %89 = tpu.matmul %87, %88, %cst_44 {dimension_numbers = #tpu.dot_dimension_numbers<[1], [0], [0], [1], [0, 0, 1, 1], [], []>} : vector<16x144xbf16>, vector<144x18xbf16>, vector<16x18xf32> -> vector<16x18xf32>
    %c0_45 = arith.constant 0 : index
    %c0_46 = arith.constant 0 : index
    %90 = vector.load %arg5[%c0_45, %c0_46] : memref<1x18xf32, #tpu.memory_space<vmem>>, vector<1x18xf32>
    %91 = vector.broadcast %90 : vector<1x18xf32> to vector<16x18xf32>
    %92 = arith.addf %89, %91 : vector<16x18xf32>
    %93 = vector.extract_strided_slice %92 {offsets = [0, 0], sizes = [16, 9], strides = [1, 1]} : vector<16x18xf32> to vector<16x9xf32>
    %94 = vector.extract_strided_slice %92 {offsets = [0, 9], sizes = [16, 9], strides = [1, 1]} : vector<16x18xf32> to vector<16x9xf32>
    %c0_47 = arith.constant 0 : index
    %c0_48 = arith.constant 0 : index
    %95 = vector.load %arg3[%c0_47, %c0_48] : memref<16x18xf32, #tpu.memory_space<vmem>>, vector<16x9xf32>
    %96 = arith.addf %95, %93 : vector<16x9xf32>
    %c0_49 = arith.constant 0 : index
    %c9_50 = arith.constant 9 : index
    %97 = vector.load %arg3[%c0_49, %c9_50] : memref<16x18xf32, #tpu.memory_space<vmem>>, vector<16x9xf32>
    %98 = arith.addf %97, %94 : vector<16x9xf32>
    %99 = math.floor %96 : vector<16x9xf32>
    %100 = math.floor %98 : vector<16x9xf32>
    %101 = arith.subf %96, %99 : vector<16x9xf32>
    %102 = arith.subf %98, %100 : vector<16x9xf32>
    %103 = arith.fptosi %99 : vector<16x9xf32> to vector<16x9xi32>
    %104 = arith.fptosi %100 : vector<16x9xf32> to vector<16x9xi32>
    %c1_i32 = arith.constant 1 : i32
    %105 = vector.broadcast %c1_i32 : i32 to vector<16x9xi32>
    %106 = arith.addi %103, %105 : vector<16x9xi32>
    %c1_i32_51 = arith.constant 1 : i32
    %107 = vector.broadcast %c1_i32_51 : i32 to vector<16x9xi32>
    %108 = arith.addi %104, %107 : vector<16x9xi32>
    %cst_52 = arith.constant 1.000000e+00 : f32
    %109 = vector.broadcast %cst_52 : f32 to vector<16x9xf32>
    %110 = arith.subf %109, %101 : vector<16x9xf32>
    %cst_53 = arith.constant 1.000000e+00 : f32
    %111 = vector.broadcast %cst_53 : f32 to vector<16x9xf32>
    %112 = arith.subf %111, %102 : vector<16x9xf32>
    %113 = arith.mulf %110, %112 : vector<16x9xf32>
    %c0_i32 = arith.constant 0 : i32
    %114 = vector.broadcast %c0_i32 : i32 to vector<16x9xi32>
    %115 = arith.cmpi sge, %103, %114 : vector<16x9xi32>
    %c8_i32 = arith.constant 8 : i32
    %116 = vector.broadcast %c8_i32 : i32 to vector<16x9xi32>
    %117 = arith.cmpi slt, %103, %116 : vector<16x9xi32>
    %118 = arith.andi %115, %117 : vector<16x9xi1>
    %c0_i32_54 = arith.constant 0 : i32
    %119 = vector.broadcast %c0_i32_54 : i32 to vector<16x9xi32>
    %120 = arith.cmpi sge, %104, %119 : vector<16x9xi32>
    %121 = arith.andi %118, %120 : vector<16x9xi1>
    %c8_i32_55 = arith.constant 8 : i32
    %122 = vector.broadcast %c8_i32_55 : i32 to vector<16x9xi32>
    %123 = arith.cmpi slt, %104, %122 : vector<16x9xi32>
    %124 = arith.andi %121, %123 : vector<16x9xi1>
    %c0_i32_56 = arith.constant 0 : i32
    %c7_i32 = arith.constant 7 : i32
    %125 = vector.broadcast %c0_i32_56 : i32 to vector<16x9xi32>
    %126 = arith.maxsi %125, %103 : vector<16x9xi32>
    %127 = vector.broadcast %c7_i32 : i32 to vector<16x9xi32>
    %128 = arith.minsi %127, %126 : vector<16x9xi32>
    %c8_i32_57 = arith.constant 8 : i32
    %129 = vector.broadcast %c8_i32_57 : i32 to vector<16x9xi32>
    %130 = arith.muli %128, %129 : vector<16x9xi32>
    %131 = vector.broadcast %4 : vector<16x1xi32> to vector<16x9xi32>
    %132 = arith.addi %131, %130 : vector<16x9xi32>
    %c0_i32_58 = arith.constant 0 : i32
    %c7_i32_59 = arith.constant 7 : i32
    %133 = vector.broadcast %c0_i32_58 : i32 to vector<16x9xi32>
    %134 = arith.maxsi %133, %104 : vector<16x9xi32>
    %135 = vector.broadcast %c7_i32_59 : i32 to vector<16x9xi32>
    %136 = arith.minsi %135, %134 : vector<16x9xi32>
    %137 = arith.addi %132, %136 : vector<16x9xi32>
    %cst_60 = arith.constant 0.000000e+00 : f32
    %138 = vector.broadcast %cst_60 : f32 to vector<16x9xf32>
    %139 = arith.select %124, %113, %138 : vector<16x9xi1>, vector<16x9xf32>
    %cst_61 = arith.constant 1.000000e+00 : f32
    %140 = vector.broadcast %cst_61 : f32 to vector<16x9xf32>
    %141 = arith.subf %140, %101 : vector<16x9xf32>
    %142 = arith.mulf %141, %102 : vector<16x9xf32>
    %c0_i32_62 = arith.constant 0 : i32
    %143 = vector.broadcast %c0_i32_62 : i32 to vector<16x9xi32>
    %144 = arith.cmpi sge, %103, %143 : vector<16x9xi32>
    %c8_i32_63 = arith.constant 8 : i32
    %145 = vector.broadcast %c8_i32_63 : i32 to vector<16x9xi32>
    %146 = arith.cmpi slt, %103, %145 : vector<16x9xi32>
    %147 = arith.andi %144, %146 : vector<16x9xi1>
    %c0_i32_64 = arith.constant 0 : i32
    %148 = vector.broadcast %c0_i32_64 : i32 to vector<16x9xi32>
    %149 = arith.cmpi sge, %108, %148 : vector<16x9xi32>
    %150 = arith.andi %147, %149 : vector<16x9xi1>
    %c8_i32_65 = arith.constant 8 : i32
    %151 = vector.broadcast %c8_i32_65 : i32 to vector<16x9xi32>
    %152 = arith.cmpi slt, %108, %151 : vector<16x9xi32>
    %153 = arith.andi %150, %152 : vector<16x9xi1>
    %c0_i32_66 = arith.constant 0 : i32
    %c7_i32_67 = arith.constant 7 : i32
    %154 = vector.broadcast %c0_i32_66 : i32 to vector<16x9xi32>
    %155 = arith.maxsi %154, %103 : vector<16x9xi32>
    %156 = vector.broadcast %c7_i32_67 : i32 to vector<16x9xi32>
    %157 = arith.minsi %156, %155 : vector<16x9xi32>
    %c8_i32_68 = arith.constant 8 : i32
    %158 = vector.broadcast %c8_i32_68 : i32 to vector<16x9xi32>
    %159 = arith.muli %157, %158 : vector<16x9xi32>
    %160 = vector.broadcast %4 : vector<16x1xi32> to vector<16x9xi32>
    %161 = arith.addi %160, %159 : vector<16x9xi32>
    %c0_i32_69 = arith.constant 0 : i32
    %c7_i32_70 = arith.constant 7 : i32
    %162 = vector.broadcast %c0_i32_69 : i32 to vector<16x9xi32>
    %163 = arith.maxsi %162, %108 : vector<16x9xi32>
    %164 = vector.broadcast %c7_i32_70 : i32 to vector<16x9xi32>
    %165 = arith.minsi %164, %163 : vector<16x9xi32>
    %166 = arith.addi %161, %165 : vector<16x9xi32>
    %cst_71 = arith.constant 0.000000e+00 : f32
    %167 = vector.broadcast %cst_71 : f32 to vector<16x9xf32>
    %168 = arith.select %153, %142, %167 : vector<16x9xi1>, vector<16x9xf32>
    %cst_72 = arith.constant 1.000000e+00 : f32
    %169 = vector.broadcast %cst_72 : f32 to vector<16x9xf32>
    %170 = arith.subf %169, %102 : vector<16x9xf32>
    %171 = arith.mulf %101, %170 : vector<16x9xf32>
    %c0_i32_73 = arith.constant 0 : i32
    %172 = vector.broadcast %c0_i32_73 : i32 to vector<16x9xi32>
    %173 = arith.cmpi sge, %106, %172 : vector<16x9xi32>
    %c8_i32_74 = arith.constant 8 : i32
    %174 = vector.broadcast %c8_i32_74 : i32 to vector<16x9xi32>
    %175 = arith.cmpi slt, %106, %174 : vector<16x9xi32>
    %176 = arith.andi %173, %175 : vector<16x9xi1>
    %c0_i32_75 = arith.constant 0 : i32
    %177 = vector.broadcast %c0_i32_75 : i32 to vector<16x9xi32>
    %178 = arith.cmpi sge, %104, %177 : vector<16x9xi32>
    %179 = arith.andi %176, %178 : vector<16x9xi1>
    %c8_i32_76 = arith.constant 8 : i32
    %180 = vector.broadcast %c8_i32_76 : i32 to vector<16x9xi32>
    %181 = arith.cmpi slt, %104, %180 : vector<16x9xi32>
    %182 = arith.andi %179, %181 : vector<16x9xi1>
    %c0_i32_77 = arith.constant 0 : i32
    %c7_i32_78 = arith.constant 7 : i32
    %183 = vector.broadcast %c0_i32_77 : i32 to vector<16x9xi32>
    %184 = arith.maxsi %183, %106 : vector<16x9xi32>
    %185 = vector.broadcast %c7_i32_78 : i32 to vector<16x9xi32>
    %186 = arith.minsi %185, %184 : vector<16x9xi32>
    %c8_i32_79 = arith.constant 8 : i32
    %187 = vector.broadcast %c8_i32_79 : i32 to vector<16x9xi32>
    %188 = arith.muli %186, %187 : vector<16x9xi32>
    %189 = vector.broadcast %4 : vector<16x1xi32> to vector<16x9xi32>
    %190 = arith.addi %189, %188 : vector<16x9xi32>
    %c0_i32_80 = arith.constant 0 : i32
    %c7_i32_81 = arith.constant 7 : i32
    %191 = vector.broadcast %c0_i32_80 : i32 to vector<16x9xi32>
    %192 = arith.maxsi %191, %104 : vector<16x9xi32>
    %193 = vector.broadcast %c7_i32_81 : i32 to vector<16x9xi32>
    %194 = arith.minsi %193, %192 : vector<16x9xi32>
    %195 = arith.addi %190, %194 : vector<16x9xi32>
    %cst_82 = arith.constant 0.000000e+00 : f32
    %196 = vector.broadcast %cst_82 : f32 to vector<16x9xf32>
    %197 = arith.select %182, %171, %196 : vector<16x9xi1>, vector<16x9xf32>
    %198 = arith.mulf %101, %102 : vector<16x9xf32>
    %c0_i32_83 = arith.constant 0 : i32
    %199 = vector.broadcast %c0_i32_83 : i32 to vector<16x9xi32>
    %200 = arith.cmpi sge, %106, %199 : vector<16x9xi32>
    %c8_i32_84 = arith.constant 8 : i32
    %201 = vector.broadcast %c8_i32_84 : i32 to vector<16x9xi32>
    %202 = arith.cmpi slt, %106, %201 : vector<16x9xi32>
    %203 = arith.andi %200, %202 : vector<16x9xi1>
    %c0_i32_85 = arith.constant 0 : i32
    %204 = vector.broadcast %c0_i32_85 : i32 to vector<16x9xi32>
    %205 = arith.cmpi sge, %108, %204 : vector<16x9xi32>
    %206 = arith.andi %203, %205 : vector<16x9xi1>
    %c8_i32_86 = arith.constant 8 : i32
    %207 = vector.broadcast %c8_i32_86 : i32 to vector<16x9xi32>
    %208 = arith.cmpi slt, %108, %207 : vector<16x9xi32>
    %209 = arith.andi %206, %208 : vector<16x9xi1>
    %c0_i32_87 = arith.constant 0 : i32
    %c7_i32_88 = arith.constant 7 : i32
    %210 = vector.broadcast %c0_i32_87 : i32 to vector<16x9xi32>
    %211 = arith.maxsi %210, %106 : vector<16x9xi32>
    %212 = vector.broadcast %c7_i32_88 : i32 to vector<16x9xi32>
    %213 = arith.minsi %212, %211 : vector<16x9xi32>
    %c8_i32_89 = arith.constant 8 : i32
    %214 = vector.broadcast %c8_i32_89 : i32 to vector<16x9xi32>
    %215 = arith.muli %213, %214 : vector<16x9xi32>
    %216 = vector.broadcast %4 : vector<16x1xi32> to vector<16x9xi32>
    %217 = arith.addi %216, %215 : vector<16x9xi32>
    %c0_i32_90 = arith.constant 0 : i32
    %c7_i32_91 = arith.constant 7 : i32
    %218 = vector.broadcast %c0_i32_90 : i32 to vector<16x9xi32>
    %219 = arith.maxsi %218, %108 : vector<16x9xi32>
    %220 = vector.broadcast %c7_i32_91 : i32 to vector<16x9xi32>
    %221 = arith.minsi %220, %219 : vector<16x9xi32>
    %222 = arith.addi %217, %221 : vector<16x9xi32>
    %cst_92 = arith.constant 0.000000e+00 : f32
    %223 = vector.broadcast %cst_92 : f32 to vector<16x9xf32>
    %224 = arith.select %209, %198, %223 : vector<16x9xi1>, vector<16x9xf32>
    %225 = vector.extract_strided_slice %137 {offsets = [0, 0], sizes = [16, 1], strides = [1, 1]} : vector<16x9xi32> to vector<16x1xi32>
    %226 = vector.broadcast %225 : vector<16x1xi32> to vector<16x128xi32>
    %227 = arith.cmpi eq, %2, %226 : vector<16x128xi32>
    %228 = vector.extract_strided_slice %139 {offsets = [0, 0], sizes = [16, 1], strides = [1, 1]} : vector<16x9xf32> to vector<16x1xf32>
    %cst_93 = arith.constant 0.000000e+00 : f32
    %229 = vector.shape_cast %228 : vector<16x1xf32> to vector<16x1xf32>
    %230 = vector.broadcast %229 : vector<16x1xf32> to vector<16x128xf32>
    %231 = vector.broadcast %cst_93 : f32 to vector<16x128xf32>
    %232 = arith.select %227, %230, %231 : vector<16x128xi1>, vector<16x128xf32>
    %233 = vector.extract_strided_slice %166 {offsets = [0, 0], sizes = [16, 1], strides = [1, 1]} : vector<16x9xi32> to vector<16x1xi32>
    %234 = vector.broadcast %233 : vector<16x1xi32> to vector<16x128xi32>
    %235 = arith.cmpi eq, %2, %234 : vector<16x128xi32>
    %236 = vector.extract_strided_slice %168 {offsets = [0, 0], sizes = [16, 1], strides = [1, 1]} : vector<16x9xf32> to vector<16x1xf32>
    %cst_94 = arith.constant 0.000000e+00 : f32
    %237 = vector.shape_cast %236 : vector<16x1xf32> to vector<16x1xf32>
    %238 = vector.broadcast %237 : vector<16x1xf32> to vector<16x128xf32>
    %239 = vector.broadcast %cst_94 : f32 to vector<16x128xf32>
    %240 = arith.select %235, %238, %239 : vector<16x128xi1>, vector<16x128xf32>
    %241 = arith.addf %232, %240 : vector<16x128xf32>
    %242 = vector.extract_strided_slice %195 {offsets = [0, 0], sizes = [16, 1], strides = [1, 1]} : vector<16x9xi32> to vector<16x1xi32>
    %243 = vector.broadcast %242 : vector<16x1xi32> to vector<16x128xi32>
    %244 = arith.cmpi eq, %2, %243 : vector<16x128xi32>
    %245 = vector.extract_strided_slice %197 {offsets = [0, 0], sizes = [16, 1], strides = [1, 1]} : vector<16x9xf32> to vector<16x1xf32>
    %cst_95 = arith.constant 0.000000e+00 : f32
    %246 = vector.shape_cast %245 : vector<16x1xf32> to vector<16x1xf32>
    %247 = vector.broadcast %246 : vector<16x1xf32> to vector<16x128xf32>
    %248 = vector.broadcast %cst_95 : f32 to vector<16x128xf32>
    %249 = arith.select %244, %247, %248 : vector<16x128xi1>, vector<16x128xf32>
    %250 = arith.addf %241, %249 : vector<16x128xf32>
    %251 = vector.extract_strided_slice %222 {offsets = [0, 0], sizes = [16, 1], strides = [1, 1]} : vector<16x9xi32> to vector<16x1xi32>
    %252 = vector.broadcast %251 : vector<16x1xi32> to vector<16x128xi32>
    %253 = arith.cmpi eq, %2, %252 : vector<16x128xi32>
    %254 = vector.extract_strided_slice %224 {offsets = [0, 0], sizes = [16, 1], strides = [1, 1]} : vector<16x9xf32> to vector<16x1xf32>
    %cst_96 = arith.constant 0.000000e+00 : f32
    %255 = vector.shape_cast %254 : vector<16x1xf32> to vector<16x1xf32>
    %256 = vector.broadcast %255 : vector<16x1xf32> to vector<16x128xf32>
    %257 = vector.broadcast %cst_96 : f32 to vector<16x128xf32>
    %258 = arith.select %253, %256, %257 : vector<16x128xi1>, vector<16x128xf32>
    %259 = arith.addf %250, %258 : vector<16x128xf32>
    %260 = arith.truncf %259 : vector<16x128xf32> to vector<16x128xbf16>
    %cst_97 = arith.constant dense<0.000000e+00> : vector<16x16xf32>
    %261 = tpu.matmul %260, %1, %cst_97 {dimension_numbers = #tpu.dot_dimension_numbers<[1], [0], [0], [1], [0, 0, 1, 1], [], []>} : vector<16x128xbf16>, vector<128x16xbf16>, vector<16x16xf32> -> vector<16x16xf32>
    %c0_98 = arith.constant 0 : index
    %c0_99 = arith.constant 0 : index
    %262 = vector.load %arg10[%c0_98, %c0_99] : memref<16x144xf32, #tpu.memory_space<vmem>>, vector<16x16xf32>
    tpu.vector_store %arg10[%c0_98, %c0_99], %261 {strides = array<i32>} : memref<16x144xf32, #tpu.memory_space<vmem>>, vector<16x16xf32>,
    %263 = vector.extract_strided_slice %137 {offsets = [0, 1], sizes = [16, 1], strides = [1, 1]} : vector<16x9xi32> to vector<16x1xi32>
    %264 = vector.broadcast %263 : vector<16x1xi32> to vector<16x128xi32>
    %265 = arith.cmpi eq, %2, %264 : vector<16x128xi32>
    %266 = vector.extract_strided_slice %139 {offsets = [0, 1], sizes = [16, 1], strides = [1, 1]} : vector<16x9xf32> to vector<16x1xf32>
    %cst_100 = arith.constant 0.000000e+00 : f32
    %267 = vector.shape_cast %266 : vector<16x1xf32> to vector<16x1xf32>
    %268 = vector.broadcast %267 : vector<16x1xf32> to vector<16x128xf32>
    %269 = vector.broadcast %cst_100 : f32 to vector<16x128xf32>
    %270 = arith.select %265, %268, %269 : vector<16x128xi1>, vector<16x128xf32>
    %271 = vector.extract_strided_slice %166 {offsets = [0, 1], sizes = [16, 1], strides = [1, 1]} : vector<16x9xi32> to vector<16x1xi32>
    %272 = vector.broadcast %271 : vector<16x1xi32> to vector<16x128xi32>
    %273 = arith.cmpi eq, %2, %272 : vector<16x128xi32>
    %274 = vector.extract_strided_slice %168 {offsets = [0, 1], sizes = [16, 1], strides = [1, 1]} : vector<16x9xf32> to vector<16x1xf32>
    %cst_101 = arith.constant 0.000000e+00 : f32
    %275 = vector.shape_cast %274 : vector<16x1xf32> to vector<16x1xf32>
    %276 = vector.broadcast %275 : vector<16x1xf32> to vector<16x128xf32>
    %277 = vector.broadcast %cst_101 : f32 to vector<16x128xf32>
    %278 = arith.select %273, %276, %277 : vector<16x128xi1>, vector<16x128xf32>
    %279 = arith.addf %270, %278 : vector<16x128xf32>
    %280 = vector.extract_strided_slice %195 {offsets = [0, 1], sizes = [16, 1], strides = [1, 1]} : vector<16x9xi32> to vector<16x1xi32>
    %281 = vector.broadcast %280 : vector<16x1xi32> to vector<16x128xi32>
    %282 = arith.cmpi eq, %2, %281 : vector<16x128xi32>
    %283 = vector.extract_strided_slice %197 {offsets = [0, 1], sizes = [16, 1], strides = [1, 1]} : vector<16x9xf32> to vector<16x1xf32>
    %cst_102 = arith.constant 0.000000e+00 : f32
    %284 = vector.shape_cast %283 : vector<16x1xf32> to vector<16x1xf32>
    %285 = vector.broadcast %284 : vector<16x1xf32> to vector<16x128xf32>
    %286 = vector.broadcast %cst_102 : f32 to vector<16x128xf32>
    %287 = arith.select %282, %285, %286 : vector<16x128xi1>, vector<16x128xf32>
    %288 = arith.addf %279, %287 : vector<16x128xf32>
    %289 = vector.extract_strided_slice %222 {offsets = [0, 1], sizes = [16, 1], strides = [1, 1]} : vector<16x9xi32> to vector<16x1xi32>
    %290 = vector.broadcast %289 : vector<16x1xi32> to vector<16x128xi32>
    %291 = arith.cmpi eq, %2, %290 : vector<16x128xi32>
    %292 = vector.extract_strided_slice %224 {offsets = [0, 1], sizes = [16, 1], strides = [1, 1]} : vector<16x9xf32> to vector<16x1xf32>
    %cst_103 = arith.constant 0.000000e+00 : f32
    %293 = vector.shape_cast %292 : vector<16x1xf32> to vector<16x1xf32>
    %294 = vector.broadcast %293 : vector<16x1xf32> to vector<16x128xf32>
    %295 = vector.broadcast %cst_103 : f32 to vector<16x128xf32>
    %296 = arith.select %291, %294, %295 : vector<16x128xi1>, vector<16x128xf32>
    %297 = arith.addf %288, %296 : vector<16x128xf32>
    %298 = arith.truncf %297 : vector<16x128xf32> to vector<16x128xbf16>
    %cst_104 = arith.constant dense<0.000000e+00> : vector<16x16xf32>
    %299 = tpu.matmul %298, %1, %cst_104 {dimension_numbers = #tpu.dot_dimension_numbers<[1], [0], [0], [1], [0, 0, 1, 1], [], []>} : vector<16x128xbf16>, vector<128x16xbf16>, vector<16x16xf32> -> vector<16x16xf32>
    %c0_105 = arith.constant 0 : index
    %c16_106 = arith.constant 16 : index
    %300 = vector.load %arg10[%c0_105, %c16_106] : memref<16x144xf32, #tpu.memory_space<vmem>>, vector<16x16xf32>
    tpu.vector_store %arg10[%c0_105, %c16_106], %299 {strides = array<i32>} : memref<16x144xf32, #tpu.memory_space<vmem>>, vector<16x16xf32>,
    %301 = vector.extract_strided_slice %137 {offsets = [0, 2], sizes = [16, 1], strides = [1, 1]} : vector<16x9xi32> to vector<16x1xi32>
    %302 = vector.broadcast %301 : vector<16x1xi32> to vector<16x128xi32>
    %303 = arith.cmpi eq, %2, %302 : vector<16x128xi32>
    %304 = vector.extract_strided_slice %139 {offsets = [0, 2], sizes = [16, 1], strides = [1, 1]} : vector<16x9xf32> to vector<16x1xf32>
    %cst_107 = arith.constant 0.000000e+00 : f32
    %305 = vector.shape_cast %304 : vector<16x1xf32> to vector<16x1xf32>
    %306 = vector.broadcast %305 : vector<16x1xf32> to vector<16x128xf32>
    %307 = vector.broadcast %cst_107 : f32 to vector<16x128xf32>
    %308 = arith.select %303, %306, %307 : vector<16x128xi1>, vector<16x128xf32>
    %309 = vector.extract_strided_slice %166 {offsets = [0, 2], sizes = [16, 1], strides = [1, 1]} : vector<16x9xi32> to vector<16x1xi32>
    %310 = vector.broadcast %309 : vector<16x1xi32> to vector<16x128xi32>
    %311 = arith.cmpi eq, %2, %310 : vector<16x128xi32>
    %312 = vector.extract_strided_slice %168 {offsets = [0, 2], sizes = [16, 1], strides = [1, 1]} : vector<16x9xf32> to vector<16x1xf32>
    %cst_108 = arith.constant 0.000000e+00 : f32
    %313 = vector.shape_cast %312 : vector<16x1xf32> to vector<16x1xf32>
    %314 = vector.broadcast %313 : vector<16x1xf32> to vector<16x128xf32>
    %315 = vector.broadcast %cst_108 : f32 to vector<16x128xf32>
    %316 = arith.select %311, %314, %315 : vector<16x128xi1>, vector<16x128xf32>
    %317 = arith.addf %308, %316 : vector<16x128xf32>
    %318 = vector.extract_strided_slice %195 {offsets = [0, 2], sizes = [16, 1], strides = [1, 1]} : vector<16x9xi32> to vector<16x1xi32>
    %319 = vector.broadcast %318 : vector<16x1xi32> to vector<16x128xi32>
    %320 = arith.cmpi eq, %2, %319 : vector<16x128xi32>
    %321 = vector.extract_strided_slice %197 {offsets = [0, 2], sizes = [16, 1], strides = [1, 1]} : vector<16x9xf32> to vector<16x1xf32>
    %cst_109 = arith.constant 0.000000e+00 : f32
    %322 = vector.shape_cast %321 : vector<16x1xf32> to vector<16x1xf32>
    %323 = vector.broadcast %322 : vector<16x1xf32> to vector<16x128xf32>
    %324 = vector.broadcast %cst_109 : f32 to vector<16x128xf32>
    %325 = arith.select %320, %323, %324 : vector<16x128xi1>, vector<16x128xf32>
    %326 = arith.addf %317, %325 : vector<16x128xf32>
    %327 = vector.extract_strided_slice %222 {offsets = [0, 2], sizes = [16, 1], strides = [1, 1]} : vector<16x9xi32> to vector<16x1xi32>
    %328 = vector.broadcast %327 : vector<16x1xi32> to vector<16x128xi32>
    %329 = arith.cmpi eq, %2, %328 : vector<16x128xi32>
    %330 = vector.extract_strided_slice %224 {offsets = [0, 2], sizes = [16, 1], strides = [1, 1]} : vector<16x9xf32> to vector<16x1xf32>
    %cst_110 = arith.constant 0.000000e+00 : f32
    %331 = vector.shape_cast %330 : vector<16x1xf32> to vector<16x1xf32>
    %332 = vector.broadcast %331 : vector<16x1xf32> to vector<16x128xf32>
    %333 = vector.broadcast %cst_110 : f32 to vector<16x128xf32>
    %334 = arith.select %329, %332, %333 : vector<16x128xi1>, vector<16x128xf32>
    %335 = arith.addf %326, %334 : vector<16x128xf32>
    %336 = arith.truncf %335 : vector<16x128xf32> to vector<16x128xbf16>
    %cst_111 = arith.constant dense<0.000000e+00> : vector<16x16xf32>
    %337 = tpu.matmul %336, %1, %cst_111 {dimension_numbers = #tpu.dot_dimension_numbers<[1], [0], [0], [1], [0, 0, 1, 1], [], []>} : vector<16x128xbf16>, vector<128x16xbf16>, vector<16x16xf32> -> vector<16x16xf32>
    %c0_112 = arith.constant 0 : index
    %c32_113 = arith.constant 32 : index
    %338 = vector.load %arg10[%c0_112, %c32_113] : memref<16x144xf32, #tpu.memory_space<vmem>>, vector<16x16xf32>
    tpu.vector_store %arg10[%c0_112, %c32_113], %337 {strides = array<i32>} : memref<16x144xf32, #tpu.memory_space<vmem>>, vector<16x16xf32>,
    %339 = vector.extract_strided_slice %137 {offsets = [0, 3], sizes = [16, 1], strides = [1, 1]} : vector<16x9xi32> to vector<16x1xi32>
    %340 = vector.broadcast %339 : vector<16x1xi32> to vector<16x128xi32>
    %341 = arith.cmpi eq, %2, %340 : vector<16x128xi32>
    %342 = vector.extract_strided_slice %139 {offsets = [0, 3], sizes = [16, 1], strides = [1, 1]} : vector<16x9xf32> to vector<16x1xf32>
    %cst_114 = arith.constant 0.000000e+00 : f32
    %343 = vector.shape_cast %342 : vector<16x1xf32> to vector<16x1xf32>
    %344 = vector.broadcast %343 : vector<16x1xf32> to vector<16x128xf32>
    %345 = vector.broadcast %cst_114 : f32 to vector<16x128xf32>
    %346 = arith.select %341, %344, %345 : vector<16x128xi1>, vector<16x128xf32>
    %347 = vector.extract_strided_slice %166 {offsets = [0, 3], sizes = [16, 1], strides = [1, 1]} : vector<16x9xi32> to vector<16x1xi32>
    %348 = vector.broadcast %347 : vector<16x1xi32> to vector<16x128xi32>
    %349 = arith.cmpi eq, %2, %348 : vector<16x128xi32>
    %350 = vector.extract_strided_slice %168 {offsets = [0, 3], sizes = [16, 1], strides = [1, 1]} : vector<16x9xf32> to vector<16x1xf32>
    %cst_115 = arith.constant 0.000000e+00 : f32
    %351 = vector.shape_cast %350 : vector<16x1xf32> to vector<16x1xf32>
    %352 = vector.broadcast %351 : vector<16x1xf32> to vector<16x128xf32>
    %353 = vector.broadcast %cst_115 : f32 to vector<16x128xf32>
    %354 = arith.select %349, %352, %353 : vector<16x128xi1>, vector<16x128xf32>
    %355 = arith.addf %346, %354 : vector<16x128xf32>
    %356 = vector.extract_strided_slice %195 {offsets = [0, 3], sizes = [16, 1], strides = [1, 1]} : vector<16x9xi32> to vector<16x1xi32>
    %357 = vector.broadcast %356 : vector<16x1xi32> to vector<16x128xi32>
    %358 = arith.cmpi eq, %2, %357 : vector<16x128xi32>
    %359 = vector.extract_strided_slice %197 {offsets = [0, 3], sizes = [16, 1], strides = [1, 1]} : vector<16x9xf32> to vector<16x1xf32>
    %cst_116 = arith.constant 0.000000e+00 : f32
    %360 = vector.shape_cast %359 : vector<16x1xf32> to vector<16x1xf32>
    %361 = vector.broadcast %360 : vector<16x1xf32> to vector<16x128xf32>
    %362 = vector.broadcast %cst_116 : f32 to vector<16x128xf32>
    %363 = arith.select %358, %361, %362 : vector<16x128xi1>, vector<16x128xf32>
    %364 = arith.addf %355, %363 : vector<16x128xf32>
    %365 = vector.extract_strided_slice %222 {offsets = [0, 3], sizes = [16, 1], strides = [1, 1]} : vector<16x9xi32> to vector<16x1xi32>
    %366 = vector.broadcast %365 : vector<16x1xi32> to vector<16x128xi32>
    %367 = arith.cmpi eq, %2, %366 : vector<16x128xi32>
    %368 = vector.extract_strided_slice %224 {offsets = [0, 3], sizes = [16, 1], strides = [1, 1]} : vector<16x9xf32> to vector<16x1xf32>
    %cst_117 = arith.constant 0.000000e+00 : f32
    %369 = vector.shape_cast %368 : vector<16x1xf32> to vector<16x1xf32>
    %370 = vector.broadcast %369 : vector<16x1xf32> to vector<16x128xf32>
    %371 = vector.broadcast %cst_117 : f32 to vector<16x128xf32>
    %372 = arith.select %367, %370, %371 : vector<16x128xi1>, vector<16x128xf32>
    %373 = arith.addf %364, %372 : vector<16x128xf32>
    %374 = arith.truncf %373 : vector<16x128xf32> to vector<16x128xbf16>
    %cst_118 = arith.constant dense<0.000000e+00> : vector<16x16xf32>
    %375 = tpu.matmul %374, %1, %cst_118 {dimension_numbers = #tpu.dot_dimension_numbers<[1], [0], [0], [1], [0, 0, 1, 1], [], []>} : vector<16x128xbf16>, vector<128x16xbf16>, vector<16x16xf32> -> vector<16x16xf32>
    %c0_119 = arith.constant 0 : index
    %c48_120 = arith.constant 48 : index
    %376 = vector.load %arg10[%c0_119, %c48_120] : memref<16x144xf32, #tpu.memory_space<vmem>>, vector<16x16xf32>
    tpu.vector_store %arg10[%c0_119, %c48_120], %375 {strides = array<i32>} : memref<16x144xf32, #tpu.memory_space<vmem>>, vector<16x16xf32>,
    %377 = vector.extract_strided_slice %137 {offsets = [0, 4], sizes = [16, 1], strides = [1, 1]} : vector<16x9xi32> to vector<16x1xi32>
    %378 = vector.broadcast %377 : vector<16x1xi32> to vector<16x128xi32>
    %379 = arith.cmpi eq, %2, %378 : vector<16x128xi32>
    %380 = vector.extract_strided_slice %139 {offsets = [0, 4], sizes = [16, 1], strides = [1, 1]} : vector<16x9xf32> to vector<16x1xf32>
    %cst_121 = arith.constant 0.000000e+00 : f32
    %381 = vector.shape_cast %380 : vector<16x1xf32> to vector<16x1xf32>
    %382 = vector.broadcast %381 : vector<16x1xf32> to vector<16x128xf32>
    %383 = vector.broadcast %cst_121 : f32 to vector<16x128xf32>
    %384 = arith.select %379, %382, %383 : vector<16x128xi1>, vector<16x128xf32>
    %385 = vector.extract_strided_slice %166 {offsets = [0, 4], sizes = [16, 1], strides = [1, 1]} : vector<16x9xi32> to vector<16x1xi32>
    %386 = vector.broadcast %385 : vector<16x1xi32> to vector<16x128xi32>
    %387 = arith.cmpi eq, %2, %386 : vector<16x128xi32>
    %388 = vector.extract_strided_slice %168 {offsets = [0, 4], sizes = [16, 1], strides = [1, 1]} : vector<16x9xf32> to vector<16x1xf32>
    %cst_122 = arith.constant 0.000000e+00 : f32
    %389 = vector.shape_cast %388 : vector<16x1xf32> to vector<16x1xf32>
    %390 = vector.broadcast %389 : vector<16x1xf32> to vector<16x128xf32>
    %391 = vector.broadcast %cst_122 : f32 to vector<16x128xf32>
    %392 = arith.select %387, %390, %391 : vector<16x128xi1>, vector<16x128xf32>
    %393 = arith.addf %384, %392 : vector<16x128xf32>
    %394 = vector.extract_strided_slice %195 {offsets = [0, 4], sizes = [16, 1], strides = [1, 1]} : vector<16x9xi32> to vector<16x1xi32>
    %395 = vector.broadcast %394 : vector<16x1xi32> to vector<16x128xi32>
    %396 = arith.cmpi eq, %2, %395 : vector<16x128xi32>
    %397 = vector.extract_strided_slice %197 {offsets = [0, 4], sizes = [16, 1], strides = [1, 1]} : vector<16x9xf32> to vector<16x1xf32>
    %cst_123 = arith.constant 0.000000e+00 : f32
    %398 = vector.shape_cast %397 : vector<16x1xf32> to vector<16x1xf32>
    %399 = vector.broadcast %398 : vector<16x1xf32> to vector<16x128xf32>
    %400 = vector.broadcast %cst_123 : f32 to vector<16x128xf32>
    %401 = arith.select %396, %399, %400 : vector<16x128xi1>, vector<16x128xf32>
    %402 = arith.addf %393, %401 : vector<16x128xf32>
    %403 = vector.extract_strided_slice %222 {offsets = [0, 4], sizes = [16, 1], strides = [1, 1]} : vector<16x9xi32> to vector<16x1xi32>
    %404 = vector.broadcast %403 : vector<16x1xi32> to vector<16x128xi32>
    %405 = arith.cmpi eq, %2, %404 : vector<16x128xi32>
    %406 = vector.extract_strided_slice %224 {offsets = [0, 4], sizes = [16, 1], strides = [1, 1]} : vector<16x9xf32> to vector<16x1xf32>
    %cst_124 = arith.constant 0.000000e+00 : f32
    %407 = vector.shape_cast %406 : vector<16x1xf32> to vector<16x1xf32>
    %408 = vector.broadcast %407 : vector<16x1xf32> to vector<16x128xf32>
    %409 = vector.broadcast %cst_124 : f32 to vector<16x128xf32>
    %410 = arith.select %405, %408, %409 : vector<16x128xi1>, vector<16x128xf32>
    %411 = arith.addf %402, %410 : vector<16x128xf32>
    %412 = arith.truncf %411 : vector<16x128xf32> to vector<16x128xbf16>
    %cst_125 = arith.constant dense<0.000000e+00> : vector<16x16xf32>
    %413 = tpu.matmul %412, %1, %cst_125 {dimension_numbers = #tpu.dot_dimension_numbers<[1], [0], [0], [1], [0, 0, 1, 1], [], []>} : vector<16x128xbf16>, vector<128x16xbf16>, vector<16x16xf32> -> vector<16x16xf32>
    %c0_126 = arith.constant 0 : index
    %c64_127 = arith.constant 64 : index
    %414 = vector.load %arg10[%c0_126, %c64_127] : memref<16x144xf32, #tpu.memory_space<vmem>>, vector<16x16xf32>
    tpu.vector_store %arg10[%c0_126, %c64_127], %413 {strides = array<i32>} : memref<16x144xf32, #tpu.memory_space<vmem>>, vector<16x16xf32>,
    %415 = vector.extract_strided_slice %137 {offsets = [0, 5], sizes = [16, 1], strides = [1, 1]} : vector<16x9xi32> to vector<16x1xi32>
    %416 = vector.broadcast %415 : vector<16x1xi32> to vector<16x128xi32>
    %417 = arith.cmpi eq, %2, %416 : vector<16x128xi32>
    %418 = vector.extract_strided_slice %139 {offsets = [0, 5], sizes = [16, 1], strides = [1, 1]} : vector<16x9xf32> to vector<16x1xf32>
    %cst_128 = arith.constant 0.000000e+00 : f32
    %419 = vector.shape_cast %418 : vector<16x1xf32> to vector<16x1xf32>
    %420 = vector.broadcast %419 : vector<16x1xf32> to vector<16x128xf32>
    %421 = vector.broadcast %cst_128 : f32 to vector<16x128xf32>
    %422 = arith.select %417, %420, %421 : vector<16x128xi1>, vector<16x128xf32>
    %423 = vector.extract_strided_slice %166 {offsets = [0, 5], sizes = [16, 1], strides = [1, 1]} : vector<16x9xi32> to vector<16x1xi32>
    %424 = vector.broadcast %423 : vector<16x1xi32> to vector<16x128xi32>
    %425 = arith.cmpi eq, %2, %424 : vector<16x128xi32>
    %426 = vector.extract_strided_slice %168 {offsets = [0, 5], sizes = [16, 1], strides = [1, 1]} : vector<16x9xf32> to vector<16x1xf32>
    %cst_129 = arith.constant 0.000000e+00 : f32
    %427 = vector.shape_cast %426 : vector<16x1xf32> to vector<16x1xf32>
    %428 = vector.broadcast %427 : vector<16x1xf32> to vector<16x128xf32>
    %429 = vector.broadcast %cst_129 : f32 to vector<16x128xf32>
    %430 = arith.select %425, %428, %429 : vector<16x128xi1>, vector<16x128xf32>
    %431 = arith.addf %422, %430 : vector<16x128xf32>
    %432 = vector.extract_strided_slice %195 {offsets = [0, 5], sizes = [16, 1], strides = [1, 1]} : vector<16x9xi32> to vector<16x1xi32>
    %433 = vector.broadcast %432 : vector<16x1xi32> to vector<16x128xi32>
    %434 = arith.cmpi eq, %2, %433 : vector<16x128xi32>
    %435 = vector.extract_strided_slice %197 {offsets = [0, 5], sizes = [16, 1], strides = [1, 1]} : vector<16x9xf32> to vector<16x1xf32>
    %cst_130 = arith.constant 0.000000e+00 : f32
    %436 = vector.shape_cast %435 : vector<16x1xf32> to vector<16x1xf32>
    %437 = vector.broadcast %436 : vector<16x1xf32> to vector<16x128xf32>
    %438 = vector.broadcast %cst_130 : f32 to vector<16x128xf32>
    %439 = arith.select %434, %437, %438 : vector<16x128xi1>, vector<16x128xf32>
    %440 = arith.addf %431, %439 : vector<16x128xf32>
    %441 = vector.extract_strided_slice %222 {offsets = [0, 5], sizes = [16, 1], strides = [1, 1]} : vector<16x9xi32> to vector<16x1xi32>
    %442 = vector.broadcast %441 : vector<16x1xi32> to vector<16x128xi32>
    %443 = arith.cmpi eq, %2, %442 : vector<16x128xi32>
    %444 = vector.extract_strided_slice %224 {offsets = [0, 5], sizes = [16, 1], strides = [1, 1]} : vector<16x9xf32> to vector<16x1xf32>
    %cst_131 = arith.constant 0.000000e+00 : f32
    %445 = vector.shape_cast %444 : vector<16x1xf32> to vector<16x1xf32>
    %446 = vector.broadcast %445 : vector<16x1xf32> to vector<16x128xf32>
    %447 = vector.broadcast %cst_131 : f32 to vector<16x128xf32>
    %448 = arith.select %443, %446, %447 : vector<16x128xi1>, vector<16x128xf32>
    %449 = arith.addf %440, %448 : vector<16x128xf32>
    %450 = arith.truncf %449 : vector<16x128xf32> to vector<16x128xbf16>
    %cst_132 = arith.constant dense<0.000000e+00> : vector<16x16xf32>
    %451 = tpu.matmul %450, %1, %cst_132 {dimension_numbers = #tpu.dot_dimension_numbers<[1], [0], [0], [1], [0, 0, 1, 1], [], []>} : vector<16x128xbf16>, vector<128x16xbf16>, vector<16x16xf32> -> vector<16x16xf32>
    %c0_133 = arith.constant 0 : index
    %c80_134 = arith.constant 80 : index
    %452 = vector.load %arg10[%c0_133, %c80_134] : memref<16x144xf32, #tpu.memory_space<vmem>>, vector<16x16xf32>
    tpu.vector_store %arg10[%c0_133, %c80_134], %451 {strides = array<i32>} : memref<16x144xf32, #tpu.memory_space<vmem>>, vector<16x16xf32>,
    %453 = vector.extract_strided_slice %137 {offsets = [0, 6], sizes = [16, 1], strides = [1, 1]} : vector<16x9xi32> to vector<16x1xi32>
    %454 = vector.broadcast %453 : vector<16x1xi32> to vector<16x128xi32>
    %455 = arith.cmpi eq, %2, %454 : vector<16x128xi32>
    %456 = vector.extract_strided_slice %139 {offsets = [0, 6], sizes = [16, 1], strides = [1, 1]} : vector<16x9xf32> to vector<16x1xf32>
    %cst_135 = arith.constant 0.000000e+00 : f32
    %457 = vector.shape_cast %456 : vector<16x1xf32> to vector<16x1xf32>
    %458 = vector.broadcast %457 : vector<16x1xf32> to vector<16x128xf32>
    %459 = vector.broadcast %cst_135 : f32 to vector<16x128xf32>
    %460 = arith.select %455, %458, %459 : vector<16x128xi1>, vector<16x128xf32>
    %461 = vector.extract_strided_slice %166 {offsets = [0, 6], sizes = [16, 1], strides = [1, 1]} : vector<16x9xi32> to vector<16x1xi32>
    %462 = vector.broadcast %461 : vector<16x1xi32> to vector<16x128xi32>
    %463 = arith.cmpi eq, %2, %462 : vector<16x128xi32>
    %464 = vector.extract_strided_slice %168 {offsets = [0, 6], sizes = [16, 1], strides = [1, 1]} : vector<16x9xf32> to vector<16x1xf32>
    %cst_136 = arith.constant 0.000000e+00 : f32
    %465 = vector.shape_cast %464 : vector<16x1xf32> to vector<16x1xf32>
    %466 = vector.broadcast %465 : vector<16x1xf32> to vector<16x128xf32>
    %467 = vector.broadcast %cst_136 : f32 to vector<16x128xf32>
    %468 = arith.select %463, %466, %467 : vector<16x128xi1>, vector<16x128xf32>
    %469 = arith.addf %460, %468 : vector<16x128xf32>
    %470 = vector.extract_strided_slice %195 {offsets = [0, 6], sizes = [16, 1], strides = [1, 1]} : vector<16x9xi32> to vector<16x1xi32>
    %471 = vector.broadcast %470 : vector<16x1xi32> to vector<16x128xi32>
    %472 = arith.cmpi eq, %2, %471 : vector<16x128xi32>
    %473 = vector.extract_strided_slice %197 {offsets = [0, 6], sizes = [16, 1], strides = [1, 1]} : vector<16x9xf32> to vector<16x1xf32>
    %cst_137 = arith.constant 0.000000e+00 : f32
    %474 = vector.shape_cast %473 : vector<16x1xf32> to vector<16x1xf32>
    %475 = vector.broadcast %474 : vector<16x1xf32> to vector<16x128xf32>
    %476 = vector.broadcast %cst_137 : f32 to vector<16x128xf32>
    %477 = arith.select %472, %475, %476 : vector<16x128xi1>, vector<16x128xf32>
    %478 = arith.addf %469, %477 : vector<16x128xf32>
    %479 = vector.extract_strided_slice %222 {offsets = [0, 6], sizes = [16, 1], strides = [1, 1]} : vector<16x9xi32> to vector<16x1xi32>
    %480 = vector.broadcast %479 : vector<16x1xi32> to vector<16x128xi32>
    %481 = arith.cmpi eq, %2, %480 : vector<16x128xi32>
    %482 = vector.extract_strided_slice %224 {offsets = [0, 6], sizes = [16, 1], strides = [1, 1]} : vector<16x9xf32> to vector<16x1xf32>
    %cst_138 = arith.constant 0.000000e+00 : f32
    %483 = vector.shape_cast %482 : vector<16x1xf32> to vector<16x1xf32>
    %484 = vector.broadcast %483 : vector<16x1xf32> to vector<16x128xf32>
    %485 = vector.broadcast %cst_138 : f32 to vector<16x128xf32>
    %486 = arith.select %481, %484, %485 : vector<16x128xi1>, vector<16x128xf32>
    %487 = arith.addf %478, %486 : vector<16x128xf32>
    %488 = arith.truncf %487 : vector<16x128xf32> to vector<16x128xbf16>
    %cst_139 = arith.constant dense<0.000000e+00> : vector<16x16xf32>
    %489 = tpu.matmul %488, %1, %cst_139 {dimension_numbers = #tpu.dot_dimension_numbers<[1], [0], [0], [1], [0, 0, 1, 1], [], []>} : vector<16x128xbf16>, vector<128x16xbf16>, vector<16x16xf32> -> vector<16x16xf32>
    %c0_140 = arith.constant 0 : index
    %c96_141 = arith.constant 96 : index
    %490 = vector.load %arg10[%c0_140, %c96_141] : memref<16x144xf32, #tpu.memory_space<vmem>>, vector<16x16xf32>
    tpu.vector_store %arg10[%c0_140, %c96_141], %489 {strides = array<i32>} : memref<16x144xf32, #tpu.memory_space<vmem>>, vector<16x16xf32>,
    %491 = vector.extract_strided_slice %137 {offsets = [0, 7], sizes = [16, 1], strides = [1, 1]} : vector<16x9xi32> to vector<16x1xi32>
    %492 = vector.broadcast %491 : vector<16x1xi32> to vector<16x128xi32>
    %493 = arith.cmpi eq, %2, %492 : vector<16x128xi32>
    %494 = vector.extract_strided_slice %139 {offsets = [0, 7], sizes = [16, 1], strides = [1, 1]} : vector<16x9xf32> to vector<16x1xf32>
    %cst_142 = arith.constant 0.000000e+00 : f32
    %495 = vector.shape_cast %494 : vector<16x1xf32> to vector<16x1xf32>
    %496 = vector.broadcast %495 : vector<16x1xf32> to vector<16x128xf32>
    %497 = vector.broadcast %cst_142 : f32 to vector<16x128xf32>
    %498 = arith.select %493, %496, %497 : vector<16x128xi1>, vector<16x128xf32>
    %499 = vector.extract_strided_slice %166 {offsets = [0, 7], sizes = [16, 1], strides = [1, 1]} : vector<16x9xi32> to vector<16x1xi32>
    %500 = vector.broadcast %499 : vector<16x1xi32> to vector<16x128xi32>
    %501 = arith.cmpi eq, %2, %500 : vector<16x128xi32>
    %502 = vector.extract_strided_slice %168 {offsets = [0, 7], sizes = [16, 1], strides = [1, 1]} : vector<16x9xf32> to vector<16x1xf32>
    %cst_143 = arith.constant 0.000000e+00 : f32
    %503 = vector.shape_cast %502 : vector<16x1xf32> to vector<16x1xf32>
    %504 = vector.broadcast %503 : vector<16x1xf32> to vector<16x128xf32>
    %505 = vector.broadcast %cst_143 : f32 to vector<16x128xf32>
    %506 = arith.select %501, %504, %505 : vector<16x128xi1>, vector<16x128xf32>
    %507 = arith.addf %498, %506 : vector<16x128xf32>
    %508 = vector.extract_strided_slice %195 {offsets = [0, 7], sizes = [16, 1], strides = [1, 1]} : vector<16x9xi32> to vector<16x1xi32>
    %509 = vector.broadcast %508 : vector<16x1xi32> to vector<16x128xi32>
    %510 = arith.cmpi eq, %2, %509 : vector<16x128xi32>
    %511 = vector.extract_strided_slice %197 {offsets = [0, 7], sizes = [16, 1], strides = [1, 1]} : vector<16x9xf32> to vector<16x1xf32>
    %cst_144 = arith.constant 0.000000e+00 : f32
    %512 = vector.shape_cast %511 : vector<16x1xf32> to vector<16x1xf32>
    %513 = vector.broadcast %512 : vector<16x1xf32> to vector<16x128xf32>
    %514 = vector.broadcast %cst_144 : f32 to vector<16x128xf32>
    %515 = arith.select %510, %513, %514 : vector<16x128xi1>, vector<16x128xf32>
    %516 = arith.addf %507, %515 : vector<16x128xf32>
    %517 = vector.extract_strided_slice %222 {offsets = [0, 7], sizes = [16, 1], strides = [1, 1]} : vector<16x9xi32> to vector<16x1xi32>
    %518 = vector.broadcast %517 : vector<16x1xi32> to vector<16x128xi32>
    %519 = arith.cmpi eq, %2, %518 : vector<16x128xi32>
    %520 = vector.extract_strided_slice %224 {offsets = [0, 7], sizes = [16, 1], strides = [1, 1]} : vector<16x9xf32> to vector<16x1xf32>
    %cst_145 = arith.constant 0.000000e+00 : f32
    %521 = vector.shape_cast %520 : vector<16x1xf32> to vector<16x1xf32>
    %522 = vector.broadcast %521 : vector<16x1xf32> to vector<16x128xf32>
    %523 = vector.broadcast %cst_145 : f32 to vector<16x128xf32>
    %524 = arith.select %519, %522, %523 : vector<16x128xi1>, vector<16x128xf32>
    %525 = arith.addf %516, %524 : vector<16x128xf32>
    %526 = arith.truncf %525 : vector<16x128xf32> to vector<16x128xbf16>
    %cst_146 = arith.constant dense<0.000000e+00> : vector<16x16xf32>
    %527 = tpu.matmul %526, %1, %cst_146 {dimension_numbers = #tpu.dot_dimension_numbers<[1], [0], [0], [1], [0, 0, 1, 1], [], []>} : vector<16x128xbf16>, vector<128x16xbf16>, vector<16x16xf32> -> vector<16x16xf32>
    %c0_147 = arith.constant 0 : index
    %c112_148 = arith.constant 112 : index
    %528 = vector.load %arg10[%c0_147, %c112_148] : memref<16x144xf32, #tpu.memory_space<vmem>>, vector<16x16xf32>
    tpu.vector_store %arg10[%c0_147, %c112_148], %527 {strides = array<i32>} : memref<16x144xf32, #tpu.memory_space<vmem>>, vector<16x16xf32>,
    %529 = vector.extract_strided_slice %137 {offsets = [0, 8], sizes = [16, 1], strides = [1, 1]} : vector<16x9xi32> to vector<16x1xi32>
    %530 = vector.broadcast %529 : vector<16x1xi32> to vector<16x128xi32>
    %531 = arith.cmpi eq, %2, %530 : vector<16x128xi32>
    %532 = vector.extract_strided_slice %139 {offsets = [0, 8], sizes = [16, 1], strides = [1, 1]} : vector<16x9xf32> to vector<16x1xf32>
    %cst_149 = arith.constant 0.000000e+00 : f32
    %533 = vector.shape_cast %532 : vector<16x1xf32> to vector<16x1xf32>
    %534 = vector.broadcast %533 : vector<16x1xf32> to vector<16x128xf32>
    %535 = vector.broadcast %cst_149 : f32 to vector<16x128xf32>
    %536 = arith.select %531, %534, %535 : vector<16x128xi1>, vector<16x128xf32>
    %537 = vector.extract_strided_slice %166 {offsets = [0, 8], sizes = [16, 1], strides = [1, 1]} : vector<16x9xi32> to vector<16x1xi32>
    %538 = vector.broadcast %537 : vector<16x1xi32> to vector<16x128xi32>
    %539 = arith.cmpi eq, %2, %538 : vector<16x128xi32>
    %540 = vector.extract_strided_slice %168 {offsets = [0, 8], sizes = [16, 1], strides = [1, 1]} : vector<16x9xf32> to vector<16x1xf32>
    %cst_150 = arith.constant 0.000000e+00 : f32
    %541 = vector.shape_cast %540 : vector<16x1xf32> to vector<16x1xf32>
    %542 = vector.broadcast %541 : vector<16x1xf32> to vector<16x128xf32>
    %543 = vector.broadcast %cst_150 : f32 to vector<16x128xf32>
    %544 = arith.select %539, %542, %543 : vector<16x128xi1>, vector<16x128xf32>
    %545 = arith.addf %536, %544 : vector<16x128xf32>
    %546 = vector.extract_strided_slice %195 {offsets = [0, 8], sizes = [16, 1], strides = [1, 1]} : vector<16x9xi32> to vector<16x1xi32>
    %547 = vector.broadcast %546 : vector<16x1xi32> to vector<16x128xi32>
    %548 = arith.cmpi eq, %2, %547 : vector<16x128xi32>
    %549 = vector.extract_strided_slice %197 {offsets = [0, 8], sizes = [16, 1], strides = [1, 1]} : vector<16x9xf32> to vector<16x1xf32>
    %cst_151 = arith.constant 0.000000e+00 : f32
    %550 = vector.shape_cast %549 : vector<16x1xf32> to vector<16x1xf32>
    %551 = vector.broadcast %550 : vector<16x1xf32> to vector<16x128xf32>
    %552 = vector.broadcast %cst_151 : f32 to vector<16x128xf32>
    %553 = arith.select %548, %551, %552 : vector<16x128xi1>, vector<16x128xf32>
    %554 = arith.addf %545, %553 : vector<16x128xf32>
    %555 = vector.extract_strided_slice %222 {offsets = [0, 8], sizes = [16, 1], strides = [1, 1]} : vector<16x9xi32> to vector<16x1xi32>
    %556 = vector.broadcast %555 : vector<16x1xi32> to vector<16x128xi32>
    %557 = arith.cmpi eq, %2, %556 : vector<16x128xi32>
    %558 = vector.extract_strided_slice %224 {offsets = [0, 8], sizes = [16, 1], strides = [1, 1]} : vector<16x9xf32> to vector<16x1xf32>
    %cst_152 = arith.constant 0.000000e+00 : f32
    %559 = vector.shape_cast %558 : vector<16x1xf32> to vector<16x1xf32>
    %560 = vector.broadcast %559 : vector<16x1xf32> to vector<16x128xf32>
    %561 = vector.broadcast %cst_152 : f32 to vector<16x128xf32>
    %562 = arith.select %557, %560, %561 : vector<16x128xi1>, vector<16x128xf32>
    %563 = arith.addf %554, %562 : vector<16x128xf32>
    %564 = arith.truncf %563 : vector<16x128xf32> to vector<16x128xbf16>
    %cst_153 = arith.constant dense<0.000000e+00> : vector<16x16xf32>
    %565 = tpu.matmul %564, %1, %cst_153 {dimension_numbers = #tpu.dot_dimension_numbers<[1], [0], [0], [1], [0, 0, 1, 1], [], []>} : vector<16x128xbf16>, vector<128x16xbf16>, vector<16x16xf32> -> vector<16x16xf32>
    %c0_154 = arith.constant 0 : index
    %c128_155 = arith.constant 128 : index
    %566 = vector.load %arg10[%c0_154, %c128_155] : memref<16x144xf32, #tpu.memory_space<vmem>>, vector<16x16xf32>
    tpu.vector_store %arg10[%c0_154, %c128_155], %565 {strides = array<i32>} : memref<16x144xf32, #tpu.memory_space<vmem>>, vector<16x16xf32>,
    %c0_156 = arith.constant 0 : index
    %c0_157 = arith.constant 0 : index
    %567 = vector.load %arg10[%c0_156, %c0_157] : memref<16x144xf32, #tpu.memory_space<vmem>>, vector<16x144xf32>
    %568 = arith.truncf %567 : vector<16x144xf32> to vector<16x144xbf16>
    %c0_158 = arith.constant 0 : index
    %c0_159 = arith.constant 0 : index
    %569 = vector.load %arg6[%c0_158, %c0_159] : memref<144x128xbf16, #tpu.memory_space<vmem>>, vector<144x128xbf16>
    %cst_160 = arith.constant dense<0.000000e+00> : vector<16x128xf32>
    %570 = tpu.matmul %568, %569, %cst_160 {dimension_numbers = #tpu.dot_dimension_numbers<[1], [0], [0], [1], [0, 0, 1, 1], [], []>} : vector<16x144xbf16>, vector<144x128xbf16>, vector<16x128xf32> -> vector<16x128xf32>
    %c0_161 = arith.constant 0 : index
    %c0_162 = arith.constant 0 : index
    %571 = vector.load %arg7[%c0_161, %c0_162] : memref<1x128xf32, #tpu.memory_space<vmem>>, vector<1x128xf32>
    %572 = vector.broadcast %571 : vector<1x128xf32> to vector<16x128xf32>
    %573 = arith.addf %570, %572 : vector<16x128xf32>
    %c0_163 = arith.constant 0 : index
    %c0_164 = arith.constant 0 : index
    %574 = vector.load %arg8[%c0_163, %c0_164] : memref<16x128xf32, #tpu.memory_space<vmem>>, vector<16x128xf32>
    tpu.vector_store %arg8[%c0_163, %c0_164], %573 {strides = array<i32>} : memref<16x128xf32, #tpu.memory_space<vmem>>, vector<16x128xf32>,
    return
  }
  func.func @transform_0(%arg0: i32) -> (i32, i32) {
    %c0_i32 = arith.constant 0 : i32
    %c0_i32_0 = arith.constant 0 : i32
    %c0_i32_1 = arith.constant 0 : i32
    return %c0_i32, %c0_i32_0 : i32, i32
  }
  func.func @transform_1(%arg0: i32) -> (i32, i32) {
    %c0_i32 = arith.constant 0 : i32
    %c0_i32_0 = arith.constant 0 : i32
    return %arg0, %c0_i32 : i32, i32
  }
  func.func @transform_2(%arg0: i32) -> (i32, i32) {
    %c0_i32 = arith.constant 0 : i32
    %c0_i32_0 = arith.constant 0 : i32
    return %arg0, %c0_i32 : i32, i32
  }
  func.func @transform_3(%arg0: i32) -> (i32, i32) {
    %c0_i32 = arith.constant 0 : i32
    %c0_i32_0 = arith.constant 0 : i32
    %c0_i32_1 = arith.constant 0 : i32
    return %c0_i32, %c0_i32_0 : i32, i32
  }
  func.func @transform_4(%arg0: i32) -> (i32, i32) {
    %c0_i32 = arith.constant 0 : i32
    %c0_i32_0 = arith.constant 0 : i32
    %c0_i32_1 = arith.constant 0 : i32
    return %c0_i32, %c0_i32_0 : i32, i32
  }
  func.func @transform_5(%arg0: i32) -> (i32, i32) {
    %c0_i32 = arith.constant 0 : i32
    %c0_i32_0 = arith.constant 0 : i32
    %c0_i32_1 = arith.constant 0 : i32
    return %c0_i32, %c0_i32_0 : i32, i32
  }
  func.func @transform_6(%arg0: i32) -> (i32, i32) {
    %c0_i32 = arith.constant 0 : i32
    %c0_i32_0 = arith.constant 0 : i32
    %c0_i32_1 = arith.constant 0 : i32
    return %c0_i32, %c0_i32_0 : i32, i32
  }
  func.func @transform_7(%arg0: i32) -> (i32, i32) {
    %c0_i32 = arith.constant 0 : i32
    %c0_i32_0 = arith.constant 0 : i32
    return %arg0, %c0_i32 : i32, i32
  }
}

</mosaic_0001>

<bundles_post_ra>
// kernel: net_forward.2
= control target key start
LH: loop header
LB: loop body
LE: loop exit
PB: predicated region body
PF: predicated region fallthrough
CT: control target
= control target key end

     0   :  { %s3305_s24 = smov 0   ;;  %s4717_s0 = inlined_call_operand.vmem [shape: f32[128,128], index: 0, kind: input, shape index: {}]   ;;  %s4718_s1 = inlined_call_operand.vmem [shape: s32[128,10], index: 1, kind: input, shape index: {}]   ;;  %s4719_s2 = inlined_call_operand.vmem [shape: f32[128,18], index: 2, kind: input, shape index: {}]   ;;  %s4720_s3 = inlined_call_operand.vmem [shape: bf16[144,18], index: 3, kind: input, shape index: {}]   ;;  %s4721_s4 = inlined_call_operand.vmem [shape: f32[1,18], index: 4, kind: input, shape index: {}]   ;;  %s4722_s5 = inlined_call_operand.vmem [shape: bf16[144,128], index: 5, kind: input, shape index: {}]   ;;  %s4723_s6 = inlined_call_operand.vmem [shape: f32[1,128], index: 6, kind: input, shape index: {}]   ;;  %s4724_s7 = inlined_call_operand.vmem [shape: f32[128,128], index: 7, kind: output, shape index: {}]  }
   0x1 LB: > { %s2525_s25 = sadd.s32 4294967295, %s3242_s24   ;;  %p2529_p0 = scmp.ge.s32.totalorder %s3242_s24, 1  ;;  %s3242_s24 = sphi %s3305_s24, %s17_s24  }
   0x2   : > { %p249_p1 = scmp.lt.s32.totalorder %s3242_s24, 9 }
   0x4   : > { %p250_p2 = pnand %p2529_p0, %p249_p1 }
   0x6   : > { %253 = sbr.rel (%p250_p2) target bundleno = 1991 (0x7c7), region = 48 }
   0xd   : > { %s2530_s26 = sshll.u32 %s2525_s25, 1  ;;  %v305_v0 = vld [vmem:[%s4717_s0] sm:$0xff]  ;;  %v4738_v1 = vmov 1   ;;  %v4736_v2 = vmov 0   ;;  %v306_v3 = vld [vmem:[%s4717_s0 + $0x8] sm:$0xff]  ;;  %v307_v5 = vld [vmem:[%s4717_s0 + $0x10] sm:$0xff]  ;;  %v329_v36 = vlaneseq }
   0xe   : > { %3134 = vset.pattern.permute.xlu1 %v4738_v1  ;;  %3133 = vset.pattern.permute.xlu0 %v4736_v2  ;;  %p287_p3 = scmp.lt.s32.totalorder %s2530_s26, 15  ;;  %v3321_v4 = vpack.c.bf16 %v306_v3, %v305_v0  ;;  %v308_v6 = vld [vmem:[%s4717_s0 + $0x18] sm:$0xff]  ;;  %v4731_v7 = vmov 0.0   ;;  %v309_v9 = vld [vmem:[%s4717_s0 + $0x20] sm:$0xff]  ;;  %v310_v10 = vld [vmem:[%s4717_s0 + $0x28] sm:$0xff]  ;;  %vm3247_vm0 = vmmov 0  }
   0xf   : > { %2740 = vmatprep.subr.bf16.mxu0 %v4731_v7  ;;  %2760 = vmatprep.subr.bf16.mxu1 %v4731_v7  ;;  %v3337_v8 = vpack.c.bf16 %v308_v6, %v307_v5  ;;  %v3357_v13 = vpack.c.bf16 %v310_v10, %v309_v9  ;;  %v311_v14 = vld [vmem:[%s4717_s0 + $0x30] sm:$0xff]  ;;  %v312_v15 = vld [vmem:[%s4717_s0 + $0x38] sm:$0xff]  ;;  %v313_v17 = vld [vmem:[%s4717_s0 + $0x40] sm:$0xff]  ;;  %v4733_v19 = vmov 2   ;;  %v4734_v21 = vmov 3   ;;  %s3257_s20 = smov 32  }
  0x10   : > { %s4878_s26 = smov (!%p287_p3, %s2530_s26), 15  ;;  %2741 = vmatpush3.bf16.msra.mxu0 %v3321_v4  ;;  %2761 = vmatpush3.bf16.msra.mxu1 %v3321_v4  ;;  %v3373_v16 = vpack.c.bf16 %v312_v15, %v311_v14  ;;  %v314_v18 = vld [vmem:[%s4717_s0 + $0x48] sm:$0xff]  ;;  %v315_v22 = vld [vmem:[%s4717_s0 + $0x50] sm:$0xff]  ;;  %v316_v23 = vld [vmem:[%s4717_s0 + $0x58] sm:$0xff]  ;;  %v4740_v27 = vmov 4   ;;  %v4747_v28 = vmov 5  }
  0x11   : > { %s3333_s12 = sshll.u32 %s4878_s26, 3  ;;  %2742 = vmatprep.subr.bf16.mxu0 %v4731_v7  ;;  %2762 = vmatprep.subr.bf16.mxu1 %v4731_v7  ;;  %v3393_v20 = vpack.c.bf16 %v314_v18, %v313_v17  ;;  %v3409_v24 = vpack.c.bf16 %v316_v23, %v315_v22  ;;  %v317_v25 = vld [vmem:[%s4717_s0 + $0x60] sm:$0xff]  ;;  %v318_v26 = vld [vmem:[%s4717_s0 + $0x68] sm:$0xff]  ;;  %v319_v30 = vld [vmem:[%s4717_s0 + $0x70] sm:$0xff]  ;;  %v4743_v32 = vmov 6   ;;  %v4745_v34 = vmov 7  }
  0x12   : > { %s290_s19 = scalar_lea.vmem %s4718_s1, %s3333_s12  ;;  %2756 = vmatprep.mubr.msk.bf16.mxu0 %vm3247_vm0, %v4731_v7  ;;  %2776 = vmatprep.mubr.msk.bf16.mxu1 %vm3247_vm0, %v4731_v7  ;;  %v3423_v29 = vpack.c.bf16 %v318_v26, %v317_v25  ;;  %v320_v31 = vld [vmem:[%s4717_s0 + $0x78] sm:$0xff]  ;;  %v4741_v35 = vmov 8   ;;  %v3457_v39 = vand.u32 127, %v329_v36  ;;  %v3255_v42 = vmov 1.0|1.0   ;;  %s3258_s21 = smov 48  }
  0x13   : > { %v3349_v11 = vld [vmem:[%s290_s19] sm:$0xff]  ;;  %v3353_v12 = vld [vmem:[%s290_s19 + $0x8] sm:$0xff]  ;;  %v3437_v33 = vpack.c.bf16 %v320_v31, %v319_v30  ;;  %s3256_s19 = smov 16   ;;  %v3220_v30 = vld [vmem:[%s4720_s3 + $0x10] sm:$0xff]   ;;  %s3259_s29 = smov 64  }
  0x14   : > { %389 = vperm.xlu1 %3134, %v3349_v11   ;;  %334 = vperm.xlu0 %3133, %v3349_v11   ;;  %v3218_v18 = vld [vmem:[%s4720_s3] sm:$0xff]   ;;  %v3219_v22 = vld [vmem:[%s4720_s3 + $0x8] sm:$0xff]   ;;  %s3260_s9 = smov 80   ;;  %s3261_s25 = smov 96  }
  0x15   : > { %2743 = vmatpush3.bf16.msra.mxu0 %v3337_v8  ;;  %2763 = vmatpush3.bf16.msra.mxu1 %v3337_v8  ;;  %4752 = vst [vmem:[#allocation4_spill] sm:$0xff] %v3437_v33  ;;  %s3262_s26 = smov 112   ;;  %s296_s30 = scalar_lea.vmem %s4719_s2, %s3333_s12 }
  0x16   : > { %2744 = vmatprep.subr.bf16.mxu0 %v4731_v7  ;;  %2764 = vmatprep.subr.bf16.mxu1 %v4731_v7  ;;  %s3264_s11 = smov 119   ;;  %s302_s14 = scalar_lea.vmem %s4724_s7, %s3333_s12 }
  0x18   : > { %392 = vperm.xlu1 %3134, %v3353_v12   ;;  %337 = vperm.xlu0 %3133, %v3353_v12  }
  0x19   : > { %2745 = vmatpush3.bf16.msra.mxu0 %v3357_v13  ;;  %2765 = vmatpush3.bf16.msra.mxu1 %v3357_v13 }
  0x1a   : > { %2746 = vmatprep.subr.bf16.mxu0 %v4731_v7  ;;  %2766 = vmatprep.subr.bf16.mxu1 %v4731_v7 }
  0x1c   : > { %3136 = vset.pattern.permute.xlu1 %v4733_v19  ;;  %3135 = vset.pattern.permute.xlu0 %v4733_v19 }
  0x1d   : > { %455 = vperm.xlu1 %3136, %v3353_v12   ;;  %452 = vperm.xlu0 %3135, %v3349_v11  }
  0x1e   : > { %2747 = vmatpush3.bf16.msra.mxu0 %v3373_v16  ;;  %2767 = vmatpush3.bf16.msra.mxu1 %v3373_v16 }
  0x1f   : > { %2748 = vmatprep.subr.bf16.mxu0 %v4731_v7  ;;  %2768 = vmatprep.subr.bf16.mxu1 %v4731_v7 }
  0x21   : > { %3137 = vset.pattern.permute.xlu1 %v4734_v21  ;;  %3138 = vset.pattern.permute.xlu0 %v4734_v21 }
  0x22   : > { %515 = vperm.xlu1 %3137, %v3349_v11   ;;  %518 = vperm.xlu0 %3138, %v3353_v12  }
  0x23   : > { %2749 = vmatpush3.bf16.msra.mxu0 %v3393_v20  ;;  %2769 = vmatpush3.bf16.msra.mxu1 %v3393_v20 }
  0x24   : > { %2750 = vmatprep.subr.bf16.mxu0 %v4731_v7  ;;  %2770 = vmatprep.subr.bf16.mxu1 %v4731_v7 }
  0x26   : > { %3139 = vset.pattern.permute.xlu1 %v4740_v27  ;;  %3140 = vset.pattern.permute.xlu0 %v4747_v28 }
  0x27   : > { %578 = vperm.xlu1 %3139, %v3349_v11   ;;  %641 = vperm.xlu0 %3140, %v3349_v11  }
  0x28   : > { %2751 = vmatpush3.bf16.msra.mxu0 %v3409_v24  ;;  %2771 = vmatpush3.bf16.msra.mxu1 %v3409_v24 }
  0x29   : > { %2752 = vmatprep.subr.bf16.mxu0 %v4731_v7  ;;  %2772 = vmatprep.subr.bf16.mxu1 %v4731_v7 }
  0x2b   : > { %581 = vperm.xlu1 %3139, %v3353_v12   ;;  %3143 = vset.pattern.permute.xlu0 %v4743_v32 }
  0x2c   : > { %707 = vperm.xlu0 %3143, %v3353_v12   ;;  %2753 = vmatpush3.bf16.msra.mxu0 %v3423_v29 }
  0x2d   : > { %2773 = vmatpush3.bf16.msra.mxu1 %v3423_v29  ;;  %2754 = vmatprep.subr.bf16.mxu0 %v4731_v7 }
  0x2e   : > { %2774 = vmatprep.subr.bf16.mxu1 %v4731_v7 }
  0x2f   : > { %3141 = vset.pattern.permute.xlu1 %v4747_v28 }
  0x30   : > { %644 = vperm.xlu1 %3141, %v3353_v12   ;;  %2755 = vmatpush3.bf16.msra.mxu0 %v3437_v33 }
  0x31   : > { %2775 = vmatpush3.bf16.msra.mxu1 %v3437_v33  ;;  %2780 = vmatprep.subr.bf16.mxu0 %v4731_v7 }
  0x32   : > { %2800 = vmatprep.subr.bf16.mxu1 %v4731_v7  ;;  %3145 = vset.pattern.permute.xlu0 %v4741_v35 }
  0x33   : > { %830 = vperm.xlu0 %3145, %v3349_v11  }
  0x34   : > { %3142 = vset.pattern.permute.xlu1 %v4743_v32 }
  0x35   : > { %704 = vperm.xlu1 %3142, %v3349_v11  }
  0x39   : > { %3144 = vset.pattern.permute.xlu1 %v4745_v34 }
  0x3a   : > { %767 = vperm.xlu1 %3144, %v3349_v11  }
  0x3e   : > { %770 = vperm.xlu1 %3144, %v3353_v12  }
  0x42   : > { %3146 = vset.pattern.permute.xlu1 %v4741_v35 }
  0x43   : > { %833 = vperm.xlu1 %3146, %v3353_v12  }
  0x93   : > { %v390_v37 = vpop.permute.xlu1 %389  ;;  %v335_v38 = vpop.permute.xlu0 %334 }
  0x94   : > { %vm394_vm1 = vcmp.eq.s32.totalorder %v3457_v39, %v390_v37  ;;  %vm339_vm4 = vcmp.eq.s32.totalorder %v3457_v39, %v335_v38 }
  0x97   : > { %v393_v40 = vpop.permute.xlu1 %392  ;;  %v338_v41 = vpop.permute.xlu0 %337 }
  0x98   : > { %vm395_vm2 = vcmp.eq.s32.totalorder %v3457_v39, %v393_v40  ;;  %vm340_vm3 = vcmp.eq.s32.totalorder %v3457_v39, %v338_v41  ;;  %v3221_v41 = vld [vmem:[%s4720_s3 + $0x18] sm:$0xff]  }
  0x99   : > { %vm2538_vm5 = vmpackc.low %vm395_vm2, %vm394_vm1 }
  0x9a   : > { %vm2536_vm6 = vmpackc.low %vm340_vm3, %vm339_vm4  ;;  %2777 = vmatmul.mubr.msk.bf16.vlgmr.msra.gmra.mrb[0].mxu1 %vm2538_vm5, %v3255_v42 }
  0x9b   : > { %2757 = vmatmul.mubr.msk.bf16.vlgmr.msra.gmra.mrb[0].mxu0 %vm2536_vm6, %v3255_v42  ;;  %2801 = vmatpush3.bf16.msra.mxu1 %v3321_v4 }
  0x9c   : > { %2781 = vmatpush3.bf16.msra.mxu0 %v3321_v4  ;;  %2802 = vmatprep.subr.bf16.mxu1 %v4731_v7  ;;  %v456_v43 = vpop.permute.xlu1 %455  ;;  %v453_v44 = vpop.permute.xlu0 %452 }
  0x9d   : > { %2782 = vmatprep.subr.bf16.mxu0 %v4731_v7  ;;  %2796 = vmatprep.mubr.msk.bf16.mxu0 %vm3247_vm0, %v4731_v7  ;;  %vm458_vm9 = vcmp.eq.s32.totalorder %v3457_v39, %v456_v43  ;;  %vm457_vm10 = vcmp.eq.s32.totalorder %v3457_v39, %v453_v44  ;;  %v3223_v43 = vld [vmem:[%s4720_s3 + $0x28] sm:$0xff]   ;;  %v3224_v44 = vld [vmem:[%s4720_s3 + $0x30] sm:$0xff]  }
  0x9e   : > { %2816 = vmatprep.mubr.msk.bf16.mxu1 %vm3247_vm0, %v4731_v7  ;;  %vm2540_vm12 = vmpackc.low %vm458_vm9, %vm457_vm10 }
  0x9f   : > { %2803 = vmatpush3.bf16.msra.mxu1 %v3337_v8 }
  0xa0   : > { %2783 = vmatpush3.bf16.msra.mxu0 %v3337_v8  ;;  %2804 = vmatprep.subr.bf16.mxu1 %v4731_v7 }
  0xa1   : > { %2784 = vmatprep.subr.bf16.mxu0 %v4731_v7  ;;  %v516_v45 = vpop.permute.xlu1 %515  ;;  %v519_v46 = vpop.permute.xlu0 %518 }
  0xa2   : > { %vm520_vm7 = vcmp.eq.s32.totalorder %v3457_v39, %v516_v45  ;;  %vm521_vm8 = vcmp.eq.s32.totalorder %v3457_v39, %v519_v46  ;;  %v3225_v45 = vld [vmem:[%s4720_s3 + $0x38] sm:$0xff]   ;;  %v3226_v46 = vld [vmem:[%s4720_s3 + $0x40] sm:$0xff]  }
  0xa3   : > { %2805 = vmatpush3.bf16.msra.mxu1 %v3357_v13  ;;  %vm2542_vm11 = vmpackc.low %vm521_vm8, %vm520_vm7 }
  0xa4   : > { %2785 = vmatpush3.bf16.msra.mxu0 %v3357_v13  ;;  %2806 = vmatprep.subr.bf16.mxu1 %v4731_v7 }
  0xa5   : > { %2786 = vmatprep.subr.bf16.mxu0 %v4731_v7 }
  0xa6   : > { %v579_v47 = vpop.permute.xlu1 %578  ;;  %v642_v50 = vpop.permute.xlu0 %641 }
  0xa7   : > { %2807 = vmatpush3.bf16.msra.mxu1 %v3373_v16  ;;  %vm646_vm14 = vcmp.eq.s32.totalorder %v3457_v39, %v642_v50  ;;  %vm583_vm15 = vcmp.eq.s32.totalorder %v3457_v39, %v579_v47 }
  0xa8   : > { %2787 = vmatpush3.bf16.msra.mxu0 %v3373_v16  ;;  %2808 = vmatprep.subr.bf16.mxu1 %v4731_v7 }
  0xa9   : > { %2788 = vmatprep.subr.bf16.mxu0 %v4731_v7 }
  0xaa   : > { %v582_v48 = vpop.permute.xlu1 %581 }
  0xab   : > { %2809 = vmatpush3.bf16.msra.mxu1 %v3393_v20  ;;  %vm584_vm1 = vcmp.eq.s32.totalorder %v3457_v39, %v582_v48  ;;  %v708_v54 = vpop.permute.xlu0 %707 }
  0xac   : > { %2789 = vmatpush3.bf16.msra.mxu0 %v3393_v20  ;;  %2810 = vmatprep.subr.bf16.mxu1 %v4731_v7  ;;  %vm2544_vm3 = vmpackc.low %vm584_vm1, %vm583_vm15  ;;  %vm710_vm7 = vcmp.eq.s32.totalorder %v3457_v39, %v708_v54  ;;  %vm4730_vm15 = vcmask 392448   ;;  %vm4729_vm1 = vcmask 523648  }
  0xad   : > { %2790 = vmatprep.subr.bf16.mxu0 %v4731_v7 }
  0xaf   : > { %2811 = vmatpush3.bf16.msra.mxu1 %v3409_v24  ;;  %v645_v49 = vpop.permute.xlu1 %644 }
  0xb0   : > { %2791 = vmatpush3.bf16.msra.mxu0 %v3409_v24  ;;  %2812 = vmatprep.subr.bf16.mxu1 %v4731_v7  ;;  %vm647_vm13 = vcmp.eq.s32.totalorder %v3457_v39, %v645_v49 }
  0xb1   : > { %2792 = vmatprep.subr.bf16.mxu0 %v4731_v7  ;;  %vm2546_vm2 = vmpackc.low %vm647_vm13, %vm646_vm14  ;;  %vm385_vm13 = vcmask 130048   ;;  %vm448_vm14 = vcmask 261248  }
  0xb2   : > { %v831_v56 = vpop.permute.xlu0 %830 }
  0xb3   : > { %2813 = vmatpush3.bf16.msra.mxu1 %v3423_v29 }
  0xb4   : > { %2793 = vmatpush3.bf16.msra.mxu0 %v3423_v29  ;;  %2814 = vmatprep.subr.bf16.mxu1 %v4731_v7  ;;  %v705_v51 = vpop.permute.xlu1 %704 }
  0xb5   : > { %2794 = vmatprep.subr.bf16.mxu0 %v4731_v7  ;;  %vm709_vm6 = vcmp.eq.s32.totalorder %v3457_v39, %v705_v51 }
  0xb6   : > { %vm2548_vm9 = vmpackc.low %vm710_vm7, %vm709_vm6 }
  0xb7   : > { %2815 = vmatpush3.bf16.msra.mxu1 %v3437_v33 }
  0xb8   : > { %2795 = vmatpush3.bf16.msra.mxu0 %v3437_v33  ;;  %2840 = vmatprep.subr.bf16.mxu1 %v4731_v7 }
  0xb9   : > { %2820 = vmatprep.subr.bf16.mxu0 %v4731_v7  ;;  %v768_v52 = vpop.permute.xlu1 %767 }
  0xba   : > { %2817 = vmatmul.mubr.msk.bf16.vlgmr.msra.gmra.mrb[4].mxu1 %vm2542_vm11, %v3255_v42  ;;  %vm772_vm4 = vcmp.eq.s32.totalorder %v3457_v39, %v768_v52  ;;  %vm835_vm11 = vcmp.eq.s32.totalorder %v3457_v39, %v831_v56 }
  0xbb   : > { %2797 = vmatmul.mubr.msk.bf16.vlgmr.msra.gmra.mrb[4].mxu0 %vm2540_vm12, %v3255_v42  ;;  %2841 = vmatpush3.bf16.msra.mxu1 %v3321_v4 }
  0xbc   : > { %2821 = vmatpush3.bf16.msra.mxu0 %v3321_v4  ;;  %2842 = vmatprep.subr.bf16.mxu1 %v4731_v7 }
  0xbd   : > { %2822 = vmatprep.subr.bf16.mxu0 %v4731_v7  ;;  %2836 = vmatprep.mubr.msk.bf16.mxu0 %vm3247_vm0, %v4731_v7  ;;  %v771_v53 = vpop.permute.xlu1 %770 }
  0xbe   : > { %2856 = vmatprep.mubr.msk.bf16.mxu1 %vm3247_vm0, %v4731_v7  ;;  %vm773_vm5 = vcmp.eq.s32.totalorder %v3457_v39, %v771_v53 }
  0xbf   : > { %2843 = vmatpush3.bf16.msra.mxu1 %v3337_v8  ;;  %vm2550_vm8 = vmpackc.low %vm773_vm5, %vm772_vm4  ;;  %vm4726_vm4 = vcmask 917248   ;;  %vm4725_vm5 = vcmask 1048448  }
  0xc0   : > { %2823 = vmatpush3.bf16.msra.mxu0 %v3337_v8  ;;  %2844 = vmatprep.subr.bf16.mxu1 %v4731_v7 }
  0xc1   : > { %2824 = vmatprep.subr.bf16.mxu0 %v4731_v7 }
  0xc2   : > { %v834_v55 = vpop.permute.xlu1 %833 }
  0xc3   : > { %2845 = vmatpush3.bf16.msra.mxu1 %v3357_v13  ;;  %vm836_vm10 = vcmp.eq.s32.totalorder %v3457_v39, %v834_v55  ;;  %v3263_v55 = vmov 9  }
  0xc4   : > { %2825 = vmatpush3.bf16.msra.mxu0 %v3357_v13  ;;  %2846 = vmatprep.subr.bf16.mxu1 %v4731_v7  ;;  %vm2552_vm12 = vmpackc.low %vm836_vm10, %vm835_vm11 }
  0xc5   : > { %2826 = vmatprep.subr.bf16.mxu0 %v4731_v7  ;;  %3148 = vset.pattern.permute.xlu0 %v3263_v55 }
  0xc6   : > { %3147 = vset.pattern.permute.xlu1 %v3263_v55 }
  0xc7   : > { %2847 = vmatpush3.bf16.msra.mxu1 %v3373_v16 }
  0xc8   : > { %2827 = vmatpush3.bf16.msra.mxu0 %v3373_v16  ;;  %2848 = vmatprep.subr.bf16.mxu1 %v4731_v7 }
  0xc9   : > { %2828 = vmatprep.subr.bf16.mxu0 %v4731_v7 }
  0xcb   : > { %2849 = vmatpush3.bf16.msra.mxu1 %v3393_v20 }
  0xcc   : > { %2829 = vmatpush3.bf16.msra.mxu0 %v3393_v20  ;;  %2850 = vmatprep.subr.bf16.mxu1 %v4731_v7 }
  0xcd   : > { %2830 = vmatprep.subr.bf16.mxu0 %v4731_v7 }
  0xcf   : > { %2851 = vmatpush3.bf16.msra.mxu1 %v3409_v24 }
  0xd0   : > { %2831 = vmatpush3.bf16.msra.mxu0 %v3409_v24  ;;  %2852 = vmatprep.subr.bf16.mxu1 %v4731_v7 }
  0xd1   : > { %2832 = vmatprep.subr.bf16.mxu0 %v4731_v7 }
  0xd3   : > { %2853 = vmatpush3.bf16.msra.mxu1 %v3423_v29 }
  0xd4   : > { %2833 = vmatpush3.bf16.msra.mxu0 %v3423_v29  ;;  %2854 = vmatprep.subr.bf16.mxu1 %v4731_v7 }
  0xd5   : > { %2834 = vmatprep.subr.bf16.mxu0 %v4731_v7 }
  0xd7   : > { %2855 = vmatpush3.bf16.msra.mxu1 %v3437_v33 }
  0xd8   : > { %2835 = vmatpush3.bf16.msra.mxu0 %v3437_v33  ;;  %2880 = vmatprep.subr.bf16.mxu1 %v4731_v7 }
  0xd9   : > { %2860 = vmatprep.subr.bf16.mxu0 %v4731_v7 }
  0xda   : > { %2857 = vmatmul.mubr.msk.bf16.vlgmr.msra.gmra.mrb[8].mxu1 %vm2546_vm2, %v3255_v42  ;;  %vm4728_vm2 = vcmask 654848  }
  0xdb   : > { %2837 = vmatmul.mubr.msk.bf16.vlgmr.msra.gmra.mrb[8].mxu0 %vm2544_vm3, %v3255_v42  ;;  %2881 = vmatpush3.bf16.msra.mxu1 %v3321_v4  ;;  %vm4727_vm3 = vcmask 786048  }
  0xdc   : > { %2861 = vmatpush3.bf16.msra.mxu0 %v3321_v4  ;;  %2882 = vmatprep.subr.bf16.mxu1 %v4731_v7 }
  0xdd   : > { %2862 = vmatprep.subr.bf16.mxu0 %v4731_v7  ;;  %2876 = vmatprep.mubr.msk.bf16.mxu0 %vm3247_vm0, %v4731_v7 }
  0xde   : > { %2896 = vmatprep.mubr.msk.bf16.mxu1 %vm3247_vm0, %v4731_v7 }
  0xdf   : > { %2883 = vmatpush3.bf16.msra.mxu1 %v3337_v8 }
  0xe0   : > { %2863 = vmatpush3.bf16.msra.mxu0 %v3337_v8  ;;  %2884 = vmatprep.subr.bf16.mxu1 %v4731_v7 }
  0xe1   : > { %2864 = vmatprep.subr.bf16.mxu0 %v4731_v7 }
  0xe3   : > { %2885 = vmatpush3.bf16.msra.mxu1 %v3357_v13 }
  0xe4   : > { %2865 = vmatpush3.bf16.msra.mxu0 %v3357_v13  ;;  %2886 = vmatprep.subr.bf16.mxu1 %v4731_v7 }
  0xe5   : > { %2866 = vmatprep.subr.bf16.mxu0 %v4731_v7 }
  0xe7   : > { %2887 = vmatpush3.bf16.msra.mxu1 %v3373_v16 }
  0xe8   : > { %2867 = vmatpush3.bf16.msra.mxu0 %v3373_v16  ;;  %2888 = vmatprep.subr.bf16.mxu1 %v4731_v7 }
  0xe9   : > { %2868 = vmatprep.subr.bf16.mxu0 %v4731_v7 }
  0xeb   : > { %2889 = vmatpush3.bf16.msra.mxu1 %v3393_v20 }
  0xec   : > { %2869 = vmatpush3.bf16.msra.mxu0 %v3393_v20  ;;  %2890 = vmatprep.subr.bf16.mxu1 %v4731_v7 }
  0xed   : > { %2870 = vmatprep.subr.bf16.mxu0 %v4731_v7 }
  0xef   : > { %2891 = vmatpush3.bf16.msra.mxu1 %v3409_v24 }
  0xf0   : > { %2871 = vmatpush3.bf16.msra.mxu0 %v3409_v24  ;;  %2892 = vmatprep.subr.bf16.mxu1 %v4731_v7 }
  0xf1   : > { %2872 = vmatprep.subr.bf16.mxu0 %v4731_v7 }
  0xf3   : > { %2893 = vmatpush3.bf16.msra.mxu1 %v3423_v29 }
  0xf4   : > { %2873 = vmatpush3.bf16.msra.mxu0 %v3423_v29  ;;  %2894 = vmatprep.subr.bf16.mxu1 %v4731_v7 }
  0xf5   : > { %2874 = vmatprep.subr.bf16.mxu0 %v4731_v7 }
  0xf7   : > { %2895 = vmatpush3.bf16.msra.mxu1 %v3437_v33 }
  0xf8   : > { %2875 = vmatpush3.bf16.msra.mxu0 %v3437_v33  ;;  %971 = vmatprep.subr.bf16.mxu1 %v4736_v2 }
  0xf9   : > { %2900 = vmatprep.subr.bf16.mxu0 %v4731_v7 }
  0xfa   : > { %2897 = vmatmul.mubr.msk.bf16.vlgmr.msra.gmra.mrb[12].mxu1 %vm2550_vm8, %v3255_v42 }
  0xfb   : > { %2877 = vmatmul.mubr.msk.bf16.vlgmr.msra.gmra.mrb[12].mxu0 %vm2548_vm9, %v3255_v42  ;;  %972 = vmatpush1.bf16.msra.mxu1 %v3218_v18 }
  0xfc   : > { %2901 = vmatpush3.bf16.msra.mxu0 %v3321_v4  ;;  %2916 = vmatprep.mubr.msk.bf16.mxu0 %vm3247_vm0, %v4731_v7 }
  0xfd   : > { %2902 = vmatprep.subr.bf16.mxu0 %v4731_v7  ;;  %973 = vmatprep.subr.bf16.mxu1 %v4736_v2 }
  0xff   : > { %974 = vmatpush1.bf16.msra.mxu1 %v3219_v22 }
 0x100   : > { %2903 = vmatpush3.bf16.msra.mxu0 %v3337_v8  ;;  %975 = vmatprep.subr.bf16.mxu1 %v4736_v2 }
 0x101   : > { %2904 = vmatprep.subr.bf16.mxu0 %v4731_v7 }
 0x103   : > { %976 = vmatpush1.bf16.msra.mxu1 %v3220_v30  ;;  %v2554_v30 = vld [vmem:[%s4721_s4] ss:$0 sm:$0xff] }
 0x104   : > { %2905 = vmatpush3.bf16.msra.mxu0 %v3357_v13  ;;  %977 = vmatprep.subr.bf16.mxu1 %v4736_v2 }
 0x105   : > { %2906 = vmatprep.subr.bf16.mxu0 %v4731_v7 }
 0x107   : > { %978 = vmatpush1.bf16.msra.mxu1 %v3221_v41  ;;  %v1013_v41 = vld [vmem:[%s296_s30 + $0x8] sm:$0xff] }
 0x108   : > { %2907 = vmatpush3.bf16.msra.mxu0 %v3373_v16  ;;  %979 = vmatprep.subr.bf16.mxu1 %v4736_v2 }
 0x109   : > { %2908 = vmatprep.subr.bf16.mxu0 %v4731_v7 }
 0x10c   : > { %2909 = vmatpush3.bf16.msra.mxu0 %v3393_v20 }
 0x10d   : > { %2910 = vmatprep.subr.bf16.mxu0 %v4731_v7 }
 0x110   : > { %2911 = vmatpush3.bf16.msra.mxu0 %v3409_v24 }
 0x111   : > { %2912 = vmatprep.subr.bf16.mxu0 %v4731_v7 }
 0x114   : > { %2913 = vmatpush3.bf16.msra.mxu0 %v3423_v29 }
 0x115   : > { %2914 = vmatprep.subr.bf16.mxu0 %v4731_v7 }
 0x118   : > { %2915 = vmatpush3.bf16.msra.mxu0 %v3437_v33 }
 0x119   : > { %2920 = vmatprep.subr.bf16.mxu0 %v4731_v7 }
 0x11b   : > { %2917 = vmatmul.mubr.msk.bf16.vlgmr.msra.gmra.mrb[16].mxu0 %vm2552_vm12, %v3255_v42  ;;  %v3222_v42 = vld [vmem:[%s4720_s3 + $0x20] sm:$0xff]  }
 0x11c   : > { %2921 = vmatpush3.bf16.msra.mxu0 %v3321_v4  ;;  %2936 = vmatprep.mubr.msk.bf16.mxu0 %vm3247_vm0, %v4731_v7 }
 0x11d   : > { %2922 = vmatprep.subr.bf16.mxu0 %v4731_v7  ;;  %980 = vmatpush1.bf16.msra.mxu1 %v3222_v42 }
 0x11e   : > { %981 = vmatprep.subr.bf16.mxu1 %v4736_v2 }
 0x120   : > { %2923 = vmatpush3.bf16.msra.mxu0 %v3337_v8 }
 0x121   : > { %2924 = vmatprep.subr.bf16.mxu0 %v4731_v7  ;;  %982 = vmatpush1.bf16.msra.mxu1 %v3223_v43 }
 0x122   : > { %983 = vmatprep.subr.bf16.mxu1 %v4736_v2 }
 0x124   : > { %2925 = vmatpush3.bf16.msra.mxu0 %v3357_v13 }
 0x125   : > { %2926 = vmatprep.subr.bf16.mxu0 %v4731_v7  ;;  %984 = vmatpush1.bf16.msra.mxu1 %v3224_v44 }
 0x126   : > { %985 = vmatprep.subr.bf16.mxu1 %v4736_v2 }
 0x128   : > { %2927 = vmatpush3.bf16.msra.mxu0 %v3373_v16 }
 0x129   : > { %2928 = vmatprep.subr.bf16.mxu0 %v4731_v7  ;;  %986 = vmatpush1.bf16.msra.mxu1 %v3225_v45 }
 0x12a   : > { %987 = vmatprep.subr.bf16.mxu1 %v4736_v2 }
 0x12c   : > { %2929 = vmatpush3.bf16.msra.mxu0 %v3393_v20 }
 0x12d   : > { %2930 = vmatprep.subr.bf16.mxu0 %v4731_v7  ;;  %988 = vmatpush1.bf16.msra.mxu1 %v3226_v46 }
 0x12e   : > { %2940 = vmatprep.subr.bf16.mxu1 %v4731_v7 }
 0x130   : > { %2931 = vmatpush3.bf16.msra.mxu0 %v3409_v24 }
 0x131   : > { %2932 = vmatprep.subr.bf16.mxu0 %v4731_v7 }
 0x134   : > { %2933 = vmatpush3.bf16.msra.mxu0 %v3423_v29 }
 0x135   : > { %2934 = vmatprep.subr.bf16.mxu0 %v4731_v7 }
 0x138   : > { %2935 = vmatpush3.bf16.msra.mxu0 %v3437_v33 }
 0x139   : > { %2960 = vmatprep.subr.bf16.mxu0 %v4731_v7 }
 0x16d   : > { %v433_v57 = vpop.f32.mrb[0].mxu1 }
 0x16e   : > { %v378_v58 = vpop.f32.mrb[0].mxu0  ;;  %442 = vrot.lane.b32.xlu1 %v433_v57, %s3256_s19  ;;  %v2778_v59 = vpop.f32.mrb[1].mxu1 }
 0x16f   : > { %386 = vst.msk [vmem:[#allocation2] sm:$0xff] %vm385_vm13, %v378_v58  ;;  %v2758_v60 = vpop.f32.mrb[1].mxu0  ;;  %v436_v61 = vpop.f32.mrb[2].mxu1 }
 0x170   : > { %v381_v62 = vpop.f32.mrb[2].mxu0  ;;  %v2779_v63 = vpop.f32.mrb[3].mxu1  ;;  %444 = vrot.lane.b32.xlu0 %v436_v61, %s3256_s19 }
 0x171   : > { %387 = vst.msk [vmem:[#allocation2 + $0x10] sm:$0xff] %vm385_vm13, %v381_v62  ;;  %v2759_v0 = vpop.f32.mrb[3].mxu0 }
 0x18d   : > { %v559_v3 = vpop.f32.mrb[4].mxu1 }
 0x18e   : > { %v496_v5 = vpop.f32.mrb[4].mxu0  ;;  %v2818_v6 = vpop.f32.mrb[5].mxu1 }
 0x18f   : > { %505 = vrot.lane.b32.xlu1 %v496_v5, %s3257_s20  ;;  %v2798_v9 = vpop.f32.mrb[5].mxu0  ;;  %v562_v10 = vpop.f32.mrb[6].mxu1 }
 0x190   : > { %v499_v14 = vpop.f32.mrb[6].mxu0  ;;  %v2819_v15 = vpop.f32.mrb[7].mxu1 }
 0x191   : > { %507 = vrot.lane.b32.xlu0 %v499_v14, %s3257_s20  ;;  %v2799_v17 = vpop.f32.mrb[7].mxu0 }
 0x193   : > { %568 = vrot.lane.b32.xlu1 %v559_v3, %s3258_s21 }
 0x195   : > { %570 = vrot.lane.b32.xlu0 %v562_v10, %s3258_s21 }
 0x1ad   : > { %v685_v23 = vpop.f32.mrb[8].mxu1 }
 0x1ae   : > { %v622_v25 = vpop.f32.mrb[8].mxu0  ;;  %v2858_v26 = vpop.f32.mrb[9].mxu1 }
 0x1af   : > { %v2838_v31 = vpop.f32.mrb[9].mxu0  ;;  %631 = vrot.lane.b32.xlu1 %v622_v25, %s3259_s29  ;;  %v688_v36 = vpop.f32.mrb[10].mxu1 }
 0x1b0   : > { %v625_v37 = vpop.f32.mrb[10].mxu0  ;;  %v2859_v38 = vpop.f32.mrb[11].mxu1 }
 0x1b1   : > { %v2839_v40 = vpop.f32.mrb[11].mxu0  ;;  %633 = vrot.lane.b32.xlu0 %v625_v37, %s3259_s29 }
 0x1b3   : > { %694 = vrot.lane.b32.xlu1 %v685_v23, %s3260_s9 }
 0x1b5   : > { %696 = vrot.lane.b32.xlu0 %v688_v36, %s3260_s9  ;;  %v1012_v36 = vld [vmem:[%s296_s30] sm:$0xff] }
 0x1cd   : > { %v811_v47 = vpop.f32.mrb[12].mxu1 }
 0x1ce   : > { %v748_v48 = vpop.f32.mrb[12].mxu0  ;;  %v2898_v49 = vpop.f32.mrb[13].mxu1 }
 0x1cf   : > { %757 = vrot.lane.b32.xlu1 %v748_v48, %s3261_s25  ;;  %v2878_v50 = vpop.f32.mrb[13].mxu0  ;;  %v814_v51 = vpop.f32.mrb[14].mxu1 }
 0x1d0   : > { %v751_v52 = vpop.f32.mrb[14].mxu0  ;;  %v2899_v53 = vpop.f32.mrb[15].mxu1 }
 0x1d1   : > { %759 = vrot.lane.b32.xlu0 %v751_v52, %s3261_s25  ;;  %v2879_v54 = vpop.f32.mrb[15].mxu0 }
 0x1d3   : > { %820 = vrot.lane.b32.xlu1 %v811_v47, %s3262_s26 }
 0x1d5   : > { %822 = vrot.lane.b32.xlu0 %v814_v51, %s3262_s26 }
 0x1d7   : > { %1073 = vperm.xlu1 %3147, %v3349_v11  }
 0x1d9   : > { %1076 = vperm.xlu0 %3148, %v3353_v12  }
 0x1db   : > { %3150 = vset.pattern.permute.xlu1 %v4736_v2 }
 0x1dd   : > { %3149 = vset.pattern.permute.xlu0 %v4736_v2 }
 0x1e0   : > { %v443_v56 = vpop.permute.xlu1 %442 }
 0x1e1   : > { %449 = vst.msk [vmem:[#allocation2] sm:$0xff] %vm448_vm14, %v443_v56 }
 0x1e2   : > { %v445_v57 = vpop.permute.xlu0 %444 }
 0x1e3   : > { %450 = vst.msk [vmem:[#allocation2 + $0x10] sm:$0xff] %vm448_vm14, %v445_v57 }
 0x1ee   : > { %v874_v58 = vpop.f32.mrb[16].mxu0 }
 0x1ef   : > { %881 = vst.msk [vmem:[#allocation2 + $0x8] sm:$0xff] %vm385_vm13, %v874_v58  ;;  %v2918_v59 = vpop.f32.mrb[17].mxu0 }
 0x1f0   : > { %v877_v60 = vpop.f32.mrb[18].mxu0 }
 0x1f1   : > { %882 = vst.msk [vmem:[#allocation2 + $0x18] sm:$0xff] %vm385_vm13, %v877_v60  ;;  %v2919_v11 = vpop.f32.mrb[19].mxu0 }
 0x1f6   : > { %v884_v12 = vld [vmem:[#allocation2 + $0x8] sm:$0xff] }
 0x1f8   : > { %v886_v61 = vld [vmem:[#allocation2 + $0x18] sm:$0xff] }
 0x1f9   : > { %v888_v62 = vpack.c.bf16 %v886_v61, %v884_v12 }
 0x1fb   : > { %2564 = vmatprep.mubr.msk.bf16.mxu1 %vm385_vm13, %v888_v62 }
 0x201   : > { %v506_v63 = vpop.permute.xlu1 %505 }
 0x202   : > { %512 = vst.msk [vmem:[#allocation2] sm:$0xff] %vm4730_vm15, %v506_v63 }
 0x203   : > { %v508_v0 = vpop.permute.xlu0 %507 }
 0x204   : > { %513 = vst.msk [vmem:[#allocation2 + $0x10] sm:$0xff] %vm4730_vm15, %v508_v0 }
 0x205   : > { %v569_v3 = vpop.permute.xlu1 %568 }
 0x206   : > { %575 = vst.msk [vmem:[#allocation2] sm:$0xff] %vm4729_vm1, %v569_v3 }
 0x207   : > { %v571_v5 = vpop.permute.xlu0 %570 }
 0x208   : > { %576 = vst.msk [vmem:[#allocation2 + $0x10] sm:$0xff] %vm4729_vm1, %v571_v5 }
 0x221   : > { %v632_v6 = vpop.permute.xlu1 %631 }
 0x222   : > { %638 = vst.msk [vmem:[#allocation2] sm:$0xff] %vm4728_vm2, %v632_v6 }
 0x223   : > { %v634_v9 = vpop.permute.xlu0 %633 }
 0x224   : > { %639 = vst.msk [vmem:[#allocation2 + $0x10] sm:$0xff] %vm4728_vm2, %v634_v9 }
 0x225   : > { %v695_v10 = vpop.permute.xlu1 %694 }
 0x226   : > { %701 = vst.msk [vmem:[#allocation2] sm:$0xff] %vm4727_vm3, %v695_v10 }
 0x227   : > { %v697_v14 = vpop.permute.xlu0 %696 }
 0x228   : > { %702 = vst.msk [vmem:[#allocation2 + $0x10] sm:$0xff] %vm4727_vm3, %v697_v14 }
 0x241   : > { %v758_v15 = vpop.permute.xlu1 %757 }
 0x242   : > { %764 = vst.msk [vmem:[#allocation2] sm:$0xff] %vm4726_vm4, %v758_v15 }
 0x243   : > { %v760_v17 = vpop.permute.xlu0 %759 }
 0x244   : > { %765 = vst.msk [vmem:[#allocation2 + $0x10] sm:$0xff] %vm4726_vm4, %v760_v17 }
 0x245   : > { %v821_v18 = vpop.permute.xlu1 %820 }
 0x246   : > { %827 = vst.msk [vmem:[#allocation2] sm:$0xff] %vm4725_vm5, %v821_v18 }
 0x247   : > { %v823_v22 = vpop.permute.xlu0 %822 }
 0x248   : > { %828 = vst.msk [vmem:[#allocation2 + $0x10] sm:$0xff] %vm4725_vm5, %v823_v22 }
 0x24d   : > { %v883_v23 = vld [vmem:[#allocation2] sm:$0xff] }
 0x24f   : > { %v885_v25 = vld [vmem:[#allocation2 + $0x10] sm:$0xff] }
 0x250   : > { %v887_v26 = vpack.c.bf16 %v885_v25, %v883_v23 }
 0x252   : > { %1004 = vmatmul.mubr.bf16.vlgmr.msra.gmra.mrb[16].mxu1 %v887_v26 }
 0x253   : > { %2941 = vmatpush3.bf16.msra.mxu1 %v3321_v4  ;;  %2956 = vmatprep.mubr.msk.bf16.mxu1 %vm3247_vm0, %v4731_v7 }
 0x254   : > { %2942 = vmatprep.subr.bf16.mxu1 %v4731_v7 }
 0x256   : > { %v1074_v26 = vpop.permute.xlu1 %1073 }
 0x257   : > { %2943 = vmatpush3.bf16.msra.mxu1 %v3337_v8 }
 0x258   : > { %2944 = vmatprep.subr.bf16.mxu1 %v4731_v7  ;;  %v3798_v25 = vpop.permute.xlu0 %1076 }
 0x25b   : > { %2945 = vmatpush3.bf16.msra.mxu1 %v3357_v13 }
 0x25c   : > { %2946 = vmatprep.subr.bf16.mxu1 %v4731_v7 }
 0x25f   : > { %2947 = vmatpush3.bf16.msra.mxu1 %v3373_v16 }
 0x260   : > { %2948 = vmatprep.subr.bf16.mxu1 %v4731_v7 }
 0x263   : > { %2949 = vmatpush3.bf16.msra.mxu1 %v3393_v20 }
 0x264   : > { %2950 = vmatprep.subr.bf16.mxu1 %v4731_v7 }
 0x267   : > { %2951 = vmatpush3.bf16.msra.mxu1 %v3409_v24 }
 0x268   : > { %2952 = vmatprep.subr.bf16.mxu1 %v4731_v7 }
 0x26b   : > { %2953 = vmatpush3.bf16.msra.mxu1 %v3423_v29 }
 0x26c   : > { %2954 = vmatprep.subr.bf16.mxu1 %v4731_v7 }
 0x26f   : > { %2955 = vmatpush3.bf16.msra.mxu1 %v3437_v33 }
 0x270   : > { %2980 = vmatprep.subr.bf16.mxu1 %v4731_v7 }
 0x325   : > { %v1005_v31 = vpop.f32.mrb[16].mxu1 }
 0x326   : > { %v1006_v37 = vadd.f32 %v2554_v30, %v1005_v31  ;;  %v1007_v38 = vpop.f32.mrb[17].mxu1 }
 0x327   : > { %v1008_v40 = vpop.f32.mrb[18].mxu1 }
 0x328   : > { %v1014_v42 = vadd.f32 %v1012_v36, %v1006_v37  ;;  %v1009_v43 = vadd.f32 %v2554_v30, %v1008_v40  ;;  %v1010_v44 = vpop.f32.mrb[19].mxu1 }
 0x32a   : > { %v1016_v45 = vfloor.f32 %v1014_v42  ;;  %v1015_v46 = vadd.f32 %v1013_v41, %v1009_v43 }
 0x32c   : > { %v3728_v47 = vsub.f32 %v1014_v42, %v1016_v45  ;;  %v3100_v48 = vtrunc.f32 %v1016_v45  ;;  %v1017_v49 = vfloor.f32 %v1015_v46 }
 0x32e   : > { %v3101_v50 = vcvt.f32.s32 %v3100_v48  ;;  %v3730_v51 = vsub.f32 %v1015_v46, %v1017_v49  ;;  %v3102_v52 = vtrunc.f32 %v1017_v49  ;;  %1090 = vrot.lane.b32.xlu0 %v3728_v47, %s3264_s11  ;;  %v3737_v54 = vsub.f32 1.0, %v3728_v47 }
 0x330   : > { %v3103_v53 = vcvt.f32.s32 %v3102_v52  ;;  %1092 = vrot.lane.b32.xlu1 %v3730_v51, %s3264_s11  ;;  %vm1036_vm6 = vcmp.ge.s32.totalorder %v3101_v50, 0  ;;  %vm1038_vm7 = vcmp.lt.s32.totalorder %v3101_v50, 8  ;;  %v1022_v55 = vadd.s32 1, %v3101_v50 }
 0x331   : > { %vm3739_vm8 = vmand %vm1036_vm6, %vm1038_vm7  ;;  %v1042_v58 = vsel %vm1036_vm6, 1, %v4736_v2  ;;  %vm1062_vm5 = vcmp.gt.s32.totalorder %v3101_v50, 0  ;;  %v1052_v60 = vsel %vm1038_vm7, 1, %v4736_v2  ;;  %v3761_v12 = vsub.f32 1.0, %v3730_v51 }
 0x332   : > { %1028 = vrot.lane.b32.xlu0 %v3737_v54, %s3264_s11  ;;  %vm1037_vm9 = vcmp.ge.s32.totalorder %v3103_v53, 0  ;;  %vm1039_vm10 = vcmp.lt.s32.totalorder %v3103_v53, 8  ;;  %v1023_v57 = vadd.s32 1, %v3103_v53  ;;  %vm1098_vm11 = vcmp.ge.s32.totalorder %v1022_v55, 0 }
 0x333   : > { %vm3748_vm12 = vmand %vm1037_vm9, %vm1039_vm10  ;;  %vm1110_vm4 = vcmp.lt.s32.totalorder %v1022_v55, 8  ;;  %v1063_v61 = vsel %vm1062_vm5, %v3101_v50, 0  ;;  %v1100_v63 = vsel %vm1098_vm11, 1, %v4736_v2  ;;  %v1043_v0 = vsel %vm1037_vm9, 1, %v4736_v2 }
 0x334   : > { %1044 = vrot.lane.b32.xlu1 %v1042_v58, %s3264_s11  ;;  %vm1099_vm3 = vcmp.ge.s32.totalorder %v1023_v57, 0  ;;  %vm3755_vm2 = vmand %vm1098_vm11, %vm1110_vm4  ;;  %vm1111_vm6 = vcmp.lt.s32.totalorder %v1023_v57, 8  ;;  %vm1066_vm7 = vcmp.lt.s32.totalorder %v1063_v61, 7  ;;  %vm1122_vm5 = vcmp.gt.s32.totalorder %v1022_v55, 0 }
 0x335   : > { %vm3765_vm1 = vmand %vm1099_vm3, %vm1111_vm6  ;;  %v1067_v3 = vsel %vm1066_vm7, %v1063_v61, 7  ;;  %vm1064_vm15 = vcmp.gt.s32.totalorder %v3103_v53, 0  ;;  %v1053_v5 = vsel %vm1039_vm10, 1, %v4736_v2  ;;  %v1123_v6 = vsel %vm1122_vm5, %v1022_v55, 0 }
 0x336   : > { %1054 = vrot.lane.b32.xlu0 %v1052_v60, %s3264_s11  ;;  %v1112_v9 = vsel %vm1110_vm4, 1, %v4736_v2  ;;  %v1065_v10 = vsel %vm1064_vm15, %v3103_v53, 0  ;;  %vm1126_vm9 = vcmp.lt.s32.totalorder %v1123_v6, 7  ;;  %v1101_v14 = vsel %vm1099_vm3, 1, %v4736_v2 }
 0x337   : > { %vm1068_vm11 = vcmp.lt.s32.totalorder %v1065_v10, 7  ;;  %v1127_v15 = vsel %vm1126_vm9, %v1123_v6, 7  ;;  %vm1124_vm10 = vcmp.gt.s32.totalorder %v1023_v57, 0  ;;  %v1113_v22 = vsel %vm1111_vm6, 1, %v4736_v2 }
 0x338   : > { %1030 = vrot.lane.b32.xlu1 %v3761_v12, %s3264_s11  ;;  %v3787_v17 = vsel %vm1068_vm11, %v1065_v10, 7  ;;  %v1125_v18 = vsel %vm1124_vm10, %v1023_v57, 0  ;;  %v1070_v42 = vmul.u32 8, %v1067_v3  ;;  %v1146_v48 = vmul.u32 8, %v1127_v15 }
 0x339   : > { %vm1128_vm15 = vcmp.lt.s32.totalorder %v1125_v18, 7 }
 0x33a   : > { %1102 = vrot.lane.b32.xlu0 %v1100_v63, %s3264_s11  ;;  %v3794_v23 = vsel %vm1128_vm15, %v1125_v18, 7  ;;  %v3818_v46 = vadd.s32 %v1074_v26, %v1070_v42  ;;  %v3826_v53 = vadd.s32 %v1146_v48, %v1074_v26 }
 0x33c   : > { %1046 = vrot.lane.b32.xlu1 %v1043_v0, %s3264_s11  ;;  %v4791_v0 = vmov 3  }
 0x33e   : > { %1080 = vrot.lane.b32.xlu0 %v1067_v3, %s3264_s11  ;;  %v1071_v3 = vmul.u32 8, %v3787_v17 }
 0x340   : > { %1056 = vrot.lane.b32.xlu1 %v1053_v5, %s3264_s11 }
 0x342   : > { %1114 = vrot.lane.b32.xlu0 %v1112_v9, %s3264_s11  ;;  %v1079_v9 = vadd.s32 %v3798_v25, %v1071_v3 }
 0x344   : > { %1104 = vrot.lane.b32.xlu1 %v1101_v14, %s3264_s11  ;;  %v1147_v14 = vmul.u32 8, %v3794_v23 }
 0x346   : > { %1130 = vrot.lane.b32.xlu0 %v1127_v15, %s3264_s11 }
 0x348   : > { %1082 = vrot.lane.b32.xlu1 %v3787_v17, %s3264_s11  ;;  %v3901_v17 = vadd.s32 %v1147_v14, %v3798_v25 }
 0x34c   : > { %1116 = vrot.lane.b32.xlu1 %v1113_v22, %s3264_s11 }
 0x350   : > { %1132 = vrot.lane.b32.xlu1 %v3794_v23, %s3264_s11 }
 0x3a0   : > { %v3800_v30 = vpop.permute.xlu0 %1090 }
 0x3a1   : > { %v1154_v22 = vmul.f32 %v3800_v30, %v3728_v47  ;;  %v1096_v25 = vmul.f32 %v3800_v30, %v3737_v54 }
 0x3a2   : > { %v3802_v31 = vpop.permute.xlu1 %1092 }
 0x3a3   : > { %v1155_v33 = vmul.f32 %v3802_v31, %v3730_v51 }
 0x3a4   : > { %v1029_v36 = vpop.permute.xlu0 %1028 }
 0x3a5   : > { %v1034_v40 = vmul.f32 %v1029_v36, %v3737_v54  ;;  %v1138_v58 = vmul.f32 %v1029_v36, %v3728_v47 }
 0x3a6   : > { %v1045_v37 = vpop.permute.xlu1 %1044 }
 0x3a7   : > { %vm1048_vm3 = vcmp.ne.s32.totalorder %v1045_v37, 0  ;;  %v1097_v37 = vmul.f32 %v3802_v31, %v3761_v12 }
 0x3a8   : > { %vm1050_vm4 = vmand %vm3739_vm8, %vm1048_vm3  ;;  %v1055_v38 = vpop.permute.xlu0 %1054 }
 0x3a9   : > { %vm1058_vm6 = vcmp.ne.s32.totalorder %v1055_v38, 0  ;;  %vm1142_vm5 = vmand %vm3755_vm2, %vm1048_vm3 }
 0x3aa   : > { %vm1060_vm7 = vmand %vm1050_vm4, %vm1058_vm6  ;;  %v3809_v41 = vpop.permute.xlu1 %1030 }
 0x3ab   : > { %v3811_v43 = vsel %vm1060_vm7, %v1034_v40, 0.0  ;;  %vm1144_vm9 = vmand %vm1142_vm5, %vm1058_vm6  ;;  %v1035_v5 = vmul.f32 %v3809_v41, %v3761_v12  ;;  %v1139_v54 = vmul.f32 %v3809_v41, %v3730_v51 }
 0x3ac   : > { %1174 = vperm.xlu1 %3150, %v3811_v43   ;;  %v3814_v44 = vpop.permute.xlu0 %1102  ;;  %v3847_v60 = vsel %vm1144_vm9, %v1138_v58, 0.0 }
 0x3ad   : > { %vm1106_vm9 = vcmp.ne.s32.totalorder %v3814_v44, 0 }
 0x3ae   : > { %v3816_v45 = vpop.permute.xlu1 %1046 }
 0x3af   : > { %vm1049_vm4 = vcmp.ne.s32.totalorder %v3816_v45, 0 }
 0x3b0   : > { %v1081_v49 = vpop.permute.xlu0 %1080  ;;  %3151 = vset.pattern.permute.xlu1 %v4738_v1  ;;  %vm1051_vm7 = vmand %vm3748_vm12, %vm1049_vm4 }
 0x3b1   : > { %v3822_v50 = vadd.s32 %v1081_v49, %v3818_v46  ;;  %v3834_v55 = vadd.s32 %v3826_v53, %v1081_v49 }
 0x3b2   : > { %v3824_v52 = vpop.permute.xlu1 %1056 }
 0x3b3   : > { %1295 = vperm.xlu1 %3151, %v3822_v50   ;;  %1165 = vperm.xlu0 %3149, %v3822_v50   ;;  %vm1059_vm6 = vcmp.ne.s32.totalorder %v3824_v52, 0 }
 0x3b4   : > { %vm1061_vm5 = vmand %vm1051_vm7, %vm1059_vm6  ;;  %v1115_v15 = vpop.permute.xlu0 %1114 }
 0x3b5   : > { %v3887_v6 = vsel %vm1061_vm5, %v1035_v5, 0.0  ;;  %vm1156_vm7 = vmand %vm3755_vm2, %vm1106_vm9 }
 0x3b6   : > { %v3836_v57 = vpop.permute.xlu1 %1104  ;;  %vm1108_vm2 = vmand %vm3739_vm8, %vm1106_vm9 }
 0x3b7   : > { %vm1107_vm11 = vcmp.ne.s32.totalorder %v3836_v57, 0  ;;  %1303 = vperm.xlu1 %3151, %v3811_v43   ;;  %1207 = vperm.xlu0 %3149, %v3834_v55   ;;  %vm1143_vm8 = vmand %vm3765_vm1, %vm1049_vm4 }
 0x3b8   : > { %vm1157_vm10 = vmand %vm3765_vm1, %vm1107_vm11  ;;  %v1131_v11 = vpop.permute.xlu0 %1130 }
 0x3b9   : > { %v3931_v47 = vadd.s32 %v1131_v11, %v3818_v46  ;;  %vm1145_vm9 = vmand %vm1143_vm8, %vm1059_vm6  ;;  %v3972_v62 = vadd.s32 %v3826_v53, %v1131_v11 }
 0x3ba   : > { %v1083_v61 = vpop.permute.xlu1 %1082  ;;  %v3965_v56 = vsel %vm1145_vm9, %v1139_v54, 0.0  ;;  %vm1109_vm1 = vmand %vm3748_vm12, %vm1107_vm11 }
 0x3bb   : > { %1333 = vperm.xlu1 %3151, %v3834_v55   ;;  %1216 = vperm.xlu0 %3149, %v3847_v60   ;;  %v3893_v10 = vadd.s32 %v1083_v61, %v1079_v9  ;;  %v3906_v18 = vadd.s32 %v3901_v17, %v1083_v61 }
 0x3be   : > { %v3851_v63 = vpop.permute.xlu1 %1116 }
 0x3bf   : > { %vm1119_vm15 = vcmp.ne.s32.totalorder %v3851_v63, 0  ;;  %3153 = vset.pattern.permute.xlu1 %v4733_v19  ;;  %3152 = vset.pattern.permute.xlu0 %v4738_v1 }
 0x3c0   : > { %1433 = vperm.xlu1 %3153, %v3811_v43   ;;  %1341 = vperm.xlu0 %3152, %v3847_v60   ;;  %vm3860_vm3 = vmand %vm1157_vm10, %vm1119_vm15  ;;  %vm1118_vm10 = vcmp.ne.s32.totalorder %v1115_v15, 0 }
 0x3c1   : > { %vm1158_vm5 = vmand %vm1156_vm7, %vm1118_vm10 }
 0x3c2   : > { %v3919_v23 = vsel %vm1158_vm5, %v1154_v22, 0.0  ;;  %vm1120_vm7 = vmand %vm1108_vm2, %vm1118_vm10  ;;  %v1133_v30 = vpop.permute.xlu1 %1132 }
 0x3c3   : > { %v3942_v26 = vsel %vm1120_vm7, %v1096_v25, 0.0  ;;  %v3974_v36 = vadd.s32 %v1133_v30, %v1079_v9  ;;  %vm1121_vm4 = vmand %vm1109_vm1, %vm1119_vm15  ;;  %v3993_v59 = vadd.s32 %v3901_v17, %v1133_v30 }
 0x3c4   : > { %3154 = vset.pattern.permute.xlu1 %v4734_v21  ;;  %3155 = vset.pattern.permute.xlu0 %v4734_v21  ;;  %v3987_v38 = vsel %vm1121_vm4, %v1097_v37, 0.0 }
 0x3c5   : > { %1555 = vperm.xlu1 %3154, %v3822_v50   ;;  %1601 = vperm.xlu0 %3155, %v3847_v60  }
 0x3c9   : > { %1563 = vperm.xlu1 %3154, %v3811_v43   ;;  %3158 = vset.pattern.permute.xlu0 %v4747_v28 }
 0x3ca   : > { %1861 = vperm.xlu0 %3158, %v3847_v60  }
 0x3cd   : > { %1593 = vperm.xlu1 %3154, %v3834_v55  }
 0x3ce   : > { %3159 = vset.pattern.permute.xlu0 %v4743_v32 }
 0x3cf   : > { %1945 = vperm.xlu0 %3159, %v3822_v50  }
 0x3d1   : > { %3156 = vset.pattern.permute.xlu1 %v4740_v27 }
 0x3d2   : > { %1693 = vperm.xlu1 %3156, %v3811_v43  }
 0x3d3   : > { %3163 = vset.pattern.permute.xlu0 %v4736_v2 }
 0x3d4   : > { %1179 = vperm.xlu0 %3163, %v3887_v6  }
 0x3d6   : > { %3157 = vset.pattern.permute.xlu1 %v4747_v28 }
 0x3d7   : > { %1815 = vperm.xlu1 %3157, %v3822_v50  }
 0x3d8   : > { %3164 = vset.pattern.permute.xlu0 %v4738_v1 }
 0x3d9   : > { %1298 = vperm.xlu0 %3164, %v3893_v10  }
 0x3db   : > { %1823 = vperm.xlu1 %3157, %v3811_v43  }
 0x3dd   : > { %1307 = vperm.xlu0 %3164, %v3887_v6  }
 0x3df   : > { %1853 = vperm.xlu1 %3157, %v3834_v55  }
 0x3e1   : > { %1336 = vperm.xlu0 %3164, %v3906_v18  }
 0x3e3   : > { %3160 = vset.pattern.permute.xlu1 %v4743_v32 }
 0x3e4   : > { %1953 = vperm.xlu1 %3160, %v3811_v43  }
 0x3e5   : > { %3170 = vset.pattern.permute.xlu0 %v4736_v2 }
 0x3e6   : > { %1238 = vperm.xlu0 %3170, %v3919_v23  }
 0x3e8   : > { %3161 = vset.pattern.permute.xlu1 %v4745_v34 }
 0x3e9   : > { %2075 = vperm.xlu1 %3161, %v3822_v50  }
 0x3ea   : > { %3172 = vset.pattern.permute.xlu0 %v4734_v21 }
 0x3eb   : > { %1558 = vperm.xlu0 %3172, %v3893_v10  }
 0x3ed   : > { %3162 = vset.pattern.permute.xlu1 %v4736_v2 }
 0x3ee   : > { %1168 = vperm.xlu1 %3162, %v3893_v10  }
 0x3ef   : > { %1567 = vperm.xlu0 %3172, %v3887_v6  }
 0x3f2   : > { %1185 = vperm.xlu1 %3162, %v3931_v47  }
 0x3f3   : > { %1596 = vperm.xlu0 %3172, %v3906_v18  }
 0x3f6   : > { %1194 = vperm.xlu1 %3162, %v3942_v26  }
 0x3f7   : > { %3179 = vset.pattern.permute.xlu0 %v4747_v28 }
 0x3f8   : > { %1818 = vperm.xlu0 %3179, %v3893_v10  }
 0x3fa   : > { %3165 = vset.pattern.permute.xlu1 %v4738_v1 }
 0x3fb   : > { %1313 = vperm.xlu1 %3165, %v3931_v47  }
 0x3fc   : > { %1827 = vperm.xlu0 %3179, %v3887_v6  }
 0x3ff   : > { %3166 = vset.pattern.permute.xlu1 %v4736_v2 }
 0x400   : > { %1856 = vperm.xlu0 %3179, %v3906_v18   ;;  %1210 = vperm.xlu1 %3166, %v3906_v18  }
 0x404   : > { %3186 = vset.pattern.permute.xlu0 %v4743_v32  ;;  %3167 = vset.pattern.permute.xlu1 %v4738_v1 }
 0x405   : > { %1957 = vperm.xlu0 %3186, %v3887_v6   ;;  %1321 = vperm.xlu1 %3167, %v3942_v26  }
 0x409   : > { %3187 = vset.pattern.permute.xlu0 %v4745_v34  ;;  %3168 = vset.pattern.permute.xlu1 %v4736_v2 }
 0x40a   : > { %2078 = vperm.xlu0 %3187, %v3893_v10   ;;  %1221 = vperm.xlu1 %3168, %v3965_v56  }
 0x40e   : > { %3189 = vset.pattern.permute.xlu0 %v4736_v2  ;;  %1229 = vperm.xlu1 %3168, %v3972_v62  }
 0x40f   : > { %1188 = vperm.xlu0 %3189, %v3974_v36  }
 0x412   : > { %3169 = vset.pattern.permute.xlu1 %v4738_v1 }
 0x413   : > { %1199 = vperm.xlu0 %3189, %v3987_v38   ;;  %1345 = vperm.xlu1 %3169, %v3965_v56  }
 0x417   : > { %3192 = vset.pattern.permute.xlu0 %v4738_v1  ;;  %1353 = vperm.xlu1 %3169, %v3972_v62  }
 0x418   : > { %1356 = vperm.xlu0 %3192, %v3993_v59  }
 0x41b   : > { %1361 = vperm.xlu1 %3169, %v3919_v23  }
 0x41c   : > { %3196 = vset.pattern.permute.xlu0 %v4745_v34 }
 0x41d   : > { %2087 = vperm.xlu0 %3196, %v3887_v6  }
 0x41f   : > { %3171 = vset.pattern.permute.xlu1 %v4733_v19 }
 0x420   : > { %1428 = vperm.xlu1 %3171, %v3893_v10  }
 0x421   : > { %3197 = vset.pattern.permute.xlu0 %v4733_v19 }
 0x422   : > { %1425 = vperm.xlu0 %3197, %v3822_v50  }
 0x424   : > { %1443 = vperm.xlu1 %3171, %v3931_v47  }
 0x426   : > { %1437 = vperm.xlu0 %3197, %v3887_v6  }
 0x428   : > { %1451 = vperm.xlu1 %3171, %v3942_v26  }
 0x42a   : > { %1463 = vperm.xlu0 %3197, %v3834_v55  }
 0x42b   : > { %v4011_v12 = vpop.permute.xlu1 %1174 }
 0x42c   : > { %3173 = vset.pattern.permute.xlu1 %v4734_v21 }
 0x42d   : > { %1573 = vperm.xlu1 %3173, %v3931_v47  }
 0x42e   : > { %1471 = vperm.xlu0 %3197, %v3847_v60  }
 0x431   : > { %3174 = vset.pattern.permute.xlu1 %v4733_v19 }
 0x432   : > { %v4015_v40 = vpop.permute.xlu1 %1295  ;;  %1491 = vperm.xlu0 %3197, %v3919_v23   ;;  %1466 = vperm.xlu1 %3174, %v3906_v18   ;;  %v4019_v41 = vpop.permute.xlu0 %1165 }
 0x433   : > { %vm1300_vm2 = vcmp.eq.s32.totalorder %v3457_v39, %v4015_v40 }
 0x436   : > { %v4021_v42 = vpop.permute.xlu1 %1303  ;;  %1446 = vperm.xlu0 %3197, %v3974_v36   ;;  %3175 = vset.pattern.permute.xlu1 %v4734_v21  ;;  %v4025_v44 = vpop.permute.xlu0 %1207 }
 0x437   : > { %1581 = vperm.xlu1 %3175, %v3942_v26   ;;  %vm1212_vm1 = vcmp.eq.s32.totalorder %v3457_v39, %v4025_v44 }
 0x43a   : > { %v4028_v45 = vpop.permute.xlu1 %1333  ;;  %1455 = vperm.xlu0 %3197, %v3987_v38   ;;  %v4031_v46 = vpop.permute.xlu0 %1216 }
 0x43b   : > { %3176 = vset.pattern.permute.xlu1 %v4733_v19  ;;  %v1224_v40 = vsel %vm1212_vm1, %v4031_v46, 0.0 }
 0x43c   : > { %1475 = vperm.xlu1 %3176, %v3965_v56  }
 0x43e   : > { %3200 = vset.pattern.permute.xlu0 %v4734_v21 }
 0x43f   : > { %v4036_v48 = vpop.permute.xlu1 %1433  ;;  %1616 = vperm.xlu0 %3200, %v3993_v59   ;;  %v4039_v49 = vpop.permute.xlu0 %1341 }
 0x440   : > { %4763 = vst [vmem:[#allocation5_spill] sm:$0xff] %v4036_v48  ;;  %1483 = vperm.xlu1 %3176, %v3972_v62  }
 0x443   : > { %3204 = vset.pattern.permute.xlu0 %v4745_v34 }
 0x444   : > { %v4043_v52 = vpop.permute.xlu1 %1555  ;;  %2116 = vperm.xlu0 %3204, %v3906_v18   ;;  %3177 = vset.pattern.permute.xlu1 %v4734_v21  ;;  %v4047_v53 = vpop.permute.xlu0 %1601 }
 0x445   : > { %4764 = vst [vmem:[#allocation6_spill] sm:$0xff] %v4043_v52  ;;  %4765 = vst [vmem:[#allocation7_spill] sm:$0xff] %v4047_v53  ;;  %1605 = vperm.xlu1 %3177, %v3965_v56   ;;  %v4187_v52 = vsel %vm3860_vm3, %v1155_v33, 0.0  ;;  %vm1170_vm3 = vcmp.eq.s32.totalorder %v3457_v39, %v4019_v41 }
 0x448   : > { %v4050_v57 = vpop.permute.xlu1 %1563  ;;  %2121 = vperm.xlu0 %3204, %v3847_v60  }
 0x449   : > { %4766 = vst [vmem:[#allocation8_spill] sm:$0xff] %v4050_v57  ;;  %1613 = vperm.xlu1 %3177, %v3972_v62   ;;  %v4054_v58 = vpop.permute.xlu0 %1861 }
 0x44a   : > { %4767 = vst [vmem:[#allocation9_spill] sm:$0xff] %v4054_v58  ;;  %v4781_v58 = vmov 6  }
 0x44c   : > { %v4056_v61 = vpop.permute.xlu1 %1593  ;;  %3206 = vset.pattern.permute.xlu0 %v4740_v27 }
 0x44d   : > { %4768 = vst [vmem:[#allocation10_spill] sm:$0xff] %v4056_v61  ;;  %1685 = vperm.xlu0 %3206, %v3822_v50   ;;  %1621 = vperm.xlu1 %3177, %v3919_v23   ;;  %v4786_v61 = vmov 0  }
 0x44e   : > { %v4061_v63 = vpop.permute.xlu0 %1945 }
 0x44f   : > { %4769 = vst [vmem:[#allocation11_spill] sm:$0xff] %v4061_v63  ;;  %v4780_v63 = vmov 7  }
 0x451   : > { %v4063_v3 = vpop.permute.xlu1 %1693  ;;  %1697 = vperm.xlu0 %3206, %v3887_v6   ;;  %3178 = vset.pattern.permute.xlu1 %v4740_v27 }
 0x452   : > { %4770 = vst [vmem:[#allocation12_spill] sm:$0xff] %v4063_v3  ;;  %1688 = vperm.xlu1 %3178, %v3893_v10  }
 0x453   : > { %v4068_v5 = vpop.permute.xlu0 %1179 }
 0x455   : > { %1723 = vperm.xlu0 %3206, %v3834_v55  }
 0x456   : > { %v4071_v9 = vpop.permute.xlu1 %1815  ;;  %1703 = vperm.xlu1 %3178, %v3931_v47  }
 0x457   : > { %4771 = vst [vmem:[#allocation13_spill] sm:$0xff] %v4071_v9 }
 0x458   : > { %v4074_v14 = vpop.permute.xlu0 %1298 }
 0x459   : > { %1731 = vperm.xlu0 %3206, %v3847_v60  }
 0x45a   : > { %v4077_v15 = vpop.permute.xlu1 %1823  ;;  %1711 = vperm.xlu1 %3178, %v3942_v26  }
 0x45b   : > { %4772 = vst [vmem:[#allocation14_spill] sm:$0xff] %v4077_v15 }
 0x45c   : > { %v4080_v17 = vpop.permute.xlu0 %1307 }
 0x45d   : > { %1751 = vperm.xlu0 %3206, %v3919_v23  }
 0x45e   : > { %v4083_v22 = vpop.permute.xlu1 %1853  ;;  %3180 = vset.pattern.permute.xlu1 %v4747_v28 }
 0x45f   : > { %4773 = vst [vmem:[#allocation15_spill] sm:$0xff] %v4083_v22  ;;  %1833 = vperm.xlu1 %3180, %v3931_v47   ;;  %v4783_v22 = vmov 8  }
 0x460   : > { %v4087_v11 = vpop.permute.xlu0 %1336 }
 0x461   : > { %1706 = vperm.xlu0 %3206, %v3974_v36  }
 0x463   : > { %v4090_v25 = vpop.permute.xlu1 %1953  ;;  %3181 = vset.pattern.permute.xlu1 %v4740_v27 }
 0x464   : > { %4774 = vst [vmem:[#allocation16_spill] sm:$0xff] %v4090_v25  ;;  %1726 = vperm.xlu1 %3181, %v3906_v18  }
 0x465   : > { %1715 = vperm.xlu0 %3206, %v3987_v38   ;;  %v4095_v54 = vpop.permute.xlu0 %1238 }
 0x468   : > { %v4097_v30 = vpop.permute.xlu1 %2075  ;;  %3182 = vset.pattern.permute.xlu1 %v4747_v28 }
 0x469   : > { %3209 = vset.pattern.permute.xlu0 %v4747_v28  ;;  %1841 = vperm.xlu1 %3182, %v3942_v26  }
 0x46a   : > { %1876 = vperm.xlu0 %3209, %v3993_v59   ;;  %v4103_v37 = vpop.permute.xlu0 %1558 }
 0x46b   : > { %4775 = vst [vmem:[#allocation17_spill] sm:$0xff] %v4103_v37 }
 0x46d   : > { %v4105_v7 = vpop.permute.xlu1 %1168  ;;  %3183 = vset.pattern.permute.xlu1 %v4740_v27 }
 0x46e   : > { %3210 = vset.pattern.permute.xlu0 %v4743_v32  ;;  %1735 = vperm.xlu1 %3183, %v3965_v56   ;;  %v4110_v19 = vpop.permute.xlu0 %1567  ;;  %vm1171_vm6 = vcmp.eq.s32.totalorder %v3457_v39, %v4105_v7 }
 0x46f   : > { %4776 = vst [vmem:[#allocation18_spill] sm:$0xff] %v4110_v19  ;;  %1983 = vperm.xlu0 %3210, %v3834_v55   ;;  %v1183_v41 = vsel %vm1171_vm6, %v4068_v5, 0.0 }
 0x471   : > { %v4113_v21 = vpop.permute.xlu1 %1185 }
 0x472   : > { %1743 = vperm.xlu1 %3183, %v3972_v62   ;;  %v4116_v2 = vpop.permute.xlu0 %1596  ;;  %vm1190_vm10 = vcmp.eq.s32.totalorder %v3457_v39, %v4113_v21 }
 0x473   : > { %4777 = vst [vmem:[#allocation19_spill] sm:$0xff] %v4116_v2  ;;  %1991 = vperm.xlu0 %3210, %v3847_v60  }
 0x475   : > { %v4119_v1 = vpop.permute.xlu1 %1194 }
 0x476   : > { %3184 = vset.pattern.permute.xlu1 %v4747_v28 }
 0x477   : > { %2011 = vperm.xlu0 %3210, %v3919_v23   ;;  %1865 = vperm.xlu1 %3184, %v3965_v56   ;;  %v1819_v27 = vpop.permute.xlu0 %1818 }
 0x478   : > { %vm1821_vm12 = vcmp.eq.s32.totalorder %v3457_v39, %v1819_v27 }
 0x47a   : > { %v4124_v35 = vpop.permute.xlu1 %1313 }
 0x47b   : > { %1966 = vperm.xlu0 %3210, %v3974_v36   ;;  %1873 = vperm.xlu1 %3184, %v3972_v62   ;;  %v1828_v32 = vpop.permute.xlu0 %1827  ;;  %vm1318_vm8 = vcmp.eq.s32.totalorder %v3457_v39, %v4124_v35 }
 0x47c   : > { %v4129_v34 = vsel %vm1821_vm12, %v1828_v32, 0.0  ;;  %vm1301_vm12 = vcmp.eq.s32.totalorder %v3457_v39, %v4074_v14 }
 0x47d   : > { %4778 = vst [vmem:[#allocation20_spill] sm:$0xff] %v4129_v34 }
 0x47f   : > { %1975 = vperm.xlu0 %3210, %v3987_v38   ;;  %v4132_v25 = vpop.permute.xlu1 %1210  ;;  %1881 = vperm.xlu1 %3184, %v3919_v23   ;;  %v4135_v28 = vpop.permute.xlu0 %1856 }
 0x480   : > { %4779 = vst [vmem:[#allocation21_spill] sm:$0xff] %v4135_v28  ;;  %vm1213_vm4 = vcmp.eq.s32.totalorder %v3457_v39, %v4132_v25 }
 0x483   : > { %3214 = vset.pattern.permute.xlu0 %v4780_v63  ;;  %3185 = vset.pattern.permute.xlu1 %v4781_v58 }
 0x484   : > { %2136 = vperm.xlu0 %3214, %v3993_v59   ;;  %v4140_v27 = vpop.permute.xlu1 %1321  ;;  %1948 = vperm.xlu1 %3185, %v3893_v10   ;;  %v4143_v32 = vpop.permute.xlu0 %1957 }
 0x485   : > { %4782 = vst [vmem:[#allocation22_spill] sm:$0xff] %v4143_v32 }
 0x488   : > { %3216 = vset.pattern.permute.xlu0 %v4783_v22  ;;  %1963 = vperm.xlu1 %3185, %v3931_v47  }
 0x489   : > { %v4147_v15 = vpop.permute.xlu1 %1221  ;;  %2205 = vperm.xlu0 %3216, %v3822_v50   ;;  %v2079_v9 = vpop.permute.xlu0 %2078  ;;  %v4784_v50 = vmov 1  }
 0x48a   : > { %vm2081_vm11 = vcmp.eq.s32.totalorder %v3457_v39, %v2079_v9  ;;  %v1225_v35 = vsel %vm1213_vm4, %v4147_v15, 0.0 }
 0x48c   : > { %1971 = vperm.xlu1 %3185, %v3942_v26  }
 0x48d   : > { %v4151_v3 = vpop.permute.xlu1 %1229  ;;  %2217 = vperm.xlu0 %3216, %v3887_v6  }
 0x48e   : > { %v4154_v34 = vpop.permute.xlu0 %1188  ;;  %vm1234_vm7 = vcmp.eq.s32.totalorder %v3457_v39, %v4151_v3 }
 0x48f   : > { %vm1191_vm5 = vcmp.eq.s32.totalorder %v3457_v39, %v4154_v34 }
 0x490   : > { %3188 = vset.pattern.permute.xlu1 %v4780_v63 }
 0x491   : > { %2093 = vperm.xlu1 %3188, %v3931_v47   ;;  %2246 = vperm.xlu0 %3216, %v3906_v18  }
 0x492   : > { %v4159_v28 = vpop.permute.xlu1 %1345  ;;  %v4161_v32 = vpop.permute.xlu0 %1199 }
 0x495   : > { %3190 = vset.pattern.permute.xlu1 %v4784_v50  ;;  %2255 = vperm.xlu0 %3216, %v3965_v56  }
 0x496   : > { %1316 = vperm.xlu1 %3190, %v3974_v36   ;;  %v4166_v2 = vpop.permute.xlu1 %1353 }
 0x497   : > { %v4168_v6 = vpop.permute.xlu0 %1356  ;;  %vm1358_vm6 = vcmp.eq.s32.totalorder %v3457_v39, %v4166_v2 }
 0x499   : > { %2226 = vperm.xlu0 %3216, %v3974_v36  }
 0x49a   : > { %1325 = vperm.xlu1 %3190, %v3987_v38   ;;  %v4172_v53 = vpop.permute.xlu1 %1361 }
 0x49c   : > { %v2088_v19 = vpop.permute.xlu0 %2087 }
 0x49d   : > { %v4175_v37 = vsel %vm2081_vm11, %v2088_v19, 0.0  ;;  %2235 = vperm.xlu0 %3216, %v3987_v38  }
 0x49e   : > { %4785 = vst [vmem:[#allocation23_spill] sm:$0xff] %v4175_v37  ;;  %3191 = vset.pattern.permute.xlu1 %v4786_v61 }
 0x49f   : > { %1232 = vperm.xlu1 %3191, %v3993_v59   ;;  %v4180_v57 = vpop.permute.xlu1 %1428 }
 0x4a0   : > { %vm1431_vm1 = vcmp.eq.s32.totalorder %v3457_v39, %v4180_v57 }
 0x4a1   : > { %2266 = vperm.xlu0 %3216, %v3993_v59  }
 0x4a3   : > { %1243 = vperm.xlu1 %3191, %v4187_v52   ;;  %v4190_v19 = vpop.permute.xlu1 %1443 }
 0x4a5   : > { %2275 = vperm.xlu0 %3216, %v4187_v52  }
 0x4a7   : > { %3193 = vset.pattern.permute.xlu1 %v4784_v50  ;;  %v4194_v9 = vpop.permute.xlu1 %1451 }
 0x4a8   : > { %4787 = vst [vmem:[#allocation24_spill] sm:$0xff] %v4194_v9  ;;  %1365 = vperm.xlu1 %3193, %v4187_v52  }
 0x4ac   : > { %3194 = vset.pattern.permute.xlu1 %v4781_v58  ;;  %v4198_v51 = vpop.permute.xlu1 %1573 }
 0x4ad   : > { %4788 = vst [vmem:[#allocation25_spill] sm:$0xff] %v4198_v51  ;;  %1986 = vperm.xlu1 %3194, %v3906_v18   ;;  %v4794_v18 = vmov 2  }
 0x4b1   : > { %3195 = vset.pattern.permute.xlu1 %v4780_v63  ;;  %v4202_v33 = vpop.permute.xlu1 %1466 }
 0x4b2   : > { %4789 = vst [vmem:[#allocation26_spill] sm:$0xff] %v4202_v33  ;;  %2083 = vperm.xlu1 %3195, %v3811_v43  }
 0x4b6   : > { %2101 = vperm.xlu1 %3195, %v3942_v26   ;;  %v4206_v31 = vpop.permute.xlu1 %1581 }
 0x4b7   : > { %4790 = vst [vmem:[#allocation27_spill] sm:$0xff] %v4206_v31  ;;  %v4222_v31 = vpop.permute.xlu0 %1425 }
 0x4ba   : > { %3198 = vset.pattern.permute.xlu1 %v4791_v0 }
 0x4bb   : > { %1576 = vperm.xlu1 %3198, %v3974_v36   ;;  %v4210_v50 = vpop.permute.xlu1 %1475 }
 0x4bc   : > { %4792 = vst [vmem:[#allocation28_spill] sm:$0xff] %v4210_v50  ;;  %v4228_v50 = vpop.permute.xlu0 %1437 }
 0x4bd   : > { %4798 = vst [vmem:[#allocation33_spill] sm:$0xff] %v4228_v50 }
 0x4bf   : > { %1585 = vperm.xlu1 %3198, %v3987_v38   ;;  %v4213_v61 = vpop.permute.xlu1 %1483 }
 0x4c0   : > { %4793 = vst [vmem:[#allocation29_spill] sm:$0xff] %v4213_v61 }
 0x4c3   : > { %3199 = vset.pattern.permute.xlu1 %v4794_v18 }
 0x4c4   : > { %1486 = vperm.xlu1 %3199, %v3993_v59   ;;  %v4217_v37 = vpop.permute.xlu1 %1605 }
 0x4c5   : > { %4795 = vst [vmem:[#allocation30_spill] sm:$0xff] %v4217_v37  ;;  %v4234_v37 = vpop.permute.xlu0 %1463 }
 0x4c6   : > { %4800 = vst [vmem:[#allocation35_spill] sm:$0xff] %v4234_v37 }
 0x4c8   : > { %1495 = vperm.xlu1 %3199, %v4187_v52   ;;  %v4220_v51 = vpop.permute.xlu1 %1613 }
 0x4c9   : > { %4796 = vst [vmem:[#allocation31_spill] sm:$0xff] %v4220_v51 }
 0x4cc   : > { %3201 = vset.pattern.permute.xlu1 %v4791_v0  ;;  %v4225_v33 = vpop.permute.xlu1 %1621 }
 0x4cd   : > { %4797 = vst [vmem:[#allocation32_spill] sm:$0xff] %v4225_v33  ;;  %1625 = vperm.xlu1 %3201, %v4187_v52   ;;  %v4242_v33 = vpop.permute.xlu0 %1471 }
 0x4ce   : > { %4803 = vst [vmem:[#allocation38_spill] sm:$0xff] %v4242_v33  ;;  %v4809_v33 = vmov 4  }
 0x4d1   : > { %3202 = vset.pattern.permute.xlu1 %v4781_v58  ;;  %v4231_v18 = vpop.permute.xlu1 %1688  ;;  %v4249_v9 = vpop.permute.xlu0 %1491 }
 0x4d2   : > { %4799 = vst [vmem:[#allocation34_spill] sm:$0xff] %v4231_v18  ;;  %1995 = vperm.xlu1 %3202, %v3965_v56   ;;  %v4805_v18 = vmov 5   ;;  %4806 = vst [vmem:[#allocation40_spill] sm:$0xff] %v4249_v9 }
 0x4d5   : > { %v4236_v61 = vpop.permute.xlu1 %1703  ;;  %v4255_v37 = vpop.permute.xlu0 %1446 }
 0x4d6   : > { %4801 = vst [vmem:[#allocation36_spill] sm:$0xff] %v4236_v61  ;;  %3203 = vset.pattern.permute.xlu1 %v4780_v63 }
 0x4d7   : > { %2113 = vperm.xlu1 %3203, %v3834_v55  }
 0x4d9   : > { %v4240_v0 = vpop.permute.xlu1 %1711  ;;  %v4261_v50 = vpop.permute.xlu0 %1455 }
 0x4da   : > { %4802 = vst [vmem:[#allocation37_spill] sm:$0xff] %v4240_v0 }
 0x4db   : > { %3205 = vset.pattern.permute.xlu1 %v4781_v58 }
 0x4dc   : > { %2003 = vperm.xlu1 %3205, %v3972_v62  }
 0x4de   : > { %v4246_v51 = vpop.permute.xlu1 %1833 }
 0x4df   : > { %4804 = vst [vmem:[#allocation39_spill] sm:$0xff] %v4246_v51 }
 0x4e0   : > { %3207 = vset.pattern.permute.xlu1 %v4805_v18 }
 0x4e1   : > { %1836 = vperm.xlu1 %3207, %v3974_v36  }
 0x4e3   : > { %v4252_v61 = vpop.permute.xlu1 %1726 }
 0x4e4   : > { %4807 = vst [vmem:[#allocation41_spill] sm:$0xff] %v4252_v61  ;;  %v4269_v61 = vpop.permute.xlu0 %1616 }
 0x4e5   : > { %1845 = vperm.xlu1 %3207, %v3987_v38   ;;  %4812 = vst [vmem:[#allocation45_spill] sm:$0xff] %v4269_v61 }
 0x4e8   : > { %v4257_v0 = vpop.permute.xlu1 %1841 }
 0x4e9   : > { %4808 = vst [vmem:[#allocation42_spill] sm:$0xff] %v4257_v0  ;;  %3208 = vset.pattern.permute.xlu1 %v4809_v33  ;;  %v4276_v33 = vpop.permute.xlu0 %2116 }
 0x4ea   : > { %1746 = vperm.xlu1 %3208, %v3993_v59   ;;  %4814 = vst [vmem:[#allocation47_spill] sm:$0xff] %v4276_v33 }
 0x4ed   : > { %v4263_v51 = vpop.permute.xlu1 %1735 }
 0x4ee   : > { %4810 = vst [vmem:[#allocation43_spill] sm:$0xff] %v4263_v51  ;;  %1755 = vperm.xlu1 %3208, %v4187_v52  }
 0x4f1   : > { %v4266_v9 = vpop.permute.xlu1 %1743 }
 0x4f2   : > { %4811 = vst [vmem:[#allocation44_spill] sm:$0xff] %v4266_v9  ;;  %3211 = vset.pattern.permute.xlu1 %v4805_v18  ;;  %v4283_v9 = vpop.permute.xlu0 %2121 }
 0x4f3   : > { %1885 = vperm.xlu1 %3211, %v4187_v52   ;;  %4816 = vst [vmem:[#allocation49_spill] sm:$0xff] %v4283_v9 }
 0x4f6   : > { %v4272_v48 = vpop.permute.xlu1 %1865 }
 0x4f7   : > { %4813 = vst [vmem:[#allocation46_spill] sm:$0xff] %v4272_v48  ;;  %3212 = vset.pattern.permute.xlu1 %v4780_v63  ;;  %v4289_v48 = vpop.permute.xlu0 %1685 }
 0x4f8   : > { %2125 = vperm.xlu1 %3212, %v3965_v56  }
 0x4fa   : > { %v4278_v0 = vpop.permute.xlu1 %1873 }
 0x4fb   : > { %v4293_v56 = vpop.permute.xlu0 %1697 }
 0x4fc   : > { %2133 = vperm.xlu1 %3212, %v3972_v62  }
 0x4fe   : > { %v4281_v51 = vpop.permute.xlu1 %1881 }
 0x4ff   : > { %4815 = vst [vmem:[#allocation48_spill] sm:$0xff] %v4281_v51  ;;  %v4301_v9 = vpop.permute.xlu0 %1723 }
 0x500   : > { %2096 = vperm.xlu1 %3212, %v3974_v36  }
 0x503   : > { %v4286_v18 = vpop.permute.xlu1 %1948 }
 0x504   : > { %2105 = vperm.xlu1 %3212, %v3987_v38  }
 0x507   : > { %v1964_v61 = vpop.permute.xlu1 %1963 }
 0x508   : > { %3213 = vset.pattern.permute.xlu1 %v4781_v58  ;;  %vm1968_vm15 = vcmp.eq.s32.totalorder %v3457_v39, %v1964_v61  ;;  %v1202_v61 = vsel %vm1190_vm10, %v4119_v1, 0.0  ;;  %v1310_v1 = vsel %vm1300_vm2, %v4021_v42, 0.0  ;;  %v1246_v42 = vsel %vm1234_vm7, %v4095_v54, 0.0 }
 0x509   : > { %2006 = vperm.xlu1 %3213, %v3993_v59   ;;  %v4306_v59 = vpop.permute.xlu0 %1731  ;;  %v1368_v54 = vsel %vm1358_vm6, %v4172_v53, 0.0  ;;  %vm1359_vm10 = vcmp.eq.s32.totalorder %v3457_v39, %v4168_v6  ;;  %vm2080_vm2 = vcmp.eq.s32.totalorder %v3457_v39, %v4097_v30  ;;  %vm1430_vm7 = vcmp.eq.s32.totalorder %v3457_v39, %v4222_v31  ;;  %v4819_v31 = vld [vmem:[#allocation33_spill] sm:$0xff] }
 0x50b   : > { %v1972_v33 = vpop.permute.xlu1 %1971 }
 0x50c   : > { %v4296_v51 = vsel %vm1968_vm15, %v1972_v33, 0.0  ;;  %vm1338_vm15 = vcmp.eq.s32.totalorder %v3457_v39, %v4028_v45 }
 0x50d   : > { %2015 = vperm.xlu1 %3213, %v4187_v52   ;;  %v4322_v33 = vpop.permute.xlu0 %1751  ;;  %v1348_v15 = vsel %vm1338_vm15, %v4039_v49, 0.0 }
 0x510   : > { %v4299_v36 = vpop.permute.xlu1 %2093 }
 0x511   : > { %3215 = vset.pattern.permute.xlu1 %v4780_v63  ;;  %v1182_v63 = vsel %vm1170_vm3, %v4011_v12, 0.0  ;;  %v4345_v25 = vpop.permute.xlu0 %1706  ;;  %vm1339_vm3 = vcmp.eq.s32.totalorder %v3457_v39, %v4087_v11 }
 0x512   : > { %2141 = vperm.xlu1 %3215, %v3919_v23   ;;  %v1204_v7 = vadd.f32 %v1202_v61, %v1182_v63 }
 0x514   : > { %v1226_v3 = vadd.f32 %v1224_v40, %v1204_v7  ;;  %v4823_v40 = vld [vmem:[#allocation29_spill] sm:$0xff] }
 0x515   : > { %v1317_v38 = vpop.permute.xlu1 %1316 }
 0x516   : > { %2145 = vperm.xlu1 %3215, %v4187_v52   ;;  %v1203_v52 = vsel %vm1191_vm5, %v4161_v32, 0.0  ;;  %vm1319_vm9 = vcmp.eq.s32.totalorder %v3457_v39, %v1317_v38  ;;  %v1248_v46 = vadd.f32 %v1246_v42, %v1226_v3  ;;  %vm2098_vm5 = vcmp.eq.s32.totalorder %v3457_v39, %v4299_v36  ;;  %v4824_v42 = vld [vmem:[#allocation25_spill] sm:$0xff] }
 0x517   : > { %v1205_v21 = vadd.f32 %v1203_v52, %v1183_v41  ;;  %v4360_v52 = vpop.permute.xlu0 %1715  ;;  %vm1578_vm15 = vcmp.eq.s32.totalorder %v3457_v39, %v4824_v42 }
 0x519   : > { %v1326_v58 = vpop.permute.xlu1 %1325  ;;  %v1227_v5 = vadd.f32 %v1225_v35, %v1205_v21 }
 0x51a   : > { %3217 = vset.pattern.permute.xlu1 %v4783_v22  ;;  %v1329_v12 = vsel %vm1319_vm9, %v1326_v58, 0.0  ;;  %vm1448_vm9 = vcmp.eq.s32.totalorder %v3457_v39, %v4190_v19  ;;  %v4822_v19 = vld [vmem:[#allocation26_spill] sm:$0xff] }
 0x51b   : > { %2208 = vperm.xlu1 %3217, %v3893_v10   ;;  %v1328_v10 = vsel %vm1318_vm8, %v4140_v27, 0.0  ;;  %vm1449_vm8 = vcmp.eq.s32.totalorder %v3457_v39, %v4255_v37 }
 0x51c   : > { %v1330_v22 = vadd.f32 %v1328_v10, %v1310_v1  ;;  %v1441_v10 = vsel %vm1431_vm1, %v4819_v31, 0.0  ;;  %v4836_v31 = vld [vmem:[#allocation19_spill] sm:$0xff] }
 0x51e   : > { %v1233_v34 = vpop.permute.xlu1 %1232 }
 0x51f   : > { %2223 = vperm.xlu1 %3217, %v3931_v47   ;;  %v1311_v47 = vsel %vm1301_vm12, %v4080_v17, 0.0  ;;  %vm1235_vm11 = vcmp.eq.s32.totalorder %v3457_v39, %v1233_v34  ;;  %v1349_v17 = vsel %vm1339_vm3, %v4159_v28, 0.0  ;;  %v4817_v28 = vmov 0.0   ;;  %v4818_v34 = vld [vmem:[#allocation5_spill] sm:$0xff] }
 0x520   : > { %v1331_v27 = vadd.f32 %v1329_v12, %v1311_v47  ;;  %v1440_v1 = vsel %vm1430_vm7, %v4818_v34, 0.0  ;;  %v4820_v12 = vld [vmem:[#allocation24_spill] sm:$0xff]  ;;  %vm1469_vm12 = vcmp.eq.s32.totalorder %v3457_v39, %v4822_v19  ;;  %v4825_v47 = vld [vmem:[#allocation38_spill] sm:$0xff]  ;;  %v4835_v34 = vld [vmem:[#allocation7_spill] sm:$0xff]  ;;  %vm1599_vm7 = vcmp.eq.s32.totalorder %v3457_v39, %v4836_v31 }
 0x521   : > { %v1458_v37 = vsel %vm1448_vm9, %v4820_v12, 0.0  ;;  %v4838_v12 = vld [vmem:[#allocation30_spill] sm:$0xff]  ;;  %vm1951_vm9 = vcmp.eq.s32.totalorder %v3457_v39, %v4286_v18 }
 0x522   : > { %v1244_v44 = vpop.permute.xlu1 %1243  ;;  %v1351_v58 = vadd.f32 %v1349_v17, %v1331_v27  ;;  %v1460_v27 = vadd.f32 %v1458_v37, %v1440_v1  ;;  %v4830_v17 = vld [vmem:[#allocation8_spill] sm:$0xff]  ;;  %v1609_v37 = vsel %vm1599_vm7, %v4838_v12, 0.0 }
 0x523   : > { %v1247_v32 = vsel %vm1235_vm11, %v1244_v44, 0.0  ;;  %2213 = vperm.xlu1 %3217, %v3811_v43   ;;  %v1350_v43 = vadd.f32 %v1348_v15, %v1330_v22  ;;  %vm1488_vm11 = vcmp.eq.s32.totalorder %v3457_v39, %v4823_v40  ;;  %v4826_v44 = vld [vmem:[#allocation28_spill] sm:$0xff]  ;;  %v4827_v22 = vld [vmem:[#allocation6_spill] sm:$0xff]  ;;  %v4840_v40 = vld [vmem:[#allocation45_spill] sm:$0xff] }
 0x524   : > { %v1249_v14 = vadd.f32 %v1247_v32, %v1227_v5  ;;  %v1479_v5 = vsel %vm1469_vm12, %v4826_v44, 0.0  ;;  %vm1560_vm6 = vcmp.eq.s32.totalorder %v3457_v39, %v4827_v22  ;;  %v4828_v32 = vld [vmem:[#allocation27_spill] sm:$0xff]  ;;  %v4829_v15 = vld [vmem:[#allocation4_spill] sm:$0xff]  ;;  %vm1619_vm1 = vcmp.eq.s32.totalorder %v3457_v39, %v4840_v40  ;;  %v4841_v22 = vld [vmem:[#allocation22_spill] sm:$0xff] }
 0x525   : > { %v1370_v11 = vadd.f32 %v1368_v54, %v1350_v43  ;;  %v1570_v54 = vsel %vm1560_vm6, %v4830_v17, 0.0  ;;  %v4832_v43 = vld [vmem:[#allocation17_spill] sm:$0xff]  ;;  %v4850_v12 = vld [vmem:[#allocation44_spill] sm:$0xff]  ;;  %v4853_v40 = vld [vmem:[#allocation42_spill] sm:$0xff] }
 0x526   : > { %v1250_v38 = vpack.c.bf16 %v1249_v14, %v1248_v46  ;;  %v1588_v46 = vsel %vm1578_vm15, %v4828_v32, 0.0  ;;  %vm1690_vm15 = vcmp.eq.s32.totalorder %v3457_v39, %v4289_v48  ;;  %v4847_v48 = vld [vmem:[#allocation46_spill] sm:$0xff]  ;;  %vm1748_vm7 = vcmp.eq.s32.totalorder %v3457_v39, %v4850_v12 }
 0x527   : > { %2231 = vperm.xlu1 %3217, %v3942_v26   ;;  %v1366_v45 = vpop.permute.xlu1 %1365  ;;  %v4372_v26 = vpop.permute.xlu0 %1876 }
 0x528   : > { %v1369_v61 = vsel %vm1359_vm10, %v1366_v45, 0.0  ;;  %2937 = vmatmul.mubr.bf16.vlgmr.msra.gmra.mrb[20].mxu0 %v1250_v38  ;;  %v4831_v38 = vld [vmem:[#allocation10_spill] sm:$0xff]  ;;  %v4833_v45 = vld [vmem:[#allocation40_spill] sm:$0xff] }
 0x529   : > { %v1371_v2 = vadd.f32 %v1369_v61, %v1351_v58  ;;  %2961 = vmatpush3.bf16.msra.mxu0 %v3321_v4  ;;  %2976 = vmatprep.mubr.msk.bf16.mxu0 %vm3247_vm0, %v4817_v28  ;;  %vm1598_vm10 = vcmp.eq.s32.totalorder %v3457_v39, %v4831_v38  ;;  %v1498_v58 = vsel %vm1488_vm11, %v4833_v45, 0.0  ;;  %v4834_v61 = vld [vmem:[#allocation18_spill] sm:$0xff] }
 0x52a   : > { %2962 = vmatprep.subr.bf16.mxu0 %v4817_v28  ;;  %v1608_v1 = vsel %vm1598_vm10, %v4835_v34, 0.0 }
 0x52b   : > { %v1372_v49 = vpack.c.bf16 %v1371_v2, %v1370_v11  ;;  %2243 = vperm.xlu1 %3217, %v3834_v55   ;;  %v4383_v55 = vpop.permute.xlu0 %1983 }
 0x52c   : > { %v4367_v53 = vpop.permute.xlu1 %1986 }
 0x52d   : > { %2957 = vmatmul.mubr.bf16.vlgmr.msra.gmra.mrb[20].mxu1 %v1372_v49  ;;  %2963 = vmatpush3.bf16.msra.mxu0 %v3337_v8  ;;  %vm1989_vm12 = vcmp.eq.s32.totalorder %v3457_v39, %v4367_v53 }
 0x52e   : > { %2981 = vmatpush3.bf16.msra.mxu1 %v3321_v4  ;;  %2964 = vmatprep.subr.bf16.mxu0 %v4817_v28 }
 0x52f   : > { %2251 = vperm.xlu1 %3217, %v3847_v60   ;;  %2982 = vmatprep.subr.bf16.mxu1 %v4817_v28  ;;  %v4399_v30 = vpop.permute.xlu0 %1991 }
 0x530   : > { %2996 = vmatprep.mubr.msk.bf16.mxu1 %vm3247_vm0, %v4817_v28 }
 0x531   : > { %v2084_v6 = vpop.permute.xlu1 %2083  ;;  %2965 = vmatpush3.bf16.msra.mxu0 %v3357_v13 }
 0x532   : > { %2983 = vmatpush3.bf16.msra.mxu1 %v3337_v8  ;;  %2966 = vmatprep.subr.bf16.mxu0 %v4817_v28  ;;  %v2090_v63 = vsel %vm2080_vm2, %v2084_v6, 0.0 }
 0x533   : > { %2263 = vperm.xlu1 %3217, %v3972_v62   ;;  %2984 = vmatprep.subr.bf16.mxu1 %v4817_v28  ;;  %v4415_v21 = vpop.permute.xlu0 %2011 }
 0x535   : > { %v2102_v60 = vpop.permute.xlu1 %2101  ;;  %2967 = vmatpush3.bf16.msra.mxu0 %v3373_v16 }
 0x536   : > { %v2108_v41 = vsel %vm2098_vm5, %v2102_v60, 0.0  ;;  %2985 = vmatpush3.bf16.msra.mxu1 %v3357_v13  ;;  %2968 = vmatprep.subr.bf16.mxu0 %v4817_v28  ;;  %vm1561_vm5 = vcmp.eq.s32.totalorder %v3457_v39, %v4832_v43 }
 0x537   : > { %v4392_v62 = vadd.f32 %v2108_v41, %v2090_v63  ;;  %2271 = vperm.xlu1 %3217, %v3919_v23   ;;  %2986 = vmatprep.subr.bf16.mxu1 %v4817_v28  ;;  %v1459_v23 = vsel %vm1449_vm8, %v4261_v50, 0.0  ;;  %v4821_v50 = vld [vmem:[#allocation35_spill] sm:$0xff]  ;;  %v1571_v11 = vsel %vm1561_vm5, %v4834_v61, 0.0  ;;  %v1967_v6 = vpop.permute.xlu0 %1966  ;;  %v1590_v63 = vadd.f32 %v1588_v46, %v1570_v54  ;;  %v4842_v61 = vld [vmem:[#allocation36_spill] sm:$0xff] }
 0x538   : > { %vm1468_vm4 = vcmp.eq.s32.totalorder %v3457_v39, %v4821_v50  ;;  %v1461_v57 = vadd.f32 %v1459_v23, %v1441_v10  ;;  %v4837_v10 = vld [vmem:[#allocation31_spill] sm:$0xff]  ;;  %v4839_v50 = vld [vmem:[#allocation32_spill] sm:$0xff]  ;;  %vm1709_vm5 = vcmp.eq.s32.totalorder %v3457_v39, %v4345_v25 }
 0x539   : > { %2969 = vmatpush3.bf16.msra.mxu0 %v3393_v20  ;;  %v1478_v3 = vsel %vm1468_vm4, %v4825_v47, 0.0  ;;  %vm1618_vm8 = vcmp.eq.s32.totalorder %v3457_v39, %v4837_v10  ;;  %vm1969_vm4 = vcmp.eq.s32.totalorder %v3457_v39, %v1967_v6  ;;  %v1719_v34 = vsel %vm1709_vm5, %v4360_v52, 0.0  ;;  %v4849_v10 = vld [vmem:[#allocation41_spill] sm:$0xff] }
 0x53a   : > { %v1577_v36 = vpop.permute.xlu1 %1576  ;;  %2987 = vmatpush3.bf16.msra.mxu1 %v3373_v16  ;;  %2970 = vmatprep.subr.bf16.mxu0 %v4817_v28  ;;  %v1480_v2 = vadd.f32 %v1478_v3, %v1460_v27  ;;  %v1481_v49 = vadd.f32 %v1479_v5, %v1461_v57  ;;  %v1628_v19 = vsel %vm1618_vm8, %v4839_v50, 0.0  ;;  %v1961_v27 = vsel %vm1951_vm9, %v4841_v22, 0.0 }
 0x53b   : > { %2988 = vmatprep.subr.bf16.mxu1 %v4817_v28  ;;  %vm1579_vm3 = vcmp.eq.s32.totalorder %v3457_v39, %v1577_v36  ;;  %v1976_v3 = vpop.permute.xlu0 %1975  ;;  %vm1728_vm9 = vcmp.eq.s32.totalorder %v3457_v39, %v4301_v9 }
 0x53c   : > { %v1979_v18 = vsel %vm1969_vm4, %v1976_v3, 0.0  ;;  %v4855_v3 = vld [vmem:[#allocation14_spill] sm:$0xff] }
 0x53d   : > { %2971 = vmatpush3.bf16.msra.mxu0 %v3409_v24 }
 0x53e   : > { %v1586_v7 = vpop.permute.xlu1 %1585  ;;  %2989 = vmatpush3.bf16.msra.mxu1 %v3393_v20  ;;  %2972 = vmatprep.subr.bf16.mxu0 %v4817_v28 }
 0x53f   : > { %2990 = vmatprep.subr.bf16.mxu1 %v4817_v28  ;;  %v1589_v14 = vsel %vm1579_vm3, %v1586_v7, 0.0  ;;  %v1500_v7 = vadd.f32 %v1498_v58, %v1480_v2  ;;  %vm1708_vm3 = vcmp.eq.s32.totalorder %v3457_v39, %v4842_v61  ;;  %v4843_v2 = vld [vmem:[#allocation21_spill] sm:$0xff] }
 0x540   : > { %v1591_v41 = vadd.f32 %v1589_v14, %v1571_v11  ;;  %v1981_v14 = vadd.f32 %v1979_v18, %v1961_v27  ;;  %vm1859_vm6 = vcmp.eq.s32.totalorder %v3457_v39, %v4843_v2  ;;  %v4856_v27 = vld [vmem:[#allocation15_spill] sm:$0xff] }
 0x541   : > { %2973 = vmatpush3.bf16.msra.mxu0 %v3423_v29 }
 0x542   : > { %2991 = vmatpush3.bf16.msra.mxu1 %v3409_v24  ;;  %2974 = vmatprep.subr.bf16.mxu0 %v4817_v28  ;;  %v1611_v47 = vadd.f32 %v1609_v37, %v1591_v41  ;;  %v4846_v41 = vld [vmem:[#allocation34_spill] sm:$0xff]  ;;  %v4851_v37 = vld [vmem:[#allocation39_spill] sm:$0xff] }
 0x543   : > { %v1487_v35 = vpop.permute.xlu1 %1486  ;;  %2992 = vmatprep.subr.bf16.mxu1 %v4817_v28  ;;  %vm1691_vm10 = vcmp.eq.s32.totalorder %v3457_v39, %v4846_v41  ;;  %vm1838_vm8 = vcmp.eq.s32.totalorder %v3457_v39, %v4851_v37  ;;  %v2137_v41 = vpop.permute.xlu0 %2136 }
 0x544   : > { %vm1489_vm2 = vcmp.eq.s32.totalorder %v3457_v39, %v1487_v35  ;;  %v1610_v35 = vadd.f32 %v1608_v1, %v1590_v63  ;;  %v1701_v50 = vsel %vm1691_vm10, %v4293_v56, 0.0  ;;  %v1758_v56 = vsel %vm1748_vm7, %v4322_v33, 0.0 }
 0x545   : > { %2975 = vmatpush3.bf16.msra.mxu0 %v4829_v15  ;;  %v1721_v52 = vadd.f32 %v1719_v34, %v1701_v50  ;;  %v4861_v34 = vld [vmem:[#allocation11_spill] sm:$0xff] }
 0x546   : > { %2993 = vmatpush3.bf16.msra.mxu1 %v3423_v29  ;;  %3000 = vmatprep.subr.bf16.mxu0 %v4817_v28  ;;  %v1630_v5 = vadd.f32 %v1628_v19, %v1610_v35  ;;  %v4852_v19 = vld [vmem:[#allocation43_spill] sm:$0xff]  ;;  %v1848_v35 = vsel %vm1838_vm8, %v4853_v40, 0.0  ;;  %vm1950_vm10 = vcmp.eq.s32.totalorder %v3457_v39, %v4861_v34 }
 0x547   : > { %v1496_v60 = vpop.permute.xlu1 %1495  ;;  %2994 = vmatprep.subr.bf16.mxu1 %v4817_v28  ;;  %v4590_v50 = vpop.permute.xlu0 %2205 }
 0x548   : > { %v1499_v36 = vsel %vm1489_vm2, %v1496_v60, 0.0  ;;  %v4845_v60 = vld [vmem:[#allocation20_spill] sm:$0xff]  ;;  %vm1729_vm2 = vcmp.eq.s32.totalorder %v3457_v39, %v4849_v10 }
 0x549   : > { %v1501_v23 = vadd.f32 %v1499_v36, %v1481_v49  ;;  %v4844_v49 = vld [vmem:[#allocation37_spill] sm:$0xff]  ;;  %v1869_v36 = vsel %vm1859_vm6, %v4847_v48, 0.0 }
 0x54a   : > { %2995 = vmatpush3.bf16.msra.mxu1 %v4829_v15  ;;  %v1718_v6 = vsel %vm1708_vm3, %v4844_v49, 0.0 }
 0x54b   : > { %v1502_v57 = vpack.c.bf16 %v1501_v23, %v1500_v7  ;;  %3020 = vmatprep.subr.bf16.mxu1 %v4817_v28  ;;  %v4848_v7 = vld [vmem:[#allocation12_spill] sm:$0xff] }
 0x54c   : > { %v1626_v42 = vpop.permute.xlu1 %1625  ;;  %v1700_v23 = vsel %vm1690_vm15, %v4848_v7, 0.0  ;;  %vm1879_vm15 = vcmp.eq.s32.totalorder %v3457_v39, %v4372_v26  ;;  %v4860_v7 = vld [vmem:[#allocation23_spill] sm:$0xff] }
 0x54d   : > { %v1629_v44 = vsel %vm1619_vm1, %v1626_v42, 0.0  ;;  %2977 = vmatmul.mubr.bf16.vlgmr.msra.gmra.mrb[24].mxu0 %v1502_v57  ;;  %v1720_v31 = vadd.f32 %v1718_v6, %v1700_v23  ;;  %v1739_v57 = vsel %vm1729_vm2, %v4852_v19, 0.0  ;;  %v4854_v42 = vld [vmem:[#allocation13_spill] sm:$0xff]  ;;  %vm1988_vm2 = vcmp.eq.s32.totalorder %v3457_v39, %v4383_v55 }
 0x54e   : > { %v1631_v32 = vadd.f32 %v1629_v44, %v1611_v47  ;;  %3001 = vmatpush3.bf16.msra.mxu0 %v3321_v4  ;;  %3016 = vmatprep.mubr.msk.bf16.mxu0 %vm3247_vm0, %v4817_v28  ;;  %vm1820_vm1 = vcmp.eq.s32.totalorder %v3457_v39, %v4854_v42  ;;  %v1738_v47 = vsel %vm1728_vm9, %v4306_v59, 0.0  ;;  %v1741_v9 = vadd.f32 %v1739_v57, %v1721_v52  ;;  %v4857_v59 = vld [vmem:[#allocation9_spill] sm:$0xff] }
 0x54f   : > { %3002 = vmatprep.subr.bf16.mxu0 %v4817_v28  ;;  %v1830_v44 = vsel %vm1820_vm1, %v4855_v3, 0.0  ;;  %v1998_v19 = vsel %vm1988_vm2, %v4399_v30, 0.0  ;;  %v2218_v30 = vpop.permute.xlu0 %2217  ;;  %v4863_v42 = vld [vmem:[#allocation49_spill] sm:$0xff]  ;;  %vm2139_vm1 = vcmp.eq.s32.totalorder %v3457_v39, %v2137_v41 }
 0x550   : > { %v1632_v46 = vpack.c.bf16 %v1631_v32, %v1630_v5  ;;  %v1740_v5 = vadd.f32 %v1738_v47, %v1720_v31  ;;  %v1850_v32 = vadd.f32 %v1848_v35, %v1830_v44  ;;  %v4862_v31 = vld [vmem:[#allocation16_spill] sm:$0xff] }
 0x551   : > { %v1996_v17 = vpop.permute.xlu1 %1995  ;;  %v1960_v10 = vsel %vm1950_vm10, %v4862_v31, 0.0 }
 0x552   : > { %v1999_v54 = vsel %vm1989_vm12, %v1996_v17, 0.0  ;;  %2997 = vmatmul.mubr.bf16.vlgmr.msra.gmra.mrb[24].mxu1 %v1632_v46  ;;  %3003 = vmatpush3.bf16.msra.mxu0 %v3337_v8  ;;  %vm1858_vm12 = vcmp.eq.s32.totalorder %v3457_v39, %v4856_v27  ;;  %v1760_v46 = vadd.f32 %v1758_v56, %v1740_v5  ;;  %v4858_v17 = vld [vmem:[#allocation48_spill] sm:$0xff]  ;;  %v4864_v5 = vmov 0  }
 0x553   : > { %v4475_v38 = vadd.f32 %v1999_v54, %v1981_v14  ;;  %3021 = vmatpush3.bf16.msra.mxu1 %v3321_v4  ;;  %3004 = vmatprep.subr.bf16.mxu0 %v4817_v28  ;;  %v1868_v33 = vsel %vm1858_vm12, %v4857_v59, 0.0  ;;  %v2247_v3 = vpop.permute.xlu0 %2246 }
 0x554   : > { %3022 = vmatprep.subr.bf16.mxu1 %v4817_v28  ;;  %3036 = vmatprep.mubr.msk.bf16.mxu1 %vm3247_vm0, %v4817_v28 }
 0x556   : > { %v4482_v43 = vpop.permute.xlu1 %2113  ;;  %3005 = vmatpush3.bf16.msra.mxu0 %v3357_v13 }
 0x557   : > { %3023 = vmatpush3.bf16.msra.mxu1 %v3337_v8  ;;  %3006 = vmatprep.subr.bf16.mxu0 %v4817_v28  ;;  %vm2118_vm8 = vcmp.eq.s32.totalorder %v3457_v39, %v4482_v43 }
 0x558   : > { %3024 = vmatprep.subr.bf16.mxu1 %v4817_v28  ;;  %v2128_v47 = vsel %vm2118_vm8, %v4863_v42, 0.0  ;;  %vm4869_vm8 = vcmask 654848  }
 0x559   : > { %v2130_v43 = vadd.f32 %v2128_v47, %v4392_v62 }
 0x55a   : > { %3007 = vmatpush3.bf16.msra.mxu0 %v3373_v16 }
 0x55b   : > { %v4489_v53 = vpop.permute.xlu1 %2003  ;;  %3025 = vmatpush3.bf16.msra.mxu1 %v3357_v13  ;;  %3008 = vmatprep.subr.bf16.mxu0 %v4817_v28 }
 0x55c   : > { %3026 = vmatprep.subr.bf16.mxu1 %v4817_v28  ;;  %vm2008_vm5 = vcmp.eq.s32.totalorder %v3457_v39, %v4489_v53 }
 0x55e   : > { %3009 = vmatpush3.bf16.msra.mxu0 %v3393_v20 }
 0x55f   : > { %3027 = vmatpush3.bf16.msra.mxu1 %v3373_v16  ;;  %3010 = vmatprep.subr.bf16.mxu0 %v4817_v28 }
 0x560   : > { %v1837_v45 = vpop.permute.xlu1 %1836  ;;  %3028 = vmatprep.subr.bf16.mxu1 %v4817_v28 }
 0x561   : > { %vm1839_vm11 = vcmp.eq.s32.totalorder %v3457_v39, %v1837_v45 }
 0x562   : > { %3011 = vmatpush3.bf16.msra.mxu0 %v3409_v24 }
 0x563   : > { %3029 = vmatpush3.bf16.msra.mxu1 %v3393_v20  ;;  %3012 = vmatprep.subr.bf16.mxu0 %v4817_v28 }
 0x564   : > { %v1846_v58 = vpop.permute.xlu1 %1845  ;;  %3030 = vmatprep.subr.bf16.mxu1 %v4817_v28 }
 0x565   : > { %v1849_v11 = vsel %vm1839_vm11, %v1846_v58, 0.0  ;;  %vm1878_vm11 = vcmp.eq.s32.totalorder %v3457_v39, %v4278_v0  ;;  %v1870_v58 = vadd.f32 %v1868_v33, %v1850_v32  ;;  %v2256_v32 = vpop.permute.xlu0 %2255 }
 0x566   : > { %v1851_v63 = vadd.f32 %v1849_v11, %v4845_v60  ;;  %3013 = vmatpush3.bf16.msra.mxu0 %v3423_v29  ;;  %v1888_v54 = vsel %vm1878_vm11, %v4858_v17, 0.0  ;;  %vm2210_vm11 = vcmp.eq.s32.totalorder %v3457_v39, %v4590_v50 }
 0x567   : > { %3031 = vmatpush3.bf16.msra.mxu1 %v3409_v24  ;;  %3014 = vmatprep.subr.bf16.mxu0 %v4817_v28  ;;  %v1890_v2 = vadd.f32 %v1888_v54, %v1870_v58 }
 0x568   : > { %3032 = vmatprep.subr.bf16.mxu1 %v4817_v28  ;;  %v1871_v1 = vadd.f32 %v1869_v36, %v1851_v63  ;;  %v4859_v36 = vld [vmem:[#allocation47_spill] sm:$0xff] }
 0x569   : > { %v1747_v25 = vpop.permute.xlu1 %1746  ;;  %vm2119_vm6 = vcmp.eq.s32.totalorder %v3457_v39, %v4859_v36 }
 0x56a   : > { %3015 = vmatpush3.bf16.msra.mxu0 %v4829_v15  ;;  %vm1749_vm4 = vcmp.eq.s32.totalorder %v3457_v39, %v1747_v25  ;;  %v1980_v25 = vadd.f32 %v4296_v51, %v1960_v10  ;;  %v2018_v51 = vsel %vm2008_vm5, %v4415_v21, 0.0  ;;  %vm4865_vm5 = vcmask 392448  }
 0x56b   : > { %3033 = vmatpush3.bf16.msra.mxu1 %v3423_v29  ;;  %3040 = vmatprep.subr.bf16.mxu0 %v4817_v28  ;;  %vm4866_vm2 = vmmov %vm4865_vm5 }
 0x56c   : > { %3034 = vmatprep.subr.bf16.mxu1 %v4817_v28  ;;  %v2000_v57 = vadd.f32 %v1998_v19, %v1980_v25 }
 0x56d   : > { %v1756_v22 = vpop.permute.xlu1 %1755 }
 0x56e   : > { %v1759_v18 = vsel %vm1749_vm4, %v1756_v22, 0.0  ;;  %v2020_v55 = vadd.f32 %v2018_v51, %v2000_v57  ;;  %v3227_v51 = vld [vmem:[%s4722_s5] sm:$0xff]   ;;  %v3228_v57 = vld [vmem:[%s4722_s5 + $0x8] sm:$0xff]  }
 0x56f   : > { %v1761_v14 = vadd.f32 %v1759_v18, %v1741_v9  ;;  %3035 = vmatpush3.bf16.msra.mxu1 %v4829_v15  ;;  %v2227_v18 = vpop.permute.xlu0 %2226 }
 0x570   : > { %3060 = vmatprep.subr.bf16.mxu1 %v4817_v28  ;;  %vm2229_vm4 = vcmp.eq.s32.totalorder %v3457_v39, %v2227_v18 }
 0x571   : > { %v1762_v45 = vpack.c.bf16 %v1761_v14, %v1760_v46 }
 0x572   : > { %v1886_v61 = vpop.permute.xlu1 %1885 }
 0x573   : > { %v1889_v11 = vsel %vm1879_vm15, %v1886_v61, 0.0  ;;  %3017 = vmatmul.mubr.bf16.vlgmr.msra.gmra.mrb[28].mxu0 %v1762_v45  ;;  %v2236_v14 = vpop.permute.xlu0 %2235  ;;  %vm2249_vm15 = vcmp.eq.s32.totalorder %v3457_v39, %v2247_v3  ;;  %v3233_v3 = vld [vmem:[%s4722_s5 + $0x30] sm:$0xff]  }
 0x574   : > { %v1891_v49 = vadd.f32 %v1889_v11, %v1871_v1  ;;  %3041 = vmatpush3.bf16.msra.mxu0 %v3321_v4  ;;  %3056 = vmatprep.mubr.msk.bf16.mxu0 %vm3247_vm0, %v4817_v28  ;;  %v2239_v33 = vsel %vm2229_vm4, %v2236_v14, 0.0  ;;  %vm4873_vm4 = vcmask 917248  }
 0x575   : > { %3042 = vmatprep.subr.bf16.mxu0 %v4817_v28 }
 0x576   : > { %v1892_v0 = vpack.c.bf16 %v1891_v49, %v1890_v2 }
 0x577   : > { %v2126_v6 = vpop.permute.xlu1 %2125  ;;  %v2267_v59 = vpop.permute.xlu0 %2266 }
 0x578   : > { %3043 = vmatpush3.bf16.msra.mxu0 %v3337_v8  ;;  %3037 = vmatmul.mubr.bf16.vlgmr.msra.gmra.mrb[28].mxu1 %v1892_v0  ;;  %v2129_v1 = vsel %vm2119_vm6, %v2126_v6, 0.0  ;;  %vm2269_vm6 = vcmp.eq.s32.totalorder %v3457_v39, %v2267_v59 }
 0x579   : > { %3044 = vmatprep.subr.bf16.mxu0 %v4817_v28  ;;  %3061 = vmatpush3.bf16.msra.mxu1 %v3321_v4 }
 0x57a   : > { %3062 = vmatprep.subr.bf16.mxu1 %v4817_v28  ;;  %3076 = vmatprep.mubr.msk.bf16.mxu1 %vm3247_vm0, %v4817_v28 }
 0x57b   : > { %v2134_v26 = vpop.permute.xlu1 %2133  ;;  %v2276_v58 = vpop.permute.xlu0 %2275 }
 0x57c   : > { %3045 = vmatpush3.bf16.msra.mxu0 %v3357_v13  ;;  %vm2138_vm9 = vcmp.eq.s32.totalorder %v3457_v39, %v2134_v26  ;;  %v2279_v49 = vsel %vm2269_vm6, %v2276_v58, 0.0 }
 0x57d   : > { %3046 = vmatprep.subr.bf16.mxu0 %v4817_v28  ;;  %3063 = vmatpush3.bf16.msra.mxu1 %v3337_v8 }
 0x57e   : > { %3064 = vmatprep.subr.bf16.mxu1 %v4817_v28 }
 0x57f   : > { %v2097_v60 = vpop.permute.xlu1 %2096 }
 0x580   : > { %3047 = vmatpush3.bf16.msra.mxu0 %v3373_v16  ;;  %vm2099_vm3 = vcmp.eq.s32.totalorder %v3457_v39, %v2097_v60 }
 0x581   : > { %3048 = vmatprep.subr.bf16.mxu0 %v4817_v28  ;;  %3065 = vmatpush3.bf16.msra.mxu1 %v3357_v13 }
 0x582   : > { %3066 = vmatprep.subr.bf16.mxu1 %v4817_v28 }
 0x583   : > { %v2106_v63 = vpop.permute.xlu1 %2105 }
 0x584   : > { %v2109_v48 = vsel %vm2099_vm3, %v2106_v63, 0.0  ;;  %3049 = vmatpush3.bf16.msra.mxu0 %v3393_v20 }
 0x585   : > { %v2111_v23 = vadd.f32 %v2109_v48, %v4860_v7  ;;  %3050 = vmatprep.subr.bf16.mxu0 %v4817_v28  ;;  %3067 = vmatpush3.bf16.msra.mxu1 %v3373_v16 }
 0x586   : > { %3068 = vmatprep.subr.bf16.mxu1 %v4817_v28 }
 0x587   : > { %v2131_v12 = vadd.f32 %v2129_v1, %v2111_v23 }
 0x588   : > { %3051 = vmatpush3.bf16.msra.mxu0 %v3409_v24  ;;  %v2007_v37 = vpop.permute.xlu1 %2006 }
 0x589   : > { %3052 = vmatprep.subr.bf16.mxu0 %v4817_v28  ;;  %3069 = vmatpush3.bf16.msra.mxu1 %v3393_v20  ;;  %vm2009_vm7 = vcmp.eq.s32.totalorder %v3457_v39, %v2007_v37 }
 0x58a   : > { %3070 = vmatprep.subr.bf16.mxu1 %v4817_v28 }
 0x58c   : > { %3053 = vmatpush3.bf16.msra.mxu0 %v3423_v29  ;;  %v2016_v53 = vpop.permute.xlu1 %2015 }
 0x58d   : > { %v2019_v52 = vsel %vm2009_vm7, %v2016_v53, 0.0  ;;  %3054 = vmatprep.subr.bf16.mxu0 %v4817_v28  ;;  %3071 = vmatpush3.bf16.msra.mxu1 %v3409_v24  ;;  %vm4867_vm7 = vcmask 523648  }
 0x58e   : > { %v2021_v40 = vadd.f32 %v2019_v52, %v4475_v38  ;;  %3072 = vmatprep.subr.bf16.mxu1 %v4817_v28 }
 0x590   : > { %v2022_v21 = vpack.c.bf16 %v2021_v40, %v2020_v55  ;;  %3055 = vmatpush3.bf16.msra.mxu0 %v4829_v15  ;;  %v3229_v55 = vld [vmem:[%s4722_s5 + $0x10] sm:$0xff]  }
 0x591   : > { %v2142_v35 = vpop.permute.xlu1 %2141  ;;  %3073 = vmatpush3.bf16.msra.mxu1 %v3423_v29  ;;  %3080 = vmatprep.subr.bf16.mxu0 %v4817_v28 }
 0x592   : > { %3074 = vmatprep.subr.bf16.mxu1 %v4817_v28  ;;  %v2148_v38 = vsel %vm2138_vm9, %v2142_v35, 0.0  ;;  %v3230_v35 = vld [vmem:[%s4722_s5 + $0x18] sm:$0xff]   ;;  %vm4870_vm9 = vmmov %vm4869_vm8 }
 0x593   : > { %3057 = vmatmul.mubr.bf16.vlgmr.msra.gmra.mrb[32].mxu0 %v2022_v21  ;;  %v2150_v9 = vadd.f32 %v2148_v38, %v2130_v43  ;;  %v3231_v43 = vld [vmem:[%s4722_s5 + $0x20] sm:$0xff]  }
 0x594   : > { %3081 = vmatpush3.bf16.msra.mxu0 %v3321_v4  ;;  %3096 = vmatprep.mubr.msk.bf16.mxu0 %vm3247_vm0, %v4817_v28 }
 0x595   : > { %v2146_v56 = vpop.permute.xlu1 %2145  ;;  %3075 = vmatpush3.bf16.msra.mxu1 %v4829_v15  ;;  %3082 = vmatprep.subr.bf16.mxu0 %v4817_v28 }
 0x596   : > { %v2149_v44 = vsel %vm2139_vm1, %v2146_v56, 0.0  ;;  %2414 = vmatprep.subr.bf16.mxu1 %v4864_v5  ;;  %v3232_v56 = vld [vmem:[%s4722_s5 + $0x28] sm:$0xff]   ;;  %vm4871_vm1 = vcmask 786048  }
 0x597   : > { %v2151_v22 = vadd.f32 %v2149_v44, %v2131_v12 }
 0x598   : > { %3083 = vmatpush3.bf16.msra.mxu0 %v3337_v8 }
 0x599   : > { %v2152_v4 = vpack.c.bf16 %v2151_v22, %v2150_v9  ;;  %3084 = vmatprep.subr.bf16.mxu0 %v4817_v28  ;;  %v3234_v9 = vld [vmem:[%s4722_s5 + $0x38] sm:$0xff]  }
 0x59a   : > { %v2209_v27 = vpop.permute.xlu1 %2208 }
 0x59b   : > { %3077 = vmatmul.mubr.bf16.vlgmr.msra.gmra.mrb[32].mxu1 %v2152_v4  ;;  %vm2211_vm0 = vcmp.eq.s32.totalorder %v3457_v39, %v2209_v27 }
 0x59c   : > { %3085 = vmatpush3.bf16.msra.mxu0 %v3357_v13  ;;  %2415 = vmatpush1.bf16.msra.mxu1 %v3227_v51 }
 0x59d   : > { %3086 = vmatprep.subr.bf16.mxu0 %v4817_v28  ;;  %2416 = vmatprep.subr.bf16.mxu1 %v4864_v5 }
 0x59e   : > { %v2224_v62 = vpop.permute.xlu1 %2223 }
 0x59f   : > { %vm2228_vm12 = vcmp.eq.s32.totalorder %v3457_v39, %v2224_v62 }
 0x5a0   : > { %3087 = vmatpush3.bf16.msra.mxu0 %v3373_v16  ;;  %v2221_v16 = vsel %vm2211_vm0, %v2218_v30, 0.0  ;;  %2417 = vmatpush1.bf16.msra.mxu1 %v3228_v57  ;;  %vm4872_vm0 = vmmov %vm4871_vm1 }
 0x5a1   : > { %3088 = vmatprep.subr.bf16.mxu0 %v4817_v28  ;;  %v2241_v17 = vadd.f32 %v2239_v33, %v2221_v16  ;;  %2418 = vmatprep.subr.bf16.mxu1 %v4864_v5 }
 0x5a2   : > { %v2214_v46 = vpop.permute.xlu1 %2213 }
 0x5a3   : > { %v2220_v54 = vsel %vm2210_vm11, %v2214_v46, 0.0 }
 0x5a4   : > { %3089 = vmatpush3.bf16.msra.mxu0 %v3393_v20  ;;  %2419 = vmatpush1.bf16.msra.mxu1 %v3229_v55 }
 0x5a5   : > { %3090 = vmatprep.subr.bf16.mxu0 %v4817_v28  ;;  %2420 = vmatprep.subr.bf16.mxu1 %v4864_v5 }
 0x5a6   : > { %v2232_v8 = vpop.permute.xlu1 %2231 }
 0x5a8   : > { %3091 = vmatpush3.bf16.msra.mxu0 %v3409_v24  ;;  %v2238_v24 = vsel %vm2228_vm12, %v2232_v8, 0.0  ;;  %2421 = vmatpush1.bf16.msra.mxu1 %v3230_v35  ;;  %vm4874_vm12 = vmmov %vm4873_vm4 }
 0x5a9   : > { %3092 = vmatprep.subr.bf16.mxu0 %v4817_v28  ;;  %v2240_v11 = vadd.f32 %v2238_v24, %v2220_v54  ;;  %2422 = vmatprep.subr.bf16.mxu1 %v4864_v5 }
 0x5aa   : > { %v2244_v13 = vpop.permute.xlu1 %2243 }
 0x5ab   : > { %vm2248_vm3 = vcmp.eq.s32.totalorder %v3457_v39, %v2244_v13 }
 0x5ac   : > { %3093 = vmatpush3.bf16.msra.mxu0 %v3423_v29  ;;  %2423 = vmatpush1.bf16.msra.mxu1 %v3231_v43 }
 0x5ad   : > { %3094 = vmatprep.subr.bf16.mxu0 %v4817_v28  ;;  %v2259_v28 = vsel %vm2249_vm15, %v2256_v32, 0.0  ;;  %2424 = vmatprep.subr.bf16.mxu1 %v4864_v5  ;;  %v3235_v32 = vld [vmem:[%s4722_s5 + $0x40] sm:$0xff]  }
 0x5ae   : > { %v2252_v20 = vpop.permute.xlu1 %2251  ;;  %v2261_v61 = vadd.f32 %v2259_v28, %v2241_v17 }
 0x5af   : > { %v2258_v45 = vsel %vm2248_vm3, %v2252_v20, 0.0 }
 0x5b0   : > { %3095 = vmatpush3.bf16.msra.mxu0 %v4829_v15  ;;  %v2260_v2 = vadd.f32 %v2258_v45, %v2240_v11  ;;  %v2281_v26 = vadd.f32 %v2279_v49, %v2261_v61  ;;  %2425 = vmatpush1.bf16.msra.mxu1 %v3232_v56 }
 0x5b1   : > { %2426 = vmatprep.subr.bf16.mxu1 %v4864_v5 }
 0x5b2   : > { %v2264_v29 = vpop.permute.xlu1 %2263 }
 0x5b3   : > { %vm2268_vm10 = vcmp.eq.s32.totalorder %v3457_v39, %v2264_v29 }
 0x5b4   : > { %2427 = vmatpush1.bf16.msra.mxu1 %v3233_v3 }
 0x5b5   : > { %2428 = vmatprep.subr.bf16.mxu1 %v4864_v5 }
 0x5b6   : > { %v2272_v15 = vpop.permute.xlu1 %2271 }
 0x5b7   : > { %v2278_v0 = vsel %vm2268_vm10, %v2272_v15, 0.0 }
 0x5b8   : > { %v2280_v6 = vadd.f32 %v2278_v0, %v2260_v2  ;;  %2429 = vmatpush1.bf16.msra.mxu1 %v3234_v9 }
 0x5b9   : > { %2430 = vmatprep.subr.bf16.mxu1 %v4864_v5 }
 0x5ba   : > { %v2282_v60 = vpack.c.bf16 %v2281_v26, %v2280_v6 }
 0x5bc   : > { %3097 = vmatmul.mubr.bf16.vlgmr.msra.gmra.mrb[36].mxu0 %v2282_v60  ;;  %2431 = vmatpush1.bf16.msra.mxu1 %v3235_v32 }
 0x5fb   : > { %v1285_v63 = vpop.f32.mrb[20].mxu0 }
 0x5fc   : > { %1292 = vst.msk [vmem:[#allocation3] sm:$0xff] %vm385_vm13, %v1285_v63  ;;  %v2938_v41 = vpop.f32.mrb[21].mxu0 }
 0x5fd   : > { %v1288_v48 = vpop.f32.mrb[22].mxu0  ;;  %v2565_v41 = vld [vmem:[%s4723_s6] ss:$0 sm:$0xff] }
 0x5fe   : > { %1293 = vst.msk [vmem:[#allocation3 + $0x10] sm:$0xff] %vm385_vm13, %v1288_v48  ;;  %v2939_v36 = vpop.f32.mrb[23].mxu0 }
 0x600   : > { %v1407_v7 = vpop.f32.mrb[20].mxu1 }
 0x601   : > { %1416 = vrot.lane.b32.xlu1 %v1407_v7, %s3256_s19  ;;  %v2958_v23 = vpop.f32.mrb[21].mxu1 }
 0x602   : > { %v1410_v39 = vpop.f32.mrb[22].mxu1 }
 0x603   : > { %1418 = vrot.lane.b32.xlu0 %v1410_v39, %s3256_s19  ;;  %v2959_v34 = vpop.f32.mrb[23].mxu1 }
 0x620   : > { %v1537_v1 = vpop.f32.mrb[24].mxu0 }
 0x621   : > { %1546 = vrot.lane.b32.xlu1 %v1537_v1, %s3257_s20  ;;  %v2978_v31 = vpop.f32.mrb[25].mxu0 }
 0x622   : > { %v1540_v10 = vpop.f32.mrb[26].mxu0 }
 0x623   : > { %1548 = vrot.lane.b32.xlu0 %v1540_v10, %s3257_s20  ;;  %v2979_v12 = vpop.f32.mrb[27].mxu0 }
 0x625   : > { %v1667_v25 = vpop.f32.mrb[24].mxu1 }
 0x626   : > { %1676 = vrot.lane.b32.xlu1 %v1667_v25, %s3258_s21  ;;  %v2998_v37 = vpop.f32.mrb[25].mxu1 }
 0x627   : > { %v1670_v50 = vpop.f32.mrb[26].mxu1 }
 0x628   : > { %1678 = vrot.lane.b32.xlu0 %v1670_v50, %s3258_s21  ;;  %v2999_v19 = vpop.f32.mrb[27].mxu1 }
 0x646   : > { %v1797_v53 = vpop.f32.mrb[28].mxu0 }
 0x647   : > { %1806 = vrot.lane.b32.xlu1 %v1797_v53, %s3259_s29  ;;  %v3018_v52 = vpop.f32.mrb[29].mxu0 }
 0x648   : > { %v1800_v40 = vpop.f32.mrb[30].mxu0 }
 0x649   : > { %1808 = vrot.lane.b32.xlu0 %v1800_v40, %s3259_s29  ;;  %v3019_v30 = vpop.f32.mrb[31].mxu0 }
 0x64b   : > { %v1927_v21 = vpop.f32.mrb[28].mxu1 }
 0x64c   : > { %1936 = vrot.lane.b32.xlu1 %v1927_v21, %s3260_s9  ;;  %v3038_v42 = vpop.f32.mrb[29].mxu1 }
 0x64d   : > { %v1930_v47 = vpop.f32.mrb[30].mxu1 }
 0x64e   : > { %1938 = vrot.lane.b32.xlu0 %v1930_v47, %s3260_s9  ;;  %v3039_v38 = vpop.f32.mrb[31].mxu1 }
 0x666   : > { %v2057_v44 = vpop.f32.mrb[32].mxu0 }
 0x667   : > { %2066 = vrot.lane.b32.xlu1 %v2057_v44, %s3261_s25  ;;  %v3058_v22 = vpop.f32.mrb[33].mxu0 }
 0x668   : > { %v2060_v4 = vpop.f32.mrb[34].mxu0 }
 0x669   : > { %2068 = vrot.lane.b32.xlu0 %v2060_v4, %s3261_s25  ;;  %v3059_v27 = vpop.f32.mrb[35].mxu0 }
 0x66e   : > { %v2187_v62 = vpop.f32.mrb[32].mxu1 }
 0x66f   : > { %2196 = vrot.lane.b32.xlu1 %v2187_v62, %s3262_s26  ;;  %v3078_v18 = vpop.f32.mrb[33].mxu1 }
 0x670   : > { %v2190_v46 = vpop.f32.mrb[34].mxu1 }
 0x671   : > { %2198 = vrot.lane.b32.xlu0 %v2190_v46, %s3262_s26  ;;  %v3079_v8 = vpop.f32.mrb[35].mxu1 }
 0x673   : > { %v1417_v14 = vpop.permute.xlu1 %1416 }
 0x674   : > { %1422 = vst.msk [vmem:[#allocation3] sm:$0xff] %vm448_vm14, %v1417_v14 }
 0x675   : > { %v1419_v13 = vpop.permute.xlu0 %1418 }
 0x676   : > { %1423 = vst.msk [vmem:[#allocation3 + $0x10] sm:$0xff] %vm448_vm14, %v1419_v13  ;;  %vm4868_vm14 = vmmov %vm4867_vm7 }
 0x68f   : > { %v2317_v16 = vpop.f32.mrb[36].mxu0 }
 0x690   : > { %2324 = vst.msk [vmem:[#allocation3 + $0x8] sm:$0xff] %vm385_vm13, %v2317_v16  ;;  %v3098_v59 = vpop.f32.mrb[37].mxu0 }
 0x691   : > { %v2320_v5 = vpop.f32.mrb[38].mxu0 }
 0x692   : > { %2325 = vst.msk [vmem:[#allocation3 + $0x18] sm:$0xff] %vm385_vm13, %v2320_v5  ;;  %v3099_v20 = vpop.f32.mrb[39].mxu0 }
 0x693   : > { %v1547_v33 = vpop.permute.xlu1 %1546 }
 0x694   : > { %1552 = vst.msk [vmem:[#allocation3] sm:$0xff] %vm4865_vm5, %v1547_v33 }
 0x695   : > { %v1549_v17 = vpop.permute.xlu0 %1548 }
 0x696   : > { %1553 = vst.msk [vmem:[#allocation3 + $0x10] sm:$0xff] %vm4866_vm2, %v1549_v17 }
 0x697   : > { %v2327_v29 = vld [vmem:[#allocation3 + $0x8] sm:$0xff] }
 0x698   : > { %v1677_v24 = vpop.permute.xlu1 %1676 }
 0x699   : > { %1682 = vst.msk [vmem:[#allocation3] sm:$0xff] %vm4867_vm7, %v1677_v24  ;;  %v2329_v28 = vld [vmem:[#allocation3 + $0x18] sm:$0xff] }
 0x69a   : > { %v1679_v54 = vpop.permute.xlu0 %1678  ;;  %v2331_v45 = vpack.c.bf16 %v2329_v28, %v2327_v29 }
 0x69b   : > { %1683 = vst.msk [vmem:[#allocation3 + $0x10] sm:$0xff] %vm4868_vm14, %v1679_v54 }
 0x69c   : > { %2575 = vmatprep.mubr.msk.bf16.mxu1 %vm385_vm13, %v2331_v45  ;;  %vm4875_vm13 = vcmask 1048448  }
 0x69d   : > { %vm4876_vm11 = vmmov %vm4875_vm13 }
 0x6b9   : > { %v1807_v58 = vpop.permute.xlu1 %1806 }
 0x6ba   : > { %1812 = vst.msk [vmem:[#allocation3] sm:$0xff] %vm4869_vm8, %v1807_v58 }
 0x6bb   : > { %v1809_v61 = vpop.permute.xlu0 %1808 }
 0x6bc   : > { %1813 = vst.msk [vmem:[#allocation3 + $0x10] sm:$0xff] %vm4870_vm9, %v1809_v61 }
 0x6be   : > { %v1937_v11 = vpop.permute.xlu1 %1936 }
 0x6bf   : > { %1942 = vst.msk [vmem:[#allocation3] sm:$0xff] %vm4871_vm1, %v1937_v11 }
 0x6c0   : > { %v1939_v2 = vpop.permute.xlu0 %1938 }
 0x6c1   : > { %1943 = vst.msk [vmem:[#allocation3 + $0x10] sm:$0xff] %vm4872_vm0, %v1939_v2 }
 0x6d9   : > { %v2067_v15 = vpop.permute.xlu1 %2066 }
 0x6da   : > { %2072 = vst.msk [vmem:[#allocation3] sm:$0xff] %vm4873_vm4, %v2067_v15 }
 0x6db   : > { %v2069_v49 = vpop.permute.xlu0 %2068 }
 0x6dc   : > { %2073 = vst.msk [vmem:[#allocation3 + $0x10] sm:$0xff] %vm4874_vm12, %v2069_v49 }
 0x6e1   : > { %v2197_v0 = vpop.permute.xlu1 %2196 }
 0x6e2   : > { %2202 = vst.msk [vmem:[#allocation3] sm:$0xff] %vm4875_vm13, %v2197_v0 }
 0x6e3   : > { %v2199_v6 = vpop.permute.xlu0 %2198 }
 0x6e4   : > { %2203 = vst.msk [vmem:[#allocation3 + $0x10] sm:$0xff] %vm4876_vm11, %v2199_v6 }
 0x6e9   : > { %v2326_v26 = vld [vmem:[#allocation3] sm:$0xff] }
 0x6eb   : > { %v2328_v60 = vld [vmem:[#allocation3 + $0x10] sm:$0xff] }
 0x6ec   : > { %v2330_v63 = vpack.c.bf16 %v2328_v60, %v2326_v26 }
 0x6ee   : > { %2447 = vmatmul.mubr.bf16.vlgmr.msra.gmra.mrb[36].mxu1 %v2330_v63 }
 0x7c1   : > { %v2448_v48 = vpop.f32.mrb[36].mxu1 }
 0x7c2   : > { %v2449_v36 = vadd.f32 %v2565_v41, %v2448_v48  ;;  %v2450_v7 = vpop.f32.mrb[37].mxu1 }
 0x7c3   : > { %v2451_v23 = vpop.f32.mrb[38].mxu1 }
 0x7c4   : > { %2455 = vst [vmem:[%s302_s14] sm:$0xff] %v2449_v36  ;;  %v2452_v39 = vadd.f32 %v2565_v41, %v2451_v23  ;;  %v2453_v34 = vpop.f32.mrb[39].mxu1 }
 0x7c6   : > { %2456 = vst [vmem:[%s302_s14 + $0x8] sm:$0xff] %v2452_v39 }
 0x7c7 PF: > { %s17_s24 = sadd.s32 1, %s3242_s24  }
 0x7c8   : > { %p14_p4 = scmp.ge.s32.totalorder %s17_s24, 10  }
 0x7ca   :  { %16 = sbr.rel (!%p14_p4) target bundleno = 1 (0x1), region = 81 }

// kernel: net_forward.3
= control target key start
LH: loop header
LB: loop body
LE: loop exit
PB: predicated region body
PF: predicated region fallthrough
CT: control target
= control target key end

     0   :  { %12 = vsyncpa [#allocation5], 0  ;;  %s4916_s0 = inlined_call_operand.vmem [shape: f32[128,128], index: 0, kind: input, shape index: {}]   ;;  %s4917_s1 = inlined_call_operand.vmem [shape: s32[128,10], index: 1, kind: input, shape index: {}]   ;;  %s4918_s2 = inlined_call_operand.vmem [shape: f32[128,18], index: 2, kind: input, shape index: {}]   ;;  %s4919_s3 = inlined_call_operand.vmem [shape: bf16[144,18], index: 3, kind: input, shape index: {}]   ;;  %s4920_s4 = inlined_call_operand.vmem [shape: f32[1,18], index: 4, kind: input, shape index: {}]   ;;  %s4921_s5 = inlined_call_operand.vmem [shape: bf16[144,128], index: 5, kind: input, shape index: {}]   ;;  %s4922_s6 = inlined_call_operand.vmem [shape: f32[1,128], index: 6, kind: input, shape index: {}]   ;;  %s4923_s7 = inlined_call_operand.hbm [shape: f32[128,128], index: 7, kind: output, shape index: {}]  }
   0x1   :  { %14 = vsyncpa [#allocation5 + $0x1], 0  ;;  %s3417_s24 = smov 0   ;;  %s3419_s25 = smov 0  }
   0x2   :  { %s3421_s26 = smov 0   ;;  %s3423_s27 = smov 0  }
   0x3 LB: > { %s3438_s28 = sadd.s32 4294967295, %s3351_s27   ;;  %s2543_s29 = sadd.s32 4294967294, %s3351_s27   ;;  %s3351_s27 = sphi %s3423_s27, %s5084_s27   ;;  %s3347_s26 = sphi %s3421_s26, %s5083_s26   ;;  %s3343_s25 = sphi %s3419_s25, %s5082_s25   ;;  %s3339_s24 = sphi %s3417_s24, %s5081_s24  }
   0x4   : > { %s3442_s30 = sadd.s32 1, %s3351_s27   ;;  %s184_s8 = sadd.s32 1, %s3347_s26 }
   0x5   : > { %s181_s9 = ssub.s32 %s3351_s27, %s3442_s30  ;;  %p194_p0 = scmp.ne.s32.totalorder %s3347_s26, %s3343_s25 }
   0x6   : > { %p182_p1 = scmp.eq.s32.totalorder %s181_s9, 0  ;;  %p195_p2 = scmp.eq.s32.totalorder %s3438_s28, 7 }
   0x7   : > { %p200_p3 = scmp.ne.s32.totalorder %s3343_s25, %s3339_s24  ;;  %p201_p4 = scmp.eq.s32.totalorder %s2543_s29, 7 }
   0x8   : > { %s3453_s10 = scalar_select %p182_p1, %s3347_s26, %s184_s8  }
   0x9   : > { %p3455_p5 = por %p195_p2, %p194_p0  ;;  %p3459_p6 = por %p201_p4, %p200_p3 }
   0xa   : > { %p2546_p7 = scmp.ge.s32.totalorder %s3351_s27, 1  ;;  %p252_p8 = scmp.lt.s32.totalorder %s3351_s27, 9 }
   0xc   : > { %p253_p9 = pnand %p2546_p7, %p252_p8 }
   0xe   : > { %256 = sbr.rel (%p253_p9) target bundleno = 2013 (0x7dd), region = 48 }
  0x15   : > { %s2548_s13 = sshll.u32 %s3438_s28, 1  ;;  %v303_v0 = vld [vmem:[%s4916_s0] sm:$0xff]  ;;  %v4939_v1 = vmov 1   ;;  %v4937_v2 = vmov 0   ;;  %v304_v3 = vld [vmem:[%s4916_s0 + $0x8] sm:$0xff]  ;;  %v305_v5 = vld [vmem:[%s4916_s0 + $0x10] sm:$0xff]  ;;  %v327_v36 = vlaneseq }
  0x16   : > { %3187 = vset.pattern.permute.xlu1 %v4939_v1  ;;  %3186 = vset.pattern.permute.xlu0 %v4937_v2  ;;  %p290_p10 = scmp.lt.s32.totalorder %s2548_s13, 15  ;;  %v3474_v4 = vpack.c.bf16 %v304_v3, %v303_v0  ;;  %v306_v6 = vld [vmem:[%s4916_s0 + $0x18] sm:$0xff]  ;;  %v4932_v7 = vmov 0.0   ;;  %v307_v9 = vld [vmem:[%s4916_s0 + $0x20] sm:$0xff]  ;;  %v308_v10 = vld [vmem:[%s4916_s0 + $0x28] sm:$0xff]  ;;  %vm3356_vm0 = vmmov 0  }
  0x17   : > { %2760 = vmatprep.subr.bf16.mxu0 %v4932_v7  ;;  %2780 = vmatprep.subr.bf16.mxu1 %v4932_v7  ;;  %v3491_v8 = vpack.c.bf16 %v306_v6, %v305_v5  ;;  %v3512_v13 = vpack.c.bf16 %v308_v10, %v307_v9  ;;  %v309_v14 = vld [vmem:[%s4916_s0 + $0x30] sm:$0xff]  ;;  %v310_v15 = vld [vmem:[%s4916_s0 + $0x38] sm:$0xff]  ;;  %v311_v17 = vld [vmem:[%s4916_s0 + $0x40] sm:$0xff]  ;;  %v4934_v19 = vmov 2   ;;  %v4935_v21 = vmov 3   ;;  %s3365_s9 = smov 16  }
  0x18   : > { %s5086_s13 = smov (!%p290_p10, %s2548_s13), 15  ;;  %2761 = vmatpush3.bf16.msra.mxu0 %v3474_v4  ;;  %2781 = vmatpush3.bf16.msra.mxu1 %v3474_v4  ;;  %v3528_v16 = vpack.c.bf16 %v310_v15, %v309_v14  ;;  %v312_v18 = vld [vmem:[%s4916_s0 + $0x48] sm:$0xff]  ;;  %v313_v22 = vld [vmem:[%s4916_s0 + $0x50] sm:$0xff]  ;;  %v314_v23 = vld [vmem:[%s4916_s0 + $0x58] sm:$0xff]  ;;  %v4941_v27 = vmov 4   ;;  %v4948_v28 = vmov 5  }
  0x19   : > { %s2549_s22 = sshll.u32 %s5086_s13, 3  ;;  %2762 = vmatprep.subr.bf16.mxu0 %v4932_v7  ;;  %2782 = vmatprep.subr.bf16.mxu1 %v4932_v7  ;;  %v3548_v20 = vpack.c.bf16 %v312_v18, %v311_v17  ;;  %v3564_v24 = vpack.c.bf16 %v314_v23, %v313_v22  ;;  %v315_v25 = vld [vmem:[%s4916_s0 + $0x60] sm:$0xff]  ;;  %v316_v26 = vld [vmem:[%s4916_s0 + $0x68] sm:$0xff]  ;;  %v317_v30 = vld [vmem:[%s4916_s0 + $0x70] sm:$0xff]  ;;  %v4944_v32 = vmov 6   ;;  %v4946_v34 = vmov 7  }
  0x1a   : > { %s293_s16 = scalar_lea.vmem %s4917_s1, %s2549_s22  ;;  %2776 = vmatprep.mubr.msk.bf16.mxu0 %vm3356_vm0, %v4932_v7  ;;  %2796 = vmatprep.mubr.msk.bf16.mxu1 %vm3356_vm0, %v4932_v7  ;;  %v3578_v29 = vpack.c.bf16 %v316_v26, %v315_v25  ;;  %v318_v31 = vld [vmem:[%s4916_s0 + $0x78] sm:$0xff]  ;;  %v4942_v35 = vmov 8   ;;  %v3612_v39 = vand.u32 127, %v327_v36  ;;  %v3364_v42 = vmov 1.0|1.0   ;;  %s3366_s14 = smov 32  }
  0x1b   : > { %v3504_v11 = vld [vmem:[%s293_s16] sm:$0xff]  ;;  %v3508_v12 = vld [vmem:[%s293_s16 + $0x8] sm:$0xff]  ;;  %v3592_v33 = vpack.c.bf16 %v318_v31, %v317_v30  ;;  %s3367_s15 = smov 48   ;;  %v3273_v30 = vld [vmem:[%s4919_s3 + $0x10] sm:$0xff]   ;;  %s3368_s23 = smov 64  }
  0x1c   : > { %387 = vperm.xlu1 %3187, %v3504_v11   ;;  %332 = vperm.xlu0 %3186, %v3504_v11   ;;  %v3271_v18 = vld [vmem:[%s4919_s3] sm:$0xff]   ;;  %v3272_v22 = vld [vmem:[%s4919_s3 + $0x8] sm:$0xff]   ;;  %s4924_s16 = smov 80   ;;  %s3370_s19 = smov 96  }
  0x1d   : > { %2763 = vmatpush3.bf16.msra.mxu0 %v3491_v8  ;;  %2783 = vmatpush3.bf16.msra.mxu1 %v3491_v8  ;;  %4955 = vst [vmem:[#allocation7_spill] sm:$0xff] %v3592_v33  ;;  %s299_s29 = scalar_lea.vmem %s4918_s2, %s2549_s22  ;;  %s3373_s13 = smov 119  }
  0x1e   : > { %2764 = vmatprep.subr.bf16.mxu0 %v4932_v7  ;;  %2784 = vmatprep.subr.bf16.mxu1 %v4932_v7  ;;  %s5068_s8 = smov 80  }
  0x20   : > { %390 = vperm.xlu1 %3187, %v3508_v12   ;;  %335 = vperm.xlu0 %3186, %v3508_v12  }
  0x21   : > { %2765 = vmatpush3.bf16.msra.mxu0 %v3512_v13  ;;  %2785 = vmatpush3.bf16.msra.mxu1 %v3512_v13 }
  0x22   : > { %2766 = vmatprep.subr.bf16.mxu0 %v4932_v7  ;;  %2786 = vmatprep.subr.bf16.mxu1 %v4932_v7 }
  0x24   : > { %3189 = vset.pattern.permute.xlu1 %v4934_v19  ;;  %3188 = vset.pattern.permute.xlu0 %v4934_v19 }
  0x25   : > { %453 = vperm.xlu1 %3189, %v3508_v12   ;;  %450 = vperm.xlu0 %3188, %v3504_v11  }
  0x26   : > { %2767 = vmatpush3.bf16.msra.mxu0 %v3528_v16  ;;  %2787 = vmatpush3.bf16.msra.mxu1 %v3528_v16 }
  0x27   : > { %2768 = vmatprep.subr.bf16.mxu0 %v4932_v7  ;;  %2788 = vmatprep.subr.bf16.mxu1 %v4932_v7 }
  0x29   : > { %3190 = vset.pattern.permute.xlu1 %v4935_v21  ;;  %3191 = vset.pattern.permute.xlu0 %v4935_v21 }
  0x2a   : > { %513 = vperm.xlu1 %3190, %v3504_v11   ;;  %516 = vperm.xlu0 %3191, %v3508_v12  }
  0x2b   : > { %2769 = vmatpush3.bf16.msra.mxu0 %v3548_v20  ;;  %2789 = vmatpush3.bf16.msra.mxu1 %v3548_v20 }
  0x2c   : > { %2770 = vmatprep.subr.bf16.mxu0 %v4932_v7  ;;  %2790 = vmatprep.subr.bf16.mxu1 %v4932_v7 }
  0x2e   : > { %3192 = vset.pattern.permute.xlu1 %v4941_v27  ;;  %3193 = vset.pattern.permute.xlu0 %v4948_v28 }
  0x2f   : > { %576 = vperm.xlu1 %3192, %v3504_v11   ;;  %639 = vperm.xlu0 %3193, %v3504_v11  }
  0x30   : > { %2771 = vmatpush3.bf16.msra.mxu0 %v3564_v24  ;;  %2791 = vmatpush3.bf16.msra.mxu1 %v3564_v24 }
  0x31   : > { %2772 = vmatprep.subr.bf16.mxu0 %v4932_v7  ;;  %2792 = vmatprep.subr.bf16.mxu1 %v4932_v7 }
  0x33   : > { %579 = vperm.xlu1 %3192, %v3508_v12   ;;  %3196 = vset.pattern.permute.xlu0 %v4944_v32 }
  0x34   : > { %705 = vperm.xlu0 %3196, %v3508_v12   ;;  %2773 = vmatpush3.bf16.msra.mxu0 %v3578_v29 }
  0x35   : > { %2793 = vmatpush3.bf16.msra.mxu1 %v3578_v29  ;;  %2774 = vmatprep.subr.bf16.mxu0 %v4932_v7 }
  0x36   : > { %2794 = vmatprep.subr.bf16.mxu1 %v4932_v7 }
  0x37   : > { %3194 = vset.pattern.permute.xlu1 %v4948_v28 }
  0x38   : > { %642 = vperm.xlu1 %3194, %v3508_v12   ;;  %2775 = vmatpush3.bf16.msra.mxu0 %v3592_v33 }
  0x39   : > { %2795 = vmatpush3.bf16.msra.mxu1 %v3592_v33  ;;  %2800 = vmatprep.subr.bf16.mxu0 %v4932_v7 }
  0x3a   : > { %2820 = vmatprep.subr.bf16.mxu1 %v4932_v7  ;;  %3198 = vset.pattern.permute.xlu0 %v4942_v35 }
  0x3b   : > { %828 = vperm.xlu0 %3198, %v3504_v11  }
  0x3c   : > { %3195 = vset.pattern.permute.xlu1 %v4944_v32 }
  0x3d   : > { %702 = vperm.xlu1 %3195, %v3504_v11  }
  0x41   : > { %3197 = vset.pattern.permute.xlu1 %v4946_v34 }
  0x42   : > { %765 = vperm.xlu1 %3197, %v3504_v11  }
  0x46   : > { %768 = vperm.xlu1 %3197, %v3508_v12  }
  0x4a   : > { %3199 = vset.pattern.permute.xlu1 %v4942_v35 }
  0x4b   : > { %831 = vperm.xlu1 %3199, %v3508_v12  }
  0x9b   : > { %v388_v37 = vpop.permute.xlu1 %387  ;;  %v333_v38 = vpop.permute.xlu0 %332 }
  0x9c   : > { %vm392_vm1 = vcmp.eq.s32.totalorder %v3612_v39, %v388_v37  ;;  %vm337_vm4 = vcmp.eq.s32.totalorder %v3612_v39, %v333_v38 }
  0x9f   : > { %v391_v40 = vpop.permute.xlu1 %390  ;;  %v336_v41 = vpop.permute.xlu0 %335 }
  0xa0   : > { %vm393_vm2 = vcmp.eq.s32.totalorder %v3612_v39, %v391_v40  ;;  %vm338_vm3 = vcmp.eq.s32.totalorder %v3612_v39, %v336_v41  ;;  %v3274_v41 = vld [vmem:[%s4919_s3 + $0x18] sm:$0xff]  }
  0xa1   : > { %vm2554_vm5 = vmpackc.low %vm393_vm2, %vm392_vm1 }
  0xa2   : > { %vm2552_vm6 = vmpackc.low %vm338_vm3, %vm337_vm4  ;;  %2797 = vmatmul.mubr.msk.bf16.vlgmr.msra.gmra.mrb[0].mxu1 %vm2554_vm5, %v3364_v42 }
  0xa3   : > { %2777 = vmatmul.mubr.msk.bf16.vlgmr.msra.gmra.mrb[0].mxu0 %vm2552_vm6, %v3364_v42  ;;  %2821 = vmatpush3.bf16.msra.mxu1 %v3474_v4 }
  0xa4   : > { %2801 = vmatpush3.bf16.msra.mxu0 %v3474_v4  ;;  %2822 = vmatprep.subr.bf16.mxu1 %v4932_v7  ;;  %v454_v43 = vpop.permute.xlu1 %453  ;;  %v451_v44 = vpop.permute.xlu0 %450 }
  0xa5   : > { %2802 = vmatprep.subr.bf16.mxu0 %v4932_v7  ;;  %2816 = vmatprep.mubr.msk.bf16.mxu0 %vm3356_vm0, %v4932_v7  ;;  %vm456_vm9 = vcmp.eq.s32.totalorder %v3612_v39, %v454_v43  ;;  %vm455_vm10 = vcmp.eq.s32.totalorder %v3612_v39, %v451_v44  ;;  %v3276_v43 = vld [vmem:[%s4919_s3 + $0x28] sm:$0xff]   ;;  %v3277_v44 = vld [vmem:[%s4919_s3 + $0x30] sm:$0xff]  }
  0xa6   : > { %2836 = vmatprep.mubr.msk.bf16.mxu1 %vm3356_vm0, %v4932_v7  ;;  %vm2556_vm12 = vmpackc.low %vm456_vm9, %vm455_vm10 }
  0xa7   : > { %2823 = vmatpush3.bf16.msra.mxu1 %v3491_v8 }
  0xa8   : > { %2803 = vmatpush3.bf16.msra.mxu0 %v3491_v8  ;;  %2824 = vmatprep.subr.bf16.mxu1 %v4932_v7 }
  0xa9   : > { %2804 = vmatprep.subr.bf16.mxu0 %v4932_v7  ;;  %v514_v45 = vpop.permute.xlu1 %513  ;;  %v517_v46 = vpop.permute.xlu0 %516 }
  0xaa   : > { %vm518_vm7 = vcmp.eq.s32.totalorder %v3612_v39, %v514_v45  ;;  %vm519_vm8 = vcmp.eq.s32.totalorder %v3612_v39, %v517_v46  ;;  %v3278_v45 = vld [vmem:[%s4919_s3 + $0x38] sm:$0xff]   ;;  %v3279_v46 = vld [vmem:[%s4919_s3 + $0x40] sm:$0xff]  }
  0xab   : > { %2825 = vmatpush3.bf16.msra.mxu1 %v3512_v13  ;;  %vm2558_vm11 = vmpackc.low %vm519_vm8, %vm518_vm7 }
  0xac   : > { %2805 = vmatpush3.bf16.msra.mxu0 %v3512_v13  ;;  %2826 = vmatprep.subr.bf16.mxu1 %v4932_v7 }
  0xad   : > { %2806 = vmatprep.subr.bf16.mxu0 %v4932_v7 }
  0xae   : > { %v577_v47 = vpop.permute.xlu1 %576  ;;  %v640_v50 = vpop.permute.xlu0 %639 }
  0xaf   : > { %2827 = vmatpush3.bf16.msra.mxu1 %v3528_v16  ;;  %vm644_vm14 = vcmp.eq.s32.totalorder %v3612_v39, %v640_v50  ;;  %vm581_vm15 = vcmp.eq.s32.totalorder %v3612_v39, %v577_v47 }
  0xb0   : > { %2807 = vmatpush3.bf16.msra.mxu0 %v3528_v16  ;;  %2828 = vmatprep.subr.bf16.mxu1 %v4932_v7 }
  0xb1   : > { %2808 = vmatprep.subr.bf16.mxu0 %v4932_v7 }
  0xb2   : > { %v580_v48 = vpop.permute.xlu1 %579 }
  0xb3   : > { %2829 = vmatpush3.bf16.msra.mxu1 %v3548_v20  ;;  %vm582_vm1 = vcmp.eq.s32.totalorder %v3612_v39, %v580_v48  ;;  %v706_v54 = vpop.permute.xlu0 %705 }
  0xb4   : > { %2809 = vmatpush3.bf16.msra.mxu0 %v3548_v20  ;;  %2830 = vmatprep.subr.bf16.mxu1 %v4932_v7  ;;  %vm2560_vm3 = vmpackc.low %vm582_vm1, %vm581_vm15  ;;  %vm708_vm7 = vcmp.eq.s32.totalorder %v3612_v39, %v706_v54  ;;  %vm4931_vm15 = vcmask 392448   ;;  %vm4930_vm1 = vcmask 523648  }
  0xb5   : > { %2810 = vmatprep.subr.bf16.mxu0 %v4932_v7 }
  0xb7   : > { %2831 = vmatpush3.bf16.msra.mxu1 %v3564_v24  ;;  %v643_v49 = vpop.permute.xlu1 %642 }
  0xb8   : > { %2811 = vmatpush3.bf16.msra.mxu0 %v3564_v24  ;;  %2832 = vmatprep.subr.bf16.mxu1 %v4932_v7  ;;  %vm645_vm13 = vcmp.eq.s32.totalorder %v3612_v39, %v643_v49 }
  0xb9   : > { %2812 = vmatprep.subr.bf16.mxu0 %v4932_v7  ;;  %vm2562_vm2 = vmpackc.low %vm645_vm13, %vm644_vm14  ;;  %vm383_vm13 = vcmask 130048   ;;  %vm446_vm14 = vcmask 261248  }
  0xba   : > { %v829_v56 = vpop.permute.xlu0 %828 }
  0xbb   : > { %2833 = vmatpush3.bf16.msra.mxu1 %v3578_v29 }
  0xbc   : > { %2813 = vmatpush3.bf16.msra.mxu0 %v3578_v29  ;;  %2834 = vmatprep.subr.bf16.mxu1 %v4932_v7  ;;  %v703_v51 = vpop.permute.xlu1 %702 }
  0xbd   : > { %2814 = vmatprep.subr.bf16.mxu0 %v4932_v7  ;;  %vm707_vm6 = vcmp.eq.s32.totalorder %v3612_v39, %v703_v51 }
  0xbe   : > { %vm2564_vm9 = vmpackc.low %vm708_vm7, %vm707_vm6 }
  0xbf   : > { %2835 = vmatpush3.bf16.msra.mxu1 %v3592_v33 }
  0xc0   : > { %2815 = vmatpush3.bf16.msra.mxu0 %v3592_v33  ;;  %2860 = vmatprep.subr.bf16.mxu1 %v4932_v7 }
  0xc1   : > { %2840 = vmatprep.subr.bf16.mxu0 %v4932_v7  ;;  %v766_v52 = vpop.permute.xlu1 %765 }
  0xc2   : > { %2837 = vmatmul.mubr.msk.bf16.vlgmr.msra.gmra.mrb[4].mxu1 %vm2558_vm11, %v3364_v42  ;;  %vm770_vm4 = vcmp.eq.s32.totalorder %v3612_v39, %v766_v52  ;;  %vm833_vm11 = vcmp.eq.s32.totalorder %v3612_v39, %v829_v56 }
  0xc3   : > { %2817 = vmatmul.mubr.msk.bf16.vlgmr.msra.gmra.mrb[4].mxu0 %vm2556_vm12, %v3364_v42  ;;  %2861 = vmatpush3.bf16.msra.mxu1 %v3474_v4 }
  0xc4   : > { %2841 = vmatpush3.bf16.msra.mxu0 %v3474_v4  ;;  %2862 = vmatprep.subr.bf16.mxu1 %v4932_v7 }
  0xc5   : > { %2842 = vmatprep.subr.bf16.mxu0 %v4932_v7  ;;  %2856 = vmatprep.mubr.msk.bf16.mxu0 %vm3356_vm0, %v4932_v7  ;;  %v769_v53 = vpop.permute.xlu1 %768 }
  0xc6   : > { %2876 = vmatprep.mubr.msk.bf16.mxu1 %vm3356_vm0, %v4932_v7  ;;  %vm771_vm5 = vcmp.eq.s32.totalorder %v3612_v39, %v769_v53 }
  0xc7   : > { %2863 = vmatpush3.bf16.msra.mxu1 %v3491_v8  ;;  %vm2566_vm8 = vmpackc.low %vm771_vm5, %vm770_vm4  ;;  %vm4927_vm4 = vcmask 917248   ;;  %vm4926_vm5 = vcmask 1048448  }
  0xc8   : > { %2843 = vmatpush3.bf16.msra.mxu0 %v3491_v8  ;;  %2864 = vmatprep.subr.bf16.mxu1 %v4932_v7 }
  0xc9   : > { %2844 = vmatprep.subr.bf16.mxu0 %v4932_v7 }
  0xca   : > { %v832_v55 = vpop.permute.xlu1 %831 }
  0xcb   : > { %2865 = vmatpush3.bf16.msra.mxu1 %v3512_v13  ;;  %vm834_vm10 = vcmp.eq.s32.totalorder %v3612_v39, %v832_v55  ;;  %v3372_v55 = vmov 9  }
  0xcc   : > { %2845 = vmatpush3.bf16.msra.mxu0 %v3512_v13  ;;  %2866 = vmatprep.subr.bf16.mxu1 %v4932_v7  ;;  %vm2568_vm12 = vmpackc.low %vm834_vm10, %vm833_vm11 }
  0xcd   : > { %2846 = vmatprep.subr.bf16.mxu0 %v4932_v7  ;;  %3201 = vset.pattern.permute.xlu0 %v3372_v55 }
  0xce   : > { %3200 = vset.pattern.permute.xlu1 %v3372_v55 }
  0xcf   : > { %2867 = vmatpush3.bf16.msra.mxu1 %v3528_v16 }
  0xd0   : > { %2847 = vmatpush3.bf16.msra.mxu0 %v3528_v16  ;;  %2868 = vmatprep.subr.bf16.mxu1 %v4932_v7 }
  0xd1   : > { %2848 = vmatprep.subr.bf16.mxu0 %v4932_v7 }
  0xd3   : > { %2869 = vmatpush3.bf16.msra.mxu1 %v3548_v20 }
  0xd4   : > { %2849 = vmatpush3.bf16.msra.mxu0 %v3548_v20  ;;  %2870 = vmatprep.subr.bf16.mxu1 %v4932_v7 }
  0xd5   : > { %2850 = vmatprep.subr.bf16.mxu0 %v4932_v7 }
  0xd7   : > { %2871 = vmatpush3.bf16.msra.mxu1 %v3564_v24 }
  0xd8   : > { %2851 = vmatpush3.bf16.msra.mxu0 %v3564_v24  ;;  %2872 = vmatprep.subr.bf16.mxu1 %v4932_v7 }
  0xd9   : > { %2852 = vmatprep.subr.bf16.mxu0 %v4932_v7 }
  0xdb   : > { %2873 = vmatpush3.bf16.msra.mxu1 %v3578_v29 }
  0xdc   : > { %2853 = vmatpush3.bf16.msra.mxu0 %v3578_v29  ;;  %2874 = vmatprep.subr.bf16.mxu1 %v4932_v7 }
  0xdd   : > { %2854 = vmatprep.subr.bf16.mxu0 %v4932_v7 }
  0xdf   : > { %2875 = vmatpush3.bf16.msra.mxu1 %v3592_v33 }
  0xe0   : > { %2855 = vmatpush3.bf16.msra.mxu0 %v3592_v33  ;;  %2900 = vmatprep.subr.bf16.mxu1 %v4932_v7 }
  0xe1   : > { %2880 = vmatprep.subr.bf16.mxu0 %v4932_v7 }
  0xe2   : > { %2877 = vmatmul.mubr.msk.bf16.vlgmr.msra.gmra.mrb[8].mxu1 %vm2562_vm2, %v3364_v42  ;;  %vm4929_vm2 = vcmask 654848  }
  0xe3   : > { %2857 = vmatmul.mubr.msk.bf16.vlgmr.msra.gmra.mrb[8].mxu0 %vm2560_vm3, %v3364_v42  ;;  %2901 = vmatpush3.bf16.msra.mxu1 %v3474_v4  ;;  %vm4928_vm3 = vcmask 786048  }
  0xe4   : > { %2881 = vmatpush3.bf16.msra.mxu0 %v3474_v4  ;;  %2902 = vmatprep.subr.bf16.mxu1 %v4932_v7 }
  0xe5   : > { %2882 = vmatprep.subr.bf16.mxu0 %v4932_v7  ;;  %2896 = vmatprep.mubr.msk.bf16.mxu0 %vm3356_vm0, %v4932_v7 }
  0xe6   : > { %2916 = vmatprep.mubr.msk.bf16.mxu1 %vm3356_vm0, %v4932_v7 }
  0xe7   : > { %2903 = vmatpush3.bf16.msra.mxu1 %v3491_v8 }
  0xe8   : > { %2883 = vmatpush3.bf16.msra.mxu0 %v3491_v8  ;;  %2904 = vmatprep.subr.bf16.mxu1 %v4932_v7 }
  0xe9   : > { %2884 = vmatprep.subr.bf16.mxu0 %v4932_v7 }
  0xeb   : > { %2905 = vmatpush3.bf16.msra.mxu1 %v3512_v13 }
  0xec   : > { %2885 = vmatpush3.bf16.msra.mxu0 %v3512_v13  ;;  %2906 = vmatprep.subr.bf16.mxu1 %v4932_v7 }
  0xed   : > { %2886 = vmatprep.subr.bf16.mxu0 %v4932_v7 }
  0xef   : > { %2907 = vmatpush3.bf16.msra.mxu1 %v3528_v16 }
  0xf0   : > { %2887 = vmatpush3.bf16.msra.mxu0 %v3528_v16  ;;  %2908 = vmatprep.subr.bf16.mxu1 %v4932_v7 }
  0xf1   : > { %2888 = vmatprep.subr.bf16.mxu0 %v4932_v7 }
  0xf3   : > { %2909 = vmatpush3.bf16.msra.mxu1 %v3548_v20 }
  0xf4   : > { %2889 = vmatpush3.bf16.msra.mxu0 %v3548_v20  ;;  %2910 = vmatprep.subr.bf16.mxu1 %v4932_v7 }
  0xf5   : > { %2890 = vmatprep.subr.bf16.mxu0 %v4932_v7 }
  0xf7   : > { %2911 = vmatpush3.bf16.msra.mxu1 %v3564_v24 }
  0xf8   : > { %2891 = vmatpush3.bf16.msra.mxu0 %v3564_v24  ;;  %2912 = vmatprep.subr.bf16.mxu1 %v4932_v7 }
  0xf9   : > { %2892 = vmatprep.subr.bf16.mxu0 %v4932_v7 }
  0xfb   : > { %2913 = vmatpush3.bf16.msra.mxu1 %v3578_v29 }
  0xfc   : > { %2893 = vmatpush3.bf16.msra.mxu0 %v3578_v29  ;;  %2914 = vmatprep.subr.bf16.mxu1 %v4932_v7 }
  0xfd   : > { %2894 = vmatprep.subr.bf16.mxu0 %v4932_v7 }
  0xff   : > { %2915 = vmatpush3.bf16.msra.mxu1 %v3592_v33 }
 0x100   : > { %2895 = vmatpush3.bf16.msra.mxu0 %v3592_v33  ;;  %969 = vmatprep.subr.bf16.mxu1 %v4937_v2 }
 0x101   : > { %2920 = vmatprep.subr.bf16.mxu0 %v4932_v7 }
 0x102   : > { %2917 = vmatmul.mubr.msk.bf16.vlgmr.msra.gmra.mrb[12].mxu1 %vm2566_vm8, %v3364_v42 }
 0x103   : > { %2897 = vmatmul.mubr.msk.bf16.vlgmr.msra.gmra.mrb[12].mxu0 %vm2564_vm9, %v3364_v42  ;;  %970 = vmatpush1.bf16.msra.mxu1 %v3271_v18 }
 0x104   : > { %2921 = vmatpush3.bf16.msra.mxu0 %v3474_v4  ;;  %2936 = vmatprep.mubr.msk.bf16.mxu0 %vm3356_vm0, %v4932_v7 }
 0x105   : > { %2922 = vmatprep.subr.bf16.mxu0 %v4932_v7  ;;  %971 = vmatprep.subr.bf16.mxu1 %v4937_v2 }
 0x107   : > { %972 = vmatpush1.bf16.msra.mxu1 %v3272_v22 }
 0x108   : > { %2923 = vmatpush3.bf16.msra.mxu0 %v3491_v8  ;;  %973 = vmatprep.subr.bf16.mxu1 %v4937_v2 }
 0x109   : > { %2924 = vmatprep.subr.bf16.mxu0 %v4932_v7 }
 0x10b   : > { %974 = vmatpush1.bf16.msra.mxu1 %v3273_v30  ;;  %v2570_v30 = vld [vmem:[%s4920_s4] ss:$0 sm:$0xff] }
 0x10c   : > { %2925 = vmatpush3.bf16.msra.mxu0 %v3512_v13  ;;  %975 = vmatprep.subr.bf16.mxu1 %v4937_v2 }
 0x10d   : > { %2926 = vmatprep.subr.bf16.mxu0 %v4932_v7 }
 0x10f   : > { %976 = vmatpush1.bf16.msra.mxu1 %v3274_v41  ;;  %v1011_v41 = vld [vmem:[%s299_s29 + $0x8] sm:$0xff] }
 0x110   : > { %2927 = vmatpush3.bf16.msra.mxu0 %v3528_v16  ;;  %977 = vmatprep.subr.bf16.mxu1 %v4937_v2 }
 0x111   : > { %2928 = vmatprep.subr.bf16.mxu0 %v4932_v7 }
 0x114   : > { %2929 = vmatpush3.bf16.msra.mxu0 %v3548_v20 }
 0x115   : > { %2930 = vmatprep.subr.bf16.mxu0 %v4932_v7 }
 0x118   : > { %2931 = vmatpush3.bf16.msra.mxu0 %v3564_v24 }
 0x119   : > { %2932 = vmatprep.subr.bf16.mxu0 %v4932_v7 }
 0x11c   : > { %2933 = vmatpush3.bf16.msra.mxu0 %v3578_v29 }
 0x11d   : > { %2934 = vmatprep.subr.bf16.mxu0 %v4932_v7 }
 0x120   : > { %2935 = vmatpush3.bf16.msra.mxu0 %v3592_v33 }
 0x121   : > { %2940 = vmatprep.subr.bf16.mxu0 %v4932_v7 }
 0x123   : > { %2937 = vmatmul.mubr.msk.bf16.vlgmr.msra.gmra.mrb[16].mxu0 %vm2568_vm12, %v3364_v42  ;;  %v3275_v42 = vld [vmem:[%s4919_s3 + $0x20] sm:$0xff]  }
 0x124   : > { %2941 = vmatpush3.bf16.msra.mxu0 %v3474_v4  ;;  %2956 = vmatprep.mubr.msk.bf16.mxu0 %vm3356_vm0, %v4932_v7 }
 0x125   : > { %2942 = vmatprep.subr.bf16.mxu0 %v4932_v7  ;;  %978 = vmatpush1.bf16.msra.mxu1 %v3275_v42 }
 0x126   : > { %979 = vmatprep.subr.bf16.mxu1 %v4937_v2 }
 0x128   : > { %2943 = vmatpush3.bf16.msra.mxu0 %v3491_v8 }
 0x129   : > { %2944 = vmatprep.subr.bf16.mxu0 %v4932_v7  ;;  %980 = vmatpush1.bf16.msra.mxu1 %v3276_v43 }
 0x12a   : > { %981 = vmatprep.subr.bf16.mxu1 %v4937_v2 }
 0x12c   : > { %2945 = vmatpush3.bf16.msra.mxu0 %v3512_v13 }
 0x12d   : > { %2946 = vmatprep.subr.bf16.mxu0 %v4932_v7  ;;  %982 = vmatpush1.bf16.msra.mxu1 %v3277_v44 }
 0x12e   : > { %983 = vmatprep.subr.bf16.mxu1 %v4937_v2 }
 0x130   : > { %2947 = vmatpush3.bf16.msra.mxu0 %v3528_v16 }
 0x131   : > { %2948 = vmatprep.subr.bf16.mxu0 %v4932_v7  ;;  %984 = vmatpush1.bf16.msra.mxu1 %v3278_v45 }
 0x132   : > { %985 = vmatprep.subr.bf16.mxu1 %v4937_v2 }
 0x134   : > { %2949 = vmatpush3.bf16.msra.mxu0 %v3548_v20 }
 0x135   : > { %2950 = vmatprep.subr.bf16.mxu0 %v4932_v7  ;;  %986 = vmatpush1.bf16.msra.mxu1 %v3279_v46 }
 0x136   : > { %2960 = vmatprep.subr.bf16.mxu1 %v4932_v7 }
 0x138   : > { %2951 = vmatpush3.bf16.msra.mxu0 %v3564_v24 }
 0x139   : > { %2952 = vmatprep.subr.bf16.mxu0 %v4932_v7 }
 0x13c   : > { %2953 = vmatpush3.bf16.msra.mxu0 %v3578_v29 }
 0x13d   : > { %2954 = vmatprep.subr.bf16.mxu0 %v4932_v7 }
 0x140   : > { %2955 = vmatpush3.bf16.msra.mxu0 %v3592_v33 }
 0x141   : > { %2980 = vmatprep.subr.bf16.mxu0 %v4932_v7 }
 0x175   : > { %v431_v57 = vpop.f32.mrb[0].mxu1 }
 0x176   : > { %v376_v58 = vpop.f32.mrb[0].mxu0  ;;  %440 = vrot.lane.b32.xlu1 %v431_v57, %s3365_s9  ;;  %v2798_v59 = vpop.f32.mrb[1].mxu1 }
 0x177   : > { %384 = vst.msk [vmem:[#allocation2] sm:$0xff] %vm383_vm13, %v376_v58  ;;  %v2778_v60 = vpop.f32.mrb[1].mxu0  ;;  %v434_v61 = vpop.f32.mrb[2].mxu1 }
 0x178   : > { %v379_v62 = vpop.f32.mrb[2].mxu0  ;;  %v2799_v63 = vpop.f32.mrb[3].mxu1  ;;  %442 = vrot.lane.b32.xlu0 %v434_v61, %s3365_s9 }
 0x179   : > { %385 = vst.msk [vmem:[#allocation2 + $0x10] sm:$0xff] %vm383_vm13, %v379_v62  ;;  %v2779_v0 = vpop.f32.mrb[3].mxu0 }
 0x195   : > { %v557_v3 = vpop.f32.mrb[4].mxu1 }
 0x196   : > { %v494_v5 = vpop.f32.mrb[4].mxu0  ;;  %v2838_v6 = vpop.f32.mrb[5].mxu1 }
 0x197   : > { %503 = vrot.lane.b32.xlu1 %v494_v5, %s3366_s14  ;;  %v2818_v9 = vpop.f32.mrb[5].mxu0  ;;  %v560_v10 = vpop.f32.mrb[6].mxu1 }
 0x198   : > { %v497_v14 = vpop.f32.mrb[6].mxu0  ;;  %v2839_v15 = vpop.f32.mrb[7].mxu1 }
 0x199   : > { %505 = vrot.lane.b32.xlu0 %v497_v14, %s3366_s14  ;;  %v2819_v17 = vpop.f32.mrb[7].mxu0 }
 0x19b   : > { %566 = vrot.lane.b32.xlu1 %v557_v3, %s3367_s15 }
 0x19d   : > { %568 = vrot.lane.b32.xlu0 %v560_v10, %s3367_s15 }
 0x1b5   : > { %v683_v23 = vpop.f32.mrb[8].mxu1 }
 0x1b6   : > { %v620_v25 = vpop.f32.mrb[8].mxu0  ;;  %v2878_v26 = vpop.f32.mrb[9].mxu1 }
 0x1b7   : > { %v2858_v31 = vpop.f32.mrb[9].mxu0  ;;  %629 = vrot.lane.b32.xlu1 %v620_v25, %s3368_s23  ;;  %v686_v36 = vpop.f32.mrb[10].mxu1 }
 0x1b8   : > { %v623_v37 = vpop.f32.mrb[10].mxu0  ;;  %v2879_v38 = vpop.f32.mrb[11].mxu1 }
 0x1b9   : > { %v2859_v40 = vpop.f32.mrb[11].mxu0  ;;  %631 = vrot.lane.b32.xlu0 %v623_v37, %s3368_s23 }
 0x1bb   : > { %692 = vrot.lane.b32.xlu1 %v683_v23, %s4924_s16 }
 0x1bd   : > { %694 = vrot.lane.b32.xlu0 %v686_v36, %s4924_s16  ;;  %s3371_s16 = smov 112   ;;  %v1010_v36 = vld [vmem:[%s299_s29] sm:$0xff] }
 0x1d5   : > { %v809_v47 = vpop.f32.mrb[12].mxu1 }
 0x1d6   : > { %v746_v48 = vpop.f32.mrb[12].mxu0  ;;  %v2918_v49 = vpop.f32.mrb[13].mxu1 }
 0x1d7   : > { %755 = vrot.lane.b32.xlu1 %v746_v48, %s3370_s19  ;;  %v2898_v50 = vpop.f32.mrb[13].mxu0  ;;  %v812_v51 = vpop.f32.mrb[14].mxu1 }
 0x1d8   : > { %v749_v52 = vpop.f32.mrb[14].mxu0  ;;  %v2919_v53 = vpop.f32.mrb[15].mxu1 }
 0x1d9   : > { %757 = vrot.lane.b32.xlu0 %v749_v52, %s3370_s19  ;;  %v2899_v54 = vpop.f32.mrb[15].mxu0 }
 0x1db   : > { %818 = vrot.lane.b32.xlu1 %v809_v47, %s3371_s16 }
 0x1dd   : > { %820 = vrot.lane.b32.xlu0 %v812_v51, %s3371_s16 }
 0x1df   : > { %1071 = vperm.xlu1 %3200, %v3504_v11  }
 0x1e1   : > { %1074 = vperm.xlu0 %3201, %v3508_v12  }
 0x1e3   : > { %3203 = vset.pattern.permute.xlu1 %v4937_v2 }
 0x1e5   : > { %3202 = vset.pattern.permute.xlu0 %v4937_v2 }
 0x1e8   : > { %v441_v56 = vpop.permute.xlu1 %440 }
 0x1e9   : > { %447 = vst.msk [vmem:[#allocation2] sm:$0xff] %vm446_vm14, %v441_v56 }
 0x1ea   : > { %v443_v57 = vpop.permute.xlu0 %442 }
 0x1eb   : > { %448 = vst.msk [vmem:[#allocation2 + $0x10] sm:$0xff] %vm446_vm14, %v443_v57 }
 0x1f6   : > { %v872_v58 = vpop.f32.mrb[16].mxu0 }
 0x1f7   : > { %879 = vst.msk [vmem:[#allocation2 + $0x8] sm:$0xff] %vm383_vm13, %v872_v58  ;;  %v2938_v59 = vpop.f32.mrb[17].mxu0 }
 0x1f8   : > { %v875_v60 = vpop.f32.mrb[18].mxu0 }
 0x1f9   : > { %880 = vst.msk [vmem:[#allocation2 + $0x18] sm:$0xff] %vm383_vm13, %v875_v60  ;;  %v2939_v11 = vpop.f32.mrb[19].mxu0 }
 0x1fe   : > { %v882_v12 = vld [vmem:[#allocation2 + $0x8] sm:$0xff] }
 0x200   : > { %v884_v61 = vld [vmem:[#allocation2 + $0x18] sm:$0xff] }
 0x201   : > { %v886_v62 = vpack.c.bf16 %v884_v61, %v882_v12 }
 0x203   : > { %2580 = vmatprep.mubr.msk.bf16.mxu1 %vm383_vm13, %v886_v62 }
 0x209   : > { %v504_v63 = vpop.permute.xlu1 %503 }
 0x20a   : > { %510 = vst.msk [vmem:[#allocation2] sm:$0xff] %vm4931_vm15, %v504_v63 }
 0x20b   : > { %v506_v0 = vpop.permute.xlu0 %505 }
 0x20c   : > { %511 = vst.msk [vmem:[#allocation2 + $0x10] sm:$0xff] %vm4931_vm15, %v506_v0 }
 0x20d   : > { %v567_v3 = vpop.permute.xlu1 %566 }
 0x20e   : > { %573 = vst.msk [vmem:[#allocation2] sm:$0xff] %vm4930_vm1, %v567_v3 }
 0x20f   : > { %v569_v5 = vpop.permute.xlu0 %568 }
 0x210   : > { %574 = vst.msk [vmem:[#allocation2 + $0x10] sm:$0xff] %vm4930_vm1, %v569_v5 }
 0x229   : > { %v630_v6 = vpop.permute.xlu1 %629 }
 0x22a   : > { %636 = vst.msk [vmem:[#allocation2] sm:$0xff] %vm4929_vm2, %v630_v6 }
 0x22b   : > { %v632_v9 = vpop.permute.xlu0 %631 }
 0x22c   : > { %637 = vst.msk [vmem:[#allocation2 + $0x10] sm:$0xff] %vm4929_vm2, %v632_v9 }
 0x22d   : > { %v693_v10 = vpop.permute.xlu1 %692 }
 0x22e   : > { %699 = vst.msk [vmem:[#allocation2] sm:$0xff] %vm4928_vm3, %v693_v10 }
 0x22f   : > { %v695_v14 = vpop.permute.xlu0 %694 }
 0x230   : > { %700 = vst.msk [vmem:[#allocation2 + $0x10] sm:$0xff] %vm4928_vm3, %v695_v14 }
 0x249   : > { %v756_v15 = vpop.permute.xlu1 %755 }
 0x24a   : > { %762 = vst.msk [vmem:[#allocation2] sm:$0xff] %vm4927_vm4, %v756_v15 }
 0x24b   : > { %v758_v17 = vpop.permute.xlu0 %757 }
 0x24c   : > { %763 = vst.msk [vmem:[#allocation2 + $0x10] sm:$0xff] %vm4927_vm4, %v758_v17 }
 0x24d   : > { %v819_v18 = vpop.permute.xlu1 %818 }
 0x24e   : > { %825 = vst.msk [vmem:[#allocation2] sm:$0xff] %vm4926_vm5, %v819_v18 }
 0x24f   : > { %v821_v22 = vpop.permute.xlu0 %820 }
 0x250   : > { %826 = vst.msk [vmem:[#allocation2 + $0x10] sm:$0xff] %vm4926_vm5, %v821_v22 }
 0x255   : > { %v881_v23 = vld [vmem:[#allocation2] sm:$0xff] }
 0x257   : > { %v883_v25 = vld [vmem:[#allocation2 + $0x10] sm:$0xff] }
 0x258   : > { %v885_v26 = vpack.c.bf16 %v883_v25, %v881_v23 }
 0x25a   : > { %1002 = vmatmul.mubr.bf16.vlgmr.msra.gmra.mrb[16].mxu1 %v885_v26 }
 0x25b   : > { %2961 = vmatpush3.bf16.msra.mxu1 %v3474_v4  ;;  %2976 = vmatprep.mubr.msk.bf16.mxu1 %vm3356_vm0, %v4932_v7 }
 0x25c   : > { %2962 = vmatprep.subr.bf16.mxu1 %v4932_v7 }
 0x25e   : > { %v1072_v26 = vpop.permute.xlu1 %1071 }
 0x25f   : > { %2963 = vmatpush3.bf16.msra.mxu1 %v3491_v8 }
 0x260   : > { %2964 = vmatprep.subr.bf16.mxu1 %v4932_v7  ;;  %v3954_v25 = vpop.permute.xlu0 %1074 }
 0x263   : > { %2965 = vmatpush3.bf16.msra.mxu1 %v3512_v13 }
 0x264   : > { %2966 = vmatprep.subr.bf16.mxu1 %v4932_v7 }
 0x267   : > { %2967 = vmatpush3.bf16.msra.mxu1 %v3528_v16 }
 0x268   : > { %2968 = vmatprep.subr.bf16.mxu1 %v4932_v7 }
 0x26b   : > { %2969 = vmatpush3.bf16.msra.mxu1 %v3548_v20 }
 0x26c   : > { %2970 = vmatprep.subr.bf16.mxu1 %v4932_v7 }
 0x26f   : > { %2971 = vmatpush3.bf16.msra.mxu1 %v3564_v24 }
 0x270   : > { %2972 = vmatprep.subr.bf16.mxu1 %v4932_v7 }
 0x273   : > { %2973 = vmatpush3.bf16.msra.mxu1 %v3578_v29 }
 0x274   : > { %2974 = vmatprep.subr.bf16.mxu1 %v4932_v7 }
 0x277   : > { %2975 = vmatpush3.bf16.msra.mxu1 %v3592_v33 }
 0x278   : > { %3000 = vmatprep.subr.bf16.mxu1 %v4932_v7 }
 0x32d   : > { %v1003_v31 = vpop.f32.mrb[16].mxu1 }
 0x32e   : > { %v1004_v37 = vadd.f32 %v2570_v30, %v1003_v31  ;;  %v1005_v38 = vpop.f32.mrb[17].mxu1 }
 0x32f   : > { %v1006_v40 = vpop.f32.mrb[18].mxu1 }
 0x330   : > { %v1012_v42 = vadd.f32 %v1010_v36, %v1004_v37  ;;  %v1007_v43 = vadd.f32 %v2570_v30, %v1006_v40  ;;  %v1008_v44 = vpop.f32.mrb[19].mxu1 }
 0x332   : > { %v1014_v45 = vfloor.f32 %v1012_v42  ;;  %v1013_v46 = vadd.f32 %v1011_v41, %v1007_v43 }
 0x334   : > { %v3884_v47 = vsub.f32 %v1012_v42, %v1014_v45  ;;  %v3120_v48 = vtrunc.f32 %v1014_v45  ;;  %v1015_v49 = vfloor.f32 %v1013_v46 }
 0x336   : > { %v3121_v50 = vcvt.f32.s32 %v3120_v48  ;;  %v3886_v51 = vsub.f32 %v1013_v46, %v1015_v49  ;;  %v3122_v52 = vtrunc.f32 %v1015_v49  ;;  %1088 = vrot.lane.b32.xlu0 %v3884_v47, %s3373_s13  ;;  %v3893_v54 = vsub.f32 1.0, %v3884_v47 }
 0x338   : > { %v3123_v53 = vcvt.f32.s32 %v3122_v52  ;;  %1090 = vrot.lane.b32.xlu1 %v3886_v51, %s3373_s13  ;;  %vm1034_vm6 = vcmp.ge.s32.totalorder %v3121_v50, 0  ;;  %vm1036_vm7 = vcmp.lt.s32.totalorder %v3121_v50, 8  ;;  %v1020_v55 = vadd.s32 1, %v3121_v50 }
 0x339   : > { %vm3895_vm8 = vmand %vm1034_vm6, %vm1036_vm7  ;;  %v1040_v58 = vsel %vm1034_vm6, 1, %v4937_v2  ;;  %vm1060_vm5 = vcmp.gt.s32.totalorder %v3121_v50, 0  ;;  %v1050_v60 = vsel %vm1036_vm7, 1, %v4937_v2  ;;  %v3917_v12 = vsub.f32 1.0, %v3886_v51 }
 0x33a   : > { %1026 = vrot.lane.b32.xlu0 %v3893_v54, %s3373_s13  ;;  %vm1035_vm9 = vcmp.ge.s32.totalorder %v3123_v53, 0  ;;  %vm1037_vm10 = vcmp.lt.s32.totalorder %v3123_v53, 8  ;;  %v1021_v57 = vadd.s32 1, %v3123_v53  ;;  %vm1096_vm11 = vcmp.ge.s32.totalorder %v1020_v55, 0 }
 0x33b   : > { %vm3904_vm12 = vmand %vm1035_vm9, %vm1037_vm10  ;;  %vm1108_vm4 = vcmp.lt.s32.totalorder %v1020_v55, 8  ;;  %v1061_v61 = vsel %vm1060_vm5, %v3121_v50, 0  ;;  %v1098_v63 = vsel %vm1096_vm11, 1, %v4937_v2  ;;  %v1041_v0 = vsel %vm1035_vm9, 1, %v4937_v2 }
 0x33c   : > { %1042 = vrot.lane.b32.xlu1 %v1040_v58, %s3373_s13  ;;  %vm1097_vm3 = vcmp.ge.s32.totalorder %v1021_v57, 0  ;;  %vm3911_vm2 = vmand %vm1096_vm11, %vm1108_vm4  ;;  %vm1109_vm6 = vcmp.lt.s32.totalorder %v1021_v57, 8  ;;  %vm1064_vm7 = vcmp.lt.s32.totalorder %v1061_v61, 7  ;;  %vm1120_vm5 = vcmp.gt.s32.totalorder %v1020_v55, 0 }
 0x33d   : > { %vm3921_vm1 = vmand %vm1097_vm3, %vm1109_vm6  ;;  %v1065_v3 = vsel %vm1064_vm7, %v1061_v61, 7  ;;  %vm1062_vm15 = vcmp.gt.s32.totalorder %v3123_v53, 0  ;;  %v1051_v5 = vsel %vm1037_vm10, 1, %v4937_v2  ;;  %v1121_v6 = vsel %vm1120_vm5, %v1020_v55, 0 }
 0x33e   : > { %1052 = vrot.lane.b32.xlu0 %v1050_v60, %s3373_s13  ;;  %v1110_v9 = vsel %vm1108_vm4, 1, %v4937_v2  ;;  %v1063_v10 = vsel %vm1062_vm15, %v3123_v53, 0  ;;  %vm1124_vm9 = vcmp.lt.s32.totalorder %v1121_v6, 7  ;;  %v1099_v14 = vsel %vm1097_vm3, 1, %v4937_v2 }
 0x33f   : > { %vm1066_vm11 = vcmp.lt.s32.totalorder %v1063_v10, 7  ;;  %v1125_v15 = vsel %vm1124_vm9, %v1121_v6, 7  ;;  %vm1122_vm10 = vcmp.gt.s32.totalorder %v1021_v57, 0  ;;  %v1111_v22 = vsel %vm1109_vm6, 1, %v4937_v2 }
 0x340   : > { %1028 = vrot.lane.b32.xlu1 %v3917_v12, %s3373_s13  ;;  %v3943_v17 = vsel %vm1066_vm11, %v1063_v10, 7  ;;  %v1123_v18 = vsel %vm1122_vm10, %v1021_v57, 0  ;;  %v1068_v42 = vmul.u32 8, %v1065_v3  ;;  %v1144_v48 = vmul.u32 8, %v1125_v15 }
 0x341   : > { %vm1126_vm15 = vcmp.lt.s32.totalorder %v1123_v18, 7 }
 0x342   : > { %1100 = vrot.lane.b32.xlu0 %v1098_v63, %s3373_s13  ;;  %v3950_v23 = vsel %vm1126_vm15, %v1123_v18, 7  ;;  %v3974_v46 = vadd.s32 %v1072_v26, %v1068_v42  ;;  %v3982_v53 = vadd.s32 %v1144_v48, %v1072_v26 }
 0x344   : > { %1044 = vrot.lane.b32.xlu1 %v1041_v0, %s3373_s13  ;;  %v4994_v0 = vmov 3  }
 0x346   : > { %1078 = vrot.lane.b32.xlu0 %v1065_v3, %s3373_s13  ;;  %v1069_v3 = vmul.u32 8, %v3943_v17 }
 0x348   : > { %1054 = vrot.lane.b32.xlu1 %v1051_v5, %s3373_s13 }
 0x34a   : > { %1112 = vrot.lane.b32.xlu0 %v1110_v9, %s3373_s13  ;;  %v1077_v9 = vadd.s32 %v3954_v25, %v1069_v3 }
 0x34c   : > { %1102 = vrot.lane.b32.xlu1 %v1099_v14, %s3373_s13  ;;  %v1145_v14 = vmul.u32 8, %v3950_v23 }
 0x34e   : > { %1128 = vrot.lane.b32.xlu0 %v1125_v15, %s3373_s13 }
 0x350   : > { %1080 = vrot.lane.b32.xlu1 %v3943_v17, %s3373_s13  ;;  %v4057_v17 = vadd.s32 %v1145_v14, %v3954_v25 }
 0x354   : > { %1114 = vrot.lane.b32.xlu1 %v1111_v22, %s3373_s13 }
 0x358   : > { %1130 = vrot.lane.b32.xlu1 %v3950_v23, %s3373_s13  ;;  %s2597_s13 = sshll.u32 %s3438_s28, 8 }
 0x3a8   : > { %v3956_v30 = vpop.permute.xlu0 %1088 }
 0x3a9   : > { %v1152_v22 = vmul.f32 %v3956_v30, %v3884_v47  ;;  %v1094_v25 = vmul.f32 %v3956_v30, %v3893_v54 }
 0x3aa   : > { %v3958_v31 = vpop.permute.xlu1 %1090 }
 0x3ab   : > { %v1153_v33 = vmul.f32 %v3958_v31, %v3886_v51 }
 0x3ac   : > { %v1027_v36 = vpop.permute.xlu0 %1026 }
 0x3ad   : > { %v1032_v40 = vmul.f32 %v1027_v36, %v3893_v54  ;;  %v1136_v58 = vmul.f32 %v1027_v36, %v3884_v47 }
 0x3ae   : > { %v1043_v37 = vpop.permute.xlu1 %1042 }
 0x3af   : > { %vm1046_vm3 = vcmp.ne.s32.totalorder %v1043_v37, 0  ;;  %v1095_v37 = vmul.f32 %v3958_v31, %v3917_v12 }
 0x3b0   : > { %vm1048_vm4 = vmand %vm3895_vm8, %vm1046_vm3  ;;  %v1053_v38 = vpop.permute.xlu0 %1052 }
 0x3b1   : > { %vm1056_vm6 = vcmp.ne.s32.totalorder %v1053_v38, 0  ;;  %vm1140_vm5 = vmand %vm3911_vm2, %vm1046_vm3 }
 0x3b2   : > { %vm1058_vm7 = vmand %vm1048_vm4, %vm1056_vm6  ;;  %v3965_v41 = vpop.permute.xlu1 %1028 }
 0x3b3   : > { %v3967_v43 = vsel %vm1058_vm7, %v1032_v40, 0.0  ;;  %vm1142_vm9 = vmand %vm1140_vm5, %vm1056_vm6  ;;  %v1033_v5 = vmul.f32 %v3965_v41, %v3917_v12  ;;  %v1137_v54 = vmul.f32 %v3965_v41, %v3886_v51 }
 0x3b4   : > { %1172 = vperm.xlu1 %3203, %v3967_v43   ;;  %v3970_v44 = vpop.permute.xlu0 %1100  ;;  %v4003_v60 = vsel %vm1142_vm9, %v1136_v58, 0.0 }
 0x3b5   : > { %vm1104_vm9 = vcmp.ne.s32.totalorder %v3970_v44, 0 }
 0x3b6   : > { %v3972_v45 = vpop.permute.xlu1 %1044 }
 0x3b7   : > { %vm1047_vm4 = vcmp.ne.s32.totalorder %v3972_v45, 0 }
 0x3b8   : > { %v1079_v49 = vpop.permute.xlu0 %1078  ;;  %3204 = vset.pattern.permute.xlu1 %v4939_v1  ;;  %vm1049_vm7 = vmand %vm3904_vm12, %vm1047_vm4 }
 0x3b9   : > { %v3978_v50 = vadd.s32 %v1079_v49, %v3974_v46  ;;  %v3990_v55 = vadd.s32 %v3982_v53, %v1079_v49 }
 0x3ba   : > { %v3980_v52 = vpop.permute.xlu1 %1054 }
 0x3bb   : > { %1293 = vperm.xlu1 %3204, %v3978_v50   ;;  %1163 = vperm.xlu0 %3202, %v3978_v50   ;;  %vm1057_vm6 = vcmp.ne.s32.totalorder %v3980_v52, 0 }
 0x3bc   : > { %vm1059_vm5 = vmand %vm1049_vm7, %vm1057_vm6  ;;  %v1113_v15 = vpop.permute.xlu0 %1112 }
 0x3bd   : > { %v4043_v6 = vsel %vm1059_vm5, %v1033_v5, 0.0  ;;  %vm1154_vm7 = vmand %vm3911_vm2, %vm1104_vm9 }
 0x3be   : > { %v3992_v57 = vpop.permute.xlu1 %1102  ;;  %vm1106_vm2 = vmand %vm3895_vm8, %vm1104_vm9 }
 0x3bf   : > { %vm1105_vm11 = vcmp.ne.s32.totalorder %v3992_v57, 0  ;;  %1301 = vperm.xlu1 %3204, %v3967_v43   ;;  %1205 = vperm.xlu0 %3202, %v3990_v55   ;;  %vm1141_vm8 = vmand %vm3921_vm1, %vm1047_vm4 }
 0x3c0   : > { %vm1155_vm10 = vmand %vm3921_vm1, %vm1105_vm11  ;;  %v1129_v11 = vpop.permute.xlu0 %1128 }
 0x3c1   : > { %v4087_v47 = vadd.s32 %v1129_v11, %v3974_v46  ;;  %vm1143_vm9 = vmand %vm1141_vm8, %vm1057_vm6  ;;  %v4128_v62 = vadd.s32 %v3982_v53, %v1129_v11 }
 0x3c2   : > { %v1081_v61 = vpop.permute.xlu1 %1080  ;;  %v4121_v56 = vsel %vm1143_vm9, %v1137_v54, 0.0  ;;  %vm1107_vm1 = vmand %vm3904_vm12, %vm1105_vm11 }
 0x3c3   : > { %1331 = vperm.xlu1 %3204, %v3990_v55   ;;  %1214 = vperm.xlu0 %3202, %v4003_v60   ;;  %v4049_v10 = vadd.s32 %v1081_v61, %v1077_v9  ;;  %v4062_v18 = vadd.s32 %v4057_v17, %v1081_v61 }
 0x3c6   : > { %v4007_v63 = vpop.permute.xlu1 %1114 }
 0x3c7   : > { %vm1117_vm15 = vcmp.ne.s32.totalorder %v4007_v63, 0  ;;  %3206 = vset.pattern.permute.xlu1 %v4934_v19  ;;  %3205 = vset.pattern.permute.xlu0 %v4939_v1 }
 0x3c8   : > { %1431 = vperm.xlu1 %3206, %v3967_v43   ;;  %1339 = vperm.xlu0 %3205, %v4003_v60   ;;  %vm4016_vm3 = vmand %vm1155_vm10, %vm1117_vm15  ;;  %vm1116_vm10 = vcmp.ne.s32.totalorder %v1113_v15, 0 }
 0x3c9   : > { %vm1156_vm5 = vmand %vm1154_vm7, %vm1116_vm10 }
 0x3ca   : > { %v4075_v23 = vsel %vm1156_vm5, %v1152_v22, 0.0  ;;  %vm1118_vm7 = vmand %vm1106_vm2, %vm1116_vm10  ;;  %v1131_v30 = vpop.permute.xlu1 %1130 }
 0x3cb   : > { %v4098_v26 = vsel %vm1118_vm7, %v1094_v25, 0.0  ;;  %v4130_v36 = vadd.s32 %v1131_v30, %v1077_v9  ;;  %vm1119_vm4 = vmand %vm1107_vm1, %vm1117_vm15  ;;  %v4149_v59 = vadd.s32 %v4057_v17, %v1131_v30 }
 0x3cc   : > { %3207 = vset.pattern.permute.xlu1 %v4935_v21  ;;  %3208 = vset.pattern.permute.xlu0 %v4935_v21  ;;  %v4143_v38 = vsel %vm1119_vm4, %v1095_v37, 0.0 }
 0x3cd   : > { %1553 = vperm.xlu1 %3207, %v3978_v50   ;;  %1599 = vperm.xlu0 %3208, %v4003_v60  }
 0x3d1   : > { %1561 = vperm.xlu1 %3207, %v3967_v43   ;;  %3211 = vset.pattern.permute.xlu0 %v4948_v28 }
 0x3d2   : > { %1859 = vperm.xlu0 %3211, %v4003_v60  }
 0x3d5   : > { %1591 = vperm.xlu1 %3207, %v3990_v55  }
 0x3d6   : > { %3212 = vset.pattern.permute.xlu0 %v4944_v32 }
 0x3d7   : > { %1943 = vperm.xlu0 %3212, %v3978_v50  }
 0x3d9   : > { %3209 = vset.pattern.permute.xlu1 %v4941_v27 }
 0x3da   : > { %1691 = vperm.xlu1 %3209, %v3967_v43  }
 0x3db   : > { %3216 = vset.pattern.permute.xlu0 %v4937_v2 }
 0x3dc   : > { %1177 = vperm.xlu0 %3216, %v4043_v6  }
 0x3de   : > { %3210 = vset.pattern.permute.xlu1 %v4948_v28 }
 0x3df   : > { %1813 = vperm.xlu1 %3210, %v3978_v50  }
 0x3e0   : > { %3217 = vset.pattern.permute.xlu0 %v4939_v1 }
 0x3e1   : > { %1296 = vperm.xlu0 %3217, %v4049_v10  }
 0x3e3   : > { %1821 = vperm.xlu1 %3210, %v3967_v43  }
 0x3e5   : > { %1305 = vperm.xlu0 %3217, %v4043_v6  }
 0x3e7   : > { %1851 = vperm.xlu1 %3210, %v3990_v55  }
 0x3e9   : > { %1334 = vperm.xlu0 %3217, %v4062_v18  }
 0x3eb   : > { %3213 = vset.pattern.permute.xlu1 %v4944_v32 }
 0x3ec   : > { %1951 = vperm.xlu1 %3213, %v3967_v43  }
 0x3ed   : > { %3223 = vset.pattern.permute.xlu0 %v4937_v2 }
 0x3ee   : > { %1236 = vperm.xlu0 %3223, %v4075_v23  }
 0x3f0   : > { %3214 = vset.pattern.permute.xlu1 %v4946_v34 }
 0x3f1   : > { %2073 = vperm.xlu1 %3214, %v3978_v50  }
 0x3f2   : > { %3225 = vset.pattern.permute.xlu0 %v4935_v21 }
 0x3f3   : > { %1556 = vperm.xlu0 %3225, %v4049_v10  }
 0x3f5   : > { %3215 = vset.pattern.permute.xlu1 %v4937_v2 }
 0x3f6   : > { %1166 = vperm.xlu1 %3215, %v4049_v10  }
 0x3f7   : > { %1565 = vperm.xlu0 %3225, %v4043_v6  }
 0x3fa   : > { %1183 = vperm.xlu1 %3215, %v4087_v47  }
 0x3fb   : > { %1594 = vperm.xlu0 %3225, %v4062_v18  }
 0x3fe   : > { %1192 = vperm.xlu1 %3215, %v4098_v26  }
 0x3ff   : > { %3232 = vset.pattern.permute.xlu0 %v4948_v28 }
 0x400   : > { %1816 = vperm.xlu0 %3232, %v4049_v10  }
 0x402   : > { %3218 = vset.pattern.permute.xlu1 %v4939_v1 }
 0x403   : > { %1311 = vperm.xlu1 %3218, %v4087_v47  }
 0x404   : > { %1825 = vperm.xlu0 %3232, %v4043_v6  }
 0x407   : > { %3219 = vset.pattern.permute.xlu1 %v4937_v2 }
 0x408   : > { %1854 = vperm.xlu0 %3232, %v4062_v18   ;;  %1208 = vperm.xlu1 %3219, %v4062_v18  }
 0x40c   : > { %3239 = vset.pattern.permute.xlu0 %v4944_v32  ;;  %3220 = vset.pattern.permute.xlu1 %v4939_v1 }
 0x40d   : > { %1955 = vperm.xlu0 %3239, %v4043_v6   ;;  %1319 = vperm.xlu1 %3220, %v4098_v26  }
 0x411   : > { %3240 = vset.pattern.permute.xlu0 %v4946_v34  ;;  %3221 = vset.pattern.permute.xlu1 %v4937_v2 }
 0x412   : > { %2076 = vperm.xlu0 %3240, %v4049_v10   ;;  %1219 = vperm.xlu1 %3221, %v4121_v56  }
 0x416   : > { %3242 = vset.pattern.permute.xlu0 %v4937_v2  ;;  %1227 = vperm.xlu1 %3221, %v4128_v62  }
 0x417   : > { %1186 = vperm.xlu0 %3242, %v4130_v36  }
 0x41a   : > { %3222 = vset.pattern.permute.xlu1 %v4939_v1 }
 0x41b   : > { %1197 = vperm.xlu0 %3242, %v4143_v38   ;;  %1343 = vperm.xlu1 %3222, %v4121_v56  }
 0x41f   : > { %3245 = vset.pattern.permute.xlu0 %v4939_v1  ;;  %1351 = vperm.xlu1 %3222, %v4128_v62  }
 0x420   : > { %1354 = vperm.xlu0 %3245, %v4149_v59  }
 0x423   : > { %1359 = vperm.xlu1 %3222, %v4075_v23  }
 0x424   : > { %3249 = vset.pattern.permute.xlu0 %v4946_v34 }
 0x425   : > { %2085 = vperm.xlu0 %3249, %v4043_v6  }
 0x427   : > { %3224 = vset.pattern.permute.xlu1 %v4934_v19 }
 0x428   : > { %1426 = vperm.xlu1 %3224, %v4049_v10  }
 0x429   : > { %3250 = vset.pattern.permute.xlu0 %v4934_v19 }
 0x42a   : > { %1423 = vperm.xlu0 %3250, %v3978_v50  }
 0x42c   : > { %1441 = vperm.xlu1 %3224, %v4087_v47  }
 0x42e   : > { %1435 = vperm.xlu0 %3250, %v4043_v6  }
 0x430   : > { %1449 = vperm.xlu1 %3224, %v4098_v26  }
 0x432   : > { %1461 = vperm.xlu0 %3250, %v3990_v55  }
 0x433   : > { %v4167_v12 = vpop.permute.xlu1 %1172 }
 0x434   : > { %3226 = vset.pattern.permute.xlu1 %v4935_v21 }
 0x435   : > { %1571 = vperm.xlu1 %3226, %v4087_v47  }
 0x436   : > { %1469 = vperm.xlu0 %3250, %v4003_v60  }
 0x439   : > { %3227 = vset.pattern.permute.xlu1 %v4934_v19 }
 0x43a   : > { %v4171_v40 = vpop.permute.xlu1 %1293  ;;  %1489 = vperm.xlu0 %3250, %v4075_v23   ;;  %1464 = vperm.xlu1 %3227, %v4062_v18   ;;  %v4175_v41 = vpop.permute.xlu0 %1163 }
 0x43b   : > { %vm1298_vm2 = vcmp.eq.s32.totalorder %v3612_v39, %v4171_v40 }
 0x43e   : > { %v4177_v42 = vpop.permute.xlu1 %1301  ;;  %1444 = vperm.xlu0 %3250, %v4130_v36   ;;  %3228 = vset.pattern.permute.xlu1 %v4935_v21  ;;  %v4181_v44 = vpop.permute.xlu0 %1205 }
 0x43f   : > { %1579 = vperm.xlu1 %3228, %v4098_v26   ;;  %vm1210_vm1 = vcmp.eq.s32.totalorder %v3612_v39, %v4181_v44 }
 0x442   : > { %v4184_v45 = vpop.permute.xlu1 %1331  ;;  %1453 = vperm.xlu0 %3250, %v4143_v38   ;;  %v4187_v46 = vpop.permute.xlu0 %1214 }
 0x443   : > { %3229 = vset.pattern.permute.xlu1 %v4934_v19  ;;  %v1222_v40 = vsel %vm1210_vm1, %v4187_v46, 0.0 }
 0x444   : > { %1473 = vperm.xlu1 %3229, %v4121_v56  }
 0x446   : > { %3253 = vset.pattern.permute.xlu0 %v4935_v21 }
 0x447   : > { %v4192_v48 = vpop.permute.xlu1 %1431  ;;  %1614 = vperm.xlu0 %3253, %v4149_v59   ;;  %v4195_v49 = vpop.permute.xlu0 %1339 }
 0x448   : > { %4966 = vst [vmem:[#allocation8_spill] sm:$0xff] %v4192_v48  ;;  %1481 = vperm.xlu1 %3229, %v4128_v62  }
 0x44b   : > { %3257 = vset.pattern.permute.xlu0 %v4946_v34 }
 0x44c   : > { %v4199_v52 = vpop.permute.xlu1 %1553  ;;  %2114 = vperm.xlu0 %3257, %v4062_v18   ;;  %3230 = vset.pattern.permute.xlu1 %v4935_v21  ;;  %v4203_v53 = vpop.permute.xlu0 %1599 }
 0x44d   : > { %4967 = vst [vmem:[#allocation9_spill] sm:$0xff] %v4199_v52  ;;  %4968 = vst [vmem:[#allocation10_spill] sm:$0xff] %v4203_v53  ;;  %1603 = vperm.xlu1 %3230, %v4121_v56   ;;  %v4343_v52 = vsel %vm4016_vm3, %v1153_v33, 0.0  ;;  %vm1168_vm3 = vcmp.eq.s32.totalorder %v3612_v39, %v4175_v41 }
 0x450   : > { %v4206_v57 = vpop.permute.xlu1 %1561  ;;  %2119 = vperm.xlu0 %3257, %v4003_v60  }
 0x451   : > { %4969 = vst [vmem:[#allocation11_spill] sm:$0xff] %v4206_v57  ;;  %1611 = vperm.xlu1 %3230, %v4128_v62   ;;  %v4210_v58 = vpop.permute.xlu0 %1859 }
 0x452   : > { %4970 = vst [vmem:[#allocation12_spill] sm:$0xff] %v4210_v58  ;;  %v4984_v58 = vmov 6  }
 0x454   : > { %v4212_v61 = vpop.permute.xlu1 %1591  ;;  %3259 = vset.pattern.permute.xlu0 %v4941_v27 }
 0x455   : > { %4971 = vst [vmem:[#allocation13_spill] sm:$0xff] %v4212_v61  ;;  %1683 = vperm.xlu0 %3259, %v3978_v50   ;;  %1619 = vperm.xlu1 %3230, %v4075_v23   ;;  %v4989_v61 = vmov 0  }
 0x456   : > { %v4217_v63 = vpop.permute.xlu0 %1943 }
 0x457   : > { %4972 = vst [vmem:[#allocation14_spill] sm:$0xff] %v4217_v63  ;;  %v4983_v63 = vmov 7  }
 0x459   : > { %v4219_v3 = vpop.permute.xlu1 %1691  ;;  %1695 = vperm.xlu0 %3259, %v4043_v6   ;;  %3231 = vset.pattern.permute.xlu1 %v4941_v27 }
 0x45a   : > { %4973 = vst [vmem:[#allocation15_spill] sm:$0xff] %v4219_v3  ;;  %1686 = vperm.xlu1 %3231, %v4049_v10  }
 0x45b   : > { %v4224_v5 = vpop.permute.xlu0 %1177 }
 0x45d   : > { %1721 = vperm.xlu0 %3259, %v3990_v55  }
 0x45e   : > { %v4227_v9 = vpop.permute.xlu1 %1813  ;;  %1701 = vperm.xlu1 %3231, %v4087_v47  }
 0x45f   : > { %4974 = vst [vmem:[#allocation16_spill] sm:$0xff] %v4227_v9 }
 0x460   : > { %v4230_v14 = vpop.permute.xlu0 %1296 }
 0x461   : > { %1729 = vperm.xlu0 %3259, %v4003_v60  }
 0x462   : > { %v4233_v15 = vpop.permute.xlu1 %1821  ;;  %1709 = vperm.xlu1 %3231, %v4098_v26  }
 0x463   : > { %4975 = vst [vmem:[#allocation17_spill] sm:$0xff] %v4233_v15 }
 0x464   : > { %v4236_v17 = vpop.permute.xlu0 %1305 }
 0x465   : > { %1749 = vperm.xlu0 %3259, %v4075_v23  }
 0x466   : > { %v4239_v22 = vpop.permute.xlu1 %1851  ;;  %3233 = vset.pattern.permute.xlu1 %v4948_v28 }
 0x467   : > { %4976 = vst [vmem:[#allocation18_spill] sm:$0xff] %v4239_v22  ;;  %1831 = vperm.xlu1 %3233, %v4087_v47   ;;  %v4986_v22 = vmov 8  }
 0x468   : > { %v4243_v11 = vpop.permute.xlu0 %1334 }
 0x469   : > { %1704 = vperm.xlu0 %3259, %v4130_v36  }
 0x46b   : > { %v4246_v25 = vpop.permute.xlu1 %1951  ;;  %3234 = vset.pattern.permute.xlu1 %v4941_v27 }
 0x46c   : > { %4977 = vst [vmem:[#allocation19_spill] sm:$0xff] %v4246_v25  ;;  %1724 = vperm.xlu1 %3234, %v4062_v18  }
 0x46d   : > { %1713 = vperm.xlu0 %3259, %v4143_v38   ;;  %v4251_v54 = vpop.permute.xlu0 %1236 }
 0x470   : > { %v4253_v30 = vpop.permute.xlu1 %2073  ;;  %3235 = vset.pattern.permute.xlu1 %v4948_v28 }
 0x471   : > { %3262 = vset.pattern.permute.xlu0 %v4948_v28  ;;  %1839 = vperm.xlu1 %3235, %v4098_v26  }
 0x472   : > { %1874 = vperm.xlu0 %3262, %v4149_v59   ;;  %v4259_v37 = vpop.permute.xlu0 %1556 }
 0x473   : > { %4978 = vst [vmem:[#allocation20_spill] sm:$0xff] %v4259_v37 }
 0x475   : > { %v4261_v7 = vpop.permute.xlu1 %1166  ;;  %3236 = vset.pattern.permute.xlu1 %v4941_v27 }
 0x476   : > { %3263 = vset.pattern.permute.xlu0 %v4944_v32  ;;  %1733 = vperm.xlu1 %3236, %v4121_v56   ;;  %v4266_v19 = vpop.permute.xlu0 %1565  ;;  %vm1169_vm6 = vcmp.eq.s32.totalorder %v3612_v39, %v4261_v7 }
 0x477   : > { %4979 = vst [vmem:[#allocation21_spill] sm:$0xff] %v4266_v19  ;;  %1981 = vperm.xlu0 %3263, %v3990_v55   ;;  %v1181_v41 = vsel %vm1169_vm6, %v4224_v5, 0.0 }
 0x479   : > { %v4269_v21 = vpop.permute.xlu1 %1183 }
 0x47a   : > { %1741 = vperm.xlu1 %3236, %v4128_v62   ;;  %v4272_v2 = vpop.permute.xlu0 %1594  ;;  %vm1188_vm10 = vcmp.eq.s32.totalorder %v3612_v39, %v4269_v21 }
 0x47b   : > { %4980 = vst [vmem:[#allocation22_spill] sm:$0xff] %v4272_v2  ;;  %1989 = vperm.xlu0 %3263, %v4003_v60  }
 0x47d   : > { %v4275_v1 = vpop.permute.xlu1 %1192 }
 0x47e   : > { %3237 = vset.pattern.permute.xlu1 %v4948_v28 }
 0x47f   : > { %2009 = vperm.xlu0 %3263, %v4075_v23   ;;  %1863 = vperm.xlu1 %3237, %v4121_v56   ;;  %v1817_v27 = vpop.permute.xlu0 %1816 }
 0x480   : > { %vm1819_vm12 = vcmp.eq.s32.totalorder %v3612_v39, %v1817_v27 }
 0x482   : > { %v4280_v35 = vpop.permute.xlu1 %1311 }
 0x483   : > { %1964 = vperm.xlu0 %3263, %v4130_v36   ;;  %1871 = vperm.xlu1 %3237, %v4128_v62   ;;  %v1826_v32 = vpop.permute.xlu0 %1825  ;;  %vm1316_vm8 = vcmp.eq.s32.totalorder %v3612_v39, %v4280_v35 }
 0x484   : > { %v4285_v34 = vsel %vm1819_vm12, %v1826_v32, 0.0  ;;  %vm1299_vm12 = vcmp.eq.s32.totalorder %v3612_v39, %v4230_v14 }
 0x485   : > { %4981 = vst [vmem:[#allocation23_spill] sm:$0xff] %v4285_v34 }
 0x487   : > { %1973 = vperm.xlu0 %3263, %v4143_v38   ;;  %v4288_v25 = vpop.permute.xlu1 %1208  ;;  %1879 = vperm.xlu1 %3237, %v4075_v23   ;;  %v4291_v28 = vpop.permute.xlu0 %1854 }
 0x488   : > { %4982 = vst [vmem:[#allocation24_spill] sm:$0xff] %v4291_v28  ;;  %vm1211_vm4 = vcmp.eq.s32.totalorder %v3612_v39, %v4288_v25 }
 0x48b   : > { %3267 = vset.pattern.permute.xlu0 %v4983_v63  ;;  %3238 = vset.pattern.permute.xlu1 %v4984_v58 }
 0x48c   : > { %2134 = vperm.xlu0 %3267, %v4149_v59   ;;  %v4296_v27 = vpop.permute.xlu1 %1319  ;;  %1946 = vperm.xlu1 %3238, %v4049_v10   ;;  %v4299_v32 = vpop.permute.xlu0 %1955 }
 0x48d   : > { %4985 = vst [vmem:[#allocation25_spill] sm:$0xff] %v4299_v32 }
 0x490   : > { %3269 = vset.pattern.permute.xlu0 %v4986_v22  ;;  %1961 = vperm.xlu1 %3238, %v4087_v47  }
 0x491   : > { %v4303_v15 = vpop.permute.xlu1 %1219  ;;  %2203 = vperm.xlu0 %3269, %v3978_v50   ;;  %v2077_v9 = vpop.permute.xlu0 %2076  ;;  %v4987_v50 = vmov 1  }
 0x492   : > { %vm2079_vm11 = vcmp.eq.s32.totalorder %v3612_v39, %v2077_v9  ;;  %v1223_v35 = vsel %vm1211_vm4, %v4303_v15, 0.0 }
 0x494   : > { %1969 = vperm.xlu1 %3238, %v4098_v26  }
 0x495   : > { %v4307_v3 = vpop.permute.xlu1 %1227  ;;  %2215 = vperm.xlu0 %3269, %v4043_v6  }
 0x496   : > { %v4310_v34 = vpop.permute.xlu0 %1186  ;;  %vm1232_vm7 = vcmp.eq.s32.totalorder %v3612_v39, %v4307_v3 }
 0x497   : > { %vm1189_vm5 = vcmp.eq.s32.totalorder %v3612_v39, %v4310_v34 }
 0x498   : > { %3241 = vset.pattern.permute.xlu1 %v4983_v63 }
 0x499   : > { %2091 = vperm.xlu1 %3241, %v4087_v47   ;;  %2244 = vperm.xlu0 %3269, %v4062_v18  }
 0x49a   : > { %v4315_v28 = vpop.permute.xlu1 %1343  ;;  %v4317_v32 = vpop.permute.xlu0 %1197 }
 0x49d   : > { %3243 = vset.pattern.permute.xlu1 %v4987_v50  ;;  %2253 = vperm.xlu0 %3269, %v4121_v56  }
 0x49e   : > { %1314 = vperm.xlu1 %3243, %v4130_v36   ;;  %v4322_v2 = vpop.permute.xlu1 %1351 }
 0x49f   : > { %v4324_v6 = vpop.permute.xlu0 %1354  ;;  %vm1356_vm6 = vcmp.eq.s32.totalorder %v3612_v39, %v4322_v2 }
 0x4a1   : > { %2224 = vperm.xlu0 %3269, %v4130_v36  }
 0x4a2   : > { %1323 = vperm.xlu1 %3243, %v4143_v38   ;;  %v4328_v53 = vpop.permute.xlu1 %1359 }
 0x4a4   : > { %v2086_v19 = vpop.permute.xlu0 %2085 }
 0x4a5   : > { %v4331_v37 = vsel %vm2079_vm11, %v2086_v19, 0.0  ;;  %2233 = vperm.xlu0 %3269, %v4143_v38  }
 0x4a6   : > { %4988 = vst [vmem:[#allocation26_spill] sm:$0xff] %v4331_v37  ;;  %3244 = vset.pattern.permute.xlu1 %v4989_v61 }
 0x4a7   : > { %1230 = vperm.xlu1 %3244, %v4149_v59   ;;  %v4336_v57 = vpop.permute.xlu1 %1426 }
 0x4a8   : > { %vm1429_vm1 = vcmp.eq.s32.totalorder %v3612_v39, %v4336_v57 }
 0x4a9   : > { %2264 = vperm.xlu0 %3269, %v4149_v59  }
 0x4ab   : > { %1241 = vperm.xlu1 %3244, %v4343_v52   ;;  %v4346_v19 = vpop.permute.xlu1 %1441 }
 0x4ad   : > { %2273 = vperm.xlu0 %3269, %v4343_v52  }
 0x4af   : > { %3246 = vset.pattern.permute.xlu1 %v4987_v50  ;;  %v4350_v9 = vpop.permute.xlu1 %1449 }
 0x4b0   : > { %4990 = vst [vmem:[#allocation27_spill] sm:$0xff] %v4350_v9  ;;  %1363 = vperm.xlu1 %3246, %v4343_v52  }
 0x4b4   : > { %3247 = vset.pattern.permute.xlu1 %v4984_v58  ;;  %v4354_v51 = vpop.permute.xlu1 %1571 }
 0x4b5   : > { %4991 = vst [vmem:[#allocation28_spill] sm:$0xff] %v4354_v51  ;;  %1984 = vperm.xlu1 %3247, %v4062_v18   ;;  %v4997_v18 = vmov 2  }
 0x4b9   : > { %3248 = vset.pattern.permute.xlu1 %v4983_v63  ;;  %v4358_v33 = vpop.permute.xlu1 %1464 }
 0x4ba   : > { %4992 = vst [vmem:[#allocation29_spill] sm:$0xff] %v4358_v33  ;;  %2081 = vperm.xlu1 %3248, %v3967_v43  }
 0x4be   : > { %2099 = vperm.xlu1 %3248, %v4098_v26   ;;  %v4362_v31 = vpop.permute.xlu1 %1579 }
 0x4bf   : > { %4993 = vst [vmem:[#allocation30_spill] sm:$0xff] %v4362_v31  ;;  %v4378_v31 = vpop.permute.xlu0 %1423 }
 0x4c2   : > { %3251 = vset.pattern.permute.xlu1 %v4994_v0 }
 0x4c3   : > { %1574 = vperm.xlu1 %3251, %v4130_v36   ;;  %v4366_v50 = vpop.permute.xlu1 %1473 }
 0x4c4   : > { %4995 = vst [vmem:[#allocation31_spill] sm:$0xff] %v4366_v50  ;;  %v4384_v50 = vpop.permute.xlu0 %1435 }
 0x4c5   : > { %5001 = vst [vmem:[#allocation36_spill] sm:$0xff] %v4384_v50 }
 0x4c7   : > { %1583 = vperm.xlu1 %3251, %v4143_v38   ;;  %v4369_v61 = vpop.permute.xlu1 %1481 }
 0x4c8   : > { %4996 = vst [vmem:[#allocation32_spill] sm:$0xff] %v4369_v61 }
 0x4cb   : > { %3252 = vset.pattern.permute.xlu1 %v4997_v18 }
 0x4cc   : > { %1484 = vperm.xlu1 %3252, %v4149_v59   ;;  %v4373_v37 = vpop.permute.xlu1 %1603 }
 0x4cd   : > { %4998 = vst [vmem:[#allocation33_spill] sm:$0xff] %v4373_v37  ;;  %v4390_v37 = vpop.permute.xlu0 %1461 }
 0x4ce   : > { %5003 = vst [vmem:[#allocation38_spill] sm:$0xff] %v4390_v37 }
 0x4d0   : > { %1493 = vperm.xlu1 %3252, %v4343_v52   ;;  %v4376_v51 = vpop.permute.xlu1 %1611 }
 0x4d1   : > { %4999 = vst [vmem:[#allocation34_spill] sm:$0xff] %v4376_v51 }
 0x4d4   : > { %3254 = vset.pattern.permute.xlu1 %v4994_v0  ;;  %v4381_v33 = vpop.permute.xlu1 %1619 }
 0x4d5   : > { %5000 = vst [vmem:[#allocation35_spill] sm:$0xff] %v4381_v33  ;;  %1623 = vperm.xlu1 %3254, %v4343_v52   ;;  %v4398_v33 = vpop.permute.xlu0 %1469 }
 0x4d6   : > { %5006 = vst [vmem:[#allocation41_spill] sm:$0xff] %v4398_v33  ;;  %v5012_v33 = vmov 4  }
 0x4d9   : > { %3255 = vset.pattern.permute.xlu1 %v4984_v58  ;;  %v4387_v18 = vpop.permute.xlu1 %1686  ;;  %v4405_v9 = vpop.permute.xlu0 %1489 }
 0x4da   : > { %5002 = vst [vmem:[#allocation37_spill] sm:$0xff] %v4387_v18  ;;  %1993 = vperm.xlu1 %3255, %v4121_v56   ;;  %v5008_v18 = vmov 5   ;;  %5009 = vst [vmem:[#allocation43_spill] sm:$0xff] %v4405_v9 }
 0x4dd   : > { %v4392_v61 = vpop.permute.xlu1 %1701  ;;  %v4411_v37 = vpop.permute.xlu0 %1444 }
 0x4de   : > { %5004 = vst [vmem:[#allocation39_spill] sm:$0xff] %v4392_v61  ;;  %3256 = vset.pattern.permute.xlu1 %v4983_v63 }
 0x4df   : > { %2111 = vperm.xlu1 %3256, %v3990_v55  }
 0x4e1   : > { %v4396_v0 = vpop.permute.xlu1 %1709  ;;  %v4417_v50 = vpop.permute.xlu0 %1453 }
 0x4e2   : > { %5005 = vst [vmem:[#allocation40_spill] sm:$0xff] %v4396_v0 }
 0x4e3   : > { %3258 = vset.pattern.permute.xlu1 %v4984_v58 }
 0x4e4   : > { %2001 = vperm.xlu1 %3258, %v4128_v62  }
 0x4e6   : > { %v4402_v51 = vpop.permute.xlu1 %1831 }
 0x4e7   : > { %5007 = vst [vmem:[#allocation42_spill] sm:$0xff] %v4402_v51 }
 0x4e8   : > { %3260 = vset.pattern.permute.xlu1 %v5008_v18 }
 0x4e9   : > { %1834 = vperm.xlu1 %3260, %v4130_v36  }
 0x4eb   : > { %v4408_v61 = vpop.permute.xlu1 %1724 }
 0x4ec   : > { %5010 = vst [vmem:[#allocation44_spill] sm:$0xff] %v4408_v61  ;;  %v4425_v61 = vpop.permute.xlu0 %1614 }
 0x4ed   : > { %1843 = vperm.xlu1 %3260, %v4143_v38   ;;  %5015 = vst [vmem:[#allocation48_spill] sm:$0xff] %v4425_v61 }
 0x4f0   : > { %v4413_v0 = vpop.permute.xlu1 %1839 }
 0x4f1   : > { %5011 = vst [vmem:[#allocation45_spill] sm:$0xff] %v4413_v0  ;;  %3261 = vset.pattern.permute.xlu1 %v5012_v33  ;;  %v4432_v33 = vpop.permute.xlu0 %2114 }
 0x4f2   : > { %1744 = vperm.xlu1 %3261, %v4149_v59   ;;  %5017 = vst [vmem:[#allocation50_spill] sm:$0xff] %v4432_v33 }
 0x4f5   : > { %v4419_v51 = vpop.permute.xlu1 %1733 }
 0x4f6   : > { %5013 = vst [vmem:[#allocation46_spill] sm:$0xff] %v4419_v51  ;;  %1753 = vperm.xlu1 %3261, %v4343_v52  }
 0x4f9   : > { %v4422_v9 = vpop.permute.xlu1 %1741 }
 0x4fa   : > { %5014 = vst [vmem:[#allocation47_spill] sm:$0xff] %v4422_v9  ;;  %3264 = vset.pattern.permute.xlu1 %v5008_v18  ;;  %v4439_v9 = vpop.permute.xlu0 %2119 }
 0x4fb   : > { %1883 = vperm.xlu1 %3264, %v4343_v52   ;;  %5019 = vst [vmem:[#allocation52_spill] sm:$0xff] %v4439_v9 }
 0x4fe   : > { %v4428_v48 = vpop.permute.xlu1 %1863 }
 0x4ff   : > { %5016 = vst [vmem:[#allocation49_spill] sm:$0xff] %v4428_v48  ;;  %3265 = vset.pattern.permute.xlu1 %v4983_v63  ;;  %v4445_v48 = vpop.permute.xlu0 %1683 }
 0x500   : > { %2123 = vperm.xlu1 %3265, %v4121_v56  }
 0x502   : > { %v4434_v0 = vpop.permute.xlu1 %1871 }
 0x503   : > { %v4449_v56 = vpop.permute.xlu0 %1695 }
 0x504   : > { %2131 = vperm.xlu1 %3265, %v4128_v62  }
 0x506   : > { %v4437_v51 = vpop.permute.xlu1 %1879 }
 0x507   : > { %5018 = vst [vmem:[#allocation51_spill] sm:$0xff] %v4437_v51  ;;  %v4457_v9 = vpop.permute.xlu0 %1721 }
 0x508   : > { %2094 = vperm.xlu1 %3265, %v4130_v36  }
 0x50b   : > { %v4442_v18 = vpop.permute.xlu1 %1946 }
 0x50c   : > { %2103 = vperm.xlu1 %3265, %v4143_v38  }
 0x50f   : > { %v1962_v61 = vpop.permute.xlu1 %1961 }
 0x510   : > { %3266 = vset.pattern.permute.xlu1 %v4984_v58  ;;  %vm1966_vm15 = vcmp.eq.s32.totalorder %v3612_v39, %v1962_v61  ;;  %v1200_v61 = vsel %vm1188_vm10, %v4275_v1, 0.0  ;;  %v1308_v1 = vsel %vm1298_vm2, %v4177_v42, 0.0  ;;  %v1244_v42 = vsel %vm1232_vm7, %v4251_v54, 0.0 }
 0x511   : > { %2004 = vperm.xlu1 %3266, %v4149_v59   ;;  %v4462_v59 = vpop.permute.xlu0 %1729  ;;  %v1366_v54 = vsel %vm1356_vm6, %v4328_v53, 0.0  ;;  %vm1357_vm10 = vcmp.eq.s32.totalorder %v3612_v39, %v4324_v6  ;;  %vm2078_vm2 = vcmp.eq.s32.totalorder %v3612_v39, %v4253_v30  ;;  %vm1428_vm7 = vcmp.eq.s32.totalorder %v3612_v39, %v4378_v31  ;;  %v5022_v31 = vld [vmem:[#allocation36_spill] sm:$0xff] }
 0x513   : > { %v1970_v33 = vpop.permute.xlu1 %1969 }
 0x514   : > { %v4452_v51 = vsel %vm1966_vm15, %v1970_v33, 0.0  ;;  %vm1336_vm15 = vcmp.eq.s32.totalorder %v3612_v39, %v4184_v45 }
 0x515   : > { %2013 = vperm.xlu1 %3266, %v4343_v52   ;;  %v4478_v33 = vpop.permute.xlu0 %1749  ;;  %v1346_v15 = vsel %vm1336_vm15, %v4195_v49, 0.0 }
 0x518   : > { %v4455_v36 = vpop.permute.xlu1 %2091 }
 0x519   : > { %3268 = vset.pattern.permute.xlu1 %v4983_v63  ;;  %v1180_v63 = vsel %vm1168_vm3, %v4167_v12, 0.0  ;;  %v4501_v25 = vpop.permute.xlu0 %1704  ;;  %vm1337_vm3 = vcmp.eq.s32.totalorder %v3612_v39, %v4243_v11 }
 0x51a   : > { %2139 = vperm.xlu1 %3268, %v4075_v23   ;;  %v1202_v7 = vadd.f32 %v1200_v61, %v1180_v63 }
 0x51c   : > { %v1224_v3 = vadd.f32 %v1222_v40, %v1202_v7  ;;  %v5026_v40 = vld [vmem:[#allocation32_spill] sm:$0xff] }
 0x51d   : > { %v1315_v38 = vpop.permute.xlu1 %1314 }
 0x51e   : > { %2143 = vperm.xlu1 %3268, %v4343_v52   ;;  %v1201_v52 = vsel %vm1189_vm5, %v4317_v32, 0.0  ;;  %vm1317_vm9 = vcmp.eq.s32.totalorder %v3612_v39, %v1315_v38  ;;  %v1246_v46 = vadd.f32 %v1244_v42, %v1224_v3  ;;  %vm2096_vm5 = vcmp.eq.s32.totalorder %v3612_v39, %v4455_v36  ;;  %v5027_v42 = vld [vmem:[#allocation28_spill] sm:$0xff] }
 0x51f   : > { %v1203_v21 = vadd.f32 %v1201_v52, %v1181_v41  ;;  %v4516_v52 = vpop.permute.xlu0 %1713  ;;  %vm1576_vm15 = vcmp.eq.s32.totalorder %v3612_v39, %v5027_v42 }
 0x521   : > { %v1324_v58 = vpop.permute.xlu1 %1323  ;;  %v1225_v5 = vadd.f32 %v1223_v35, %v1203_v21 }
 0x522   : > { %3270 = vset.pattern.permute.xlu1 %v4986_v22  ;;  %v1327_v12 = vsel %vm1317_vm9, %v1324_v58, 0.0  ;;  %vm1446_vm9 = vcmp.eq.s32.totalorder %v3612_v39, %v4346_v19  ;;  %v5025_v19 = vld [vmem:[#allocation29_spill] sm:$0xff] }
 0x523   : > { %2206 = vperm.xlu1 %3270, %v4049_v10   ;;  %v1326_v10 = vsel %vm1316_vm8, %v4296_v27, 0.0  ;;  %vm1447_vm8 = vcmp.eq.s32.totalorder %v3612_v39, %v4411_v37 }
 0x524   : > { %v1328_v22 = vadd.f32 %v1326_v10, %v1308_v1  ;;  %v1439_v10 = vsel %vm1429_vm1, %v5022_v31, 0.0  ;;  %v5039_v31 = vld [vmem:[#allocation22_spill] sm:$0xff] }
 0x526   : > { %v1231_v34 = vpop.permute.xlu1 %1230 }
 0x527   : > { %2221 = vperm.xlu1 %3270, %v4087_v47   ;;  %v1309_v47 = vsel %vm1299_vm12, %v4236_v17, 0.0  ;;  %vm1233_vm11 = vcmp.eq.s32.totalorder %v3612_v39, %v1231_v34  ;;  %v1347_v17 = vsel %vm1337_vm3, %v4315_v28, 0.0  ;;  %v5020_v28 = vmov 0.0   ;;  %v5021_v34 = vld [vmem:[#allocation8_spill] sm:$0xff] }
 0x528   : > { %v1329_v27 = vadd.f32 %v1327_v12, %v1309_v47  ;;  %v1438_v1 = vsel %vm1428_vm7, %v5021_v34, 0.0  ;;  %v5023_v12 = vld [vmem:[#allocation27_spill] sm:$0xff]  ;;  %vm1467_vm12 = vcmp.eq.s32.totalorder %v3612_v39, %v5025_v19  ;;  %v5028_v47 = vld [vmem:[#allocation41_spill] sm:$0xff]  ;;  %v5038_v34 = vld [vmem:[#allocation10_spill] sm:$0xff]  ;;  %vm1597_vm7 = vcmp.eq.s32.totalorder %v3612_v39, %v5039_v31 }
 0x529   : > { %v1456_v37 = vsel %vm1446_vm9, %v5023_v12, 0.0  ;;  %v5041_v12 = vld [vmem:[#allocation33_spill] sm:$0xff]  ;;  %vm1949_vm9 = vcmp.eq.s32.totalorder %v3612_v39, %v4442_v18 }
 0x52a   : > { %v1242_v44 = vpop.permute.xlu1 %1241  ;;  %v1349_v58 = vadd.f32 %v1347_v17, %v1329_v27  ;;  %v1458_v27 = vadd.f32 %v1456_v37, %v1438_v1  ;;  %v5033_v17 = vld [vmem:[#allocation11_spill] sm:$0xff]  ;;  %v1607_v37 = vsel %vm1597_vm7, %v5041_v12, 0.0 }
 0x52b   : > { %v1245_v32 = vsel %vm1233_vm11, %v1242_v44, 0.0  ;;  %2211 = vperm.xlu1 %3270, %v3967_v43   ;;  %v1348_v43 = vadd.f32 %v1346_v15, %v1328_v22  ;;  %vm1486_vm11 = vcmp.eq.s32.totalorder %v3612_v39, %v5026_v40  ;;  %v5029_v44 = vld [vmem:[#allocation31_spill] sm:$0xff]  ;;  %v5030_v22 = vld [vmem:[#allocation9_spill] sm:$0xff]  ;;  %v5043_v40 = vld [vmem:[#allocation48_spill] sm:$0xff] }
 0x52c   : > { %v1247_v14 = vadd.f32 %v1245_v32, %v1225_v5  ;;  %v1477_v5 = vsel %vm1467_vm12, %v5029_v44, 0.0  ;;  %vm1558_vm6 = vcmp.eq.s32.totalorder %v3612_v39, %v5030_v22  ;;  %v5031_v32 = vld [vmem:[#allocation30_spill] sm:$0xff]  ;;  %v5032_v15 = vld [vmem:[#allocation7_spill] sm:$0xff]  ;;  %vm1617_vm1 = vcmp.eq.s32.totalorder %v3612_v39, %v5043_v40  ;;  %v5044_v22 = vld [vmem:[#allocation25_spill] sm:$0xff] }
 0x52d   : > { %v1368_v11 = vadd.f32 %v1366_v54, %v1348_v43  ;;  %v1568_v54 = vsel %vm1558_vm6, %v5033_v17, 0.0  ;;  %v5035_v43 = vld [vmem:[#allocation20_spill] sm:$0xff]  ;;  %v5053_v12 = vld [vmem:[#allocation47_spill] sm:$0xff]  ;;  %v5056_v40 = vld [vmem:[#allocation45_spill] sm:$0xff] }
 0x52e   : > { %v1248_v38 = vpack.c.bf16 %v1247_v14, %v1246_v46  ;;  %v1586_v46 = vsel %vm1576_vm15, %v5031_v32, 0.0  ;;  %vm1688_vm15 = vcmp.eq.s32.totalorder %v3612_v39, %v4445_v48  ;;  %v5050_v48 = vld [vmem:[#allocation49_spill] sm:$0xff]  ;;  %vm1746_vm7 = vcmp.eq.s32.totalorder %v3612_v39, %v5053_v12 }
 0x52f   : > { %2229 = vperm.xlu1 %3270, %v4098_v26   ;;  %v1364_v45 = vpop.permute.xlu1 %1363  ;;  %v4528_v26 = vpop.permute.xlu0 %1874 }
 0x530   : > { %v1367_v61 = vsel %vm1357_vm10, %v1364_v45, 0.0  ;;  %2957 = vmatmul.mubr.bf16.vlgmr.msra.gmra.mrb[20].mxu0 %v1248_v38  ;;  %v5034_v38 = vld [vmem:[#allocation13_spill] sm:$0xff]  ;;  %v5036_v45 = vld [vmem:[#allocation43_spill] sm:$0xff] }
 0x531   : > { %v1369_v2 = vadd.f32 %v1367_v61, %v1349_v58  ;;  %2981 = vmatpush3.bf16.msra.mxu0 %v3474_v4  ;;  %2996 = vmatprep.mubr.msk.bf16.mxu0 %vm3356_vm0, %v5020_v28  ;;  %vm1596_vm10 = vcmp.eq.s32.totalorder %v3612_v39, %v5034_v38  ;;  %v1496_v58 = vsel %vm1486_vm11, %v5036_v45, 0.0  ;;  %v5037_v61 = vld [vmem:[#allocation21_spill] sm:$0xff] }
 0x532   : > { %2982 = vmatprep.subr.bf16.mxu0 %v5020_v28  ;;  %v1606_v1 = vsel %vm1596_vm10, %v5038_v34, 0.0 }
 0x533   : > { %v1370_v49 = vpack.c.bf16 %v1369_v2, %v1368_v11  ;;  %2241 = vperm.xlu1 %3270, %v3990_v55   ;;  %v4539_v55 = vpop.permute.xlu0 %1981 }
 0x534   : > { %v4523_v53 = vpop.permute.xlu1 %1984 }
 0x535   : > { %2977 = vmatmul.mubr.bf16.vlgmr.msra.gmra.mrb[20].mxu1 %v1370_v49  ;;  %2983 = vmatpush3.bf16.msra.mxu0 %v3491_v8  ;;  %vm1987_vm12 = vcmp.eq.s32.totalorder %v3612_v39, %v4523_v53 }
 0x536   : > { %3001 = vmatpush3.bf16.msra.mxu1 %v3474_v4  ;;  %2984 = vmatprep.subr.bf16.mxu0 %v5020_v28 }
 0x537   : > { %2249 = vperm.xlu1 %3270, %v4003_v60   ;;  %3002 = vmatprep.subr.bf16.mxu1 %v5020_v28  ;;  %v4555_v30 = vpop.permute.xlu0 %1989 }
 0x538   : > { %3016 = vmatprep.mubr.msk.bf16.mxu1 %vm3356_vm0, %v5020_v28 }
 0x539   : > { %v2082_v6 = vpop.permute.xlu1 %2081  ;;  %2985 = vmatpush3.bf16.msra.mxu0 %v3512_v13 }
 0x53a   : > { %3003 = vmatpush3.bf16.msra.mxu1 %v3491_v8  ;;  %2986 = vmatprep.subr.bf16.mxu0 %v5020_v28  ;;  %v2088_v63 = vsel %vm2078_vm2, %v2082_v6, 0.0 }
 0x53b   : > { %2261 = vperm.xlu1 %3270, %v4128_v62   ;;  %3004 = vmatprep.subr.bf16.mxu1 %v5020_v28  ;;  %v4571_v21 = vpop.permute.xlu0 %2009 }
 0x53d   : > { %v2100_v60 = vpop.permute.xlu1 %2099  ;;  %2987 = vmatpush3.bf16.msra.mxu0 %v3528_v16 }
 0x53e   : > { %v2106_v41 = vsel %vm2096_vm5, %v2100_v60, 0.0  ;;  %3005 = vmatpush3.bf16.msra.mxu1 %v3512_v13  ;;  %2988 = vmatprep.subr.bf16.mxu0 %v5020_v28  ;;  %vm1559_vm5 = vcmp.eq.s32.totalorder %v3612_v39, %v5035_v43 }
 0x53f   : > { %v4548_v62 = vadd.f32 %v2106_v41, %v2088_v63  ;;  %2269 = vperm.xlu1 %3270, %v4075_v23   ;;  %3006 = vmatprep.subr.bf16.mxu1 %v5020_v28  ;;  %v1457_v23 = vsel %vm1447_vm8, %v4417_v50, 0.0  ;;  %v5024_v50 = vld [vmem:[#allocation38_spill] sm:$0xff]  ;;  %v1569_v11 = vsel %vm1559_vm5, %v5037_v61, 0.0  ;;  %v1965_v6 = vpop.permute.xlu0 %1964  ;;  %v1588_v63 = vadd.f32 %v1586_v46, %v1568_v54  ;;  %v5045_v61 = vld [vmem:[#allocation39_spill] sm:$0xff] }
 0x540   : > { %vm1466_vm4 = vcmp.eq.s32.totalorder %v3612_v39, %v5024_v50  ;;  %v1459_v57 = vadd.f32 %v1457_v23, %v1439_v10  ;;  %v5040_v10 = vld [vmem:[#allocation34_spill] sm:$0xff]  ;;  %v5042_v50 = vld [vmem:[#allocation35_spill] sm:$0xff]  ;;  %vm1707_vm5 = vcmp.eq.s32.totalorder %v3612_v39, %v4501_v25 }
 0x541   : > { %2989 = vmatpush3.bf16.msra.mxu0 %v3548_v20  ;;  %v1476_v3 = vsel %vm1466_vm4, %v5028_v47, 0.0  ;;  %vm1616_vm8 = vcmp.eq.s32.totalorder %v3612_v39, %v5040_v10  ;;  %vm1967_vm4 = vcmp.eq.s32.totalorder %v3612_v39, %v1965_v6  ;;  %v1717_v34 = vsel %vm1707_vm5, %v4516_v52, 0.0  ;;  %v5052_v10 = vld [vmem:[#allocation44_spill] sm:$0xff] }
 0x542   : > { %v1575_v36 = vpop.permute.xlu1 %1574  ;;  %3007 = vmatpush3.bf16.msra.mxu1 %v3528_v16  ;;  %2990 = vmatprep.subr.bf16.mxu0 %v5020_v28  ;;  %v1478_v2 = vadd.f32 %v1476_v3, %v1458_v27  ;;  %v1479_v49 = vadd.f32 %v1477_v5, %v1459_v57  ;;  %v1626_v19 = vsel %vm1616_vm8, %v5042_v50, 0.0  ;;  %v1959_v27 = vsel %vm1949_vm9, %v5044_v22, 0.0 }
 0x543   : > { %3008 = vmatprep.subr.bf16.mxu1 %v5020_v28  ;;  %vm1577_vm3 = vcmp.eq.s32.totalorder %v3612_v39, %v1575_v36  ;;  %v1974_v3 = vpop.permute.xlu0 %1973  ;;  %vm1726_vm9 = vcmp.eq.s32.totalorder %v3612_v39, %v4457_v9 }
 0x544   : > { %v1977_v18 = vsel %vm1967_vm4, %v1974_v3, 0.0  ;;  %v5058_v3 = vld [vmem:[#allocation17_spill] sm:$0xff] }
 0x545   : > { %2991 = vmatpush3.bf16.msra.mxu0 %v3564_v24 }
 0x546   : > { %v1584_v7 = vpop.permute.xlu1 %1583  ;;  %3009 = vmatpush3.bf16.msra.mxu1 %v3548_v20  ;;  %2992 = vmatprep.subr.bf16.mxu0 %v5020_v28 }
 0x547   : > { %3010 = vmatprep.subr.bf16.mxu1 %v5020_v28  ;;  %v1587_v14 = vsel %vm1577_vm3, %v1584_v7, 0.0  ;;  %v1498_v7 = vadd.f32 %v1496_v58, %v1478_v2  ;;  %vm1706_vm3 = vcmp.eq.s32.totalorder %v3612_v39, %v5045_v61  ;;  %v5046_v2 = vld [vmem:[#allocation24_spill] sm:$0xff] }
 0x548   : > { %v1589_v41 = vadd.f32 %v1587_v14, %v1569_v11  ;;  %v1979_v14 = vadd.f32 %v1977_v18, %v1959_v27  ;;  %vm1857_vm6 = vcmp.eq.s32.totalorder %v3612_v39, %v5046_v2  ;;  %v5059_v27 = vld [vmem:[#allocation18_spill] sm:$0xff] }
 0x549   : > { %2993 = vmatpush3.bf16.msra.mxu0 %v3578_v29 }
 0x54a   : > { %3011 = vmatpush3.bf16.msra.mxu1 %v3564_v24  ;;  %2994 = vmatprep.subr.bf16.mxu0 %v5020_v28  ;;  %v1609_v47 = vadd.f32 %v1607_v37, %v1589_v41  ;;  %v5049_v41 = vld [vmem:[#allocation37_spill] sm:$0xff]  ;;  %v5054_v37 = vld [vmem:[#allocation42_spill] sm:$0xff] }
 0x54b   : > { %v1485_v35 = vpop.permute.xlu1 %1484  ;;  %3012 = vmatprep.subr.bf16.mxu1 %v5020_v28  ;;  %vm1689_vm10 = vcmp.eq.s32.totalorder %v3612_v39, %v5049_v41  ;;  %vm1836_vm8 = vcmp.eq.s32.totalorder %v3612_v39, %v5054_v37  ;;  %v2135_v41 = vpop.permute.xlu0 %2134 }
 0x54c   : > { %vm1487_vm2 = vcmp.eq.s32.totalorder %v3612_v39, %v1485_v35  ;;  %v1608_v35 = vadd.f32 %v1606_v1, %v1588_v63  ;;  %v1699_v50 = vsel %vm1689_vm10, %v4449_v56, 0.0  ;;  %v1756_v56 = vsel %vm1746_vm7, %v4478_v33, 0.0 }
 0x54d   : > { %2995 = vmatpush3.bf16.msra.mxu0 %v5032_v15  ;;  %v1719_v52 = vadd.f32 %v1717_v34, %v1699_v50  ;;  %v5064_v34 = vld [vmem:[#allocation14_spill] sm:$0xff] }
 0x54e   : > { %3013 = vmatpush3.bf16.msra.mxu1 %v3578_v29  ;;  %3020 = vmatprep.subr.bf16.mxu0 %v5020_v28  ;;  %v1628_v5 = vadd.f32 %v1626_v19, %v1608_v35  ;;  %v5055_v19 = vld [vmem:[#allocation46_spill] sm:$0xff]  ;;  %v1846_v35 = vsel %vm1836_vm8, %v5056_v40, 0.0  ;;  %vm1948_vm10 = vcmp.eq.s32.totalorder %v3612_v39, %v5064_v34 }
 0x54f   : > { %v1494_v60 = vpop.permute.xlu1 %1493  ;;  %3014 = vmatprep.subr.bf16.mxu1 %v5020_v28  ;;  %v4746_v50 = vpop.permute.xlu0 %2203 }
 0x550   : > { %v1497_v36 = vsel %vm1487_vm2, %v1494_v60, 0.0  ;;  %v5048_v60 = vld [vmem:[#allocation23_spill] sm:$0xff]  ;;  %vm1727_vm2 = vcmp.eq.s32.totalorder %v3612_v39, %v5052_v10 }
 0x551   : > { %v1499_v23 = vadd.f32 %v1497_v36, %v1479_v49  ;;  %v5047_v49 = vld [vmem:[#allocation40_spill] sm:$0xff]  ;;  %v1867_v36 = vsel %vm1857_vm6, %v5050_v48, 0.0 }
 0x552   : > { %3015 = vmatpush3.bf16.msra.mxu1 %v5032_v15  ;;  %v1716_v6 = vsel %vm1706_vm3, %v5047_v49, 0.0 }
 0x553   : > { %v1500_v57 = vpack.c.bf16 %v1499_v23, %v1498_v7  ;;  %3040 = vmatprep.subr.bf16.mxu1 %v5020_v28  ;;  %v5051_v7 = vld [vmem:[#allocation15_spill] sm:$0xff] }
 0x554   : > { %v1624_v42 = vpop.permute.xlu1 %1623  ;;  %v1698_v23 = vsel %vm1688_vm15, %v5051_v7, 0.0  ;;  %vm1877_vm15 = vcmp.eq.s32.totalorder %v3612_v39, %v4528_v26  ;;  %v5063_v7 = vld [vmem:[#allocation26_spill] sm:$0xff] }
 0x555   : > { %v1627_v44 = vsel %vm1617_vm1, %v1624_v42, 0.0  ;;  %2997 = vmatmul.mubr.bf16.vlgmr.msra.gmra.mrb[24].mxu0 %v1500_v57  ;;  %v1718_v31 = vadd.f32 %v1716_v6, %v1698_v23  ;;  %v1737_v57 = vsel %vm1727_vm2, %v5055_v19, 0.0  ;;  %v5057_v42 = vld [vmem:[#allocation16_spill] sm:$0xff]  ;;  %vm1986_vm2 = vcmp.eq.s32.totalorder %v3612_v39, %v4539_v55 }
 0x556   : > { %v1629_v32 = vadd.f32 %v1627_v44, %v1609_v47  ;;  %3021 = vmatpush3.bf16.msra.mxu0 %v3474_v4  ;;  %3036 = vmatprep.mubr.msk.bf16.mxu0 %vm3356_vm0, %v5020_v28  ;;  %vm1818_vm1 = vcmp.eq.s32.totalorder %v3612_v39, %v5057_v42  ;;  %v1736_v47 = vsel %vm1726_vm9, %v4462_v59, 0.0  ;;  %v1739_v9 = vadd.f32 %v1737_v57, %v1719_v52  ;;  %v5060_v59 = vld [vmem:[#allocation12_spill] sm:$0xff] }
 0x557   : > { %3022 = vmatprep.subr.bf16.mxu0 %v5020_v28  ;;  %v1828_v44 = vsel %vm1818_vm1, %v5058_v3, 0.0  ;;  %v1996_v19 = vsel %vm1986_vm2, %v4555_v30, 0.0  ;;  %v2216_v30 = vpop.permute.xlu0 %2215  ;;  %v5066_v42 = vld [vmem:[#allocation52_spill] sm:$0xff]  ;;  %vm2137_vm1 = vcmp.eq.s32.totalorder %v3612_v39, %v2135_v41 }
 0x558   : > { %v1630_v46 = vpack.c.bf16 %v1629_v32, %v1628_v5  ;;  %v1738_v5 = vadd.f32 %v1736_v47, %v1718_v31  ;;  %v1848_v32 = vadd.f32 %v1846_v35, %v1828_v44  ;;  %v5065_v31 = vld [vmem:[#allocation19_spill] sm:$0xff] }
 0x559   : > { %v1994_v17 = vpop.permute.xlu1 %1993  ;;  %v1958_v10 = vsel %vm1948_vm10, %v5065_v31, 0.0 }
 0x55a   : > { %v1997_v54 = vsel %vm1987_vm12, %v1994_v17, 0.0  ;;  %3017 = vmatmul.mubr.bf16.vlgmr.msra.gmra.mrb[24].mxu1 %v1630_v46  ;;  %3023 = vmatpush3.bf16.msra.mxu0 %v3491_v8  ;;  %vm1856_vm12 = vcmp.eq.s32.totalorder %v3612_v39, %v5059_v27  ;;  %v1758_v46 = vadd.f32 %v1756_v56, %v1738_v5  ;;  %v5061_v17 = vld [vmem:[#allocation51_spill] sm:$0xff]  ;;  %v5067_v5 = vmov 0  }
 0x55b   : > { %v4631_v38 = vadd.f32 %v1997_v54, %v1979_v14  ;;  %3041 = vmatpush3.bf16.msra.mxu1 %v3474_v4  ;;  %3024 = vmatprep.subr.bf16.mxu0 %v5020_v28  ;;  %v1866_v33 = vsel %vm1856_vm12, %v5060_v59, 0.0  ;;  %v2245_v3 = vpop.permute.xlu0 %2244 }
 0x55c   : > { %3042 = vmatprep.subr.bf16.mxu1 %v5020_v28  ;;  %3056 = vmatprep.mubr.msk.bf16.mxu1 %vm3356_vm0, %v5020_v28 }
 0x55e   : > { %v4638_v43 = vpop.permute.xlu1 %2111  ;;  %3025 = vmatpush3.bf16.msra.mxu0 %v3512_v13 }
 0x55f   : > { %3043 = vmatpush3.bf16.msra.mxu1 %v3491_v8  ;;  %3026 = vmatprep.subr.bf16.mxu0 %v5020_v28  ;;  %vm2116_vm8 = vcmp.eq.s32.totalorder %v3612_v39, %v4638_v43 }
 0x560   : > { %3044 = vmatprep.subr.bf16.mxu1 %v5020_v28  ;;  %v2126_v47 = vsel %vm2116_vm8, %v5066_v42, 0.0  ;;  %vm5073_vm8 = vcmask 654848  }
 0x561   : > { %v2128_v43 = vadd.f32 %v2126_v47, %v4548_v62 }
 0x562   : > { %3027 = vmatpush3.bf16.msra.mxu0 %v3528_v16 }
 0x563   : > { %v4645_v53 = vpop.permute.xlu1 %2001  ;;  %3045 = vmatpush3.bf16.msra.mxu1 %v3512_v13  ;;  %3028 = vmatprep.subr.bf16.mxu0 %v5020_v28 }
 0x564   : > { %3046 = vmatprep.subr.bf16.mxu1 %v5020_v28  ;;  %vm2006_vm5 = vcmp.eq.s32.totalorder %v3612_v39, %v4645_v53 }
 0x566   : > { %3029 = vmatpush3.bf16.msra.mxu0 %v3548_v20 }
 0x567   : > { %3047 = vmatpush3.bf16.msra.mxu1 %v3528_v16  ;;  %3030 = vmatprep.subr.bf16.mxu0 %v5020_v28 }
 0x568   : > { %v1835_v45 = vpop.permute.xlu1 %1834  ;;  %3048 = vmatprep.subr.bf16.mxu1 %v5020_v28 }
 0x569   : > { %vm1837_vm11 = vcmp.eq.s32.totalorder %v3612_v39, %v1835_v45 }
 0x56a   : > { %3031 = vmatpush3.bf16.msra.mxu0 %v3564_v24 }
 0x56b   : > { %3049 = vmatpush3.bf16.msra.mxu1 %v3548_v20  ;;  %3032 = vmatprep.subr.bf16.mxu0 %v5020_v28 }
 0x56c   : > { %v1844_v58 = vpop.permute.xlu1 %1843  ;;  %3050 = vmatprep.subr.bf16.mxu1 %v5020_v28 }
 0x56d   : > { %v1847_v11 = vsel %vm1837_vm11, %v1844_v58, 0.0  ;;  %vm1876_vm11 = vcmp.eq.s32.totalorder %v3612_v39, %v4434_v0  ;;  %v1868_v58 = vadd.f32 %v1866_v33, %v1848_v32  ;;  %v2254_v32 = vpop.permute.xlu0 %2253 }
 0x56e   : > { %v1849_v63 = vadd.f32 %v1847_v11, %v5048_v60  ;;  %3033 = vmatpush3.bf16.msra.mxu0 %v3578_v29  ;;  %v1886_v54 = vsel %vm1876_vm11, %v5061_v17, 0.0  ;;  %vm2208_vm11 = vcmp.eq.s32.totalorder %v3612_v39, %v4746_v50 }
 0x56f   : > { %3051 = vmatpush3.bf16.msra.mxu1 %v3564_v24  ;;  %3034 = vmatprep.subr.bf16.mxu0 %v5020_v28  ;;  %v1888_v2 = vadd.f32 %v1886_v54, %v1868_v58 }
 0x570   : > { %3052 = vmatprep.subr.bf16.mxu1 %v5020_v28  ;;  %v1869_v1 = vadd.f32 %v1867_v36, %v1849_v63  ;;  %v5062_v36 = vld [vmem:[#allocation50_spill] sm:$0xff] }
 0x571   : > { %v1745_v25 = vpop.permute.xlu1 %1744  ;;  %vm2117_vm6 = vcmp.eq.s32.totalorder %v3612_v39, %v5062_v36 }
 0x572   : > { %3035 = vmatpush3.bf16.msra.mxu0 %v5032_v15  ;;  %vm1747_vm4 = vcmp.eq.s32.totalorder %v3612_v39, %v1745_v25  ;;  %v1978_v25 = vadd.f32 %v4452_v51, %v1958_v10  ;;  %v2016_v51 = vsel %vm2006_vm5, %v4571_v21, 0.0  ;;  %vm5069_vm5 = vcmask 392448  }
 0x573   : > { %3053 = vmatpush3.bf16.msra.mxu1 %v3578_v29  ;;  %3060 = vmatprep.subr.bf16.mxu0 %v5020_v28  ;;  %vm5070_vm2 = vmmov %vm5069_vm5 }
 0x574   : > { %3054 = vmatprep.subr.bf16.mxu1 %v5020_v28  ;;  %v1998_v57 = vadd.f32 %v1996_v19, %v1978_v25 }
 0x575   : > { %v1754_v22 = vpop.permute.xlu1 %1753 }
 0x576   : > { %v1757_v18 = vsel %vm1747_vm4, %v1754_v22, 0.0  ;;  %v2018_v55 = vadd.f32 %v2016_v51, %v1998_v57  ;;  %v3280_v51 = vld [vmem:[%s4921_s5] sm:$0xff]   ;;  %v3281_v57 = vld [vmem:[%s4921_s5 + $0x8] sm:$0xff]  }
 0x577   : > { %v1759_v14 = vadd.f32 %v1757_v18, %v1739_v9  ;;  %3055 = vmatpush3.bf16.msra.mxu1 %v5032_v15  ;;  %v2225_v18 = vpop.permute.xlu0 %2224 }
 0x578   : > { %3080 = vmatprep.subr.bf16.mxu1 %v5020_v28  ;;  %vm2227_vm4 = vcmp.eq.s32.totalorder %v3612_v39, %v2225_v18 }
 0x579   : > { %v1760_v45 = vpack.c.bf16 %v1759_v14, %v1758_v46 }
 0x57a   : > { %v1884_v61 = vpop.permute.xlu1 %1883 }
 0x57b   : > { %v1887_v11 = vsel %vm1877_vm15, %v1884_v61, 0.0  ;;  %3037 = vmatmul.mubr.bf16.vlgmr.msra.gmra.mrb[28].mxu0 %v1760_v45  ;;  %v2234_v14 = vpop.permute.xlu0 %2233  ;;  %vm2247_vm15 = vcmp.eq.s32.totalorder %v3612_v39, %v2245_v3  ;;  %v3286_v3 = vld [vmem:[%s4921_s5 + $0x30] sm:$0xff]  }
 0x57c   : > { %v1889_v49 = vadd.f32 %v1887_v11, %v1869_v1  ;;  %3061 = vmatpush3.bf16.msra.mxu0 %v3474_v4  ;;  %3076 = vmatprep.mubr.msk.bf16.mxu0 %vm3356_vm0, %v5020_v28  ;;  %v2237_v33 = vsel %vm2227_vm4, %v2234_v14, 0.0  ;;  %vm5077_vm4 = vcmask 917248  }
 0x57d   : > { %3062 = vmatprep.subr.bf16.mxu0 %v5020_v28 }
 0x57e   : > { %v1890_v0 = vpack.c.bf16 %v1889_v49, %v1888_v2 }
 0x57f   : > { %v2124_v6 = vpop.permute.xlu1 %2123  ;;  %v2265_v59 = vpop.permute.xlu0 %2264 }
 0x580   : > { %3063 = vmatpush3.bf16.msra.mxu0 %v3491_v8  ;;  %3057 = vmatmul.mubr.bf16.vlgmr.msra.gmra.mrb[28].mxu1 %v1890_v0  ;;  %v2127_v1 = vsel %vm2117_vm6, %v2124_v6, 0.0  ;;  %vm2267_vm6 = vcmp.eq.s32.totalorder %v3612_v39, %v2265_v59 }
 0x581   : > { %3064 = vmatprep.subr.bf16.mxu0 %v5020_v28  ;;  %3081 = vmatpush3.bf16.msra.mxu1 %v3474_v4 }
 0x582   : > { %3082 = vmatprep.subr.bf16.mxu1 %v5020_v28  ;;  %3096 = vmatprep.mubr.msk.bf16.mxu1 %vm3356_vm0, %v5020_v28 }
 0x583   : > { %v2132_v26 = vpop.permute.xlu1 %2131  ;;  %v2274_v58 = vpop.permute.xlu0 %2273 }
 0x584   : > { %3065 = vmatpush3.bf16.msra.mxu0 %v3512_v13  ;;  %vm2136_vm9 = vcmp.eq.s32.totalorder %v3612_v39, %v2132_v26  ;;  %v2277_v49 = vsel %vm2267_vm6, %v2274_v58, 0.0 }
 0x585   : > { %3066 = vmatprep.subr.bf16.mxu0 %v5020_v28  ;;  %3083 = vmatpush3.bf16.msra.mxu1 %v3491_v8 }
 0x586   : > { %3084 = vmatprep.subr.bf16.mxu1 %v5020_v28 }
 0x587   : > { %v2095_v60 = vpop.permute.xlu1 %2094 }
 0x588   : > { %3067 = vmatpush3.bf16.msra.mxu0 %v3528_v16  ;;  %vm2097_vm3 = vcmp.eq.s32.totalorder %v3612_v39, %v2095_v60 }
 0x589   : > { %3068 = vmatprep.subr.bf16.mxu0 %v5020_v28  ;;  %3085 = vmatpush3.bf16.msra.mxu1 %v3512_v13 }
 0x58a   : > { %3086 = vmatprep.subr.bf16.mxu1 %v5020_v28 }
 0x58b   : > { %v2104_v63 = vpop.permute.xlu1 %2103 }
 0x58c   : > { %v2107_v48 = vsel %vm2097_vm3, %v2104_v63, 0.0  ;;  %3069 = vmatpush3.bf16.msra.mxu0 %v3548_v20 }
 0x58d   : > { %v2109_v23 = vadd.f32 %v2107_v48, %v5063_v7  ;;  %3070 = vmatprep.subr.bf16.mxu0 %v5020_v28  ;;  %3087 = vmatpush3.bf16.msra.mxu1 %v3528_v16 }
 0x58e   : > { %3088 = vmatprep.subr.bf16.mxu1 %v5020_v28 }
 0x58f   : > { %v2129_v12 = vadd.f32 %v2127_v1, %v2109_v23 }
 0x590   : > { %3071 = vmatpush3.bf16.msra.mxu0 %v3564_v24  ;;  %v2005_v37 = vpop.permute.xlu1 %2004 }
 0x591   : > { %3072 = vmatprep.subr.bf16.mxu0 %v5020_v28  ;;  %3089 = vmatpush3.bf16.msra.mxu1 %v3548_v20  ;;  %vm2007_vm7 = vcmp.eq.s32.totalorder %v3612_v39, %v2005_v37 }
 0x592   : > { %3090 = vmatprep.subr.bf16.mxu1 %v5020_v28 }
 0x594   : > { %3073 = vmatpush3.bf16.msra.mxu0 %v3578_v29  ;;  %v2014_v53 = vpop.permute.xlu1 %2013 }
 0x595   : > { %v2017_v52 = vsel %vm2007_vm7, %v2014_v53, 0.0  ;;  %3074 = vmatprep.subr.bf16.mxu0 %v5020_v28  ;;  %3091 = vmatpush3.bf16.msra.mxu1 %v3564_v24  ;;  %vm5071_vm7 = vcmask 523648  }
 0x596   : > { %v2019_v40 = vadd.f32 %v2017_v52, %v4631_v38  ;;  %3092 = vmatprep.subr.bf16.mxu1 %v5020_v28 }
 0x598   : > { %v2020_v21 = vpack.c.bf16 %v2019_v40, %v2018_v55  ;;  %3075 = vmatpush3.bf16.msra.mxu0 %v5032_v15  ;;  %v3282_v55 = vld [vmem:[%s4921_s5 + $0x10] sm:$0xff]  }
 0x599   : > { %v2140_v35 = vpop.permute.xlu1 %2139  ;;  %3093 = vmatpush3.bf16.msra.mxu1 %v3578_v29  ;;  %3100 = vmatprep.subr.bf16.mxu0 %v5020_v28 }
 0x59a   : > { %3094 = vmatprep.subr.bf16.mxu1 %v5020_v28  ;;  %v2146_v38 = vsel %vm2136_vm9, %v2140_v35, 0.0  ;;  %v3283_v35 = vld [vmem:[%s4921_s5 + $0x18] sm:$0xff]   ;;  %vm5074_vm9 = vmmov %vm5073_vm8 }
 0x59b   : > { %3077 = vmatmul.mubr.bf16.vlgmr.msra.gmra.mrb[32].mxu0 %v2020_v21  ;;  %v2148_v9 = vadd.f32 %v2146_v38, %v2128_v43  ;;  %v3284_v43 = vld [vmem:[%s4921_s5 + $0x20] sm:$0xff]  }
 0x59c   : > { %3101 = vmatpush3.bf16.msra.mxu0 %v3474_v4  ;;  %3116 = vmatprep.mubr.msk.bf16.mxu0 %vm3356_vm0, %v5020_v28 }
 0x59d   : > { %v2144_v56 = vpop.permute.xlu1 %2143  ;;  %3095 = vmatpush3.bf16.msra.mxu1 %v5032_v15  ;;  %3102 = vmatprep.subr.bf16.mxu0 %v5020_v28 }
 0x59e   : > { %v2147_v44 = vsel %vm2137_vm1, %v2144_v56, 0.0  ;;  %2412 = vmatprep.subr.bf16.mxu1 %v5067_v5  ;;  %v3285_v56 = vld [vmem:[%s4921_s5 + $0x28] sm:$0xff]   ;;  %vm5075_vm1 = vcmask 786048  }
 0x59f   : > { %v2149_v22 = vadd.f32 %v2147_v44, %v2129_v12 }
 0x5a0   : > { %3103 = vmatpush3.bf16.msra.mxu0 %v3491_v8 }
 0x5a1   : > { %v2150_v4 = vpack.c.bf16 %v2149_v22, %v2148_v9  ;;  %3104 = vmatprep.subr.bf16.mxu0 %v5020_v28  ;;  %v3287_v9 = vld [vmem:[%s4921_s5 + $0x38] sm:$0xff]  }
 0x5a2   : > { %v2207_v27 = vpop.permute.xlu1 %2206 }
 0x5a3   : > { %3097 = vmatmul.mubr.bf16.vlgmr.msra.gmra.mrb[32].mxu1 %v2150_v4  ;;  %vm2209_vm0 = vcmp.eq.s32.totalorder %v3612_v39, %v2207_v27 }
 0x5a4   : > { %3105 = vmatpush3.bf16.msra.mxu0 %v3512_v13  ;;  %2413 = vmatpush1.bf16.msra.mxu1 %v3280_v51 }
 0x5a5   : > { %3106 = vmatprep.subr.bf16.mxu0 %v5020_v28  ;;  %2414 = vmatprep.subr.bf16.mxu1 %v5067_v5 }
 0x5a6   : > { %v2222_v62 = vpop.permute.xlu1 %2221 }
 0x5a7   : > { %vm2226_vm12 = vcmp.eq.s32.totalorder %v3612_v39, %v2222_v62 }
 0x5a8   : > { %3107 = vmatpush3.bf16.msra.mxu0 %v3528_v16  ;;  %v2219_v16 = vsel %vm2209_vm0, %v2216_v30, 0.0  ;;  %2415 = vmatpush1.bf16.msra.mxu1 %v3281_v57  ;;  %vm5076_vm0 = vmmov %vm5075_vm1 }
 0x5a9   : > { %3108 = vmatprep.subr.bf16.mxu0 %v5020_v28  ;;  %v2239_v17 = vadd.f32 %v2237_v33, %v2219_v16  ;;  %2416 = vmatprep.subr.bf16.mxu1 %v5067_v5 }
 0x5aa   : > { %v2212_v46 = vpop.permute.xlu1 %2211 }
 0x5ab   : > { %v2218_v54 = vsel %vm2208_vm11, %v2212_v46, 0.0 }
 0x5ac   : > { %3109 = vmatpush3.bf16.msra.mxu0 %v3548_v20  ;;  %2417 = vmatpush1.bf16.msra.mxu1 %v3282_v55 }
 0x5ad   : > { %3110 = vmatprep.subr.bf16.mxu0 %v5020_v28  ;;  %2418 = vmatprep.subr.bf16.mxu1 %v5067_v5 }
 0x5ae   : > { %v2230_v8 = vpop.permute.xlu1 %2229 }
 0x5b0   : > { %3111 = vmatpush3.bf16.msra.mxu0 %v3564_v24  ;;  %v2236_v24 = vsel %vm2226_vm12, %v2230_v8, 0.0  ;;  %2419 = vmatpush1.bf16.msra.mxu1 %v3283_v35  ;;  %vm5078_vm12 = vmmov %vm5077_vm4 }
 0x5b1   : > { %3112 = vmatprep.subr.bf16.mxu0 %v5020_v28  ;;  %v2238_v11 = vadd.f32 %v2236_v24, %v2218_v54  ;;  %2420 = vmatprep.subr.bf16.mxu1 %v5067_v5 }
 0x5b2   : > { %v2242_v13 = vpop.permute.xlu1 %2241 }
 0x5b3   : > { %vm2246_vm3 = vcmp.eq.s32.totalorder %v3612_v39, %v2242_v13 }
 0x5b4   : > { %3113 = vmatpush3.bf16.msra.mxu0 %v3578_v29  ;;  %2421 = vmatpush1.bf16.msra.mxu1 %v3284_v43 }
 0x5b5   : > { %3114 = vmatprep.subr.bf16.mxu0 %v5020_v28  ;;  %v2257_v28 = vsel %vm2247_vm15, %v2254_v32, 0.0  ;;  %2422 = vmatprep.subr.bf16.mxu1 %v5067_v5  ;;  %v3288_v32 = vld [vmem:[%s4921_s5 + $0x40] sm:$0xff]  }
 0x5b6   : > { %v2250_v20 = vpop.permute.xlu1 %2249  ;;  %v2259_v61 = vadd.f32 %v2257_v28, %v2239_v17 }
 0x5b7   : > { %v2256_v45 = vsel %vm2246_vm3, %v2250_v20, 0.0 }
 0x5b8   : > { %3115 = vmatpush3.bf16.msra.mxu0 %v5032_v15  ;;  %v2258_v2 = vadd.f32 %v2256_v45, %v2238_v11  ;;  %v2279_v26 = vadd.f32 %v2277_v49, %v2259_v61  ;;  %2423 = vmatpush1.bf16.msra.mxu1 %v3285_v56 }
 0x5b9   : > { %2424 = vmatprep.subr.bf16.mxu1 %v5067_v5 }
 0x5ba   : > { %v2262_v29 = vpop.permute.xlu1 %2261 }
 0x5bb   : > { %vm2266_vm10 = vcmp.eq.s32.totalorder %v3612_v39, %v2262_v29 }
 0x5bc   : > { %2425 = vmatpush1.bf16.msra.mxu1 %v3286_v3 }
 0x5bd   : > { %2426 = vmatprep.subr.bf16.mxu1 %v5067_v5 }
 0x5be   : > { %v2270_v15 = vpop.permute.xlu1 %2269 }
 0x5bf   : > { %v2276_v0 = vsel %vm2266_vm10, %v2270_v15, 0.0 }
 0x5c0   : > { %v2278_v6 = vadd.f32 %v2276_v0, %v2258_v2  ;;  %2427 = vmatpush1.bf16.msra.mxu1 %v3287_v9 }
 0x5c1   : > { %2428 = vmatprep.subr.bf16.mxu1 %v5067_v5 }
 0x5c2   : > { %v2280_v60 = vpack.c.bf16 %v2279_v26, %v2278_v6 }
 0x5c4   : > { %3117 = vmatmul.mubr.bf16.vlgmr.msra.gmra.mrb[36].mxu0 %v2280_v60  ;;  %2429 = vmatpush1.bf16.msra.mxu1 %v3288_v32 }
 0x603   : > { %v1283_v63 = vpop.f32.mrb[20].mxu0 }
 0x604   : > { %1290 = vst.msk [vmem:[#allocation3] sm:$0xff] %vm383_vm13, %v1283_v63  ;;  %v2958_v41 = vpop.f32.mrb[21].mxu0 }
 0x605   : > { %v1286_v48 = vpop.f32.mrb[22].mxu0  ;;  %v2581_v41 = vld [vmem:[%s4922_s6] ss:$0 sm:$0xff] }
 0x606   : > { %1291 = vst.msk [vmem:[#allocation3 + $0x10] sm:$0xff] %vm383_vm13, %v1286_v48  ;;  %v2959_v36 = vpop.f32.mrb[23].mxu0 }
 0x608   : > { %v1405_v7 = vpop.f32.mrb[20].mxu1 }
 0x609   : > { %1414 = vrot.lane.b32.xlu1 %v1405_v7, %s3365_s9  ;;  %v2978_v23 = vpop.f32.mrb[21].mxu1 }
 0x60a   : > { %v1408_v39 = vpop.f32.mrb[22].mxu1 }
 0x60b   : > { %1416 = vrot.lane.b32.xlu0 %v1408_v39, %s3365_s9  ;;  %v2979_v34 = vpop.f32.mrb[23].mxu1  ;;  %s4873_s9 = scalar_lea.hbm %s4923_s7, %s2597_s13 }
 0x628   : > { %v1535_v1 = vpop.f32.mrb[24].mxu0 }
 0x629   : > { %1544 = vrot.lane.b32.xlu1 %v1535_v1, %s3366_s14  ;;  %v2998_v31 = vpop.f32.mrb[25].mxu0 }
 0x62a   : > { %v1538_v10 = vpop.f32.mrb[26].mxu0 }
 0x62b   : > { %1546 = vrot.lane.b32.xlu0 %v1538_v10, %s3366_s14  ;;  %v2999_v12 = vpop.f32.mrb[27].mxu0  ;;  %s3374_s14 = smov [#allocation4]  }
 0x62c   : > { %s3293_s21 = sshll.u32 %s3374_s14, 4  ;;  %s3294_s21 = int_to_ptr.vmem [resolvable:$false] %s3293_s21 }
 0x62d   : > { %v1665_v25 = vpop.f32.mrb[24].mxu1 }
 0x62e   : > { %1674 = vrot.lane.b32.xlu1 %v1665_v25, %s3367_s15  ;;  %v3018_v37 = vpop.f32.mrb[25].mxu1 }
 0x62f   : > { %v1668_v50 = vpop.f32.mrb[26].mxu1 }
 0x630   : > { %1676 = vrot.lane.b32.xlu0 %v1668_v50, %s3367_s15  ;;  %v3019_v19 = vpop.f32.mrb[27].mxu1  ;;  %s3295_s15 = scalar_lea.vmem %s3294_s21, 512 }
 0x64e   : > { %v1795_v53 = vpop.f32.mrb[28].mxu0 }
 0x64f   : > { %1804 = vrot.lane.b32.xlu1 %v1795_v53, %s3368_s23  ;;  %v3038_v52 = vpop.f32.mrb[29].mxu0 }
 0x650   : > { %v1798_v40 = vpop.f32.mrb[30].mxu0 }
 0x651   : > { %1806 = vrot.lane.b32.xlu0 %v1798_v40, %s3368_s23  ;;  %v3039_v30 = vpop.f32.mrb[31].mxu0 }
 0x653   : > { %v1925_v21 = vpop.f32.mrb[28].mxu1 }
 0x654   : > { %1934 = vrot.lane.b32.xlu1 %v1925_v21, %s5068_s8  ;;  %v3058_v42 = vpop.f32.mrb[29].mxu1 }
 0x655   : > { %v1928_v47 = vpop.f32.mrb[30].mxu1 }
 0x656   : > { %1936 = vrot.lane.b32.xlu0 %v1928_v47, %s5068_s8  ;;  %v3059_v38 = vpop.f32.mrb[31].mxu1 }
 0x66e   : > { %v2055_v44 = vpop.f32.mrb[32].mxu0 }
 0x66f   : > { %2064 = vrot.lane.b32.xlu1 %v2055_v44, %s3370_s19  ;;  %v3078_v22 = vpop.f32.mrb[33].mxu0 }
 0x670   : > { %v2058_v4 = vpop.f32.mrb[34].mxu0 }
 0x671   : > { %2066 = vrot.lane.b32.xlu0 %v2058_v4, %s3370_s19  ;;  %v3079_v27 = vpop.f32.mrb[35].mxu0  ;;  %s286_s19 = sand.u32 1, %s3343_s25  }
 0x672   : > { %s4875_s20 = scalar_lea.sflag [#allocation5], %s286_s19 }
 0x676   : > { %v2185_v62 = vpop.f32.mrb[32].mxu1 }
 0x677   : > { %2194 = vrot.lane.b32.xlu1 %v2185_v62, %s3371_s16  ;;  %v3098_v18 = vpop.f32.mrb[33].mxu1 }
 0x678   : > { %v2188_v46 = vpop.f32.mrb[34].mxu1 }
 0x679   : > { %2196 = vrot.lane.b32.xlu0 %v2188_v46, %s3371_s16  ;;  %v3099_v8 = vpop.f32.mrb[35].mxu1  ;;  %s2547_s16 = sshll.u32 %s286_s19, 4 }
 0x67a   : > { %s288_s23 = scalar_lea.vmem [#allocation4], %s2547_s16 }
 0x67b   : > { %v1415_v14 = vpop.permute.xlu1 %1414  ;;  %s2469_s17 = sshll.u32 %s288_s23, 4  ;;  %s4868_s17 = int_to_ptr.vmem [resolvable:$true] %s2469_s17 }
 0x67c   : > { %1420 = vst.msk [vmem:[#allocation3] sm:$0xff] %vm446_vm14, %v1415_v14  ;;  %s3289_s28 = scalar_lea.vmem %s4868_s17, 256  ;;  %p3296_p0 = scmp.lt.s32.totalorder %s4868_s17, %s3294_s21 }
 0x67d   : > { %v1417_v13 = vpop.permute.xlu0 %1416  ;;  %p3290_p11 = scmp.ne.s32.totalorder %s4868_s17, %s3289_s28  ;;  %p3297_p1 = scmp.lt.s32.totalorder %s3295_s15, %s3289_s28 }
 0x67e   : > { %1421 = vst.msk [vmem:[#allocation3 + $0x10] sm:$0xff] %vm446_vm14, %v1417_v13  ;;  %vm5072_vm14 = vmmov %vm5071_vm7 }
 0x67f   : > { %p3291_p12 = pnand %p3290_p11, %p3455_p5  ;;  %p3298_p2 = por %p3297_p1, %p3296_p0 }
 0x681   : > { %p3292_p13 = pneg %p3291_p12 }
 0x683   : > { %p3299_p3 = pnand %p3298_p2, %p3292_p13 }
 0x697   : > { %v2315_v16 = vpop.f32.mrb[36].mxu0 }
 0x698   : > { %2322 = vst.msk [vmem:[#allocation3 + $0x8] sm:$0xff] %vm383_vm13, %v2315_v16  ;;  %v3118_v59 = vpop.f32.mrb[37].mxu0 }
 0x699   : > { %v2318_v5 = vpop.f32.mrb[38].mxu0 }
 0x69a   : > { %2323 = vst.msk [vmem:[#allocation3 + $0x18] sm:$0xff] %vm383_vm13, %v2318_v5  ;;  %v3119_v20 = vpop.f32.mrb[39].mxu0 }
 0x69b   : > { %v1545_v33 = vpop.permute.xlu1 %1544 }
 0x69c   : > { %1550 = vst.msk [vmem:[#allocation3] sm:$0xff] %vm5069_vm5, %v1545_v33 }
 0x69d   : > { %v1547_v17 = vpop.permute.xlu0 %1546 }
 0x69e   : > { %1551 = vst.msk [vmem:[#allocation3 + $0x10] sm:$0xff] %vm5070_vm2, %v1547_v17 }
 0x69f   : > { %v2325_v29 = vld [vmem:[#allocation3 + $0x8] sm:$0xff] }
 0x6a0   : > { %v1675_v24 = vpop.permute.xlu1 %1674 }
 0x6a1   : > { %1680 = vst.msk [vmem:[#allocation3] sm:$0xff] %vm5071_vm7, %v1675_v24  ;;  %v2327_v28 = vld [vmem:[#allocation3 + $0x18] sm:$0xff] }
 0x6a2   : > { %v1677_v54 = vpop.permute.xlu0 %1676  ;;  %v2329_v45 = vpack.c.bf16 %v2327_v28, %v2325_v29 }
 0x6a3   : > { %1681 = vst.msk [vmem:[#allocation3 + $0x10] sm:$0xff] %vm5072_vm14, %v1677_v54 }
 0x6a4   : > { %2591 = vmatprep.mubr.msk.bf16.mxu1 %vm383_vm13, %v2329_v45  ;;  %vm5079_vm13 = vcmask 1048448  }
 0x6a5   : > { %vm5080_vm11 = vmmov %vm5079_vm13 }
 0x6c1   : > { %v1805_v58 = vpop.permute.xlu1 %1804 }
 0x6c2   : > { %1810 = vst.msk [vmem:[#allocation3] sm:$0xff] %vm5073_vm8, %v1805_v58 }
 0x6c3   : > { %v1807_v61 = vpop.permute.xlu0 %1806 }
 0x6c4   : > { %1811 = vst.msk [vmem:[#allocation3 + $0x10] sm:$0xff] %vm5074_vm9, %v1807_v61 }
 0x6c6   : > { %v1935_v11 = vpop.permute.xlu1 %1934 }
 0x6c7   : > { %1940 = vst.msk [vmem:[#allocation3] sm:$0xff] %vm5075_vm1, %v1935_v11 }
 0x6c8   : > { %v1937_v2 = vpop.permute.xlu0 %1936 }
 0x6c9   : > { %1941 = vst.msk [vmem:[#allocation3 + $0x10] sm:$0xff] %vm5076_vm0, %v1937_v2 }
 0x6e1   : > { %v2065_v15 = vpop.permute.xlu1 %2064 }
 0x6e2   : > { %2070 = vst.msk [vmem:[#allocation3] sm:$0xff] %vm5077_vm4, %v2065_v15 }
 0x6e3   : > { %v2067_v49 = vpop.permute.xlu0 %2066 }
 0x6e4   : > { %2071 = vst.msk [vmem:[#allocation3 + $0x10] sm:$0xff] %vm5078_vm12, %v2067_v49 }
 0x6e9   : > { %v2195_v0 = vpop.permute.xlu1 %2194 }
 0x6ea   : > { %2200 = vst.msk [vmem:[#allocation3] sm:$0xff] %vm5079_vm13, %v2195_v0 }
 0x6eb   : > { %v2197_v6 = vpop.permute.xlu0 %2196 }
 0x6ec   : > { %2201 = vst.msk [vmem:[#allocation3 + $0x10] sm:$0xff] %vm5080_vm11, %v2197_v6 }
 0x6f1   : > { %v2324_v26 = vld [vmem:[#allocation3] sm:$0xff] }
 0x6f3   : > { %v2326_v60 = vld [vmem:[#allocation3 + $0x10] sm:$0xff] }
 0x6f4   : > { %v2328_v63 = vpack.c.bf16 %v2326_v60, %v2324_v26 }
 0x6f6   : > { %2445 = vmatmul.mubr.bf16.vlgmr.msra.gmra.mrb[36].mxu1 %v2328_v63 }
 0x7c9   : > { %v2446_v48 = vpop.f32.mrb[36].mxu1 }
 0x7ca   : > { %v2447_v36 = vadd.f32 %v2581_v41, %v2446_v48  ;;  %v2448_v7 = vpop.f32.mrb[37].mxu1 }
 0x7cb   : > { %v2449_v23 = vpop.f32.mrb[38].mxu1 }
 0x7cc   : > { %2453 = vst [vmem:[%s288_s23] sm:$0xff] %v2447_v36  ;;  %v2450_v39 = vadd.f32 %v2581_v41, %v2449_v23  ;;  %v2451_v34 = vpop.f32.mrb[39].mxu1 }
 0x7ce   : > { %2454 = vst [vmem:[%s288_s23 + $0x8] sm:$0xff] %v2450_v39 }
 0x7cf   : > { %3302 = shalt.err (!%p3299_p3)
}
 0x7d0   : > { %s3303_s19 = scalar_lea.hbm %s4873_s9, 256  ;;  %s3307_s8 = scalar_lea.hbm %s4923_s7, 2048 }
 0x7d1   : > { %p3304_p4 = scmp.ne.s32.totalorder %s4873_s9, %s3303_s19  ;;  %p3308_p9 = scmp.lt.u32.totalorder %s4873_s9, %s4923_s7 }
 0x7d2   : > { %p3309_p10 = scmp.lt.u32.totalorder %s3307_s8, %s3303_s19  ;;  %p3311_p12 = scmp.lt.u32.totalorder %s3303_s19, %s4873_s9 }
 0x7d3   : > { %p3305_p7 = pnand %p3304_p4, %p3455_p5 }
 0x7d4   : > { %p3310_p11 = por %p3309_p10, %p3308_p9 }
 0x7d5   : > { %p3306_p8 = pneg %p3305_p7 }
 0x7d6   : > { %p3312_p13 = por %p3311_p12, %p3310_p11 }
 0x7d8   : > { %p3313_p0 = pnand %p3312_p13, %p3306_p8 }
 0x7da   : > { %3316 = shalt.err (!%p3313_p0)
}
 0x7db   : > { %s3375_s22 = smov 128   ;;  %s3376_s18 = smov 8  }
 0x7dc   : > { %3124 = dma.vmem_to_hbm [thread:$0]  (%p3455_p5), %s4868_s17, 256, %s4873_s9, %s4875_s20, %s3375_s22, %s3375_s22, %s3376_s18  }
 0x7dd PF: > { %p3130_p1 = scmp.ge.s32.totalorder %s3351_s27, 2  ;;  %s2484_s28 = sand.u32 1, %s3339_s24  }
 0x7de   : > { %s2485_s14 = scalar_lea.sflag [#allocation5], %s2484_s28 }
 0x7df   : > { %p3127_p2 = pnand %p3130_p1, %p3459_p6 }
 0x7e1   : > { %3334 = dma.done.wait (!%p3127_p2), %s2485_s14, 256  }
 0x7e2   : > { %3336 = vsyncadd (!%p3127_p2), %s2485_s14, 4294967040  ;;  %p17_p3 = scmp.ge.s32.totalorder %s3442_s30, 10   ;;  %s5081_s24 = smov %s3343_s25 }
 0x7e3   : > { %s5082_s25 = smov %s3347_s26  ;;  %s5083_s26 = smov %s3453_s10 }
 0x7e4   : > { %s5084_s27 = smov %s3442_s30  ;;  %19 = sbr.rel (!%p17_p3) target bundleno = 3 (0x3), region = 86 }
 0x7eb   :  { %2490 = vsyncpa [#allocation5], 1 }
 0x7ec   :  { %2492 = vsyncpa [#allocation5 + $0x1], 1 }

</bundles_post_ra>
